<compile_context>
chip_gen: v7x
topology: tpu7x:2x2x1
jax: 0.10.0
libtpu: 0.0.40
codegen_flags: <defaults>
</compile_context>

<pallas_src>
import functools

import jax
import jax.numpy as jnp
from jax.experimental import pallas as pl
from jax.experimental.pallas import tpu as pltpu

K = 5             # Conv1d kernel_size
PAD = K // 2      # padding=2
NEG_SLOPE = 0.01  # F.leaky_relu default slope
E = 1e-4          # BatchNorm eps from the reference module


# --------------------------------------------------------------------- conv + BN + lrelu
def _conv_bn_lrelu_kernel(x_ref, w_ref, scale_ref, shift_ref, o_ref, xpad_ref):
    # x_ref:     (B, C_in, L)
    # w_ref:     (C_out, K*C_in)      im2col-flattened Conv1d weight (tap-major columns)
    # scale_ref: (C_out, 1)           folded BN scale = gamma / sqrt(var + eps)
    # shift_ref: (C_out, 1)           folded BN shift = beta - mean * scale
    # o_ref:     (B, C_out, L)
    # xpad_ref:  (B, C_in, L + 2*PAD) VMEM scratch: zero-padded copy of x
    B, C_in, L = x_ref.shape
    xpad_ref[...] = jnp.zeros_like(xpad_ref)
    xpad_ref[:, :, PAD:PAD + L] = x_ref[...]
    w = w_ref[...]
    scale = scale_ref[...]
    shift = shift_ref[...]
    for b in range(B):  # B is small & static: one im2col matmul per batch row
        xcol = jnp.concatenate([xpad_ref[b, :, k:k + L] for k in range(K)], axis=0)
        y = jnp.dot(w, xcol, preferred_element_type=jnp.float32)       # (C_out, L)
        y = y * scale + shift                                          # BatchNorm (eval)
        o_ref[b] = jnp.where(y >= 0.0, y, NEG_SLOPE * y)               # leaky_relu


def conv_bn_lrelu(x, w, scale, shift):
    # x: (B, C_in, L);  w: (C_out, C_in, K)  [PyTorch Conv1d weight layout]
    B, C_in, L = x.shape
    C_out = w.shape[0]
    # columns ordered k-major to match the in-kernel im2col row order (k*C_in + c)
    w2 = jnp.transpose(w, (0, 2, 1)).reshape(C_out, K * C_in)
    return pl.pallas_call(
        _conv_bn_lrelu_kernel,
        out_shape=jax.ShapeDtypeStruct((B, C_out, L), jnp.float32),
        scratch_shapes=[pltpu.VMEM((B, C_in, L + 2 * PAD), jnp.float32)],
    )(x, w2, scale.reshape(C_out, 1), shift.reshape(C_out, 1))


# ------------------------------------------------------------------- bidirectional LSTM
# Gate lane layout inside the kernels (each block is H lanes wide, 8H total):
#   [ i_fwd | i_bwd | f_fwd | f_bwd | g_fwd | g_bwd | o_fwd | o_bwd ]
# so the hidden/cell state stays packed as (B, 2H) = [fwd | bwd] and each gate is one
# aligned (B, 2H) slice.  The bwd lanes of the precomputed input projection are already
# time-reversed, so step s consumes x[s] (fwd) and x[T-1-s] (bwd) with one dense load.

def _bilstm_cell(g, c, H2):
    i_g = jax.nn.sigmoid(g[:, 0:H2])
    f_g = jax.nn.sigmoid(g[:, H2:2 * H2])
    c_g = jnp.tanh(g[:, 2 * H2:3 * H2])
    o_g = jax.nn.sigmoid(g[:, 3 * H2:4 * H2])
    c_new = f_g * c + i_g * c_g
    h_new = o_g * jnp.tanh(c_new)
    return h_new, c_new


def _bilstm_seq_kernel(gx_ref, whh_ref, o_ref):
    # gx_ref:  (T, B, 8H)  precomputed x @ W_ih + b for both directions (bwd time-reversed)
    # whh_ref: (2H, 8H)    block-diagonal recurrent weight (fwd rows 0:H, bwd rows H:2H)
    # o_ref:   (T, B, 2H)  layer output, PyTorch order: [:, :, :H]=fwd, [:, :, H:]=bwd
    T, B, _ = gx_ref.shape
    H2 = whh_ref.shape[0]
    H = H2 // 2
    whh = whh_ref[...]                              # hoisted, loop-invariant load
    h = jnp.zeros((B, H2), jnp.float32)
    c = jnp.zeros((B, H2), jnp.float32)
    for s in range(T):                              # fully unrolled, static indices
        g = jnp.dot(h, whh, preferred_element_type=jnp.float32) + gx_ref[s]
        h, c = _bilstm_cell(g, c, H2)
        o_ref[s, :, :H] = h[:, :H]                  # fwd hidden state at time s
        o_ref[T - 1 - s, :, H:] = h[:, H:]          # bwd hidden state at time T-1-s


def _bilstm_head_kernel(gx_ref, whh_ref, wlin_ref, blin_ref, o_ref):
    # Last LSTM layer fused with the mean-over-time pool + Linear head.
    # wlin_ref: (2H, O) = linear.weight.T ; blin_ref: (1, O) ; o_ref: (B, O)
    T, B, _ = gx_ref.shape
    H2 = whh_ref.shape[0]
    whh = whh_ref[...]
    h = jnp.zeros((B, H2), jnp.float32)
    c = jnp.zeros((B, H2), jnp.float32)
    acc = jnp.zeros((B, H2), jnp.float32)
    for s in range(T):
        g = jnp.dot(h, whh, preferred_element_type=jnp.float32) + gx_ref[s]
        h, c = _bilstm_cell(g, c, H2)
        acc = acc + h                               # sum over steps == sum over time
    m = acc * (1.0 / T)                             # avg_pool1d over the full sequence
    o_ref[...] = (jnp.dot(m, wlin_ref[...], preferred_element_type=jnp.float32)
                  + blin_ref[...])


def _gate_precompute(x_tm, p_fwd, p_bwd, H):
    # Hoisted input projection for both directions: one big XLA matmul each, interleaved
    # into the kernel gate layout.  The bwd projection is computed on the time-reversed
    # input so the recurrence reads a single dense (B, 8H) row per step.
    T, B, _ = x_tm.shape
    bf = (p_fwd["b_ih"] + p_fwd["b_hh"]).reshape(1, 1, 4 * H)
    bb = (p_bwd["b_ih"] + p_bwd["b_hh"]).reshape(1, 1, 4 * H)
    gf = jnp.einsum("tbf,gf->tbg", x_tm, p_fwd["w_ih"]) + bf
    gb = jnp.einsum("tbf,gf->tbg", x_tm[::-1], p_bwd["w_ih"]) + bb
    g = jnp.stack([gf.reshape(T, B, 4, H), gb.reshape(T, B, 4, H)], axis=3)
    return g.reshape(T, B, 8 * H)


def _build_whh(whh_f, whh_b):
    # PyTorch weight_hh (4H, H) per direction -> packed block-diagonal (2H, 8H) matrix in
    # the interleaved gate layout, so one h_packed @ whh covers both directions per step.
    H = whh_f.shape[1]
    z = jnp.zeros((H, H), jnp.float32)
    wf, wb = whh_f.T, whh_b.T                       # (H, 4H), columns in [i, f, g, o] order
    cols = []
    for q in range(4):
        cols.append(jnp.concatenate([wf[:, q * H:(q + 1) * H], z], axis=0))
        cols.append(jnp.concatenate([z, wb[:, q * H:(q + 1) * H]], axis=0))
    return jnp.concatenate(cols, axis=1)            # (2H, 8H)


def bilstm_seq(x_tm, lp, H):
    T, B, _ = x_tm.shape
    gx = _gate_precompute(x_tm, lp["fwd"], lp["bwd"], H)
    whh = _build_whh(lp["fwd"]["w_hh"], lp["bwd"]["w_hh"])
    return pl.pallas_call(
        _bilstm_seq_kernel,
        out_shape=jax.ShapeDtypeStruct((T, B, 2 * H), jnp.float32),
    )(gx, whh)


def bilstm_head(x_tm, lp, H, lin_w, lin_b):
    T, B, _ = x_tm.shape
    O = lin_b.shape[0]
    gx = _gate_precompute(x_tm, lp["fwd"], lp["bwd"], H)
    whh = _build_whh(lp["fwd"]["w_hh"], lp["bwd"]["w_hh"])
    return pl.pallas_call(
        _bilstm_head_kernel,
        out_shape=jax.ShapeDtypeStruct((B, O), jnp.float32),
    )(gx, whh, lin_w.T, lin_b.reshape(1, O))


# ------------------------------------------------------------------------- model glue
def init_params(key, input_shape, output_size, depth, conv_channels):
    c_in, length = input_shape
    last_size = length // 2 ** (depth - 1)
    keys = iter(jax.random.split(key, 64))

    def nrm(shape, s=0.1):
        return s * jax.random.normal(next(keys), shape, jnp.float32)

    params = {"conv": [], "lstm": []}
    in_ch = c_in
    for _ in range(depth):
        params["conv"].append({
            "w": nrm((conv_channels, in_ch, K)),
            "gamma": 1.0 + nrm((conv_channels,)),
            "beta": nrm((conv_channels,)),
            "rmean": nrm((conv_channels,)),
            "rvar": 1.0 + jnp.abs(nrm((conv_channels,))),
        })
        in_ch = conv_channels

    H = conv_channels
    in_f = last_size
    for _ in range(2):  # num_layers=2, bidirectional
        layer_p = {}
        for direction in ("fwd", "bwd"):
            layer_p[direction] = {
                "w_ih": nrm((4 * H, in_f)),
                "w_hh": nrm((4 * H, H)),
                "b_ih": nrm((4 * H,)),
                "b_hh": nrm((4 * H,)),
            }
        params["lstm"].append(layer_p)
        in_f = 2 * H

    params["linear_w"] = nrm((output_size, 2 * H))
    params["linear_b"] = nrm((output_size,))
    return params


def forward(params, x, *, depth):
    h = x
    for d in range(depth):
        blk = params["conv"][d]
        if d > 0:
            # F.max_pool1d(kernel_size=2, padding=0) on the previous block output
            # (kept as tiny XLA glue: reshape+max on a few-KB tensor).
            B, C, L = h.shape
            h = h.reshape(B, C, L // 2, 2).max(axis=-1)
        scale = blk["gamma"] / jnp.sqrt(blk["rvar"] + E)
        shift = blk["beta"] - blk["rmean"] * scale
        h = conv_bn_lrelu(h, blk["w"], scale, shift)

    # nn.LSTM(batch_first=True) sees (B, seq=conv_channels, feature=last_size).
    x_tm = jnp.transpose(h, (1, 0, 2))                               # time-major (T, B, F)
    H = params["lstm"][0]["fwd"]["w_hh"].shape[1]
    y = bilstm_seq(x_tm, params["lstm"][0], H)                       # layer 1 -> (T, B, 2H)
    # LSTM inter-layer dropout (p=0.15) and nn.Dropout(0.25) are identity in eval mode.
    out = bilstm_head(y, params["lstm"][1], H,
                      params["linear_w"], params["linear_b"])        # layer 2 + pool + linear
    return out


if __name__ == "__main__":
    key = jax.random.PRNGKey(0)
    k_x, k_p = jax.random.split(key)

    batch = 2
    input_shape = (4, 128)   # (channels, length)
    output_size = 10
    depth = 3
    conv_channels = 32       # last_size = 128 // 2**(3-1) = 32 = LSTM input_size

    x = jax.random.normal(k_x, (batch,) + input_shape, jnp.float32)
    params = init_params(k_p, input_shape, output_size, depth, conv_channels)

    fn = jax.jit(functools.partial(forward, depth=depth))
    out = fn(params, x)
    jax.block_until_ready(out)
    assert out.shape == (batch, output_size) and out.dtype == jnp.float32
    print("KERNEL_OK")
</pallas_src>

<mosaic_0001>
module attributes {stable_mosaic.version = 11 : i64} {
  func.func @_conv_bn_lrelu_kernel(%arg0: memref<2x4x128xf32, #tpu.memory_space<vmem>>, %arg1: memref<32x20xf32, #tpu.memory_space<vmem>>, %arg2: memref<32x1xf32, #tpu.memory_space<vmem>>, %arg3: memref<32x1xf32, #tpu.memory_space<vmem>>, %arg4: memref<2x32x128xf32, #tpu.memory_space<vmem>>, %arg5: memref<2x4x132xf32, #tpu.memory_space<vmem>>) attributes {dimension_semantics = [], scalar_prefetch = 0 : i64, scratch_operands = 1 : i64, tpu.core_type = #tpu.core_type<tc>} {
    %cst = arith.constant 0.000000e+00 : f32
    %0 = vector.broadcast %cst : f32 to vector<2x4x132xf32>
    %c0 = arith.constant 0 : index
    %c0_0 = arith.constant 0 : index
    %c0_1 = arith.constant 0 : index
    %1 = vector.load %arg5[%c0, %c0_0, %c0_1] : memref<2x4x132xf32, #tpu.memory_space<vmem>>, vector<2x4x132xf32>
    tpu.vector_store %arg5[%c0, %c0_0, %c0_1], %0 {strides = array<i32>} : memref<2x4x132xf32, #tpu.memory_space<vmem>>, vector<2x4x132xf32>,
    %c0_2 = arith.constant 0 : index
    %c0_3 = arith.constant 0 : index
    %c0_4 = arith.constant 0 : index
    %2 = vector.load %arg0[%c0_2, %c0_3, %c0_4] : memref<2x4x128xf32, #tpu.memory_space<vmem>>, vector<2x4x128xf32>
    %c0_5 = arith.constant 0 : index
    %c0_6 = arith.constant 0 : index
    %c2 = arith.constant 2 : index
    %3 = vector.load %arg5[%c0_5, %c0_6, %c2] : memref<2x4x132xf32, #tpu.memory_space<vmem>>, vector<2x4x128xf32>
    tpu.vector_store %arg5[%c0_5, %c0_6, %c2], %2 {strides = array<i32>} : memref<2x4x132xf32, #tpu.memory_space<vmem>>, vector<2x4x128xf32>,
    %c0_7 = arith.constant 0 : index
    %c0_8 = arith.constant 0 : index
    %4 = vector.load %arg1[%c0_7, %c0_8] : memref<32x20xf32, #tpu.memory_space<vmem>>, vector<32x20xf32>
    %c0_9 = arith.constant 0 : index
    %c0_10 = arith.constant 0 : index
    %5 = vector.load %arg2[%c0_9, %c0_10] : memref<32x1xf32, #tpu.memory_space<vmem>>, vector<32x1xf32>
    %c0_11 = arith.constant 0 : index
    %c0_12 = arith.constant 0 : index
    %6 = vector.load %arg3[%c0_11, %c0_12] : memref<32x1xf32, #tpu.memory_space<vmem>>, vector<32x1xf32>
    %c0_13 = arith.constant 0 : index
    %c0_14 = arith.constant 0 : index
    %c0_15 = arith.constant 0 : index
    %7 = vector.load %arg5[%c0_13, %c0_14, %c0_15] : memref<2x4x132xf32, #tpu.memory_space<vmem>>, vector<1x4x128xf32>
    %8 = vector.shape_cast %7 : vector<1x4x128xf32> to vector<4x128xf32>
    %c0_16 = arith.constant 0 : index
    %c0_17 = arith.constant 0 : index
    %c1 = arith.constant 1 : index
    %9 = vector.load %arg5[%c0_16, %c0_17, %c1] : memref<2x4x132xf32, #tpu.memory_space<vmem>>, vector<1x4x128xf32>
    %10 = vector.shape_cast %9 : vector<1x4x128xf32> to vector<4x128xf32>
    %c0_18 = arith.constant 0 : index
    %c0_19 = arith.constant 0 : index
    %c2_20 = arith.constant 2 : index
    %11 = vector.load %arg5[%c0_18, %c0_19, %c2_20] : memref<2x4x132xf32, #tpu.memory_space<vmem>>, vector<1x4x128xf32>
    %12 = vector.shape_cast %11 : vector<1x4x128xf32> to vector<4x128xf32>
    %c0_21 = arith.constant 0 : index
    %c0_22 = arith.constant 0 : index
    %c3 = arith.constant 3 : index
    %13 = vector.load %arg5[%c0_21, %c0_22, %c3] : memref<2x4x132xf32, #tpu.memory_space<vmem>>, vector<1x4x128xf32>
    %14 = vector.shape_cast %13 : vector<1x4x128xf32> to vector<4x128xf32>
    %c0_23 = arith.constant 0 : index
    %c0_24 = arith.constant 0 : index
    %c4 = arith.constant 4 : index
    %15 = vector.load %arg5[%c0_23, %c0_24, %c4] : memref<2x4x132xf32, #tpu.memory_space<vmem>>, vector<1x4x128xf32>
    %16 = vector.shape_cast %15 : vector<1x4x128xf32> to vector<4x128xf32>
    %17 = tpu.concatenate %8, %10, %12, %14, %16 in 0 : vector<4x128xf32>, vector<4x128xf32>, vector<4x128xf32>, vector<4x128xf32>, vector<4x128xf32> -> vector<20x128xf32>
    %cst_25 = arith.constant dense<0.000000e+00> : vector<32x128xf32>
    %18 = tpu.matmul %4, %17, %cst_25 {dimension_numbers = #tpu.dot_dimension_numbers<[1], [0], [0], [1], [0, 0, 1, 1], [], []>} : vector<32x20xf32>, vector<20x128xf32>, vector<32x128xf32> -> vector<32x128xf32>
    %19 = vector.broadcast %5 : vector<32x1xf32> to vector<32x128xf32>
    %20 = arith.mulf %18, %19 : vector<32x128xf32>
    %21 = vector.broadcast %6 : vector<32x1xf32> to vector<32x128xf32>
    %22 = arith.addf %20, %21 : vector<32x128xf32>
    %cst_26 = arith.constant 0.000000e+00 : f32
    %23 = vector.broadcast %cst_26 : f32 to vector<32x128xf32>
    %24 = arith.cmpf oge, %22, %23 : vector<32x128xf32>
    %cst_27 = arith.constant 0.00999999977 : f32
    %25 = vector.broadcast %cst_27 : f32 to vector<32x128xf32>
    %26 = arith.mulf %25, %22 : vector<32x128xf32>
    %27 = arith.select %24, %22, %26 : vector<32x128xi1>, vector<32x128xf32>
    %c0_28 = arith.constant 0 : index
    %c0_29 = arith.constant 0 : index
    %c0_30 = arith.constant 0 : index
    %28 = vector.load %arg4[%c0_28, %c0_29, %c0_30] : memref<2x32x128xf32, #tpu.memory_space<vmem>>, vector<1x32x128xf32>
    %29 = vector.shape_cast %28 : vector<1x32x128xf32> to vector<32x128xf32>
    %30 = vector.shape_cast %27 : vector<32x128xf32> to vector<1x32x128xf32>
    tpu.vector_store %arg4[%c0_28, %c0_29, %c0_30], %30 {strides = array<i32>} : memref<2x32x128xf32, #tpu.memory_space<vmem>>, vector<1x32x128xf32>,
    %c1_31 = arith.constant 1 : index
    %c0_32 = arith.constant 0 : index
    %c0_33 = arith.constant 0 : index
    %31 = vector.load %arg5[%c1_31, %c0_32, %c0_33] : memref<2x4x132xf32, #tpu.memory_space<vmem>>, vector<1x4x128xf32>
    %32 = vector.shape_cast %31 : vector<1x4x128xf32> to vector<4x128xf32>
    %c1_34 = arith.constant 1 : index
    %c0_35 = arith.constant 0 : index
    %c1_36 = arith.constant 1 : index
    %33 = vector.load %arg5[%c1_34, %c0_35, %c1_36] : memref<2x4x132xf32, #tpu.memory_space<vmem>>, vector<1x4x128xf32>
    %34 = vector.shape_cast %33 : vector<1x4x128xf32> to vector<4x128xf32>
    %c1_37 = arith.constant 1 : index
    %c0_38 = arith.constant 0 : index
    %c2_39 = arith.constant 2 : index
    %35 = vector.load %arg5[%c1_37, %c0_38, %c2_39] : memref<2x4x132xf32, #tpu.memory_space<vmem>>, vector<1x4x128xf32>
    %36 = vector.shape_cast %35 : vector<1x4x128xf32> to vector<4x128xf32>
    %c1_40 = arith.constant 1 : index
    %c0_41 = arith.constant 0 : index
    %c3_42 = arith.constant 3 : index
    %37 = vector.load %arg5[%c1_40, %c0_41, %c3_42] : memref<2x4x132xf32, #tpu.memory_space<vmem>>, vector<1x4x128xf32>
    %38 = vector.shape_cast %37 : vector<1x4x128xf32> to vector<4x128xf32>
    %c1_43 = arith.constant 1 : index
    %c0_44 = arith.constant 0 : index
    %c4_45 = arith.constant 4 : index
    %39 = vector.load %arg5[%c1_43, %c0_44, %c4_45] : memref<2x4x132xf32, #tpu.memory_space<vmem>>, vector<1x4x128xf32>
    %40 = vector.shape_cast %39 : vector<1x4x128xf32> to vector<4x128xf32>
    %41 = tpu.concatenate %32, %34, %36, %38, %40 in 0 : vector<4x128xf32>, vector<4x128xf32>, vector<4x128xf32>, vector<4x128xf32>, vector<4x128xf32> -> vector<20x128xf32>
    %cst_46 = arith.constant dense<0.000000e+00> : vector<32x128xf32>
    %42 = tpu.matmul %4, %41, %cst_46 {dimension_numbers = #tpu.dot_dimension_numbers<[1], [0], [0], [1], [0, 0, 1, 1], [], []>} : vector<32x20xf32>, vector<20x128xf32>, vector<32x128xf32> -> vector<32x128xf32>
    %43 = vector.broadcast %5 : vector<32x1xf32> to vector<32x128xf32>
    %44 = arith.mulf %42, %43 : vector<32x128xf32>
    %45 = vector.broadcast %6 : vector<32x1xf32> to vector<32x128xf32>
    %46 = arith.addf %44, %45 : vector<32x128xf32>
    %cst_47 = arith.constant 0.000000e+00 : f32
    %47 = vector.broadcast %cst_47 : f32 to vector<32x128xf32>
    %48 = arith.cmpf oge, %46, %47 : vector<32x128xf32>
    %cst_48 = arith.constant 0.00999999977 : f32
    %49 = vector.broadcast %cst_48 : f32 to vector<32x128xf32>
    %50 = arith.mulf %49, %46 : vector<32x128xf32>
    %51 = arith.select %48, %46, %50 : vector<32x128xi1>, vector<32x128xf32>
    %c1_49 = arith.constant 1 : index
    %c0_50 = arith.constant 0 : index
    %c0_51 = arith.constant 0 : index
    %52 = vector.load %arg4[%c1_49, %c0_50, %c0_51] : memref<2x32x128xf32, #tpu.memory_space<vmem>>, vector<1x32x128xf32>
    %53 = vector.shape_cast %52 : vector<1x32x128xf32> to vector<32x128xf32>
    %54 = vector.shape_cast %51 : vector<32x128xf32> to vector<1x32x128xf32>
    tpu.vector_store %arg4[%c1_49, %c0_50, %c0_51], %54 {strides = array<i32>} : memref<2x32x128xf32, #tpu.memory_space<vmem>>, vector<1x32x128xf32>,
    return
  }
}

module attributes {stable_mosaic.version = 11 : i64} {
  func.func @_conv_bn_lrelu_kernel(%arg0: memref<2x32x64xf32, #tpu.memory_space<vmem>>, %arg1: memref<32x160xf32, #tpu.memory_space<vmem>>, %arg2: memref<32x1xf32, #tpu.memory_space<vmem>>, %arg3: memref<32x1xf32, #tpu.memory_space<vmem>>, %arg4: memref<2x32x64xf32, #tpu.memory_space<vmem>>, %arg5: memref<2x32x68xf32, #tpu.memory_space<vmem>>) attributes {dimension_semantics = [], scalar_prefetch = 0 : i64, scratch_operands = 1 : i64, tpu.core_type = #tpu.core_type<tc>} {
    %cst = arith.constant 0.000000e+00 : f32
    %0 = vector.broadcast %cst : f32 to vector<2x32x68xf32>
    %c0 = arith.constant 0 : index
    %c0_0 = arith.constant 0 : index
    %c0_1 = arith.constant 0 : index
    %1 = vector.load %arg5[%c0, %c0_0, %c0_1] : memref<2x32x68xf32, #tpu.memory_space<vmem>>, vector<2x32x68xf32>
    tpu.vector_store %arg5[%c0, %c0_0, %c0_1], %0 {strides = array<i32>} : memref<2x32x68xf32, #tpu.memory_space<vmem>>, vector<2x32x68xf32>,
    %c0_2 = arith.constant 0 : index
    %c0_3 = arith.constant 0 : index
    %c0_4 = arith.constant 0 : index
    %2 = vector.load %arg0[%c0_2, %c0_3, %c0_4] : memref<2x32x64xf32, #tpu.memory_space<vmem>>, vector<2x32x64xf32>
    %c0_5 = arith.constant 0 : index
    %c0_6 = arith.constant 0 : index
    %c2 = arith.constant 2 : index
    %3 = vector.load %arg5[%c0_5, %c0_6, %c2] : memref<2x32x68xf32, #tpu.memory_space<vmem>>, vector<2x32x64xf32>
    tpu.vector_store %arg5[%c0_5, %c0_6, %c2], %2 {strides = array<i32>} : memref<2x32x68xf32, #tpu.memory_space<vmem>>, vector<2x32x64xf32>,
    %c0_7 = arith.constant 0 : index
    %c0_8 = arith.constant 0 : index
    %4 = vector.load %arg1[%c0_7, %c0_8] : memref<32x160xf32, #tpu.memory_space<vmem>>, vector<32x160xf32>
    %c0_9 = arith.constant 0 : index
    %c0_10 = arith.constant 0 : index
    %5 = vector.load %arg2[%c0_9, %c0_10] : memref<32x1xf32, #tpu.memory_space<vmem>>, vector<32x1xf32>
    %c0_11 = arith.constant 0 : index
    %c0_12 = arith.constant 0 : index
    %6 = vector.load %arg3[%c0_11, %c0_12] : memref<32x1xf32, #tpu.memory_space<vmem>>, vector<32x1xf32>
    %c0_13 = arith.constant 0 : index
    %c0_14 = arith.constant 0 : index
    %c0_15 = arith.constant 0 : index
    %7 = vector.load %arg5[%c0_13, %c0_14, %c0_15] : memref<2x32x68xf32, #tpu.memory_space<vmem>>, vector<1x32x64xf32>
    %8 = vector.shape_cast %7 : vector<1x32x64xf32> to vector<32x64xf32>
    %c0_16 = arith.constant 0 : index
    %c0_17 = arith.constant 0 : index
    %c1 = arith.constant 1 : index
    %9 = vector.load %arg5[%c0_16, %c0_17, %c1] : memref<2x32x68xf32, #tpu.memory_space<vmem>>, vector<1x32x64xf32>
    %10 = vector.shape_cast %9 : vector<1x32x64xf32> to vector<32x64xf32>
    %c0_18 = arith.constant 0 : index
    %c0_19 = arith.constant 0 : index
    %c2_20 = arith.constant 2 : index
    %11 = vector.load %arg5[%c0_18, %c0_19, %c2_20] : memref<2x32x68xf32, #tpu.memory_space<vmem>>, vector<1x32x64xf32>
    %12 = vector.shape_cast %11 : vector<1x32x64xf32> to vector<32x64xf32>
    %c0_21 = arith.constant 0 : index
    %c0_22 = arith.constant 0 : index
    %c3 = arith.constant 3 : index
    %13 = vector.load %arg5[%c0_21, %c0_22, %c3] : memref<2x32x68xf32, #tpu.memory_space<vmem>>, vector<1x32x64xf32>
    %14 = vector.shape_cast %13 : vector<1x32x64xf32> to vector<32x64xf32>
    %c0_23 = arith.constant 0 : index
    %c0_24 = arith.constant 0 : index
    %c4 = arith.constant 4 : index
    %15 = vector.load %arg5[%c0_23, %c0_24, %c4] : memref<2x32x68xf32, #tpu.memory_space<vmem>>, vector<1x32x64xf32>
    %16 = vector.shape_cast %15 : vector<1x32x64xf32> to vector<32x64xf32>
    %17 = tpu.concatenate %8, %10, %12, %14, %16 in 0 : vector<32x64xf32>, vector<32x64xf32>, vector<32x64xf32>, vector<32x64xf32>, vector<32x64xf32> -> vector<160x64xf32>
    %cst_25 = arith.constant dense<0.000000e+00> : vector<32x64xf32>
    %18 = tpu.matmul %4, %17, %cst_25 {dimension_numbers = #tpu.dot_dimension_numbers<[1], [0], [0], [1], [0, 0, 1, 1], [], []>} : vector<32x160xf32>, vector<160x64xf32>, vector<32x64xf32> -> vector<32x64xf32>
    %19 = vector.broadcast %5 : vector<32x1xf32> to vector<32x64xf32>
    %20 = arith.mulf %18, %19 : vector<32x64xf32>
    %21 = vector.broadcast %6 : vector<32x1xf32> to vector<32x64xf32>
    %22 = arith.addf %20, %21 : vector<32x64xf32>
    %cst_26 = arith.constant 0.000000e+00 : f32
    %23 = vector.broadcast %cst_26 : f32 to vector<32x64xf32>
    %24 = arith.cmpf oge, %22, %23 : vector<32x64xf32>
    %cst_27 = arith.constant 0.00999999977 : f32
    %25 = vector.broadcast %cst_27 : f32 to vector<32x64xf32>
    %26 = arith.mulf %25, %22 : vector<32x64xf32>
    %27 = arith.select %24, %22, %26 : vector<32x64xi1>, vector<32x64xf32>
    %c0_28 = arith.constant 0 : index
    %c0_29 = arith.constant 0 : index
    %c0_30 = arith.constant 0 : index
    %28 = vector.load %arg4[%c0_28, %c0_29, %c0_30] : memref<2x32x64xf32, #tpu.memory_space<vmem>>, vector<1x32x64xf32>
    %29 = vector.shape_cast %28 : vector<1x32x64xf32> to vector<32x64xf32>
    %30 = vector.shape_cast %27 : vector<32x64xf32> to vector<1x32x64xf32>
    tpu.vector_store %arg4[%c0_28, %c0_29, %c0_30], %30 {strides = array<i32>} : memref<2x32x64xf32, #tpu.memory_space<vmem>>, vector<1x32x64xf32>,
    %c1_31 = arith.constant 1 : index
    %c0_32 = arith.constant 0 : index
    %c0_33 = arith.constant 0 : index
    %31 = vector.load %arg5[%c1_31, %c0_32, %c0_33] : memref<2x32x68xf32, #tpu.memory_space<vmem>>, vector<1x32x64xf32>
    %32 = vector.shape_cast %31 : vector<1x32x64xf32> to vector<32x64xf32>
    %c1_34 = arith.constant 1 : index
    %c0_35 = arith.constant 0 : index
    %c1_36 = arith.constant 1 : index
    %33 = vector.load %arg5[%c1_34, %c0_35, %c1_36] : memref<2x32x68xf32, #tpu.memory_space<vmem>>, vector<1x32x64xf32>
    %34 = vector.shape_cast %33 : vector<1x32x64xf32> to vector<32x64xf32>
    %c1_37 = arith.constant 1 : index
    %c0_38 = arith.constant 0 : index
    %c2_39 = arith.constant 2 : index
    %35 = vector.load %arg5[%c1_37, %c0_38, %c2_39] : memref<2x32x68xf32, #tpu.memory_space<vmem>>, vector<1x32x64xf32>
    %36 = vector.shape_cast %35 : vector<1x32x64xf32> to vector<32x64xf32>
    %c1_40 = arith.constant 1 : index
    %c0_41 = arith.constant 0 : index
    %c3_42 = arith.constant 3 : index
    %37 = vector.load %arg5[%c1_40, %c0_41, %c3_42] : memref<2x32x68xf32, #tpu.memory_space<vmem>>, vector<1x32x64xf32>
    %38 = vector.shape_cast %37 : vector<1x32x64xf32> to vector<32x64xf32>
    %c1_43 = arith.constant 1 : index
    %c0_44 = arith.constant 0 : index
    %c4_45 = arith.constant 4 : index
    %39 = vector.load %arg5[%c1_43, %c0_44, %c4_45] : memref<2x32x68xf32, #tpu.memory_space<vmem>>, vector<1x32x64xf32>
    %40 = vector.shape_cast %39 : vector<1x32x64xf32> to vector<32x64xf32>
    %41 = tpu.concatenate %32, %34, %36, %38, %40 in 0 : vector<32x64xf32>, vector<32x64xf32>, vector<32x64xf32>, vector<32x64xf32>, vector<32x64xf32> -> vector<160x64xf32>
    %cst_46 = arith.constant dense<0.000000e+00> : vector<32x64xf32>
    %42 = tpu.matmul %4, %41, %cst_46 {dimension_numbers = #tpu.dot_dimension_numbers<[1], [0], [0], [1], [0, 0, 1, 1], [], []>} : vector<32x160xf32>, vector<160x64xf32>, vector<32x64xf32> -> vector<32x64xf32>
    %43 = vector.broadcast %5 : vector<32x1xf32> to vector<32x64xf32>
    %44 = arith.mulf %42, %43 : vector<32x64xf32>
    %45 = vector.broadcast %6 : vector<32x1xf32> to vector<32x64xf32>
    %46 = arith.addf %44, %45 : vector<32x64xf32>
    %cst_47 = arith.constant 0.000000e+00 : f32
    %47 = vector.broadcast %cst_47 : f32 to vector<32x64xf32>
    %48 = arith.cmpf oge, %46, %47 : vector<32x64xf32>
    %cst_48 = arith.constant 0.00999999977 : f32
    %49 = vector.broadcast %cst_48 : f32 to vector<32x64xf32>
    %50 = arith.mulf %49, %46 : vector<32x64xf32>
    %51 = arith.select %48, %46, %50 : vector<32x64xi1>, vector<32x64xf32>
    %c1_49 = arith.constant 1 : index
    %c0_50 = arith.constant 0 : index
    %c0_51 = arith.constant 0 : index
    %52 = vector.load %arg4[%c1_49, %c0_50, %c0_51] : memref<2x32x64xf32, #tpu.memory_space<vmem>>, vector<1x32x64xf32>
    %53 = vector.shape_cast %52 : vector<1x32x64xf32> to vector<32x64xf32>
    %54 = vector.shape_cast %51 : vector<32x64xf32> to vector<1x32x64xf32>
    tpu.vector_store %arg4[%c1_49, %c0_50, %c0_51], %54 {strides = array<i32>} : memref<2x32x64xf32, #tpu.memory_space<vmem>>, vector<1x32x64xf32>,
    return
  }
}

module attributes {stable_mosaic.version = 11 : i64} {
  func.func @_conv_bn_lrelu_kernel(%arg0: memref<2x32x32xf32, #tpu.memory_space<vmem>>, %arg1: memref<32x160xf32, #tpu.memory_space<vmem>>, %arg2: memref<32x1xf32, #tpu.memory_space<vmem>>, %arg3: memref<32x1xf32, #tpu.memory_space<vmem>>, %arg4: memref<2x32x32xf32, #tpu.memory_space<vmem>>, %arg5: memref<2x32x36xf32, #tpu.memory_space<vmem>>) attributes {dimension_semantics = [], scalar_prefetch = 0 : i64, scratch_operands = 1 : i64, tpu.core_type = #tpu.core_type<tc>} {
    %cst = arith.constant 0.000000e+00 : f32
    %0 = vector.broadcast %cst : f32 to vector<2x32x36xf32>
    %c0 = arith.constant 0 : index
    %c0_0 = arith.constant 0 : index
    %c0_1 = arith.constant 0 : index
    %1 = vector.load %arg5[%c0, %c0_0, %c0_1] : memref<2x32x36xf32, #tpu.memory_space<vmem>>, vector<2x32x36xf32>
    tpu.vector_store %arg5[%c0, %c0_0, %c0_1], %0 {strides = array<i32>} : memref<2x32x36xf32, #tpu.memory_space<vmem>>, vector<2x32x36xf32>,
    %c0_2 = arith.constant 0 : index
    %c0_3 = arith.constant 0 : index
    %c0_4 = arith.constant 0 : index
    %2 = vector.load %arg0[%c0_2, %c0_3, %c0_4] : memref<2x32x32xf32, #tpu.memory_space<vmem>>, vector<2x32x32xf32>
    %c0_5 = arith.constant 0 : index
    %c0_6 = arith.constant 0 : index
    %c2 = arith.constant 2 : index
    %3 = vector.load %arg5[%c0_5, %c0_6, %c2] : memref<2x32x36xf32, #tpu.memory_space<vmem>>, vector<2x32x32xf32>
    tpu.vector_store %arg5[%c0_5, %c0_6, %c2], %2 {strides = array<i32>} : memref<2x32x36xf32, #tpu.memory_space<vmem>>, vector<2x32x32xf32>,
    %c0_7 = arith.constant 0 : index
    %c0_8 = arith.constant 0 : index
    %4 = vector.load %arg1[%c0_7, %c0_8] : memref<32x160xf32, #tpu.memory_space<vmem>>, vector<32x160xf32>
    %c0_9 = arith.constant 0 : index
    %c0_10 = arith.constant 0 : index
    %5 = vector.load %arg2[%c0_9, %c0_10] : memref<32x1xf32, #tpu.memory_space<vmem>>, vector<32x1xf32>
    %c0_11 = arith.constant 0 : index
    %c0_12 = arith.constant 0 : index
    %6 = vector.load %arg3[%c0_11, %c0_12] : memref<32x1xf32, #tpu.memory_space<vmem>>, vector<32x1xf32>
    %c0_13 = arith.constant 0 : index
    %c0_14 = arith.constant 0 : index
    %c0_15 = arith.constant 0 : index
    %7 = vector.load %arg5[%c0_13, %c0_14, %c0_15] : memref<2x32x36xf32, #tpu.memory_space<vmem>>, vector<1x32x32xf32>
    %8 = vector.shape_cast %7 : vector<1x32x32xf32> to vector<32x32xf32>
    %c0_16 = arith.constant 0 : index
    %c0_17 = arith.constant 0 : index
    %c1 = arith.constant 1 : index
    %9 = vector.load %arg5[%c0_16, %c0_17, %c1] : memref<2x32x36xf32, #tpu.memory_space<vmem>>, vector<1x32x32xf32>
    %10 = vector.shape_cast %9 : vector<1x32x32xf32> to vector<32x32xf32>
    %c0_18 = arith.constant 0 : index
    %c0_19 = arith.constant 0 : index
    %c2_20 = arith.constant 2 : index
    %11 = vector.load %arg5[%c0_18, %c0_19, %c2_20] : memref<2x32x36xf32, #tpu.memory_space<vmem>>, vector<1x32x32xf32>
    %12 = vector.shape_cast %11 : vector<1x32x32xf32> to vector<32x32xf32>
    %c0_21 = arith.constant 0 : index
    %c0_22 = arith.constant 0 : index
    %c3 = arith.constant 3 : index
    %13 = vector.load %arg5[%c0_21, %c0_22, %c3] : memref<2x32x36xf32, #tpu.memory_space<vmem>>, vector<1x32x32xf32>
    %14 = vector.shape_cast %13 : vector<1x32x32xf32> to vector<32x32xf32>
    %c0_23 = arith.constant 0 : index
    %c0_24 = arith.constant 0 : index
    %c4 = arith.constant 4 : index
    %15 = vector.load %arg5[%c0_23, %c0_24, %c4] : memref<2x32x36xf32, #tpu.memory_space<vmem>>, vector<1x32x32xf32>
    %16 = vector.shape_cast %15 : vector<1x32x32xf32> to vector<32x32xf32>
    %17 = tpu.concatenate %8, %10, %12, %14, %16 in 0 : vector<32x32xf32>, vector<32x32xf32>, vector<32x32xf32>, vector<32x32xf32>, vector<32x32xf32> -> vector<160x32xf32>
    %cst_25 = arith.constant dense<0.000000e+00> : vector<32x32xf32>
    %18 = tpu.matmul %4, %17, %cst_25 {dimension_numbers = #tpu.dot_dimension_numbers<[1], [0], [0], [1], [0, 0, 1, 1], [], []>} : vector<32x160xf32>, vector<160x32xf32>, vector<32x32xf32> -> vector<32x32xf32>
    %19 = vector.broadcast %5 : vector<32x1xf32> to vector<32x32xf32>
    %20 = arith.mulf %18, %19 : vector<32x32xf32>
    %21 = vector.broadcast %6 : vector<32x1xf32> to vector<32x32xf32>
    %22 = arith.addf %20, %21 : vector<32x32xf32>
    %cst_26 = arith.constant 0.000000e+00 : f32
    %23 = vector.broadcast %cst_26 : f32 to vector<32x32xf32>
    %24 = arith.cmpf oge, %22, %23 : vector<32x32xf32>
    %cst_27 = arith.constant 0.00999999977 : f32
    %25 = vector.broadcast %cst_27 : f32 to vector<32x32xf32>
    %26 = arith.mulf %25, %22 : vector<32x32xf32>
    %27 = arith.select %24, %22, %26 : vector<32x32xi1>, vector<32x32xf32>
    %c0_28 = arith.constant 0 : index
    %c0_29 = arith.constant 0 : index
    %c0_30 = arith.constant 0 : index
    %28 = vector.load %arg4[%c0_28, %c0_29, %c0_30] : memref<2x32x32xf32, #tpu.memory_space<vmem>>, vector<1x32x32xf32>
    %29 = vector.shape_cast %28 : vector<1x32x32xf32> to vector<32x32xf32>
    %30 = vector.shape_cast %27 : vector<32x32xf32> to vector<1x32x32xf32>
    tpu.vector_store %arg4[%c0_28, %c0_29, %c0_30], %30 {strides = array<i32>} : memref<2x32x32xf32, #tpu.memory_space<vmem>>, vector<1x32x32xf32>,
    %c1_31 = arith.constant 1 : index
    %c0_32 = arith.constant 0 : index
    %c0_33 = arith.constant 0 : index
    %31 = vector.load %arg5[%c1_31, %c0_32, %c0_33] : memref<2x32x36xf32, #tpu.memory_space<vmem>>, vector<1x32x32xf32>
    %32 = vector.shape_cast %31 : vector<1x32x32xf32> to vector<32x32xf32>
    %c1_34 = arith.constant 1 : index
    %c0_35 = arith.constant 0 : index
    %c1_36 = arith.constant 1 : index
    %33 = vector.load %arg5[%c1_34, %c0_35, %c1_36] : memref<2x32x36xf32, #tpu.memory_space<vmem>>, vector<1x32x32xf32>
    %34 = vector.shape_cast %33 : vector<1x32x32xf32> to vector<32x32xf32>
    %c1_37 = arith.constant 1 : index
    %c0_38 = arith.constant 0 : index
    %c2_39 = arith.constant 2 : index
    %35 = vector.load %arg5[%c1_37, %c0_38, %c2_39] : memref<2x32x36xf32, #tpu.memory_space<vmem>>, vector<1x32x32xf32>
    %36 = vector.shape_cast %35 : vector<1x32x32xf32> to vector<32x32xf32>
    %c1_40 = arith.constant 1 : index
    %c0_41 = arith.constant 0 : index
    %c3_42 = arith.constant 3 : index
    %37 = vector.load %arg5[%c1_40, %c0_41, %c3_42] : memref<2x32x36xf32, #tpu.memory_space<vmem>>, vector<1x32x32xf32>
    %38 = vector.shape_cast %37 : vector<1x32x32xf32> to vector<32x32xf32>
    %c1_43 = arith.constant 1 : index
    %c0_44 = arith.constant 0 : index
    %c4_45 = arith.constant 4 : index
    %39 = vector.load %arg5[%c1_43, %c0_44, %c4_45] : memref<2x32x36xf32, #tpu.memory_space<vmem>>, vector<1x32x32xf32>
    %40 = vector.shape_cast %39 : vector<1x32x32xf32> to vector<32x32xf32>
    %41 = tpu.concatenate %32, %34, %36, %38, %40 in 0 : vector<32x32xf32>, vector<32x32xf32>, vector<32x32xf32>, vector<32x32xf32>, vector<32x32xf32> -> vector<160x32xf32>
    %cst_46 = arith.constant dense<0.000000e+00> : vector<32x32xf32>
    %42 = tpu.matmul %4, %41, %cst_46 {dimension_numbers = #tpu.dot_dimension_numbers<[1], [0], [0], [1], [0, 0, 1, 1], [], []>} : vector<32x160xf32>, vector<160x32xf32>, vector<32x32xf32> -> vector<32x32xf32>
    %43 = vector.broadcast %5 : vector<32x1xf32> to vector<32x32xf32>
    %44 = arith.mulf %42, %43 : vector<32x32xf32>
    %45 = vector.broadcast %6 : vector<32x1xf32> to vector<32x32xf32>
    %46 = arith.addf %44, %45 : vector<32x32xf32>
    %cst_47 = arith.constant 0.000000e+00 : f32
    %47 = vector.broadcast %cst_47 : f32 to vector<32x32xf32>
    %48 = arith.cmpf oge, %46, %47 : vector<32x32xf32>
    %cst_48 = arith.constant 0.00999999977 : f32
    %49 = vector.broadcast %cst_48 : f32 to vector<32x32xf32>
    %50 = arith.mulf %49, %46 : vector<32x32xf32>
    %51 = arith.select %48, %46, %50 : vector<32x32xi1>, vector<32x32xf32>
    %c1_49 = arith.constant 1 : index
    %c0_50 = arith.constant 0 : index
    %c0_51 = arith.constant 0 : index
    %52 = vector.load %arg4[%c1_49, %c0_50, %c0_51] : memref<2x32x32xf32, #tpu.memory_space<vmem>>, vector<1x32x32xf32>
    %53 = vector.shape_cast %52 : vector<1x32x32xf32> to vector<32x32xf32>
    %54 = vector.shape_cast %51 : vector<32x32xf32> to vector<1x32x32xf32>
    tpu.vector_store %arg4[%c1_49, %c0_50, %c0_51], %54 {strides = array<i32>} : memref<2x32x32xf32, #tpu.memory_space<vmem>>, vector<1x32x32xf32>,
    return
  }
}

module attributes {stable_mosaic.version = 11 : i64} {
  func.func @_bilstm_seq_kernel(%arg0: memref<32x2x256xf32, #tpu.memory_space<vmem>>, %arg1: memref<64x256xf32, #tpu.memory_space<vmem>>, %arg2: memref<32x2x64xf32, #tpu.memory_space<vmem>>) attributes {dimension_semantics = [], scalar_prefetch = 0 : i64, scratch_operands = 0 : i64, tpu.core_type = #tpu.core_type<tc>} {
    %c0 = arith.constant 0 : index
    %c0_0 = arith.constant 0 : index
    %0 = vector.load %arg1[%c0, %c0_0] : memref<64x256xf32, #tpu.memory_space<vmem>>, vector<64x256xf32>
    %cst = arith.constant 0.000000e+00 : f32
    %1 = vector.broadcast %cst : f32 to vector<2x64xf32>
    %cst_1 = arith.constant 0.000000e+00 : f32
    %2 = vector.broadcast %cst_1 : f32 to vector<2x64xf32>
    %cst_2 = arith.constant dense<0.000000e+00> : vector<2x256xf32>
    %3 = tpu.matmul %1, %0, %cst_2 {dimension_numbers = #tpu.dot_dimension_numbers<[1], [0], [0], [1], [0, 0, 1, 1], [], []>} : vector<2x64xf32>, vector<64x256xf32>, vector<2x256xf32> -> vector<2x256xf32>
    %c0_3 = arith.constant 0 : index
    %c0_4 = arith.constant 0 : index
    %c0_5 = arith.constant 0 : index
    %4 = vector.load %arg0[%c0_3, %c0_4, %c0_5] : memref<32x2x256xf32, #tpu.memory_space<vmem>>, vector<1x2x256xf32>
    %5 = vector.shape_cast %4 : vector<1x2x256xf32> to vector<2x256xf32>
    %6 = arith.addf %3, %5 : vector<2x256xf32>
    %7 = vector.extract_strided_slice %6 {offsets = [0, 0], sizes = [2, 64], strides = [1, 1]} : vector<2x256xf32> to vector<2x64xf32>
    %8 = arith.negf %7 : vector<2x64xf32>
    %9 = math.exp %8 : vector<2x64xf32>
    %cst_6 = arith.constant 1.000000e+00 : f32
    %10 = vector.broadcast %cst_6 : f32 to vector<2x64xf32>
    %11 = arith.addf %10, %9 : vector<2x64xf32>
    %12 = arith.divf %10, %11 : vector<2x64xf32>
    %13 = vector.extract_strided_slice %6 {offsets = [0, 64], sizes = [2, 64], strides = [1, 1]} : vector<2x256xf32> to vector<2x64xf32>
    %14 = arith.negf %13 : vector<2x64xf32>
    %15 = math.exp %14 : vector<2x64xf32>
    %cst_7 = arith.constant 1.000000e+00 : f32
    %16 = vector.broadcast %cst_7 : f32 to vector<2x64xf32>
    %17 = arith.addf %16, %15 : vector<2x64xf32>
    %18 = arith.divf %16, %17 : vector<2x64xf32>
    %19 = vector.extract_strided_slice %6 {offsets = [0, 128], sizes = [2, 64], strides = [1, 1]} : vector<2x256xf32> to vector<2x64xf32>
    %20 = math.tanh %19 : vector<2x64xf32>
    %21 = vector.extract_strided_slice %6 {offsets = [0, 192], sizes = [2, 64], strides = [1, 1]} : vector<2x256xf32> to vector<2x64xf32>
    %22 = arith.negf %21 : vector<2x64xf32>
    %23 = math.exp %22 : vector<2x64xf32>
    %cst_8 = arith.constant 1.000000e+00 : f32
    %24 = vector.broadcast %cst_8 : f32 to vector<2x64xf32>
    %25 = arith.addf %24, %23 : vector<2x64xf32>
    %26 = arith.divf %24, %25 : vector<2x64xf32>
    %27 = arith.mulf %18, %2 : vector<2x64xf32>
    %28 = arith.mulf %12, %20 : vector<2x64xf32>
    %29 = arith.addf %27, %28 : vector<2x64xf32>
    %30 = math.tanh %29 : vector<2x64xf32>
    %31 = arith.mulf %26, %30 : vector<2x64xf32>
    %32 = vector.extract_strided_slice %31 {offsets = [0, 0], sizes = [2, 32], strides = [1, 1]} : vector<2x64xf32> to vector<2x32xf32>
    %c0_9 = arith.constant 0 : index
    %c0_10 = arith.constant 0 : index
    %c0_11 = arith.constant 0 : index
    %33 = vector.load %arg2[%c0_9, %c0_10, %c0_11] : memref<32x2x64xf32, #tpu.memory_space<vmem>>, vector<1x2x32xf32>
    %34 = vector.shape_cast %33 : vector<1x2x32xf32> to vector<2x32xf32>
    %35 = vector.shape_cast %32 : vector<2x32xf32> to vector<1x2x32xf32>
    tpu.vector_store %arg2[%c0_9, %c0_10, %c0_11], %35 {strides = array<i32>} : memref<32x2x64xf32, #tpu.memory_space<vmem>>, vector<1x2x32xf32>,
    %36 = vector.extract_strided_slice %31 {offsets = [0, 32], sizes = [2, 32], strides = [1, 1]} : vector<2x64xf32> to vector<2x32xf32>
    %c31 = arith.constant 31 : index
    %c0_12 = arith.constant 0 : index
    %c32 = arith.constant 32 : index
    %37 = vector.load %arg2[%c31, %c0_12, %c32] : memref<32x2x64xf32, #tpu.memory_space<vmem>>, vector<1x2x32xf32>
    %38 = vector.shape_cast %37 : vector<1x2x32xf32> to vector<2x32xf32>
    %39 = vector.shape_cast %36 : vector<2x32xf32> to vector<1x2x32xf32>
    tpu.vector_store %arg2[%c31, %c0_12, %c32], %39 {strides = array<i32>} : memref<32x2x64xf32, #tpu.memory_space<vmem>>, vector<1x2x32xf32>,
    %cst_13 = arith.constant dense<0.000000e+00> : vector<2x256xf32>
    %40 = tpu.matmul %31, %0, %cst_13 {dimension_numbers = #tpu.dot_dimension_numbers<[1], [0], [0], [1], [0, 0, 1, 1], [], []>} : vector<2x64xf32>, vector<64x256xf32>, vector<2x256xf32> -> vector<2x256xf32>
    %c1 = arith.constant 1 : index
    %c0_14 = arith.constant 0 : index
    %c0_15 = arith.constant 0 : index
    %41 = vector.load %arg0[%c1, %c0_14, %c0_15] : memref<32x2x256xf32, #tpu.memory_space<vmem>>, vector<1x2x256xf32>
    %42 = vector.shape_cast %41 : vector<1x2x256xf32> to vector<2x256xf32>
    %43 = arith.addf %40, %42 : vector<2x256xf32>
    %44 = vector.extract_strided_slice %43 {offsets = [0, 0], sizes = [2, 64], strides = [1, 1]} : vector<2x256xf32> to vector<2x64xf32>
    %45 = arith.negf %44 : vector<2x64xf32>
    %46 = math.exp %45 : vector<2x64xf32>
    %cst_16 = arith.constant 1.000000e+00 : f32
    %47 = vector.broadcast %cst_16 : f32 to vector<2x64xf32>
    %48 = arith.addf %47, %46 : vector<2x64xf32>
    %49 = arith.divf %47, %48 : vector<2x64xf32>
    %50 = vector.extract_strided_slice %43 {offsets = [0, 64], sizes = [2, 64], strides = [1, 1]} : vector<2x256xf32> to vector<2x64xf32>
    %51 = arith.negf %50 : vector<2x64xf32>
    %52 = math.exp %51 : vector<2x64xf32>
    %cst_17 = arith.constant 1.000000e+00 : f32
    %53 = vector.broadcast %cst_17 : f32 to vector<2x64xf32>
    %54 = arith.addf %53, %52 : vector<2x64xf32>
    %55 = arith.divf %53, %54 : vector<2x64xf32>
    %56 = vector.extract_strided_slice %43 {offsets = [0, 128], sizes = [2, 64], strides = [1, 1]} : vector<2x256xf32> to vector<2x64xf32>
    %57 = math.tanh %56 : vector<2x64xf32>
    %58 = vector.extract_strided_slice %43 {offsets = [0, 192], sizes = [2, 64], strides = [1, 1]} : vector<2x256xf32> to vector<2x64xf32>
    %59 = arith.negf %58 : vector<2x64xf32>
    %60 = math.exp %59 : vector<2x64xf32>
    %cst_18 = arith.constant 1.000000e+00 : f32
    %61 = vector.broadcast %cst_18 : f32 to vector<2x64xf32>
    %62 = arith.addf %61, %60 : vector<2x64xf32>
    %63 = arith.divf %61, %62 : vector<2x64xf32>
    %64 = arith.mulf %55, %29 : vector<2x64xf32>
    %65 = arith.mulf %49, %57 : vector<2x64xf32>
    %66 = arith.addf %64, %65 : vector<2x64xf32>
    %67 = math.tanh %66 : vector<2x64xf32>
    %68 = arith.mulf %63, %67 : vector<2x64xf32>
    %69 = vector.extract_strided_slice %68 {offsets = [0, 0], sizes = [2, 32], strides = [1, 1]} : vector<2x64xf32> to vector<2x32xf32>
    %c1_19 = arith.constant 1 : index
    %c0_20 = arith.constant 0 : index
    %c0_21 = arith.constant 0 : index
    %70 = vector.load %arg2[%c1_19, %c0_20, %c0_21] : memref<32x2x64xf32, #tpu.memory_space<vmem>>, vector<1x2x32xf32>
    %71 = vector.shape_cast %70 : vector<1x2x32xf32> to vector<2x32xf32>
    %72 = vector.shape_cast %69 : vector<2x32xf32> to vector<1x2x32xf32>
    tpu.vector_store %arg2[%c1_19, %c0_20, %c0_21], %72 {strides = array<i32>} : memref<32x2x64xf32, #tpu.memory_space<vmem>>, vector<1x2x32xf32>,
    %73 = vector.extract_strided_slice %68 {offsets = [0, 32], sizes = [2, 32], strides = [1, 1]} : vector<2x64xf32> to vector<2x32xf32>
    %c30 = arith.constant 30 : index
    %c0_22 = arith.constant 0 : index
    %c32_23 = arith.constant 32 : index
    %74 = vector.load %arg2[%c30, %c0_22, %c32_23] : memref<32x2x64xf32, #tpu.memory_space<vmem>>, vector<1x2x32xf32>
    %75 = vector.shape_cast %74 : vector<1x2x32xf32> to vector<2x32xf32>
    %76 = vector.shape_cast %73 : vector<2x32xf32> to vector<1x2x32xf32>
    tpu.vector_store %arg2[%c30, %c0_22, %c32_23], %76 {strides = array<i32>} : memref<32x2x64xf32, #tpu.memory_space<vmem>>, vector<1x2x32xf32>,
    %cst_24 = arith.constant dense<0.000000e+00> : vector<2x256xf32>
    %77 = tpu.matmul %68, %0, %cst_24 {dimension_numbers = #tpu.dot_dimension_numbers<[1], [0], [0], [1], [0, 0, 1, 1], [], []>} : vector<2x64xf32>, vector<64x256xf32>, vector<2x256xf32> -> vector<2x256xf32>
    %c2 = arith.constant 2 : index
    %c0_25 = arith.constant 0 : index
    %c0_26 = arith.constant 0 : index
    %78 = vector.load %arg0[%c2, %c0_25, %c0_26] : memref<32x2x256xf32, #tpu.memory_space<vmem>>, vector<1x2x256xf32>
    %79 = vector.shape_cast %78 : vector<1x2x256xf32> to vector<2x256xf32>
    %80 = arith.addf %77, %79 : vector<2x256xf32>
    %81 = vector.extract_strided_slice %80 {offsets = [0, 0], sizes = [2, 64], strides = [1, 1]} : vector<2x256xf32> to vector<2x64xf32>
    %82 = arith.negf %81 : vector<2x64xf32>
    %83 = math.exp %82 : vector<2x64xf32>
    %cst_27 = arith.constant 1.000000e+00 : f32
    %84 = vector.broadcast %cst_27 : f32 to vector<2x64xf32>
    %85 = arith.addf %84, %83 : vector<2x64xf32>
    %86 = arith.divf %84, %85 : vector<2x64xf32>
    %87 = vector.extract_strided_slice %80 {offsets = [0, 64], sizes = [2, 64], strides = [1, 1]} : vector<2x256xf32> to vector<2x64xf32>
    %88 = arith.negf %87 : vector<2x64xf32>
    %89 = math.exp %88 : vector<2x64xf32>
    %cst_28 = arith.constant 1.000000e+00 : f32
    %90 = vector.broadcast %cst_28 : f32 to vector<2x64xf32>
    %91 = arith.addf %90, %89 : vector<2x64xf32>
    %92 = arith.divf %90, %91 : vector<2x64xf32>
    %93 = vector.extract_strided_slice %80 {offsets = [0, 128], sizes = [2, 64], strides = [1, 1]} : vector<2x256xf32> to vector<2x64xf32>
    %94 = math.tanh %93 : vector<2x64xf32>
    %95 = vector.extract_strided_slice %80 {offsets = [0, 192], sizes = [2, 64], strides = [1, 1]} : vector<2x256xf32> to vector<2x64xf32>
    %96 = arith.negf %95 : vector<2x64xf32>
    %97 = math.exp %96 : vector<2x64xf32>
    %cst_29 = arith.constant 1.000000e+00 : f32
    %98 = vector.broadcast %cst_29 : f32 to vector<2x64xf32>
    %99 = arith.addf %98, %97 : vector<2x64xf32>
    %100 = arith.divf %98, %99 : vector<2x64xf32>
    %101 = arith.mulf %92, %66 : vector<2x64xf32>
    %102 = arith.mulf %86, %94 : vector<2x64xf32>
    %103 = arith.addf %101, %102 : vector<2x64xf32>
    %104 = math.tanh %103 : vector<2x64xf32>
    %105 = arith.mulf %100, %104 : vector<2x64xf32>
    %106 = vector.extract_strided_slice %105 {offsets = [0, 0], sizes = [2, 32], strides = [1, 1]} : vector<2x64xf32> to vector<2x32xf32>
    %c2_30 = arith.constant 2 : index
    %c0_31 = arith.constant 0 : index
    %c0_32 = arith.constant 0 : index
    %107 = vector.load %arg2[%c2_30, %c0_31, %c0_32] : memref<32x2x64xf32, #tpu.memory_space<vmem>>, vector<1x2x32xf32>
    %108 = vector.shape_cast %107 : vector<1x2x32xf32> to vector<2x32xf32>
    %109 = vector.shape_cast %106 : vector<2x32xf32> to vector<1x2x32xf32>
    tpu.vector_store %arg2[%c2_30, %c0_31, %c0_32], %109 {strides = array<i32>} : memref<32x2x64xf32, #tpu.memory_space<vmem>>, vector<1x2x32xf32>,
    %110 = vector.extract_strided_slice %105 {offsets = [0, 32], sizes = [2, 32], strides = [1, 1]} : vector<2x64xf32> to vector<2x32xf32>
    %c29 = arith.constant 29 : index
    %c0_33 = arith.constant 0 : index
    %c32_34 = arith.constant 32 : index
    %111 = vector.load %arg2[%c29, %c0_33, %c32_34] : memref<32x2x64xf32, #tpu.memory_space<vmem>>, vector<1x2x32xf32>
    %112 = vector.shape_cast %111 : vector<1x2x32xf32> to vector<2x32xf32>
    %113 = vector.shape_cast %110 : vector<2x32xf32> to vector<1x2x32xf32>
    tpu.vector_store %arg2[%c29, %c0_33, %c32_34], %113 {strides = array<i32>} : memref<32x2x64xf32, #tpu.memory_space<vmem>>, vector<1x2x32xf32>,
    %cst_35 = arith.constant dense<0.000000e+00> : vector<2x256xf32>
    %114 = tpu.matmul %105, %0, %cst_35 {dimension_numbers = #tpu.dot_dimension_numbers<[1], [0], [0], [1], [0, 0, 1, 1], [], []>} : vector<2x64xf32>, vector<64x256xf32>, vector<2x256xf32> -> vector<2x256xf32>
    %c3 = arith.constant 3 : index
    %c0_36 = arith.constant 0 : index
    %c0_37 = arith.constant 0 : index
    %115 = vector.load %arg0[%c3, %c0_36, %c0_37] : memref<32x2x256xf32, #tpu.memory_space<vmem>>, vector<1x2x256xf32>
    %116 = vector.shape_cast %115 : vector<1x2x256xf32> to vector<2x256xf32>
    %117 = arith.addf %114, %116 : vector<2x256xf32>
    %118 = vector.extract_strided_slice %117 {offsets = [0, 0], sizes = [2, 64], strides = [1, 1]} : vector<2x256xf32> to vector<2x64xf32>
    %119 = arith.negf %118 : vector<2x64xf32>
    %120 = math.exp %119 : vector<2x64xf32>
    %cst_38 = arith.constant 1.000000e+00 : f32
    %121 = vector.broadcast %cst_38 : f32 to vector<2x64xf32>
    %122 = arith.addf %121, %120 : vector<2x64xf32>
    %123 = arith.divf %121, %122 : vector<2x64xf32>
    %124 = vector.extract_strided_slice %117 {offsets = [0, 64], sizes = [2, 64], strides = [1, 1]} : vector<2x256xf32> to vector<2x64xf32>
    %125 = arith.negf %124 : vector<2x64xf32>
    %126 = math.exp %125 : vector<2x64xf32>
    %cst_39 = arith.constant 1.000000e+00 : f32
    %127 = vector.broadcast %cst_39 : f32 to vector<2x64xf32>
    %128 = arith.addf %127, %126 : vector<2x64xf32>
    %129 = arith.divf %127, %128 : vector<2x64xf32>
    %130 = vector.extract_strided_slice %117 {offsets = [0, 128], sizes = [2, 64], strides = [1, 1]} : vector<2x256xf32> to vector<2x64xf32>
    %131 = math.tanh %130 : vector<2x64xf32>
    %132 = vector.extract_strided_slice %117 {offsets = [0, 192], sizes = [2, 64], strides = [1, 1]} : vector<2x256xf32> to vector<2x64xf32>
    %133 = arith.negf %132 : vector<2x64xf32>
    %134 = math.exp %133 : vector<2x64xf32>
    %cst_40 = arith.constant 1.000000e+00 : f32
    %135 = vector.broadcast %cst_40 : f32 to vector<2x64xf32>
    %136 = arith.addf %135, %134 : vector<2x64xf32>
    %137 = arith.divf %135, %136 : vector<2x64xf32>
    %138 = arith.mulf %129, %103 : vector<2x64xf32>
    %139 = arith.mulf %123, %131 : vector<2x64xf32>
    %140 = arith.addf %138, %139 : vector<2x64xf32>
    %141 = math.tanh %140 : vector<2x64xf32>
    %142 = arith.mulf %137, %141 : vector<2x64xf32>
    %143 = vector.extract_strided_slice %142 {offsets = [0, 0], sizes = [2, 32], strides = [1, 1]} : vector<2x64xf32> to vector<2x32xf32>
    %c3_41 = arith.constant 3 : index
    %c0_42 = arith.constant 0 : index
    %c0_43 = arith.constant 0 : index
    %144 = vector.load %arg2[%c3_41, %c0_42, %c0_43] : memref<32x2x64xf32, #tpu.memory_space<vmem>>, vector<1x2x32xf32>
    %145 = vector.shape_cast %144 : vector<1x2x32xf32> to vector<2x32xf32>
    %146 = vector.shape_cast %143 : vector<2x32xf32> to vector<1x2x32xf32>
    tpu.vector_store %arg2[%c3_41, %c0_42, %c0_43], %146 {strides = array<i32>} : memref<32x2x64xf32, #tpu.memory_space<vmem>>, vector<1x2x32xf32>,
    %147 = vector.extract_strided_slice %142 {offsets = [0, 32], sizes = [2, 32], strides = [1, 1]} : vector<2x64xf32> to vector<2x32xf32>
    %c28 = arith.constant 28 : index
    %c0_44 = arith.constant 0 : index
    %c32_45 = arith.constant 32 : index
    %148 = vector.load %arg2[%c28, %c0_44, %c32_45] : memref<32x2x64xf32, #tpu.memory_space<vmem>>, vector<1x2x32xf32>
    %149 = vector.shape_cast %148 : vector<1x2x32xf32> to vector<2x32xf32>
    %150 = vector.shape_cast %147 : vector<2x32xf32> to vector<1x2x32xf32>
    tpu.vector_store %arg2[%c28, %c0_44, %c32_45], %150 {strides = array<i32>} : memref<32x2x64xf32, #tpu.memory_space<vmem>>, vector<1x2x32xf32>,
    %cst_46 = arith.constant dense<0.000000e+00> : vector<2x256xf32>
    %151 = tpu.matmul %142, %0, %cst_46 {dimension_numbers = #tpu.dot_dimension_numbers<[1], [0], [0], [1], [0, 0, 1, 1], [], []>} : vector<2x64xf32>, vector<64x256xf32>, vector<2x256xf32> -> vector<2x256xf32>
    %c4 = arith.constant 4 : index
    %c0_47 = arith.constant 0 : index
    %c0_48 = arith.constant 0 : index
    %152 = vector.load %arg0[%c4, %c0_47, %c0_48] : memref<32x2x256xf32, #tpu.memory_space<vmem>>, vector<1x2x256xf32>
    %153 = vector.shape_cast %152 : vector<1x2x256xf32> to vector<2x256xf32>
    %154 = arith.addf %151, %153 : vector<2x256xf32>
    %155 = vector.extract_strided_slice %154 {offsets = [0, 0], sizes = [2, 64], strides = [1, 1]} : vector<2x256xf32> to vector<2x64xf32>
    %156 = arith.negf %155 : vector<2x64xf32>
    %157 = math.exp %156 : vector<2x64xf32>
    %cst_49 = arith.constant 1.000000e+00 : f32
    %158 = vector.broadcast %cst_49 : f32 to vector<2x64xf32>
    %159 = arith.addf %158, %157 : vector<2x64xf32>
    %160 = arith.divf %158, %159 : vector<2x64xf32>
    %161 = vector.extract_strided_slice %154 {offsets = [0, 64], sizes = [2, 64], strides = [1, 1]} : vector<2x256xf32> to vector<2x64xf32>
    %162 = arith.negf %161 : vector<2x64xf32>
    %163 = math.exp %162 : vector<2x64xf32>
    %cst_50 = arith.constant 1.000000e+00 : f32
    %164 = vector.broadcast %cst_50 : f32 to vector<2x64xf32>
    %165 = arith.addf %164, %163 : vector<2x64xf32>
    %166 = arith.divf %164, %165 : vector<2x64xf32>
    %167 = vector.extract_strided_slice %154 {offsets = [0, 128], sizes = [2, 64], strides = [1, 1]} : vector<2x256xf32> to vector<2x64xf32>
    %168 = math.tanh %167 : vector<2x64xf32>
    %169 = vector.extract_strided_slice %154 {offsets = [0, 192], sizes = [2, 64], strides = [1, 1]} : vector<2x256xf32> to vector<2x64xf32>
    %170 = arith.negf %169 : vector<2x64xf32>
    %171 = math.exp %170 : vector<2x64xf32>
    %cst_51 = arith.constant 1.000000e+00 : f32
    %172 = vector.broadcast %cst_51 : f32 to vector<2x64xf32>
    %173 = arith.addf %172, %171 : vector<2x64xf32>
    %174 = arith.divf %172, %173 : vector<2x64xf32>
    %175 = arith.mulf %166, %140 : vector<2x64xf32>
    %176 = arith.mulf %160, %168 : vector<2x64xf32>
    %177 = arith.addf %175, %176 : vector<2x64xf32>
    %178 = math.tanh %177 : vector<2x64xf32>
    %179 = arith.mulf %174, %178 : vector<2x64xf32>
    %180 = vector.extract_strided_slice %179 {offsets = [0, 0], sizes = [2, 32], strides = [1, 1]} : vector<2x64xf32> to vector<2x32xf32>
    %c4_52 = arith.constant 4 : index
    %c0_53 = arith.constant 0 : index
    %c0_54 = arith.constant 0 : index
    %181 = vector.load %arg2[%c4_52, %c0_53, %c0_54] : memref<32x2x64xf32, #tpu.memory_space<vmem>>, vector<1x2x32xf32>
    %182 = vector.shape_cast %181 : vector<1x2x32xf32> to vector<2x32xf32>
    %183 = vector.shape_cast %180 : vector<2x32xf32> to vector<1x2x32xf32>
    tpu.vector_store %arg2[%c4_52, %c0_53, %c0_54], %183 {strides = array<i32>} : memref<32x2x64xf32, #tpu.memory_space<vmem>>, vector<1x2x32xf32>,
    %184 = vector.extract_strided_slice %179 {offsets = [0, 32], sizes = [2, 32], strides = [1, 1]} : vector<2x64xf32> to vector<2x32xf32>
    %c27 = arith.constant 27 : index
    %c0_55 = arith.constant 0 : index
    %c32_56 = arith.constant 32 : index
    %185 = vector.load %arg2[%c27, %c0_55, %c32_56] : memref<32x2x64xf32, #tpu.memory_space<vmem>>, vector<1x2x32xf32>
    %186 = vector.shape_cast %185 : vector<1x2x32xf32> to vector<2x32xf32>
    %187 = vector.shape_cast %184 : vector<2x32xf32> to vector<1x2x32xf32>
    tpu.vector_store %arg2[%c27, %c0_55, %c32_56], %187 {strides = array<i32>} : memref<32x2x64xf32, #tpu.memory_space<vmem>>, vector<1x2x32xf32>,
    %cst_57 = arith.constant dense<0.000000e+00> : vector<2x256xf32>
    %188 = tpu.matmul %179, %0, %cst_57 {dimension_numbers = #tpu.dot_dimension_numbers<[1], [0], [0], [1], [0, 0, 1, 1], [], []>} : vector<2x64xf32>, vector<64x256xf32>, vector<2x256xf32> -> vector<2x256xf32>
    %c5 = arith.constant 5 : index
    %c0_58 = arith.constant 0 : index
    %c0_59 = arith.constant 0 : index
    %189 = vector.load %arg0[%c5, %c0_58, %c0_59] : memref<32x2x256xf32, #tpu.memory_space<vmem>>, vector<1x2x256xf32>
    %190 = vector.shape_cast %189 : vector<1x2x256xf32> to vector<2x256xf32>
    %191 = arith.addf %188, %190 : vector<2x256xf32>
    %192 = vector.extract_strided_slice %191 {offsets = [0, 0], sizes = [2, 64], strides = [1, 1]} : vector<2x256xf32> to vector<2x64xf32>
    %193 = arith.negf %192 : vector<2x64xf32>
    %194 = math.exp %193 : vector<2x64xf32>
    %cst_60 = arith.constant 1.000000e+00 : f32
    %195 = vector.broadcast %cst_60 : f32 to vector<2x64xf32>
    %196 = arith.addf %195, %194 : vector<2x64xf32>
    %197 = arith.divf %195, %196 : vector<2x64xf32>
    %198 = vector.extract_strided_slice %191 {offsets = [0, 64], sizes = [2, 64], strides = [1, 1]} : vector<2x256xf32> to vector<2x64xf32>
    %199 = arith.negf %198 : vector<2x64xf32>
    %200 = math.exp %199 : vector<2x64xf32>
    %cst_61 = arith.constant 1.000000e+00 : f32
    %201 = vector.broadcast %cst_61 : f32 to vector<2x64xf32>
    %202 = arith.addf %201, %200 : vector<2x64xf32>
    %203 = arith.divf %201, %202 : vector<2x64xf32>
    %204 = vector.extract_strided_slice %191 {offsets = [0, 128], sizes = [2, 64], strides = [1, 1]} : vector<2x256xf32> to vector<2x64xf32>
    %205 = math.tanh %204 : vector<2x64xf32>
    %206 = vector.extract_strided_slice %191 {offsets = [0, 192], sizes = [2, 64], strides = [1, 1]} : vector<2x256xf32> to vector<2x64xf32>
    %207 = arith.negf %206 : vector<2x64xf32>
    %208 = math.exp %207 : vector<2x64xf32>
    %cst_62 = arith.constant 1.000000e+00 : f32
    %209 = vector.broadcast %cst_62 : f32 to vector<2x64xf32>
    %210 = arith.addf %209, %208 : vector<2x64xf32>
    %211 = arith.divf %209, %210 : vector<2x64xf32>
    %212 = arith.mulf %203, %177 : vector<2x64xf32>
    %213 = arith.mulf %197, %205 : vector<2x64xf32>
    %214 = arith.addf %212, %213 : vector<2x64xf32>
    %215 = math.tanh %214 : vector<2x64xf32>
    %216 = arith.mulf %211, %215 : vector<2x64xf32>
    %217 = vector.extract_strided_slice %216 {offsets = [0, 0], sizes = [2, 32], strides = [1, 1]} : vector<2x64xf32> to vector<2x32xf32>
    %c5_63 = arith.constant 5 : index
    %c0_64 = arith.constant 0 : index
    %c0_65 = arith.constant 0 : index
    %218 = vector.load %arg2[%c5_63, %c0_64, %c0_65] : memref<32x2x64xf32, #tpu.memory_space<vmem>>, vector<1x2x32xf32>
    %219 = vector.shape_cast %218 : vector<1x2x32xf32> to vector<2x32xf32>
    %220 = vector.shape_cast %217 : vector<2x32xf32> to vector<1x2x32xf32>
    tpu.vector_store %arg2[%c5_63, %c0_64, %c0_65], %220 {strides = array<i32>} : memref<32x2x64xf32, #tpu.memory_space<vmem>>, vector<1x2x32xf32>,
    %221 = vector.extract_strided_slice %216 {offsets = [0, 32], sizes = [2, 32], strides = [1, 1]} : vector<2x64xf32> to vector<2x32xf32>
    %c26 = arith.constant 26 : index
    %c0_66 = arith.constant 0 : index
    %c32_67 = arith.constant 32 : index
    %222 = vector.load %arg2[%c26, %c0_66, %c32_67] : memref<32x2x64xf32, #tpu.memory_space<vmem>>, vector<1x2x32xf32>
    %223 = vector.shape_cast %222 : vector<1x2x32xf32> to vector<2x32xf32>
    %224 = vector.shape_cast %221 : vector<2x32xf32> to vector<1x2x32xf32>
    tpu.vector_store %arg2[%c26, %c0_66, %c32_67], %224 {strides = array<i32>} : memref<32x2x64xf32, #tpu.memory_space<vmem>>, vector<1x2x32xf32>,
    %cst_68 = arith.constant dense<0.000000e+00> : vector<2x256xf32>
    %225 = tpu.matmul %216, %0, %cst_68 {dimension_numbers = #tpu.dot_dimension_numbers<[1], [0], [0], [1], [0, 0, 1, 1], [], []>} : vector<2x64xf32>, vector<64x256xf32>, vector<2x256xf32> -> vector<2x256xf32>
    %c6 = arith.constant 6 : index
    %c0_69 = arith.constant 0 : index
    %c0_70 = arith.constant 0 : index
    %226 = vector.load %arg0[%c6, %c0_69, %c0_70] : memref<32x2x256xf32, #tpu.memory_space<vmem>>, vector<1x2x256xf32>
    %227 = vector.shape_cast %226 : vector<1x2x256xf32> to vector<2x256xf32>
    %228 = arith.addf %225, %227 : vector<2x256xf32>
    %229 = vector.extract_strided_slice %228 {offsets = [0, 0], sizes = [2, 64], strides = [1, 1]} : vector<2x256xf32> to vector<2x64xf32>
    %230 = arith.negf %229 : vector<2x64xf32>
    %231 = math.exp %230 : vector<2x64xf32>
    %cst_71 = arith.constant 1.000000e+00 : f32
    %232 = vector.broadcast %cst_71 : f32 to vector<2x64xf32>
    %233 = arith.addf %232, %231 : vector<2x64xf32>
    %234 = arith.divf %232, %233 : vector<2x64xf32>
    %235 = vector.extract_strided_slice %228 {offsets = [0, 64], sizes = [2, 64], strides = [1, 1]} : vector<2x256xf32> to vector<2x64xf32>
    %236 = arith.negf %235 : vector<2x64xf32>
    %237 = math.exp %236 : vector<2x64xf32>
    %cst_72 = arith.constant 1.000000e+00 : f32
    %238 = vector.broadcast %cst_72 : f32 to vector<2x64xf32>
    %239 = arith.addf %238, %237 : vector<2x64xf32>
    %240 = arith.divf %238, %239 : vector<2x64xf32>
    %241 = vector.extract_strided_slice %228 {offsets = [0, 128], sizes = [2, 64], strides = [1, 1]} : vector<2x256xf32> to vector<2x64xf32>
    %242 = math.tanh %241 : vector<2x64xf32>
    %243 = vector.extract_strided_slice %228 {offsets = [0, 192], sizes = [2, 64], strides = [1, 1]} : vector<2x256xf32> to vector<2x64xf32>
    %244 = arith.negf %243 : vector<2x64xf32>
    %245 = math.exp %244 : vector<2x64xf32>
    %cst_73 = arith.constant 1.000000e+00 : f32
    %246 = vector.broadcast %cst_73 : f32 to vector<2x64xf32>
    %247 = arith.addf %246, %245 : vector<2x64xf32>
    %248 = arith.divf %246, %247 : vector<2x64xf32>
    %249 = arith.mulf %240, %214 : vector<2x64xf32>
    %250 = arith.mulf %234, %242 : vector<2x64xf32>
    %251 = arith.addf %249, %250 : vector<2x64xf32>
    %252 = math.tanh %251 : vector<2x64xf32>
    %253 = arith.mulf %248, %252 : vector<2x64xf32>
    %254 = vector.extract_strided_slice %253 {offsets = [0, 0], sizes = [2, 32], strides = [1, 1]} : vector<2x64xf32> to vector<2x32xf32>
    %c6_74 = arith.constant 6 : index
    %c0_75 = arith.constant 0 : index
    %c0_76 = arith.constant 0 : index
    %255 = vector.load %arg2[%c6_74, %c0_75, %c0_76] : memref<32x2x64xf32, #tpu.memory_space<vmem>>, vector<1x2x32xf32>
    %256 = vector.shape_cast %255 : vector<1x2x32xf32> to vector<2x32xf32>
    %257 = vector.shape_cast %254 : vector<2x32xf32> to vector<1x2x32xf32>
    tpu.vector_store %arg2[%c6_74, %c0_75, %c0_76], %257 {strides = array<i32>} : memref<32x2x64xf32, #tpu.memory_space<vmem>>, vector<1x2x32xf32>,
    %258 = vector.extract_strided_slice %253 {offsets = [0, 32], sizes = [2, 32], strides = [1, 1]} : vector<2x64xf32> to vector<2x32xf32>
    %c25 = arith.constant 25 : index
    %c0_77 = arith.constant 0 : index
    %c32_78 = arith.constant 32 : index
    %259 = vector.load %arg2[%c25, %c0_77, %c32_78] : memref<32x2x64xf32, #tpu.memory_space<vmem>>, vector<1x2x32xf32>
    %260 = vector.shape_cast %259 : vector<1x2x32xf32> to vector<2x32xf32>
    %261 = vector.shape_cast %258 : vector<2x32xf32> to vector<1x2x32xf32>
    tpu.vector_store %arg2[%c25, %c0_77, %c32_78], %261 {strides = array<i32>} : memref<32x2x64xf32, #tpu.memory_space<vmem>>, vector<1x2x32xf32>,
    %cst_79 = arith.constant dense<0.000000e+00> : vector<2x256xf32>
    %262 = tpu.matmul %253, %0, %cst_79 {dimension_numbers = #tpu.dot_dimension_numbers<[1], [0], [0], [1], [0, 0, 1, 1], [], []>} : vector<2x64xf32>, vector<64x256xf32>, vector<2x256xf32> -> vector<2x256xf32>
    %c7 = arith.constant 7 : index
    %c0_80 = arith.constant 0 : index
    %c0_81 = arith.constant 0 : index
    %263 = vector.load %arg0[%c7, %c0_80, %c0_81] : memref<32x2x256xf32, #tpu.memory_space<vmem>>, vector<1x2x256xf32>
    %264 = vector.shape_cast %263 : vector<1x2x256xf32> to vector<2x256xf32>
    %265 = arith.addf %262, %264 : vector<2x256xf32>
    %266 = vector.extract_strided_slice %265 {offsets = [0, 0], sizes = [2, 64], strides = [1, 1]} : vector<2x256xf32> to vector<2x64xf32>
    %267 = arith.negf %266 : vector<2x64xf32>
    %268 = math.exp %267 : vector<2x64xf32>
    %cst_82 = arith.constant 1.000000e+00 : f32
    %269 = vector.broadcast %cst_82 : f32 to vector<2x64xf32>
    %270 = arith.addf %269, %268 : vector<2x64xf32>
    %271 = arith.divf %269, %270 : vector<2x64xf32>
    %272 = vector.extract_strided_slice %265 {offsets = [0, 64], sizes = [2, 64], strides = [1, 1]} : vector<2x256xf32> to vector<2x64xf32>
    %273 = arith.negf %272 : vector<2x64xf32>
    %274 = math.exp %273 : vector<2x64xf32>
    %cst_83 = arith.constant 1.000000e+00 : f32
    %275 = vector.broadcast %cst_83 : f32 to vector<2x64xf32>
    %276 = arith.addf %275, %274 : vector<2x64xf32>
    %277 = arith.divf %275, %276 : vector<2x64xf32>
    %278 = vector.extract_strided_slice %265 {offsets = [0, 128], sizes = [2, 64], strides = [1, 1]} : vector<2x256xf32> to vector<2x64xf32>
    %279 = math.tanh %278 : vector<2x64xf32>
    %280 = vector.extract_strided_slice %265 {offsets = [0, 192], sizes = [2, 64], strides = [1, 1]} : vector<2x256xf32> to vector<2x64xf32>
    %281 = arith.negf %280 : vector<2x64xf32>
    %282 = math.exp %281 : vector<2x64xf32>
    %cst_84 = arith.constant 1.000000e+00 : f32
    %283 = vector.broadcast %cst_84 : f32 to vector<2x64xf32>
    %284 = arith.addf %283, %282 : vector<2x64xf32>
    %285 = arith.divf %283, %284 : vector<2x64xf32>
    %286 = arith.mulf %277, %251 : vector<2x64xf32>
    %287 = arith.mulf %271, %279 : vector<2x64xf32>
    %288 = arith.addf %286, %287 : vector<2x64xf32>
    %289 = math.tanh %288 : vector<2x64xf32>
    %290 = arith.mulf %285, %289 : vector<2x64xf32>
    %291 = vector.extract_strided_slice %290 {offsets = [0, 0], sizes = [2, 32], strides = [1, 1]} : vector<2x64xf32> to vector<2x32xf32>
    %c7_85 = arith.constant 7 : index
    %c0_86 = arith.constant 0 : index
    %c0_87 = arith.constant 0 : index
    %292 = vector.load %arg2[%c7_85, %c0_86, %c0_87] : memref<32x2x64xf32, #tpu.memory_space<vmem>>, vector<1x2x32xf32>
    %293 = vector.shape_cast %292 : vector<1x2x32xf32> to vector<2x32xf32>
    %294 = vector.shape_cast %291 : vector<2x32xf32> to vector<1x2x32xf32>
    tpu.vector_store %arg2[%c7_85, %c0_86, %c0_87], %294 {strides = array<i32>} : memref<32x2x64xf32, #tpu.memory_space<vmem>>, vector<1x2x32xf32>,
    %295 = vector.extract_strided_slice %290 {offsets = [0, 32], sizes = [2, 32], strides = [1, 1]} : vector<2x64xf32> to vector<2x32xf32>
    %c24 = arith.constant 24 : index
    %c0_88 = arith.constant 0 : index
    %c32_89 = arith.constant 32 : index
    %296 = vector.load %arg2[%c24, %c0_88, %c32_89] : memref<32x2x64xf32, #tpu.memory_space<vmem>>, vector<1x2x32xf32>
    %297 = vector.shape_cast %296 : vector<1x2x32xf32> to vector<2x32xf32>
    %298 = vector.shape_cast %295 : vector<2x32xf32> to vector<1x2x32xf32>
    tpu.vector_store %arg2[%c24, %c0_88, %c32_89], %298 {strides = array<i32>} : memref<32x2x64xf32, #tpu.memory_space<vmem>>, vector<1x2x32xf32>,
    %cst_90 = arith.constant dense<0.000000e+00> : vector<2x256xf32>
    %299 = tpu.matmul %290, %0, %cst_90 {dimension_numbers = #tpu.dot_dimension_numbers<[1], [0], [0], [1], [0, 0, 1, 1], [], []>} : vector<2x64xf32>, vector<64x256xf32>, vector<2x256xf32> -> vector<2x256xf32>
    %c8 = arith.constant 8 : index
    %c0_91 = arith.constant 0 : index
    %c0_92 = arith.constant 0 : index
    %300 = vector.load %arg0[%c8, %c0_91, %c0_92] : memref<32x2x256xf32, #tpu.memory_space<vmem>>, vector<1x2x256xf32>
    %301 = vector.shape_cast %300 : vector<1x2x256xf32> to vector<2x256xf32>
    %302 = arith.addf %299, %301 : vector<2x256xf32>
    %303 = vector.extract_strided_slice %302 {offsets = [0, 0], sizes = [2, 64], strides = [1, 1]} : vector<2x256xf32> to vector<2x64xf32>
    %304 = arith.negf %303 : vector<2x64xf32>
    %305 = math.exp %304 : vector<2x64xf32>
    %cst_93 = arith.constant 1.000000e+00 : f32
    %306 = vector.broadcast %cst_93 : f32 to vector<2x64xf32>
    %307 = arith.addf %306, %305 : vector<2x64xf32>
    %308 = arith.divf %306, %307 : vector<2x64xf32>
    %309 = vector.extract_strided_slice %302 {offsets = [0, 64], sizes = [2, 64], strides = [1, 1]} : vector<2x256xf32> to vector<2x64xf32>
    %310 = arith.negf %309 : vector<2x64xf32>
    %311 = math.exp %310 : vector<2x64xf32>
    %cst_94 = arith.constant 1.000000e+00 : f32
    %312 = vector.broadcast %cst_94 : f32 to vector<2x64xf32>
    %313 = arith.addf %312, %311 : vector<2x64xf32>
    %314 = arith.divf %312, %313 : vector<2x64xf32>
    %315 = vector.extract_strided_slice %302 {offsets = [0, 128], sizes = [2, 64], strides = [1, 1]} : vector<2x256xf32> to vector<2x64xf32>
    %316 = math.tanh %315 : vector<2x64xf32>
    %317 = vector.extract_strided_slice %302 {offsets = [0, 192], sizes = [2, 64], strides = [1, 1]} : vector<2x256xf32> to vector<2x64xf32>
    %318 = arith.negf %317 : vector<2x64xf32>
    %319 = math.exp %318 : vector<2x64xf32>
    %cst_95 = arith.constant 1.000000e+00 : f32
    %320 = vector.broadcast %cst_95 : f32 to vector<2x64xf32>
    %321 = arith.addf %320, %319 : vector<2x64xf32>
    %322 = arith.divf %320, %321 : vector<2x64xf32>
    %323 = arith.mulf %314, %288 : vector<2x64xf32>
    %324 = arith.mulf %308, %316 : vector<2x64xf32>
    %325 = arith.addf %323, %324 : vector<2x64xf32>
    %326 = math.tanh %325 : vector<2x64xf32>
    %327 = arith.mulf %322, %326 : vector<2x64xf32>
    %328 = vector.extract_strided_slice %327 {offsets = [0, 0], sizes = [2, 32], strides = [1, 1]} : vector<2x64xf32> to vector<2x32xf32>
    %c8_96 = arith.constant 8 : index
    %c0_97 = arith.constant 0 : index
    %c0_98 = arith.constant 0 : index
    %329 = vector.load %arg2[%c8_96, %c0_97, %c0_98] : memref<32x2x64xf32, #tpu.memory_space<vmem>>, vector<1x2x32xf32>
    %330 = vector.shape_cast %329 : vector<1x2x32xf32> to vector<2x32xf32>
    %331 = vector.shape_cast %328 : vector<2x32xf32> to vector<1x2x32xf32>
    tpu.vector_store %arg2[%c8_96, %c0_97, %c0_98], %331 {strides = array<i32>} : memref<32x2x64xf32, #tpu.memory_space<vmem>>, vector<1x2x32xf32>,
    %332 = vector.extract_strided_slice %327 {offsets = [0, 32], sizes = [2, 32], strides = [1, 1]} : vector<2x64xf32> to vector<2x32xf32>
    %c23 = arith.constant 23 : index
    %c0_99 = arith.constant 0 : index
    %c32_100 = arith.constant 32 : index
    %333 = vector.load %arg2[%c23, %c0_99, %c32_100] : memref<32x2x64xf32, #tpu.memory_space<vmem>>, vector<1x2x32xf32>
    %334 = vector.shape_cast %333 : vector<1x2x32xf32> to vector<2x32xf32>
    %335 = vector.shape_cast %332 : vector<2x32xf32> to vector<1x2x32xf32>
    tpu.vector_store %arg2[%c23, %c0_99, %c32_100], %335 {strides = array<i32>} : memref<32x2x64xf32, #tpu.memory_space<vmem>>, vector<1x2x32xf32>,
    %cst_101 = arith.constant dense<0.000000e+00> : vector<2x256xf32>
    %336 = tpu.matmul %327, %0, %cst_101 {dimension_numbers = #tpu.dot_dimension_numbers<[1], [0], [0], [1], [0, 0, 1, 1], [], []>} : vector<2x64xf32>, vector<64x256xf32>, vector<2x256xf32> -> vector<2x256xf32>
    %c9 = arith.constant 9 : index
    %c0_102 = arith.constant 0 : index
    %c0_103 = arith.constant 0 : index
    %337 = vector.load %arg0[%c9, %c0_102, %c0_103] : memref<32x2x256xf32, #tpu.memory_space<vmem>>, vector<1x2x256xf32>
    %338 = vector.shape_cast %337 : vector<1x2x256xf32> to vector<2x256xf32>
    %339 = arith.addf %336, %338 : vector<2x256xf32>
    %340 = vector.extract_strided_slice %339 {offsets = [0, 0], sizes = [2, 64], strides = [1, 1]} : vector<2x256xf32> to vector<2x64xf32>
    %341 = arith.negf %340 : vector<2x64xf32>
    %342 = math.exp %341 : vector<2x64xf32>
    %cst_104 = arith.constant 1.000000e+00 : f32
    %343 = vector.broadcast %cst_104 : f32 to vector<2x64xf32>
    %344 = arith.addf %343, %342 : vector<2x64xf32>
    %345 = arith.divf %343, %344 : vector<2x64xf32>
    %346 = vector.extract_strided_slice %339 {offsets = [0, 64], sizes = [2, 64], strides = [1, 1]} : vector<2x256xf32> to vector<2x64xf32>
    %347 = arith.negf %346 : vector<2x64xf32>
    %348 = math.exp %347 : vector<2x64xf32>
    %cst_105 = arith.constant 1.000000e+00 : f32
    %349 = vector.broadcast %cst_105 : f32 to vector<2x64xf32>
    %350 = arith.addf %349, %348 : vector<2x64xf32>
    %351 = arith.divf %349, %350 : vector<2x64xf32>
    %352 = vector.extract_strided_slice %339 {offsets = [0, 128], sizes = [2, 64], strides = [1, 1]} : vector<2x256xf32> to vector<2x64xf32>
    %353 = math.tanh %352 : vector<2x64xf32>
    %354 = vector.extract_strided_slice %339 {offsets = [0, 192], sizes = [2, 64], strides = [1, 1]} : vector<2x256xf32> to vector<2x64xf32>
    %355 = arith.negf %354 : vector<2x64xf32>
    %356 = math.exp %355 : vector<2x64xf32>
    %cst_106 = arith.constant 1.000000e+00 : f32
    %357 = vector.broadcast %cst_106 : f32 to vector<2x64xf32>
    %358 = arith.addf %357, %356 : vector<2x64xf32>
    %359 = arith.divf %357, %358 : vector<2x64xf32>
    %360 = arith.mulf %351, %325 : vector<2x64xf32>
    %361 = arith.mulf %345, %353 : vector<2x64xf32>
    %362 = arith.addf %360, %361 : vector<2x64xf32>
    %363 = math.tanh %362 : vector<2x64xf32>
    %364 = arith.mulf %359, %363 : vector<2x64xf32>
    %365 = vector.extract_strided_slice %364 {offsets = [0, 0], sizes = [2, 32], strides = [1, 1]} : vector<2x64xf32> to vector<2x32xf32>
    %c9_107 = arith.constant 9 : index
    %c0_108 = arith.constant 0 : index
    %c0_109 = arith.constant 0 : index
    %366 = vector.load %arg2[%c9_107, %c0_108, %c0_109] : memref<32x2x64xf32, #tpu.memory_space<vmem>>, vector<1x2x32xf32>
    %367 = vector.shape_cast %366 : vector<1x2x32xf32> to vector<2x32xf32>
    %368 = vector.shape_cast %365 : vector<2x32xf32> to vector<1x2x32xf32>
    tpu.vector_store %arg2[%c9_107, %c0_108, %c0_109], %368 {strides = array<i32>} : memref<32x2x64xf32, #tpu.memory_space<vmem>>, vector<1x2x32xf32>,
    %369 = vector.extract_strided_slice %364 {offsets = [0, 32], sizes = [2, 32], strides = [1, 1]} : vector<2x64xf32> to vector<2x32xf32>
    %c22 = arith.constant 22 : index
    %c0_110 = arith.constant 0 : index
    %c32_111 = arith.constant 32 : index
    %370 = vector.load %arg2[%c22, %c0_110, %c32_111] : memref<32x2x64xf32, #tpu.memory_space<vmem>>, vector<1x2x32xf32>
    %371 = vector.shape_cast %370 : vector<1x2x32xf32> to vector<2x32xf32>
    %372 = vector.shape_cast %369 : vector<2x32xf32> to vector<1x2x32xf32>
    tpu.vector_store %arg2[%c22, %c0_110, %c32_111], %372 {strides = array<i32>} : memref<32x2x64xf32, #tpu.memory_space<vmem>>, vector<1x2x32xf32>,
    %cst_112 = arith.constant dense<0.000000e+00> : vector<2x256xf32>
    %373 = tpu.matmul %364, %0, %cst_112 {dimension_numbers = #tpu.dot_dimension_numbers<[1], [0], [0], [1], [0, 0, 1, 1], [], []>} : vector<2x64xf32>, vector<64x256xf32>, vector<2x256xf32> -> vector<2x256xf32>
    %c10 = arith.constant 10 : index
    %c0_113 = arith.constant 0 : index
    %c0_114 = arith.constant 0 : index
    %374 = vector.load %arg0[%c10, %c0_113, %c0_114] : memref<32x2x256xf32, #tpu.memory_space<vmem>>, vector<1x2x256xf32>
    %375 = vector.shape_cast %374 : vector<1x2x256xf32> to vector<2x256xf32>
    %376 = arith.addf %373, %375 : vector<2x256xf32>
    %377 = vector.extract_strided_slice %376 {offsets = [0, 0], sizes = [2, 64], strides = [1, 1]} : vector<2x256xf32> to vector<2x64xf32>
    %378 = arith.negf %377 : vector<2x64xf32>
    %379 = math.exp %378 : vector<2x64xf32>
    %cst_115 = arith.constant 1.000000e+00 : f32
    %380 = vector.broadcast %cst_115 : f32 to vector<2x64xf32>
    %381 = arith.addf %380, %379 : vector<2x64xf32>
    %382 = arith.divf %380, %381 : vector<2x64xf32>
    %383 = vector.extract_strided_slice %376 {offsets = [0, 64], sizes = [2, 64], strides = [1, 1]} : vector<2x256xf32> to vector<2x64xf32>
    %384 = arith.negf %383 : vector<2x64xf32>
    %385 = math.exp %384 : vector<2x64xf32>
    %cst_116 = arith.constant 1.000000e+00 : f32
    %386 = vector.broadcast %cst_116 : f32 to vector<2x64xf32>
    %387 = arith.addf %386, %385 : vector<2x64xf32>
    %388 = arith.divf %386, %387 : vector<2x64xf32>
    %389 = vector.extract_strided_slice %376 {offsets = [0, 128], sizes = [2, 64], strides = [1, 1]} : vector<2x256xf32> to vector<2x64xf32>
    %390 = math.tanh %389 : vector<2x64xf32>
    %391 = vector.extract_strided_slice %376 {offsets = [0, 192], sizes = [2, 64], strides = [1, 1]} : vector<2x256xf32> to vector<2x64xf32>
    %392 = arith.negf %391 : vector<2x64xf32>
    %393 = math.exp %392 : vector<2x64xf32>
    %cst_117 = arith.constant 1.000000e+00 : f32
    %394 = vector.broadcast %cst_117 : f32 to vector<2x64xf32>
    %395 = arith.addf %394, %393 : vector<2x64xf32>
    %396 = arith.divf %394, %395 : vector<2x64xf32>
    %397 = arith.mulf %388, %362 : vector<2x64xf32>
    %398 = arith.mulf %382, %390 : vector<2x64xf32>
    %399 = arith.addf %397, %398 : vector<2x64xf32>
    %400 = math.tanh %399 : vector<2x64xf32>
    %401 = arith.mulf %396, %400 : vector<2x64xf32>
    %402 = vector.extract_strided_slice %401 {offsets = [0, 0], sizes = [2, 32], strides = [1, 1]} : vector<2x64xf32> to vector<2x32xf32>
    %c10_118 = arith.constant 10 : index
    %c0_119 = arith.constant 0 : index
    %c0_120 = arith.constant 0 : index
    %403 = vector.load %arg2[%c10_118, %c0_119, %c0_120] : memref<32x2x64xf32, #tpu.memory_space<vmem>>, vector<1x2x32xf32>
    %404 = vector.shape_cast %403 : vector<1x2x32xf32> to vector<2x32xf32>
    %405 = vector.shape_cast %402 : vector<2x32xf32> to vector<1x2x32xf32>
    tpu.vector_store %arg2[%c10_118, %c0_119, %c0_120], %405 {strides = array<i32>} : memref<32x2x64xf32, #tpu.memory_space<vmem>>, vector<1x2x32xf32>,
    %406 = vector.extract_strided_slice %401 {offsets = [0, 32], sizes = [2, 32], strides = [1, 1]} : vector<2x64xf32> to vector<2x32xf32>
    %c21 = arith.constant 21 : index
    %c0_121 = arith.constant 0 : index
    %c32_122 = arith.constant 32 : index
    %407 = vector.load %arg2[%c21, %c0_121, %c32_122] : memref<32x2x64xf32, #tpu.memory_space<vmem>>, vector<1x2x32xf32>
    %408 = vector.shape_cast %407 : vector<1x2x32xf32> to vector<2x32xf32>
    %409 = vector.shape_cast %406 : vector<2x32xf32> to vector<1x2x32xf32>
    tpu.vector_store %arg2[%c21, %c0_121, %c32_122], %409 {strides = array<i32>} : memref<32x2x64xf32, #tpu.memory_space<vmem>>, vector<1x2x32xf32>,
    %cst_123 = arith.constant dense<0.000000e+00> : vector<2x256xf32>
    %410 = tpu.matmul %401, %0, %cst_123 {dimension_numbers = #tpu.dot_dimension_numbers<[1], [0], [0], [1], [0, 0, 1, 1], [], []>} : vector<2x64xf32>, vector<64x256xf32>, vector<2x256xf32> -> vector<2x256xf32>
    %c11 = arith.constant 11 : index
    %c0_124 = arith.constant 0 : index
    %c0_125 = arith.constant 0 : index
    %411 = vector.load %arg0[%c11, %c0_124, %c0_125] : memref<32x2x256xf32, #tpu.memory_space<vmem>>, vector<1x2x256xf32>
    %412 = vector.shape_cast %411 : vector<1x2x256xf32> to vector<2x256xf32>
    %413 = arith.addf %410, %412 : vector<2x256xf32>
    %414 = vector.extract_strided_slice %413 {offsets = [0, 0], sizes = [2, 64], strides = [1, 1]} : vector<2x256xf32> to vector<2x64xf32>
    %415 = arith.negf %414 : vector<2x64xf32>
    %416 = math.exp %415 : vector<2x64xf32>
    %cst_126 = arith.constant 1.000000e+00 : f32
    %417 = vector.broadcast %cst_126 : f32 to vector<2x64xf32>
    %418 = arith.addf %417, %416 : vector<2x64xf32>
    %419 = arith.divf %417, %418 : vector<2x64xf32>
    %420 = vector.extract_strided_slice %413 {offsets = [0, 64], sizes = [2, 64], strides = [1, 1]} : vector<2x256xf32> to vector<2x64xf32>
    %421 = arith.negf %420 : vector<2x64xf32>
    %422 = math.exp %421 : vector<2x64xf32>
    %cst_127 = arith.constant 1.000000e+00 : f32
    %423 = vector.broadcast %cst_127 : f32 to vector<2x64xf32>
    %424 = arith.addf %423, %422 : vector<2x64xf32>
    %425 = arith.divf %423, %424 : vector<2x64xf32>
    %426 = vector.extract_strided_slice %413 {offsets = [0, 128], sizes = [2, 64], strides = [1, 1]} : vector<2x256xf32> to vector<2x64xf32>
    %427 = math.tanh %426 : vector<2x64xf32>
    %428 = vector.extract_strided_slice %413 {offsets = [0, 192], sizes = [2, 64], strides = [1, 1]} : vector<2x256xf32> to vector<2x64xf32>
    %429 = arith.negf %428 : vector<2x64xf32>
    %430 = math.exp %429 : vector<2x64xf32>
    %cst_128 = arith.constant 1.000000e+00 : f32
    %431 = vector.broadcast %cst_128 : f32 to vector<2x64xf32>
    %432 = arith.addf %431, %430 : vector<2x64xf32>
    %433 = arith.divf %431, %432 : vector<2x64xf32>
    %434 = arith.mulf %425, %399 : vector<2x64xf32>
    %435 = arith.mulf %419, %427 : vector<2x64xf32>
    %436 = arith.addf %434, %435 : vector<2x64xf32>
    %437 = math.tanh %436 : vector<2x64xf32>
    %438 = arith.mulf %433, %437 : vector<2x64xf32>
    %439 = vector.extract_strided_slice %438 {offsets = [0, 0], sizes = [2, 32], strides = [1, 1]} : vector<2x64xf32> to vector<2x32xf32>
    %c11_129 = arith.constant 11 : index
    %c0_130 = arith.constant 0 : index
    %c0_131 = arith.constant 0 : index
    %440 = vector.load %arg2[%c11_129, %c0_130, %c0_131] : memref<32x2x64xf32, #tpu.memory_space<vmem>>, vector<1x2x32xf32>
    %441 = vector.shape_cast %440 : vector<1x2x32xf32> to vector<2x32xf32>
    %442 = vector.shape_cast %439 : vector<2x32xf32> to vector<1x2x32xf32>
    tpu.vector_store %arg2[%c11_129, %c0_130, %c0_131], %442 {strides = array<i32>} : memref<32x2x64xf32, #tpu.memory_space<vmem>>, vector<1x2x32xf32>,
    %443 = vector.extract_strided_slice %438 {offsets = [0, 32], sizes = [2, 32], strides = [1, 1]} : vector<2x64xf32> to vector<2x32xf32>
    %c20 = arith.constant 20 : index
    %c0_132 = arith.constant 0 : index
    %c32_133 = arith.constant 32 : index
    %444 = vector.load %arg2[%c20, %c0_132, %c32_133] : memref<32x2x64xf32, #tpu.memory_space<vmem>>, vector<1x2x32xf32>
    %445 = vector.shape_cast %444 : vector<1x2x32xf32> to vector<2x32xf32>
    %446 = vector.shape_cast %443 : vector<2x32xf32> to vector<1x2x32xf32>
    tpu.vector_store %arg2[%c20, %c0_132, %c32_133], %446 {strides = array<i32>} : memref<32x2x64xf32, #tpu.memory_space<vmem>>, vector<1x2x32xf32>,
    %cst_134 = arith.constant dense<0.000000e+00> : vector<2x256xf32>
    %447 = tpu.matmul %438, %0, %cst_134 {dimension_numbers = #tpu.dot_dimension_numbers<[1], [0], [0], [1], [0, 0, 1, 1], [], []>} : vector<2x64xf32>, vector<64x256xf32>, vector<2x256xf32> -> vector<2x256xf32>
    %c12 = arith.constant 12 : index
    %c0_135 = arith.constant 0 : index
    %c0_136 = arith.constant 0 : index
    %448 = vector.load %arg0[%c12, %c0_135, %c0_136] : memref<32x2x256xf32, #tpu.memory_space<vmem>>, vector<1x2x256xf32>
    %449 = vector.shape_cast %448 : vector<1x2x256xf32> to vector<2x256xf32>
    %450 = arith.addf %447, %449 : vector<2x256xf32>
    %451 = vector.extract_strided_slice %450 {offsets = [0, 0], sizes = [2, 64], strides = [1, 1]} : vector<2x256xf32> to vector<2x64xf32>
    %452 = arith.negf %451 : vector<2x64xf32>
    %453 = math.exp %452 : vector<2x64xf32>
    %cst_137 = arith.constant 1.000000e+00 : f32
    %454 = vector.broadcast %cst_137 : f32 to vector<2x64xf32>
    %455 = arith.addf %454, %453 : vector<2x64xf32>
    %456 = arith.divf %454, %455 : vector<2x64xf32>
    %457 = vector.extract_strided_slice %450 {offsets = [0, 64], sizes = [2, 64], strides = [1, 1]} : vector<2x256xf32> to vector<2x64xf32>
    %458 = arith.negf %457 : vector<2x64xf32>
    %459 = math.exp %458 : vector<2x64xf32>
    %cst_138 = arith.constant 1.000000e+00 : f32
    %460 = vector.broadcast %cst_138 : f32 to vector<2x64xf32>
    %461 = arith.addf %460, %459 : vector<2x64xf32>
    %462 = arith.divf %460, %461 : vector<2x64xf32>
    %463 = vector.extract_strided_slice %450 {offsets = [0, 128], sizes = [2, 64], strides = [1, 1]} : vector<2x256xf32> to vector<2x64xf32>
    %464 = math.tanh %463 : vector<2x64xf32>
    %465 = vector.extract_strided_slice %450 {offsets = [0, 192], sizes = [2, 64], strides = [1, 1]} : vector<2x256xf32> to vector<2x64xf32>
    %466 = arith.negf %465 : vector<2x64xf32>
    %467 = math.exp %466 : vector<2x64xf32>
    %cst_139 = arith.constant 1.000000e+00 : f32
    %468 = vector.broadcast %cst_139 : f32 to vector<2x64xf32>
    %469 = arith.addf %468, %467 : vector<2x64xf32>
    %470 = arith.divf %468, %469 : vector<2x64xf32>
    %471 = arith.mulf %462, %436 : vector<2x64xf32>
    %472 = arith.mulf %456, %464 : vector<2x64xf32>
    %473 = arith.addf %471, %472 : vector<2x64xf32>
    %474 = math.tanh %473 : vector<2x64xf32>
    %475 = arith.mulf %470, %474 : vector<2x64xf32>
    %476 = vector.extract_strided_slice %475 {offsets = [0, 0], sizes = [2, 32], strides = [1, 1]} : vector<2x64xf32> to vector<2x32xf32>
    %c12_140 = arith.constant 12 : index
    %c0_141 = arith.constant 0 : index
    %c0_142 = arith.constant 0 : index
    %477 = vector.load %arg2[%c12_140, %c0_141, %c0_142] : memref<32x2x64xf32, #tpu.memory_space<vmem>>, vector<1x2x32xf32>
    %478 = vector.shape_cast %477 : vector<1x2x32xf32> to vector<2x32xf32>
    %479 = vector.shape_cast %476 : vector<2x32xf32> to vector<1x2x32xf32>
    tpu.vector_store %arg2[%c12_140, %c0_141, %c0_142], %479 {strides = array<i32>} : memref<32x2x64xf32, #tpu.memory_space<vmem>>, vector<1x2x32xf32>,
    %480 = vector.extract_strided_slice %475 {offsets = [0, 32], sizes = [2, 32], strides = [1, 1]} : vector<2x64xf32> to vector<2x32xf32>
    %c19 = arith.constant 19 : index
    %c0_143 = arith.constant 0 : index
    %c32_144 = arith.constant 32 : index
    %481 = vector.load %arg2[%c19, %c0_143, %c32_144] : memref<32x2x64xf32, #tpu.memory_space<vmem>>, vector<1x2x32xf32>
    %482 = vector.shape_cast %481 : vector<1x2x32xf32> to vector<2x32xf32>
    %483 = vector.shape_cast %480 : vector<2x32xf32> to vector<1x2x32xf32>
    tpu.vector_store %arg2[%c19, %c0_143, %c32_144], %483 {strides = array<i32>} : memref<32x2x64xf32, #tpu.memory_space<vmem>>, vector<1x2x32xf32>,
    %cst_145 = arith.constant dense<0.000000e+00> : vector<2x256xf32>
    %484 = tpu.matmul %475, %0, %cst_145 {dimension_numbers = #tpu.dot_dimension_numbers<[1], [0], [0], [1], [0, 0, 1, 1], [], []>} : vector<2x64xf32>, vector<64x256xf32>, vector<2x256xf32> -> vector<2x256xf32>
    %c13 = arith.constant 13 : index
    %c0_146 = arith.constant 0 : index
    %c0_147 = arith.constant 0 : index
    %485 = vector.load %arg0[%c13, %c0_146, %c0_147] : memref<32x2x256xf32, #tpu.memory_space<vmem>>, vector<1x2x256xf32>
    %486 = vector.shape_cast %485 : vector<1x2x256xf32> to vector<2x256xf32>
    %487 = arith.addf %484, %486 : vector<2x256xf32>
    %488 = vector.extract_strided_slice %487 {offsets = [0, 0], sizes = [2, 64], strides = [1, 1]} : vector<2x256xf32> to vector<2x64xf32>
    %489 = arith.negf %488 : vector<2x64xf32>
    %490 = math.exp %489 : vector<2x64xf32>
    %cst_148 = arith.constant 1.000000e+00 : f32
    %491 = vector.broadcast %cst_148 : f32 to vector<2x64xf32>
    %492 = arith.addf %491, %490 : vector<2x64xf32>
    %493 = arith.divf %491, %492 : vector<2x64xf32>
    %494 = vector.extract_strided_slice %487 {offsets = [0, 64], sizes = [2, 64], strides = [1, 1]} : vector<2x256xf32> to vector<2x64xf32>
    %495 = arith.negf %494 : vector<2x64xf32>
    %496 = math.exp %495 : vector<2x64xf32>
    %cst_149 = arith.constant 1.000000e+00 : f32
    %497 = vector.broadcast %cst_149 : f32 to vector<2x64xf32>
    %498 = arith.addf %497, %496 : vector<2x64xf32>
    %499 = arith.divf %497, %498 : vector<2x64xf32>
    %500 = vector.extract_strided_slice %487 {offsets = [0, 128], sizes = [2, 64], strides = [1, 1]} : vector<2x256xf32> to vector<2x64xf32>
    %501 = math.tanh %500 : vector<2x64xf32>
    %502 = vector.extract_strided_slice %487 {offsets = [0, 192], sizes = [2, 64], strides = [1, 1]} : vector<2x256xf32> to vector<2x64xf32>
    %503 = arith.negf %502 : vector<2x64xf32>
    %504 = math.exp %503 : vector<2x64xf32>
    %cst_150 = arith.constant 1.000000e+00 : f32
    %505 = vector.broadcast %cst_150 : f32 to vector<2x64xf32>
    %506 = arith.addf %505, %504 : vector<2x64xf32>
    %507 = arith.divf %505, %506 : vector<2x64xf32>
    %508 = arith.mulf %499, %473 : vector<2x64xf32>
    %509 = arith.mulf %493, %501 : vector<2x64xf32>
    %510 = arith.addf %508, %509 : vector<2x64xf32>
    %511 = math.tanh %510 : vector<2x64xf32>
    %512 = arith.mulf %507, %511 : vector<2x64xf32>
    %513 = vector.extract_strided_slice %512 {offsets = [0, 0], sizes = [2, 32], strides = [1, 1]} : vector<2x64xf32> to vector<2x32xf32>
    %c13_151 = arith.constant 13 : index
    %c0_152 = arith.constant 0 : index
    %c0_153 = arith.constant 0 : index
    %514 = vector.load %arg2[%c13_151, %c0_152, %c0_153] : memref<32x2x64xf32, #tpu.memory_space<vmem>>, vector<1x2x32xf32>
    %515 = vector.shape_cast %514 : vector<1x2x32xf32> to vector<2x32xf32>
    %516 = vector.shape_cast %513 : vector<2x32xf32> to vector<1x2x32xf32>
    tpu.vector_store %arg2[%c13_151, %c0_152, %c0_153], %516 {strides = array<i32>} : memref<32x2x64xf32, #tpu.memory_space<vmem>>, vector<1x2x32xf32>,
    %517 = vector.extract_strided_slice %512 {offsets = [0, 32], sizes = [2, 32], strides = [1, 1]} : vector<2x64xf32> to vector<2x32xf32>
    %c18 = arith.constant 18 : index
    %c0_154 = arith.constant 0 : index
    %c32_155 = arith.constant 32 : index
    %518 = vector.load %arg2[%c18, %c0_154, %c32_155] : memref<32x2x64xf32, #tpu.memory_space<vmem>>, vector<1x2x32xf32>
    %519 = vector.shape_cast %518 : vector<1x2x32xf32> to vector<2x32xf32>
    %520 = vector.shape_cast %517 : vector<2x32xf32> to vector<1x2x32xf32>
    tpu.vector_store %arg2[%c18, %c0_154, %c32_155], %520 {strides = array<i32>} : memref<32x2x64xf32, #tpu.memory_space<vmem>>, vector<1x2x32xf32>,
    %cst_156 = arith.constant dense<0.000000e+00> : vector<2x256xf32>
    %521 = tpu.matmul %512, %0, %cst_156 {dimension_numbers = #tpu.dot_dimension_numbers<[1], [0], [0], [1], [0, 0, 1, 1], [], []>} : vector<2x64xf32>, vector<64x256xf32>, vector<2x256xf32> -> vector<2x256xf32>
    %c14 = arith.constant 14 : index
    %c0_157 = arith.constant 0 : index
    %c0_158 = arith.constant 0 : index
    %522 = vector.load %arg0[%c14, %c0_157, %c0_158] : memref<32x2x256xf32, #tpu.memory_space<vmem>>, vector<1x2x256xf32>
    %523 = vector.shape_cast %522 : vector<1x2x256xf32> to vector<2x256xf32>
    %524 = arith.addf %521, %523 : vector<2x256xf32>
    %525 = vector.extract_strided_slice %524 {offsets = [0, 0], sizes = [2, 64], strides = [1, 1]} : vector<2x256xf32> to vector<2x64xf32>
    %526 = arith.negf %525 : vector<2x64xf32>
    %527 = math.exp %526 : vector<2x64xf32>
    %cst_159 = arith.constant 1.000000e+00 : f32
    %528 = vector.broadcast %cst_159 : f32 to vector<2x64xf32>
    %529 = arith.addf %528, %527 : vector<2x64xf32>
    %530 = arith.divf %528, %529 : vector<2x64xf32>
    %531 = vector.extract_strided_slice %524 {offsets = [0, 64], sizes = [2, 64], strides = [1, 1]} : vector<2x256xf32> to vector<2x64xf32>
    %532 = arith.negf %531 : vector<2x64xf32>
    %533 = math.exp %532 : vector<2x64xf32>
    %cst_160 = arith.constant 1.000000e+00 : f32
    %534 = vector.broadcast %cst_160 : f32 to vector<2x64xf32>
    %535 = arith.addf %534, %533 : vector<2x64xf32>
    %536 = arith.divf %534, %535 : vector<2x64xf32>
    %537 = vector.extract_strided_slice %524 {offsets = [0, 128], sizes = [2, 64], strides = [1, 1]} : vector<2x256xf32> to vector<2x64xf32>
    %538 = math.tanh %537 : vector<2x64xf32>
    %539 = vector.extract_strided_slice %524 {offsets = [0, 192], sizes = [2, 64], strides = [1, 1]} : vector<2x256xf32> to vector<2x64xf32>
    %540 = arith.negf %539 : vector<2x64xf32>
    %541 = math.exp %540 : vector<2x64xf32>
    %cst_161 = arith.constant 1.000000e+00 : f32
    %542 = vector.broadcast %cst_161 : f32 to vector<2x64xf32>
    %543 = arith.addf %542, %541 : vector<2x64xf32>
    %544 = arith.divf %542, %543 : vector<2x64xf32>
    %545 = arith.mulf %536, %510 : vector<2x64xf32>
    %546 = arith.mulf %530, %538 : vector<2x64xf32>
    %547 = arith.addf %545, %546 : vector<2x64xf32>
    %548 = math.tanh %547 : vector<2x64xf32>
    %549 = arith.mulf %544, %548 : vector<2x64xf32>
    %550 = vector.extract_strided_slice %549 {offsets = [0, 0], sizes = [2, 32], strides = [1, 1]} : vector<2x64xf32> to vector<2x32xf32>
    %c14_162 = arith.constant 14 : index
    %c0_163 = arith.constant 0 : index
    %c0_164 = arith.constant 0 : index
    %551 = vector.load %arg2[%c14_162, %c0_163, %c0_164] : memref<32x2x64xf32, #tpu.memory_space<vmem>>, vector<1x2x32xf32>
    %552 = vector.shape_cast %551 : vector<1x2x32xf32> to vector<2x32xf32>
    %553 = vector.shape_cast %550 : vector<2x32xf32> to vector<1x2x32xf32>
    tpu.vector_store %arg2[%c14_162, %c0_163, %c0_164], %553 {strides = array<i32>} : memref<32x2x64xf32, #tpu.memory_space<vmem>>, vector<1x2x32xf32>,
    %554 = vector.extract_strided_slice %549 {offsets = [0, 32], sizes = [2, 32], strides = [1, 1]} : vector<2x64xf32> to vector<2x32xf32>
    %c17 = arith.constant 17 : index
    %c0_165 = arith.constant 0 : index
    %c32_166 = arith.constant 32 : index
    %555 = vector.load %arg2[%c17, %c0_165, %c32_166] : memref<32x2x64xf32, #tpu.memory_space<vmem>>, vector<1x2x32xf32>
    %556 = vector.shape_cast %555 : vector<1x2x32xf32> to vector<2x32xf32>
    %557 = vector.shape_cast %554 : vector<2x32xf32> to vector<1x2x32xf32>
    tpu.vector_store %arg2[%c17, %c0_165, %c32_166], %557 {strides = array<i32>} : memref<32x2x64xf32, #tpu.memory_space<vmem>>, vector<1x2x32xf32>,
    %cst_167 = arith.constant dense<0.000000e+00> : vector<2x256xf32>
    %558 = tpu.matmul %549, %0, %cst_167 {dimension_numbers = #tpu.dot_dimension_numbers<[1], [0], [0], [1], [0, 0, 1, 1], [], []>} : vector<2x64xf32>, vector<64x256xf32>, vector<2x256xf32> -> vector<2x256xf32>
    %c15 = arith.constant 15 : index
    %c0_168 = arith.constant 0 : index
    %c0_169 = arith.constant 0 : index
    %559 = vector.load %arg0[%c15, %c0_168, %c0_169] : memref<32x2x256xf32, #tpu.memory_space<vmem>>, vector<1x2x256xf32>
    %560 = vector.shape_cast %559 : vector<1x2x256xf32> to vector<2x256xf32>
    %561 = arith.addf %558, %560 : vector<2x256xf32>
    %562 = vector.extract_strided_slice %561 {offsets = [0, 0], sizes = [2, 64], strides = [1, 1]} : vector<2x256xf32> to vector<2x64xf32>
    %563 = arith.negf %562 : vector<2x64xf32>
    %564 = math.exp %563 : vector<2x64xf32>
    %cst_170 = arith.constant 1.000000e+00 : f32
    %565 = vector.broadcast %cst_170 : f32 to vector<2x64xf32>
    %566 = arith.addf %565, %564 : vector<2x64xf32>
    %567 = arith.divf %565, %566 : vector<2x64xf32>
    %568 = vector.extract_strided_slice %561 {offsets = [0, 64], sizes = [2, 64], strides = [1, 1]} : vector<2x256xf32> to vector<2x64xf32>
    %569 = arith.negf %568 : vector<2x64xf32>
    %570 = math.exp %569 : vector<2x64xf32>
    %cst_171 = arith.constant 1.000000e+00 : f32
    %571 = vector.broadcast %cst_171 : f32 to vector<2x64xf32>
    %572 = arith.addf %571, %570 : vector<2x64xf32>
    %573 = arith.divf %571, %572 : vector<2x64xf32>
    %574 = vector.extract_strided_slice %561 {offsets = [0, 128], sizes = [2, 64], strides = [1, 1]} : vector<2x256xf32> to vector<2x64xf32>
    %575 = math.tanh %574 : vector<2x64xf32>
    %576 = vector.extract_strided_slice %561 {offsets = [0, 192], sizes = [2, 64], strides = [1, 1]} : vector<2x256xf32> to vector<2x64xf32>
    %577 = arith.negf %576 : vector<2x64xf32>
    %578 = math.exp %577 : vector<2x64xf32>
    %cst_172 = arith.constant 1.000000e+00 : f32
    %579 = vector.broadcast %cst_172 : f32 to vector<2x64xf32>
    %580 = arith.addf %579, %578 : vector<2x64xf32>
    %581 = arith.divf %579, %580 : vector<2x64xf32>
    %582 = arith.mulf %573, %547 : vector<2x64xf32>
    %583 = arith.mulf %567, %575 : vector<2x64xf32>
    %584 = arith.addf %582, %583 : vector<2x64xf32>
    %585 = math.tanh %584 : vector<2x64xf32>
    %586 = arith.mulf %581, %585 : vector<2x64xf32>
    %587 = vector.extract_strided_slice %586 {offsets = [0, 0], sizes = [2, 32], strides = [1, 1]} : vector<2x64xf32> to vector<2x32xf32>
    %c15_173 = arith.constant 15 : index
    %c0_174 = arith.constant 0 : index
    %c0_175 = arith.constant 0 : index
    %588 = vector.load %arg2[%c15_173, %c0_174, %c0_175] : memref<32x2x64xf32, #tpu.memory_space<vmem>>, vector<1x2x32xf32>
    %589 = vector.shape_cast %588 : vector<1x2x32xf32> to vector<2x32xf32>
    %590 = vector.shape_cast %587 : vector<2x32xf32> to vector<1x2x32xf32>
    tpu.vector_store %arg2[%c15_173, %c0_174, %c0_175], %590 {strides = array<i32>} : memref<32x2x64xf32, #tpu.memory_space<vmem>>, vector<1x2x32xf32>,
    %591 = vector.extract_strided_slice %586 {offsets = [0, 32], sizes = [2, 32], strides = [1, 1]} : vector<2x64xf32> to vector<2x32xf32>
    %c16 = arith.constant 16 : index
    %c0_176 = arith.constant 0 : index
    %c32_177 = arith.constant 32 : index
    %592 = vector.load %arg2[%c16, %c0_176, %c32_177] : memref<32x2x64xf32, #tpu.memory_space<vmem>>, vector<1x2x32xf32>
    %593 = vector.shape_cast %592 : vector<1x2x32xf32> to vector<2x32xf32>
    %594 = vector.shape_cast %591 : vector<2x32xf32> to vector<1x2x32xf32>
    tpu.vector_store %arg2[%c16, %c0_176, %c32_177], %594 {strides = array<i32>} : memref<32x2x64xf32, #tpu.memory_space<vmem>>, vector<1x2x32xf32>,
    %cst_178 = arith.constant dense<0.000000e+00> : vector<2x256xf32>
    %595 = tpu.matmul %586, %0, %cst_178 {dimension_numbers = #tpu.dot_dimension_numbers<[1], [0], [0], [1], [0, 0, 1, 1], [], []>} : vector<2x64xf32>, vector<64x256xf32>, vector<2x256xf32> -> vector<2x256xf32>
    %c16_179 = arith.constant 16 : index
    %c0_180 = arith.constant 0 : index
    %c0_181 = arith.constant 0 : index
    %596 = vector.load %arg0[%c16_179, %c0_180, %c0_181] : memref<32x2x256xf32, #tpu.memory_space<vmem>>, vector<1x2x256xf32>
    %597 = vector.shape_cast %596 : vector<1x2x256xf32> to vector<2x256xf32>
    %598 = arith.addf %595, %597 : vector<2x256xf32>
    %599 = vector.extract_strided_slice %598 {offsets = [0, 0], sizes = [2, 64], strides = [1, 1]} : vector<2x256xf32> to vector<2x64xf32>
    %600 = arith.negf %599 : vector<2x64xf32>
    %601 = math.exp %600 : vector<2x64xf32>
    %cst_182 = arith.constant 1.000000e+00 : f32
    %602 = vector.broadcast %cst_182 : f32 to vector<2x64xf32>
    %603 = arith.addf %602, %601 : vector<2x64xf32>
    %604 = arith.divf %602, %603 : vector<2x64xf32>
    %605 = vector.extract_strided_slice %598 {offsets = [0, 64], sizes = [2, 64], strides = [1, 1]} : vector<2x256xf32> to vector<2x64xf32>
    %606 = arith.negf %605 : vector<2x64xf32>
    %607 = math.exp %606 : vector<2x64xf32>
    %cst_183 = arith.constant 1.000000e+00 : f32
    %608 = vector.broadcast %cst_183 : f32 to vector<2x64xf32>
    %609 = arith.addf %608, %607 : vector<2x64xf32>
    %610 = arith.divf %608, %609 : vector<2x64xf32>
    %611 = vector.extract_strided_slice %598 {offsets = [0, 128], sizes = [2, 64], strides = [1, 1]} : vector<2x256xf32> to vector<2x64xf32>
    %612 = math.tanh %611 : vector<2x64xf32>
    %613 = vector.extract_strided_slice %598 {offsets = [0, 192], sizes = [2, 64], strides = [1, 1]} : vector<2x256xf32> to vector<2x64xf32>
    %614 = arith.negf %613 : vector<2x64xf32>
    %615 = math.exp %614 : vector<2x64xf32>
    %cst_184 = arith.constant 1.000000e+00 : f32
    %616 = vector.broadcast %cst_184 : f32 to vector<2x64xf32>
    %617 = arith.addf %616, %615 : vector<2x64xf32>
    %618 = arith.divf %616, %617 : vector<2x64xf32>
    %619 = arith.mulf %610, %584 : vector<2x64xf32>
    %620 = arith.mulf %604, %612 : vector<2x64xf32>
    %621 = arith.addf %619, %620 : vector<2x64xf32>
    %622 = math.tanh %621 : vector<2x64xf32>
    %623 = arith.mulf %618, %622 : vector<2x64xf32>
    %624 = vector.extract_strided_slice %623 {offsets = [0, 0], sizes = [2, 32], strides = [1, 1]} : vector<2x64xf32> to vector<2x32xf32>
    %c16_185 = arith.constant 16 : index
    %c0_186 = arith.constant 0 : index
    %c0_187 = arith.constant 0 : index
    %625 = vector.load %arg2[%c16_185, %c0_186, %c0_187] : memref<32x2x64xf32, #tpu.memory_space<vmem>>, vector<1x2x32xf32>
    %626 = vector.shape_cast %625 : vector<1x2x32xf32> to vector<2x32xf32>
    %627 = vector.shape_cast %624 : vector<2x32xf32> to vector<1x2x32xf32>
    tpu.vector_store %arg2[%c16_185, %c0_186, %c0_187], %627 {strides = array<i32>} : memref<32x2x64xf32, #tpu.memory_space<vmem>>, vector<1x2x32xf32>,
    %628 = vector.extract_strided_slice %623 {offsets = [0, 32], sizes = [2, 32], strides = [1, 1]} : vector<2x64xf32> to vector<2x32xf32>
    %c15_188 = arith.constant 15 : index
    %c0_189 = arith.constant 0 : index
    %c32_190 = arith.constant 32 : index
    %629 = vector.load %arg2[%c15_188, %c0_189, %c32_190] : memref<32x2x64xf32, #tpu.memory_space<vmem>>, vector<1x2x32xf32>
    %630 = vector.shape_cast %629 : vector<1x2x32xf32> to vector<2x32xf32>
    %631 = vector.shape_cast %628 : vector<2x32xf32> to vector<1x2x32xf32>
    tpu.vector_store %arg2[%c15_188, %c0_189, %c32_190], %631 {strides = array<i32>} : memref<32x2x64xf32, #tpu.memory_space<vmem>>, vector<1x2x32xf32>,
    %cst_191 = arith.constant dense<0.000000e+00> : vector<2x256xf32>
    %632 = tpu.matmul %623, %0, %cst_191 {dimension_numbers = #tpu.dot_dimension_numbers<[1], [0], [0], [1], [0, 0, 1, 1], [], []>} : vector<2x64xf32>, vector<64x256xf32>, vector<2x256xf32> -> vector<2x256xf32>
    %c17_192 = arith.constant 17 : index
    %c0_193 = arith.constant 0 : index
    %c0_194 = arith.constant 0 : index
    %633 = vector.load %arg0[%c17_192, %c0_193, %c0_194] : memref<32x2x256xf32, #tpu.memory_space<vmem>>, vector<1x2x256xf32>
    %634 = vector.shape_cast %633 : vector<1x2x256xf32> to vector<2x256xf32>
    %635 = arith.addf %632, %634 : vector<2x256xf32>
    %636 = vector.extract_strided_slice %635 {offsets = [0, 0], sizes = [2, 64], strides = [1, 1]} : vector<2x256xf32> to vector<2x64xf32>
    %637 = arith.negf %636 : vector<2x64xf32>
    %638 = math.exp %637 : vector<2x64xf32>
    %cst_195 = arith.constant 1.000000e+00 : f32
    %639 = vector.broadcast %cst_195 : f32 to vector<2x64xf32>
    %640 = arith.addf %639, %638 : vector<2x64xf32>
    %641 = arith.divf %639, %640 : vector<2x64xf32>
    %642 = vector.extract_strided_slice %635 {offsets = [0, 64], sizes = [2, 64], strides = [1, 1]} : vector<2x256xf32> to vector<2x64xf32>
    %643 = arith.negf %642 : vector<2x64xf32>
    %644 = math.exp %643 : vector<2x64xf32>
    %cst_196 = arith.constant 1.000000e+00 : f32
    %645 = vector.broadcast %cst_196 : f32 to vector<2x64xf32>
    %646 = arith.addf %645, %644 : vector<2x64xf32>
    %647 = arith.divf %645, %646 : vector<2x64xf32>
    %648 = vector.extract_strided_slice %635 {offsets = [0, 128], sizes = [2, 64], strides = [1, 1]} : vector<2x256xf32> to vector<2x64xf32>
    %649 = math.tanh %648 : vector<2x64xf32>
    %650 = vector.extract_strided_slice %635 {offsets = [0, 192], sizes = [2, 64], strides = [1, 1]} : vector<2x256xf32> to vector<2x64xf32>
    %651 = arith.negf %650 : vector<2x64xf32>
    %652 = math.exp %651 : vector<2x64xf32>
    %cst_197 = arith.constant 1.000000e+00 : f32
    %653 = vector.broadcast %cst_197 : f32 to vector<2x64xf32>
    %654 = arith.addf %653, %652 : vector<2x64xf32>
    %655 = arith.divf %653, %654 : vector<2x64xf32>
    %656 = arith.mulf %647, %621 : vector<2x64xf32>
    %657 = arith.mulf %641, %649 : vector<2x64xf32>
    %658 = arith.addf %656, %657 : vector<2x64xf32>
    %659 = math.tanh %658 : vector<2x64xf32>
    %660 = arith.mulf %655, %659 : vector<2x64xf32>
    %661 = vector.extract_strided_slice %660 {offsets = [0, 0], sizes = [2, 32], strides = [1, 1]} : vector<2x64xf32> to vector<2x32xf32>
    %c17_198 = arith.constant 17 : index
    %c0_199 = arith.constant 0 : index
    %c0_200 = arith.constant 0 : index
    %662 = vector.load %arg2[%c17_198, %c0_199, %c0_200] : memref<32x2x64xf32, #tpu.memory_space<vmem>>, vector<1x2x32xf32>
    %663 = vector.shape_cast %662 : vector<1x2x32xf32> to vector<2x32xf32>
    %664 = vector.shape_cast %661 : vector<2x32xf32> to vector<1x2x32xf32>
    tpu.vector_store %arg2[%c17_198, %c0_199, %c0_200], %664 {strides = array<i32>} : memref<32x2x64xf32, #tpu.memory_space<vmem>>, vector<1x2x32xf32>,
    %665 = vector.extract_strided_slice %660 {offsets = [0, 32], sizes = [2, 32], strides = [1, 1]} : vector<2x64xf32> to vector<2x32xf32>
    %c14_201 = arith.constant 14 : index
    %c0_202 = arith.constant 0 : index
    %c32_203 = arith.constant 32 : index
    %666 = vector.load %arg2[%c14_201, %c0_202, %c32_203] : memref<32x2x64xf32, #tpu.memory_space<vmem>>, vector<1x2x32xf32>
    %667 = vector.shape_cast %666 : vector<1x2x32xf32> to vector<2x32xf32>
    %668 = vector.shape_cast %665 : vector<2x32xf32> to vector<1x2x32xf32>
    tpu.vector_store %arg2[%c14_201, %c0_202, %c32_203], %668 {strides = array<i32>} : memref<32x2x64xf32, #tpu.memory_space<vmem>>, vector<1x2x32xf32>,
    %cst_204 = arith.constant dense<0.000000e+00> : vector<2x256xf32>
    %669 = tpu.matmul %660, %0, %cst_204 {dimension_numbers = #tpu.dot_dimension_numbers<[1], [0], [0], [1], [0, 0, 1, 1], [], []>} : vector<2x64xf32>, vector<64x256xf32>, vector<2x256xf32> -> vector<2x256xf32>
    %c18_205 = arith.constant 18 : index
    %c0_206 = arith.constant 0 : index
    %c0_207 = arith.constant 0 : index
    %670 = vector.load %arg0[%c18_205, %c0_206, %c0_207] : memref<32x2x256xf32, #tpu.memory_space<vmem>>, vector<1x2x256xf32>
    %671 = vector.shape_cast %670 : vector<1x2x256xf32> to vector<2x256xf32>
    %672 = arith.addf %669, %671 : vector<2x256xf32>
    %673 = vector.extract_strided_slice %672 {offsets = [0, 0], sizes = [2, 64], strides = [1, 1]} : vector<2x256xf32> to vector<2x64xf32>
    %674 = arith.negf %673 : vector<2x64xf32>
    %675 = math.exp %674 : vector<2x64xf32>
    %cst_208 = arith.constant 1.000000e+00 : f32
    %676 = vector.broadcast %cst_208 : f32 to vector<2x64xf32>
    %677 = arith.addf %676, %675 : vector<2x64xf32>
    %678 = arith.divf %676, %677 : vector<2x64xf32>
    %679 = vector.extract_strided_slice %672 {offsets = [0, 64], sizes = [2, 64], strides = [1, 1]} : vector<2x256xf32> to vector<2x64xf32>
    %680 = arith.negf %679 : vector<2x64xf32>
    %681 = math.exp %680 : vector<2x64xf32>
    %cst_209 = arith.constant 1.000000e+00 : f32
    %682 = vector.broadcast %cst_209 : f32 to vector<2x64xf32>
    %683 = arith.addf %682, %681 : vector<2x64xf32>
    %684 = arith.divf %682, %683 : vector<2x64xf32>
    %685 = vector.extract_strided_slice %672 {offsets = [0, 128], sizes = [2, 64], strides = [1, 1]} : vector<2x256xf32> to vector<2x64xf32>
    %686 = math.tanh %685 : vector<2x64xf32>
    %687 = vector.extract_strided_slice %672 {offsets = [0, 192], sizes = [2, 64], strides = [1, 1]} : vector<2x256xf32> to vector<2x64xf32>
    %688 = arith.negf %687 : vector<2x64xf32>
    %689 = math.exp %688 : vector<2x64xf32>
    %cst_210 = arith.constant 1.000000e+00 : f32
    %690 = vector.broadcast %cst_210 : f32 to vector<2x64xf32>
    %691 = arith.addf %690, %689 : vector<2x64xf32>
    %692 = arith.divf %690, %691 : vector<2x64xf32>
    %693 = arith.mulf %684, %658 : vector<2x64xf32>
    %694 = arith.mulf %678, %686 : vector<2x64xf32>
    %695 = arith.addf %693, %694 : vector<2x64xf32>
    %696 = math.tanh %695 : vector<2x64xf32>
    %697 = arith.mulf %692, %696 : vector<2x64xf32>
    %698 = vector.extract_strided_slice %697 {offsets = [0, 0], sizes = [2, 32], strides = [1, 1]} : vector<2x64xf32> to vector<2x32xf32>
    %c18_211 = arith.constant 18 : index
    %c0_212 = arith.constant 0 : index
    %c0_213 = arith.constant 0 : index
    %699 = vector.load %arg2[%c18_211, %c0_212, %c0_213] : memref<32x2x64xf32, #tpu.memory_space<vmem>>, vector<1x2x32xf32>
    %700 = vector.shape_cast %699 : vector<1x2x32xf32> to vector<2x32xf32>
    %701 = vector.shape_cast %698 : vector<2x32xf32> to vector<1x2x32xf32>
    tpu.vector_store %arg2[%c18_211, %c0_212, %c0_213], %701 {strides = array<i32>} : memref<32x2x64xf32, #tpu.memory_space<vmem>>, vector<1x2x32xf32>,
    %702 = vector.extract_strided_slice %697 {offsets = [0, 32], sizes = [2, 32], strides = [1, 1]} : vector<2x64xf32> to vector<2x32xf32>
    %c13_214 = arith.constant 13 : index
    %c0_215 = arith.constant 0 : index
    %c32_216 = arith.constant 32 : index
    %703 = vector.load %arg2[%c13_214, %c0_215, %c32_216] : memref<32x2x64xf32, #tpu.memory_space<vmem>>, vector<1x2x32xf32>
    %704 = vector.shape_cast %703 : vector<1x2x32xf32> to vector<2x32xf32>
    %705 = vector.shape_cast %702 : vector<2x32xf32> to vector<1x2x32xf32>
    tpu.vector_store %arg2[%c13_214, %c0_215, %c32_216], %705 {strides = array<i32>} : memref<32x2x64xf32, #tpu.memory_space<vmem>>, vector<1x2x32xf32>,
    %cst_217 = arith.constant dense<0.000000e+00> : vector<2x256xf32>
    %706 = tpu.matmul %697, %0, %cst_217 {dimension_numbers = #tpu.dot_dimension_numbers<[1], [0], [0], [1], [0, 0, 1, 1], [], []>} : vector<2x64xf32>, vector<64x256xf32>, vector<2x256xf32> -> vector<2x256xf32>
    %c19_218 = arith.constant 19 : index
    %c0_219 = arith.constant 0 : index
    %c0_220 = arith.constant 0 : index
    %707 = vector.load %arg0[%c19_218, %c0_219, %c0_220] : memref<32x2x256xf32, #tpu.memory_space<vmem>>, vector<1x2x256xf32>
    %708 = vector.shape_cast %707 : vector<1x2x256xf32> to vector<2x256xf32>
    %709 = arith.addf %706, %708 : vector<2x256xf32>
    %710 = vector.extract_strided_slice %709 {offsets = [0, 0], sizes = [2, 64], strides = [1, 1]} : vector<2x256xf32> to vector<2x64xf32>
    %711 = arith.negf %710 : vector<2x64xf32>
    %712 = math.exp %711 : vector<2x64xf32>
    %cst_221 = arith.constant 1.000000e+00 : f32
    %713 = vector.broadcast %cst_221 : f32 to vector<2x64xf32>
    %714 = arith.addf %713, %712 : vector<2x64xf32>
    %715 = arith.divf %713, %714 : vector<2x64xf32>
    %716 = vector.extract_strided_slice %709 {offsets = [0, 64], sizes = [2, 64], strides = [1, 1]} : vector<2x256xf32> to vector<2x64xf32>
    %717 = arith.negf %716 : vector<2x64xf32>
    %718 = math.exp %717 : vector<2x64xf32>
    %cst_222 = arith.constant 1.000000e+00 : f32
    %719 = vector.broadcast %cst_222 : f32 to vector<2x64xf32>
    %720 = arith.addf %719, %718 : vector<2x64xf32>
    %721 = arith.divf %719, %720 : vector<2x64xf32>
    %722 = vector.extract_strided_slice %709 {offsets = [0, 128], sizes = [2, 64], strides = [1, 1]} : vector<2x256xf32> to vector<2x64xf32>
    %723 = math.tanh %722 : vector<2x64xf32>
    %724 = vector.extract_strided_slice %709 {offsets = [0, 192], sizes = [2, 64], strides = [1, 1]} : vector<2x256xf32> to vector<2x64xf32>
    %725 = arith.negf %724 : vector<2x64xf32>
    %726 = math.exp %725 : vector<2x64xf32>
    %cst_223 = arith.constant 1.000000e+00 : f32
    %727 = vector.broadcast %cst_223 : f32 to vector<2x64xf32>
    %728 = arith.addf %727, %726 : vector<2x64xf32>
    %729 = arith.divf %727, %728 : vector<2x64xf32>
    %730 = arith.mulf %721, %695 : vector<2x64xf32>
    %731 = arith.mulf %715, %723 : vector<2x64xf32>
    %732 = arith.addf %730, %731 : vector<2x64xf32>
    %733 = math.tanh %732 : vector<2x64xf32>
    %734 = arith.mulf %729, %733 : vector<2x64xf32>
    %735 = vector.extract_strided_slice %734 {offsets = [0, 0], sizes = [2, 32], strides = [1, 1]} : vector<2x64xf32> to vector<2x32xf32>
    %c19_224 = arith.constant 19 : index
    %c0_225 = arith.constant 0 : index
    %c0_226 = arith.constant 0 : index
    %736 = vector.load %arg2[%c19_224, %c0_225, %c0_226] : memref<32x2x64xf32, #tpu.memory_space<vmem>>, vector<1x2x32xf32>
    %737 = vector.shape_cast %736 : vector<1x2x32xf32> to vector<2x32xf32>
    %738 = vector.shape_cast %735 : vector<2x32xf32> to vector<1x2x32xf32>
    tpu.vector_store %arg2[%c19_224, %c0_225, %c0_226], %738 {strides = array<i32>} : memref<32x2x64xf32, #tpu.memory_space<vmem>>, vector<1x2x32xf32>,
    %739 = vector.extract_strided_slice %734 {offsets = [0, 32], sizes = [2, 32], strides = [1, 1]} : vector<2x64xf32> to vector<2x32xf32>
    %c12_227 = arith.constant 12 : index
    %c0_228 = arith.constant 0 : index
    %c32_229 = arith.constant 32 : index
    %740 = vector.load %arg2[%c12_227, %c0_228, %c32_229] : memref<32x2x64xf32, #tpu.memory_space<vmem>>, vector<1x2x32xf32>
    %741 = vector.shape_cast %740 : vector<1x2x32xf32> to vector<2x32xf32>
    %742 = vector.shape_cast %739 : vector<2x32xf32> to vector<1x2x32xf32>
    tpu.vector_store %arg2[%c12_227, %c0_228, %c32_229], %742 {strides = array<i32>} : memref<32x2x64xf32, #tpu.memory_space<vmem>>, vector<1x2x32xf32>,
    %cst_230 = arith.constant dense<0.000000e+00> : vector<2x256xf32>
    %743 = tpu.matmul %734, %0, %cst_230 {dimension_numbers = #tpu.dot_dimension_numbers<[1], [0], [0], [1], [0, 0, 1, 1], [], []>} : vector<2x64xf32>, vector<64x256xf32>, vector<2x256xf32> -> vector<2x256xf32>
    %c20_231 = arith.constant 20 : index
    %c0_232 = arith.constant 0 : index
    %c0_233 = arith.constant 0 : index
    %744 = vector.load %arg0[%c20_231, %c0_232, %c0_233] : memref<32x2x256xf32, #tpu.memory_space<vmem>>, vector<1x2x256xf32>
    %745 = vector.shape_cast %744 : vector<1x2x256xf32> to vector<2x256xf32>
    %746 = arith.addf %743, %745 : vector<2x256xf32>
    %747 = vector.extract_strided_slice %746 {offsets = [0, 0], sizes = [2, 64], strides = [1, 1]} : vector<2x256xf32> to vector<2x64xf32>
    %748 = arith.negf %747 : vector<2x64xf32>
    %749 = math.exp %748 : vector<2x64xf32>
    %cst_234 = arith.constant 1.000000e+00 : f32
    %750 = vector.broadcast %cst_234 : f32 to vector<2x64xf32>
    %751 = arith.addf %750, %749 : vector<2x64xf32>
    %752 = arith.divf %750, %751 : vector<2x64xf32>
    %753 = vector.extract_strided_slice %746 {offsets = [0, 64], sizes = [2, 64], strides = [1, 1]} : vector<2x256xf32> to vector<2x64xf32>
    %754 = arith.negf %753 : vector<2x64xf32>
    %755 = math.exp %754 : vector<2x64xf32>
    %cst_235 = arith.constant 1.000000e+00 : f32
    %756 = vector.broadcast %cst_235 : f32 to vector<2x64xf32>
    %757 = arith.addf %756, %755 : vector<2x64xf32>
    %758 = arith.divf %756, %757 : vector<2x64xf32>
    %759 = vector.extract_strided_slice %746 {offsets = [0, 128], sizes = [2, 64], strides = [1, 1]} : vector<2x256xf32> to vector<2x64xf32>
    %760 = math.tanh %759 : vector<2x64xf32>
    %761 = vector.extract_strided_slice %746 {offsets = [0, 192], sizes = [2, 64], strides = [1, 1]} : vector<2x256xf32> to vector<2x64xf32>
    %762 = arith.negf %761 : vector<2x64xf32>
    %763 = math.exp %762 : vector<2x64xf32>
    %cst_236 = arith.constant 1.000000e+00 : f32
    %764 = vector.broadcast %cst_236 : f32 to vector<2x64xf32>
    %765 = arith.addf %764, %763 : vector<2x64xf32>
    %766 = arith.divf %764, %765 : vector<2x64xf32>
    %767 = arith.mulf %758, %732 : vector<2x64xf32>
    %768 = arith.mulf %752, %760 : vector<2x64xf32>
    %769 = arith.addf %767, %768 : vector<2x64xf32>
    %770 = math.tanh %769 : vector<2x64xf32>
    %771 = arith.mulf %766, %770 : vector<2x64xf32>
    %772 = vector.extract_strided_slice %771 {offsets = [0, 0], sizes = [2, 32], strides = [1, 1]} : vector<2x64xf32> to vector<2x32xf32>
    %c20_237 = arith.constant 20 : index
    %c0_238 = arith.constant 0 : index
    %c0_239 = arith.constant 0 : index
    %773 = vector.load %arg2[%c20_237, %c0_238, %c0_239] : memref<32x2x64xf32, #tpu.memory_space<vmem>>, vector<1x2x32xf32>
    %774 = vector.shape_cast %773 : vector<1x2x32xf32> to vector<2x32xf32>
    %775 = vector.shape_cast %772 : vector<2x32xf32> to vector<1x2x32xf32>
    tpu.vector_store %arg2[%c20_237, %c0_238, %c0_239], %775 {strides = array<i32>} : memref<32x2x64xf32, #tpu.memory_space<vmem>>, vector<1x2x32xf32>,
    %776 = vector.extract_strided_slice %771 {offsets = [0, 32], sizes = [2, 32], strides = [1, 1]} : vector<2x64xf32> to vector<2x32xf32>
    %c11_240 = arith.constant 11 : index
    %c0_241 = arith.constant 0 : index
    %c32_242 = arith.constant 32 : index
    %777 = vector.load %arg2[%c11_240, %c0_241, %c32_242] : memref<32x2x64xf32, #tpu.memory_space<vmem>>, vector<1x2x32xf32>
    %778 = vector.shape_cast %777 : vector<1x2x32xf32> to vector<2x32xf32>
    %779 = vector.shape_cast %776 : vector<2x32xf32> to vector<1x2x32xf32>
    tpu.vector_store %arg2[%c11_240, %c0_241, %c32_242], %779 {strides = array<i32>} : memref<32x2x64xf32, #tpu.memory_space<vmem>>, vector<1x2x32xf32>,
    %cst_243 = arith.constant dense<0.000000e+00> : vector<2x256xf32>
    %780 = tpu.matmul %771, %0, %cst_243 {dimension_numbers = #tpu.dot_dimension_numbers<[1], [0], [0], [1], [0, 0, 1, 1], [], []>} : vector<2x64xf32>, vector<64x256xf32>, vector<2x256xf32> -> vector<2x256xf32>
    %c21_244 = arith.constant 21 : index
    %c0_245 = arith.constant 0 : index
    %c0_246 = arith.constant 0 : index
    %781 = vector.load %arg0[%c21_244, %c0_245, %c0_246] : memref<32x2x256xf32, #tpu.memory_space<vmem>>, vector<1x2x256xf32>
    %782 = vector.shape_cast %781 : vector<1x2x256xf32> to vector<2x256xf32>
    %783 = arith.addf %780, %782 : vector<2x256xf32>
    %784 = vector.extract_strided_slice %783 {offsets = [0, 0], sizes = [2, 64], strides = [1, 1]} : vector<2x256xf32> to vector<2x64xf32>
    %785 = arith.negf %784 : vector<2x64xf32>
    %786 = math.exp %785 : vector<2x64xf32>
    %cst_247 = arith.constant 1.000000e+00 : f32
    %787 = vector.broadcast %cst_247 : f32 to vector<2x64xf32>
    %788 = arith.addf %787, %786 : vector<2x64xf32>
    %789 = arith.divf %787, %788 : vector<2x64xf32>
    %790 = vector.extract_strided_slice %783 {offsets = [0, 64], sizes = [2, 64], strides = [1, 1]} : vector<2x256xf32> to vector<2x64xf32>
    %791 = arith.negf %790 : vector<2x64xf32>
    %792 = math.exp %791 : vector<2x64xf32>
    %cst_248 = arith.constant 1.000000e+00 : f32
    %793 = vector.broadcast %cst_248 : f32 to vector<2x64xf32>
    %794 = arith.addf %793, %792 : vector<2x64xf32>
    %795 = arith.divf %793, %794 : vector<2x64xf32>
    %796 = vector.extract_strided_slice %783 {offsets = [0, 128], sizes = [2, 64], strides = [1, 1]} : vector<2x256xf32> to vector<2x64xf32>
    %797 = math.tanh %796 : vector<2x64xf32>
    %798 = vector.extract_strided_slice %783 {offsets = [0, 192], sizes = [2, 64], strides = [1, 1]} : vector<2x256xf32> to vector<2x64xf32>
    %799 = arith.negf %798 : vector<2x64xf32>
    %800 = math.exp %799 : vector<2x64xf32>
    %cst_249 = arith.constant 1.000000e+00 : f32
    %801 = vector.broadcast %cst_249 : f32 to vector<2x64xf32>
    %802 = arith.addf %801, %800 : vector<2x64xf32>
    %803 = arith.divf %801, %802 : vector<2x64xf32>
    %804 = arith.mulf %795, %769 : vector<2x64xf32>
    %805 = arith.mulf %789, %797 : vector<2x64xf32>
    %806 = arith.addf %804, %805 : vector<2x64xf32>
    %807 = math.tanh %806 : vector<2x64xf32>
    %808 = arith.mulf %803, %807 : vector<2x64xf32>
    %809 = vector.extract_strided_slice %808 {offsets = [0, 0], sizes = [2, 32], strides = [1, 1]} : vector<2x64xf32> to vector<2x32xf32>
    %c21_250 = arith.constant 21 : index
    %c0_251 = arith.constant 0 : index
    %c0_252 = arith.constant 0 : index
    %810 = vector.load %arg2[%c21_250, %c0_251, %c0_252] : memref<32x2x64xf32, #tpu.memory_space<vmem>>, vector<1x2x32xf32>
    %811 = vector.shape_cast %810 : vector<1x2x32xf32> to vector<2x32xf32>
    %812 = vector.shape_cast %809 : vector<2x32xf32> to vector<1x2x32xf32>
    tpu.vector_store %arg2[%c21_250, %c0_251, %c0_252], %812 {strides = array<i32>} : memref<32x2x64xf32, #tpu.memory_space<vmem>>, vector<1x2x32xf32>,
    %813 = vector.extract_strided_slice %808 {offsets = [0, 32], sizes = [2, 32], strides = [1, 1]} : vector<2x64xf32> to vector<2x32xf32>
    %c10_253 = arith.constant 10 : index
    %c0_254 = arith.constant 0 : index
    %c32_255 = arith.constant 32 : index
    %814 = vector.load %arg2[%c10_253, %c0_254, %c32_255] : memref<32x2x64xf32, #tpu.memory_space<vmem>>, vector<1x2x32xf32>
    %815 = vector.shape_cast %814 : vector<1x2x32xf32> to vector<2x32xf32>
    %816 = vector.shape_cast %813 : vector<2x32xf32> to vector<1x2x32xf32>
    tpu.vector_store %arg2[%c10_253, %c0_254, %c32_255], %816 {strides = array<i32>} : memref<32x2x64xf32, #tpu.memory_space<vmem>>, vector<1x2x32xf32>,
    %cst_256 = arith.constant dense<0.000000e+00> : vector<2x256xf32>
    %817 = tpu.matmul %808, %0, %cst_256 {dimension_numbers = #tpu.dot_dimension_numbers<[1], [0], [0], [1], [0, 0, 1, 1], [], []>} : vector<2x64xf32>, vector<64x256xf32>, vector<2x256xf32> -> vector<2x256xf32>
    %c22_257 = arith.constant 22 : index
    %c0_258 = arith.constant 0 : index
    %c0_259 = arith.constant 0 : index
    %818 = vector.load %arg0[%c22_257, %c0_258, %c0_259] : memref<32x2x256xf32, #tpu.memory_space<vmem>>, vector<1x2x256xf32>
    %819 = vector.shape_cast %818 : vector<1x2x256xf32> to vector<2x256xf32>
    %820 = arith.addf %817, %819 : vector<2x256xf32>
    %821 = vector.extract_strided_slice %820 {offsets = [0, 0], sizes = [2, 64], strides = [1, 1]} : vector<2x256xf32> to vector<2x64xf32>
    %822 = arith.negf %821 : vector<2x64xf32>
    %823 = math.exp %822 : vector<2x64xf32>
    %cst_260 = arith.constant 1.000000e+00 : f32
    %824 = vector.broadcast %cst_260 : f32 to vector<2x64xf32>
    %825 = arith.addf %824, %823 : vector<2x64xf32>
    %826 = arith.divf %824, %825 : vector<2x64xf32>
    %827 = vector.extract_strided_slice %820 {offsets = [0, 64], sizes = [2, 64], strides = [1, 1]} : vector<2x256xf32> to vector<2x64xf32>
    %828 = arith.negf %827 : vector<2x64xf32>
    %829 = math.exp %828 : vector<2x64xf32>
    %cst_261 = arith.constant 1.000000e+00 : f32
    %830 = vector.broadcast %cst_261 : f32 to vector<2x64xf32>
    %831 = arith.addf %830, %829 : vector<2x64xf32>
    %832 = arith.divf %830, %831 : vector<2x64xf32>
    %833 = vector.extract_strided_slice %820 {offsets = [0, 128], sizes = [2, 64], strides = [1, 1]} : vector<2x256xf32> to vector<2x64xf32>
    %834 = math.tanh %833 : vector<2x64xf32>
    %835 = vector.extract_strided_slice %820 {offsets = [0, 192], sizes = [2, 64], strides = [1, 1]} : vector<2x256xf32> to vector<2x64xf32>
    %836 = arith.negf %835 : vector<2x64xf32>
    %837 = math.exp %836 : vector<2x64xf32>
    %cst_262 = arith.constant 1.000000e+00 : f32
    %838 = vector.broadcast %cst_262 : f32 to vector<2x64xf32>
    %839 = arith.addf %838, %837 : vector<2x64xf32>
    %840 = arith.divf %838, %839 : vector<2x64xf32>
    %841 = arith.mulf %832, %806 : vector<2x64xf32>
    %842 = arith.mulf %826, %834 : vector<2x64xf32>
    %843 = arith.addf %841, %842 : vector<2x64xf32>
    %844 = math.tanh %843 : vector<2x64xf32>
    %845 = arith.mulf %840, %844 : vector<2x64xf32>
    %846 = vector.extract_strided_slice %845 {offsets = [0, 0], sizes = [2, 32], strides = [1, 1]} : vector<2x64xf32> to vector<2x32xf32>
    %c22_263 = arith.constant 22 : index
    %c0_264 = arith.constant 0 : index
    %c0_265 = arith.constant 0 : index
    %847 = vector.load %arg2[%c22_263, %c0_264, %c0_265] : memref<32x2x64xf32, #tpu.memory_space<vmem>>, vector<1x2x32xf32>
    %848 = vector.shape_cast %847 : vector<1x2x32xf32> to vector<2x32xf32>
    %849 = vector.shape_cast %846 : vector<2x32xf32> to vector<1x2x32xf32>
    tpu.vector_store %arg2[%c22_263, %c0_264, %c0_265], %849 {strides = array<i32>} : memref<32x2x64xf32, #tpu.memory_space<vmem>>, vector<1x2x32xf32>,
    %850 = vector.extract_strided_slice %845 {offsets = [0, 32], sizes = [2, 32], strides = [1, 1]} : vector<2x64xf32> to vector<2x32xf32>
    %c9_266 = arith.constant 9 : index
    %c0_267 = arith.constant 0 : index
    %c32_268 = arith.constant 32 : index
    %851 = vector.load %arg2[%c9_266, %c0_267, %c32_268] : memref<32x2x64xf32, #tpu.memory_space<vmem>>, vector<1x2x32xf32>
    %852 = vector.shape_cast %851 : vector<1x2x32xf32> to vector<2x32xf32>
    %853 = vector.shape_cast %850 : vector<2x32xf32> to vector<1x2x32xf32>
    tpu.vector_store %arg2[%c9_266, %c0_267, %c32_268], %853 {strides = array<i32>} : memref<32x2x64xf32, #tpu.memory_space<vmem>>, vector<1x2x32xf32>,
    %cst_269 = arith.constant dense<0.000000e+00> : vector<2x256xf32>
    %854 = tpu.matmul %845, %0, %cst_269 {dimension_numbers = #tpu.dot_dimension_numbers<[1], [0], [0], [1], [0, 0, 1, 1], [], []>} : vector<2x64xf32>, vector<64x256xf32>, vector<2x256xf32> -> vector<2x256xf32>
    %c23_270 = arith.constant 23 : index
    %c0_271 = arith.constant 0 : index
    %c0_272 = arith.constant 0 : index
    %855 = vector.load %arg0[%c23_270, %c0_271, %c0_272] : memref<32x2x256xf32, #tpu.memory_space<vmem>>, vector<1x2x256xf32>
    %856 = vector.shape_cast %855 : vector<1x2x256xf32> to vector<2x256xf32>
    %857 = arith.addf %854, %856 : vector<2x256xf32>
    %858 = vector.extract_strided_slice %857 {offsets = [0, 0], sizes = [2, 64], strides = [1, 1]} : vector<2x256xf32> to vector<2x64xf32>
    %859 = arith.negf %858 : vector<2x64xf32>
    %860 = math.exp %859 : vector<2x64xf32>
    %cst_273 = arith.constant 1.000000e+00 : f32
    %861 = vector.broadcast %cst_273 : f32 to vector<2x64xf32>
    %862 = arith.addf %861, %860 : vector<2x64xf32>
    %863 = arith.divf %861, %862 : vector<2x64xf32>
    %864 = vector.extract_strided_slice %857 {offsets = [0, 64], sizes = [2, 64], strides = [1, 1]} : vector<2x256xf32> to vector<2x64xf32>
    %865 = arith.negf %864 : vector<2x64xf32>
    %866 = math.exp %865 : vector<2x64xf32>
    %cst_274 = arith.constant 1.000000e+00 : f32
    %867 = vector.broadcast %cst_274 : f32 to vector<2x64xf32>
    %868 = arith.addf %867, %866 : vector<2x64xf32>
    %869 = arith.divf %867, %868 : vector<2x64xf32>
    %870 = vector.extract_strided_slice %857 {offsets = [0, 128], sizes = [2, 64], strides = [1, 1]} : vector<2x256xf32> to vector<2x64xf32>
    %871 = math.tanh %870 : vector<2x64xf32>
    %872 = vector.extract_strided_slice %857 {offsets = [0, 192], sizes = [2, 64], strides = [1, 1]} : vector<2x256xf32> to vector<2x64xf32>
    %873 = arith.negf %872 : vector<2x64xf32>
    %874 = math.exp %873 : vector<2x64xf32>
    %cst_275 = arith.constant 1.000000e+00 : f32
    %875 = vector.broadcast %cst_275 : f32 to vector<2x64xf32>
    %876 = arith.addf %875, %874 : vector<2x64xf32>
    %877 = arith.divf %875, %876 : vector<2x64xf32>
    %878 = arith.mulf %869, %843 : vector<2x64xf32>
    %879 = arith.mulf %863, %871 : vector<2x64xf32>
    %880 = arith.addf %878, %879 : vector<2x64xf32>
    %881 = math.tanh %880 : vector<2x64xf32>
    %882 = arith.mulf %877, %881 : vector<2x64xf32>
    %883 = vector.extract_strided_slice %882 {offsets = [0, 0], sizes = [2, 32], strides = [1, 1]} : vector<2x64xf32> to vector<2x32xf32>
    %c23_276 = arith.constant 23 : index
    %c0_277 = arith.constant 0 : index
    %c0_278 = arith.constant 0 : index
    %884 = vector.load %arg2[%c23_276, %c0_277, %c0_278] : memref<32x2x64xf32, #tpu.memory_space<vmem>>, vector<1x2x32xf32>
    %885 = vector.shape_cast %884 : vector<1x2x32xf32> to vector<2x32xf32>
    %886 = vector.shape_cast %883 : vector<2x32xf32> to vector<1x2x32xf32>
    tpu.vector_store %arg2[%c23_276, %c0_277, %c0_278], %886 {strides = array<i32>} : memref<32x2x64xf32, #tpu.memory_space<vmem>>, vector<1x2x32xf32>,
    %887 = vector.extract_strided_slice %882 {offsets = [0, 32], sizes = [2, 32], strides = [1, 1]} : vector<2x64xf32> to vector<2x32xf32>
    %c8_279 = arith.constant 8 : index
    %c0_280 = arith.constant 0 : index
    %c32_281 = arith.constant 32 : index
    %888 = vector.load %arg2[%c8_279, %c0_280, %c32_281] : memref<32x2x64xf32, #tpu.memory_space<vmem>>, vector<1x2x32xf32>
    %889 = vector.shape_cast %888 : vector<1x2x32xf32> to vector<2x32xf32>
    %890 = vector.shape_cast %887 : vector<2x32xf32> to vector<1x2x32xf32>
    tpu.vector_store %arg2[%c8_279, %c0_280, %c32_281], %890 {strides = array<i32>} : memref<32x2x64xf32, #tpu.memory_space<vmem>>, vector<1x2x32xf32>,
    %cst_282 = arith.constant dense<0.000000e+00> : vector<2x256xf32>
    %891 = tpu.matmul %882, %0, %cst_282 {dimension_numbers = #tpu.dot_dimension_numbers<[1], [0], [0], [1], [0, 0, 1, 1], [], []>} : vector<2x64xf32>, vector<64x256xf32>, vector<2x256xf32> -> vector<2x256xf32>
    %c24_283 = arith.constant 24 : index
    %c0_284 = arith.constant 0 : index
    %c0_285 = arith.constant 0 : index
    %892 = vector.load %arg0[%c24_283, %c0_284, %c0_285] : memref<32x2x256xf32, #tpu.memory_space<vmem>>, vector<1x2x256xf32>
    %893 = vector.shape_cast %892 : vector<1x2x256xf32> to vector<2x256xf32>
    %894 = arith.addf %891, %893 : vector<2x256xf32>
    %895 = vector.extract_strided_slice %894 {offsets = [0, 0], sizes = [2, 64], strides = [1, 1]} : vector<2x256xf32> to vector<2x64xf32>
    %896 = arith.negf %895 : vector<2x64xf32>
    %897 = math.exp %896 : vector<2x64xf32>
    %cst_286 = arith.constant 1.000000e+00 : f32
    %898 = vector.broadcast %cst_286 : f32 to vector<2x64xf32>
    %899 = arith.addf %898, %897 : vector<2x64xf32>
    %900 = arith.divf %898, %899 : vector<2x64xf32>
    %901 = vector.extract_strided_slice %894 {offsets = [0, 64], sizes = [2, 64], strides = [1, 1]} : vector<2x256xf32> to vector<2x64xf32>
    %902 = arith.negf %901 : vector<2x64xf32>
    %903 = math.exp %902 : vector<2x64xf32>
    %cst_287 = arith.constant 1.000000e+00 : f32
    %904 = vector.broadcast %cst_287 : f32 to vector<2x64xf32>
    %905 = arith.addf %904, %903 : vector<2x64xf32>
    %906 = arith.divf %904, %905 : vector<2x64xf32>
    %907 = vector.extract_strided_slice %894 {offsets = [0, 128], sizes = [2, 64], strides = [1, 1]} : vector<2x256xf32> to vector<2x64xf32>
    %908 = math.tanh %907 : vector<2x64xf32>
    %909 = vector.extract_strided_slice %894 {offsets = [0, 192], sizes = [2, 64], strides = [1, 1]} : vector<2x256xf32> to vector<2x64xf32>
    %910 = arith.negf %909 : vector<2x64xf32>
    %911 = math.exp %910 : vector<2x64xf32>
    %cst_288 = arith.constant 1.000000e+00 : f32
    %912 = vector.broadcast %cst_288 : f32 to vector<2x64xf32>
    %913 = arith.addf %912, %911 : vector<2x64xf32>
    %914 = arith.divf %912, %913 : vector<2x64xf32>
    %915 = arith.mulf %906, %880 : vector<2x64xf32>
    %916 = arith.mulf %900, %908 : vector<2x64xf32>
    %917 = arith.addf %915, %916 : vector<2x64xf32>
    %918 = math.tanh %917 : vector<2x64xf32>
    %919 = arith.mulf %914, %918 : vector<2x64xf32>
    %920 = vector.extract_strided_slice %919 {offsets = [0, 0], sizes = [2, 32], strides = [1, 1]} : vector<2x64xf32> to vector<2x32xf32>
    %c24_289 = arith.constant 24 : index
    %c0_290 = arith.constant 0 : index
    %c0_291 = arith.constant 0 : index
    %921 = vector.load %arg2[%c24_289, %c0_290, %c0_291] : memref<32x2x64xf32, #tpu.memory_space<vmem>>, vector<1x2x32xf32>
    %922 = vector.shape_cast %921 : vector<1x2x32xf32> to vector<2x32xf32>
    %923 = vector.shape_cast %920 : vector<2x32xf32> to vector<1x2x32xf32>
    tpu.vector_store %arg2[%c24_289, %c0_290, %c0_291], %923 {strides = array<i32>} : memref<32x2x64xf32, #tpu.memory_space<vmem>>, vector<1x2x32xf32>,
    %924 = vector.extract_strided_slice %919 {offsets = [0, 32], sizes = [2, 32], strides = [1, 1]} : vector<2x64xf32> to vector<2x32xf32>
    %c7_292 = arith.constant 7 : index
    %c0_293 = arith.constant 0 : index
    %c32_294 = arith.constant 32 : index
    %925 = vector.load %arg2[%c7_292, %c0_293, %c32_294] : memref<32x2x64xf32, #tpu.memory_space<vmem>>, vector<1x2x32xf32>
    %926 = vector.shape_cast %925 : vector<1x2x32xf32> to vector<2x32xf32>
    %927 = vector.shape_cast %924 : vector<2x32xf32> to vector<1x2x32xf32>
    tpu.vector_store %arg2[%c7_292, %c0_293, %c32_294], %927 {strides = array<i32>} : memref<32x2x64xf32, #tpu.memory_space<vmem>>, vector<1x2x32xf32>,
    %cst_295 = arith.constant dense<0.000000e+00> : vector<2x256xf32>
    %928 = tpu.matmul %919, %0, %cst_295 {dimension_numbers = #tpu.dot_dimension_numbers<[1], [0], [0], [1], [0, 0, 1, 1], [], []>} : vector<2x64xf32>, vector<64x256xf32>, vector<2x256xf32> -> vector<2x256xf32>
    %c25_296 = arith.constant 25 : index
    %c0_297 = arith.constant 0 : index
    %c0_298 = arith.constant 0 : index
    %929 = vector.load %arg0[%c25_296, %c0_297, %c0_298] : memref<32x2x256xf32, #tpu.memory_space<vmem>>, vector<1x2x256xf32>
    %930 = vector.shape_cast %929 : vector<1x2x256xf32> to vector<2x256xf32>
    %931 = arith.addf %928, %930 : vector<2x256xf32>
    %932 = vector.extract_strided_slice %931 {offsets = [0, 0], sizes = [2, 64], strides = [1, 1]} : vector<2x256xf32> to vector<2x64xf32>
    %933 = arith.negf %932 : vector<2x64xf32>
    %934 = math.exp %933 : vector<2x64xf32>
    %cst_299 = arith.constant 1.000000e+00 : f32
    %935 = vector.broadcast %cst_299 : f32 to vector<2x64xf32>
    %936 = arith.addf %935, %934 : vector<2x64xf32>
    %937 = arith.divf %935, %936 : vector<2x64xf32>
    %938 = vector.extract_strided_slice %931 {offsets = [0, 64], sizes = [2, 64], strides = [1, 1]} : vector<2x256xf32> to vector<2x64xf32>
    %939 = arith.negf %938 : vector<2x64xf32>
    %940 = math.exp %939 : vector<2x64xf32>
    %cst_300 = arith.constant 1.000000e+00 : f32
    %941 = vector.broadcast %cst_300 : f32 to vector<2x64xf32>
    %942 = arith.addf %941, %940 : vector<2x64xf32>
    %943 = arith.divf %941, %942 : vector<2x64xf32>
    %944 = vector.extract_strided_slice %931 {offsets = [0, 128], sizes = [2, 64], strides = [1, 1]} : vector<2x256xf32> to vector<2x64xf32>
    %945 = math.tanh %944 : vector<2x64xf32>
    %946 = vector.extract_strided_slice %931 {offsets = [0, 192], sizes = [2, 64], strides = [1, 1]} : vector<2x256xf32> to vector<2x64xf32>
    %947 = arith.negf %946 : vector<2x64xf32>
    %948 = math.exp %947 : vector<2x64xf32>
    %cst_301 = arith.constant 1.000000e+00 : f32
    %949 = vector.broadcast %cst_301 : f32 to vector<2x64xf32>
    %950 = arith.addf %949, %948 : vector<2x64xf32>
    %951 = arith.divf %949, %950 : vector<2x64xf32>
    %952 = arith.mulf %943, %917 : vector<2x64xf32>
    %953 = arith.mulf %937, %945 : vector<2x64xf32>
    %954 = arith.addf %952, %953 : vector<2x64xf32>
    %955 = math.tanh %954 : vector<2x64xf32>
    %956 = arith.mulf %951, %955 : vector<2x64xf32>
    %957 = vector.extract_strided_slice %956 {offsets = [0, 0], sizes = [2, 32], strides = [1, 1]} : vector<2x64xf32> to vector<2x32xf32>
    %c25_302 = arith.constant 25 : index
    %c0_303 = arith.constant 0 : index
    %c0_304 = arith.constant 0 : index
    %958 = vector.load %arg2[%c25_302, %c0_303, %c0_304] : memref<32x2x64xf32, #tpu.memory_space<vmem>>, vector<1x2x32xf32>
    %959 = vector.shape_cast %958 : vector<1x2x32xf32> to vector<2x32xf32>
    %960 = vector.shape_cast %957 : vector<2x32xf32> to vector<1x2x32xf32>
    tpu.vector_store %arg2[%c25_302, %c0_303, %c0_304], %960 {strides = array<i32>} : memref<32x2x64xf32, #tpu.memory_space<vmem>>, vector<1x2x32xf32>,
    %961 = vector.extract_strided_slice %956 {offsets = [0, 32], sizes = [2, 32], strides = [1, 1]} : vector<2x64xf32> to vector<2x32xf32>
    %c6_305 = arith.constant 6 : index
    %c0_306 = arith.constant 0 : index
    %c32_307 = arith.constant 32 : index
    %962 = vector.load %arg2[%c6_305, %c0_306, %c32_307] : memref<32x2x64xf32, #tpu.memory_space<vmem>>, vector<1x2x32xf32>
    %963 = vector.shape_cast %962 : vector<1x2x32xf32> to vector<2x32xf32>
    %964 = vector.shape_cast %961 : vector<2x32xf32> to vector<1x2x32xf32>
    tpu.vector_store %arg2[%c6_305, %c0_306, %c32_307], %964 {strides = array<i32>} : memref<32x2x64xf32, #tpu.memory_space<vmem>>, vector<1x2x32xf32>,
    %cst_308 = arith.constant dense<0.000000e+00> : vector<2x256xf32>
    %965 = tpu.matmul %956, %0, %cst_308 {dimension_numbers = #tpu.dot_dimension_numbers<[1], [0], [0], [1], [0, 0, 1, 1], [], []>} : vector<2x64xf32>, vector<64x256xf32>, vector<2x256xf32> -> vector<2x256xf32>
    %c26_309 = arith.constant 26 : index
    %c0_310 = arith.constant 0 : index
    %c0_311 = arith.constant 0 : index
    %966 = vector.load %arg0[%c26_309, %c0_310, %c0_311] : memref<32x2x256xf32, #tpu.memory_space<vmem>>, vector<1x2x256xf32>
    %967 = vector.shape_cast %966 : vector<1x2x256xf32> to vector<2x256xf32>
    %968 = arith.addf %965, %967 : vector<2x256xf32>
    %969 = vector.extract_strided_slice %968 {offsets = [0, 0], sizes = [2, 64], strides = [1, 1]} : vector<2x256xf32> to vector<2x64xf32>
    %970 = arith.negf %969 : vector<2x64xf32>
    %971 = math.exp %970 : vector<2x64xf32>
    %cst_312 = arith.constant 1.000000e+00 : f32
    %972 = vector.broadcast %cst_312 : f32 to vector<2x64xf32>
    %973 = arith.addf %972, %971 : vector<2x64xf32>
    %974 = arith.divf %972, %973 : vector<2x64xf32>
    %975 = vector.extract_strided_slice %968 {offsets = [0, 64], sizes = [2, 64], strides = [1, 1]} : vector<2x256xf32> to vector<2x64xf32>
    %976 = arith.negf %975 : vector<2x64xf32>
    %977 = math.exp %976 : vector<2x64xf32>
    %cst_313 = arith.constant 1.000000e+00 : f32
    %978 = vector.broadcast %cst_313 : f32 to vector<2x64xf32>
    %979 = arith.addf %978, %977 : vector<2x64xf32>
    %980 = arith.divf %978, %979 : vector<2x64xf32>
    %981 = vector.extract_strided_slice %968 {offsets = [0, 128], sizes = [2, 64], strides = [1, 1]} : vector<2x256xf32> to vector<2x64xf32>
    %982 = math.tanh %981 : vector<2x64xf32>
    %983 = vector.extract_strided_slice %968 {offsets = [0, 192], sizes = [2, 64], strides = [1, 1]} : vector<2x256xf32> to vector<2x64xf32>
    %984 = arith.negf %983 : vector<2x64xf32>
    %985 = math.exp %984 : vector<2x64xf32>
    %cst_314 = arith.constant 1.000000e+00 : f32
    %986 = vector.broadcast %cst_314 : f32 to vector<2x64xf32>
    %987 = arith.addf %986, %985 : vector<2x64xf32>
    %988 = arith.divf %986, %987 : vector<2x64xf32>
    %989 = arith.mulf %980, %954 : vector<2x64xf32>
    %990 = arith.mulf %974, %982 : vector<2x64xf32>
    %991 = arith.addf %989, %990 : vector<2x64xf32>
    %992 = math.tanh %991 : vector<2x64xf32>
    %993 = arith.mulf %988, %992 : vector<2x64xf32>
    %994 = vector.extract_strided_slice %993 {offsets = [0, 0], sizes = [2, 32], strides = [1, 1]} : vector<2x64xf32> to vector<2x32xf32>
    %c26_315 = arith.constant 26 : index
    %c0_316 = arith.constant 0 : index
    %c0_317 = arith.constant 0 : index
    %995 = vector.load %arg2[%c26_315, %c0_316, %c0_317] : memref<32x2x64xf32, #tpu.memory_space<vmem>>, vector<1x2x32xf32>
    %996 = vector.shape_cast %995 : vector<1x2x32xf32> to vector<2x32xf32>
    %997 = vector.shape_cast %994 : vector<2x32xf32> to vector<1x2x32xf32>
    tpu.vector_store %arg2[%c26_315, %c0_316, %c0_317], %997 {strides = array<i32>} : memref<32x2x64xf32, #tpu.memory_space<vmem>>, vector<1x2x32xf32>,
    %998 = vector.extract_strided_slice %993 {offsets = [0, 32], sizes = [2, 32], strides = [1, 1]} : vector<2x64xf32> to vector<2x32xf32>
    %c5_318 = arith.constant 5 : index
    %c0_319 = arith.constant 0 : index
    %c32_320 = arith.constant 32 : index
    %999 = vector.load %arg2[%c5_318, %c0_319, %c32_320] : memref<32x2x64xf32, #tpu.memory_space<vmem>>, vector<1x2x32xf32>
    %1000 = vector.shape_cast %999 : vector<1x2x32xf32> to vector<2x32xf32>
    %1001 = vector.shape_cast %998 : vector<2x32xf32> to vector<1x2x32xf32>
    tpu.vector_store %arg2[%c5_318, %c0_319, %c32_320], %1001 {strides = array<i32>} : memref<32x2x64xf32, #tpu.memory_space<vmem>>, vector<1x2x32xf32>,
    %cst_321 = arith.constant dense<0.000000e+00> : vector<2x256xf32>
    %1002 = tpu.matmul %993, %0, %cst_321 {dimension_numbers = #tpu.dot_dimension_numbers<[1], [0], [0], [1], [0, 0, 1, 1], [], []>} : vector<2x64xf32>, vector<64x256xf32>, vector<2x256xf32> -> vector<2x256xf32>
    %c27_322 = arith.constant 27 : index
    %c0_323 = arith.constant 0 : index
    %c0_324 = arith.constant 0 : index
    %1003 = vector.load %arg0[%c27_322, %c0_323, %c0_324] : memref<32x2x256xf32, #tpu.memory_space<vmem>>, vector<1x2x256xf32>
    %1004 = vector.shape_cast %1003 : vector<1x2x256xf32> to vector<2x256xf32>
    %1005 = arith.addf %1002, %1004 : vector<2x256xf32>
    %1006 = vector.extract_strided_slice %1005 {offsets = [0, 0], sizes = [2, 64], strides = [1, 1]} : vector<2x256xf32> to vector<2x64xf32>
    %1007 = arith.negf %1006 : vector<2x64xf32>
    %1008 = math.exp %1007 : vector<2x64xf32>
    %cst_325 = arith.constant 1.000000e+00 : f32
    %1009 = vector.broadcast %cst_325 : f32 to vector<2x64xf32>
    %1010 = arith.addf %1009, %1008 : vector<2x64xf32>
    %1011 = arith.divf %1009, %1010 : vector<2x64xf32>
    %1012 = vector.extract_strided_slice %1005 {offsets = [0, 64], sizes = [2, 64], strides = [1, 1]} : vector<2x256xf32> to vector<2x64xf32>
    %1013 = arith.negf %1012 : vector<2x64xf32>
    %1014 = math.exp %1013 : vector<2x64xf32>
    %cst_326 = arith.constant 1.000000e+00 : f32
    %1015 = vector.broadcast %cst_326 : f32 to vector<2x64xf32>
    %1016 = arith.addf %1015, %1014 : vector<2x64xf32>
    %1017 = arith.divf %1015, %1016 : vector<2x64xf32>
    %1018 = vector.extract_strided_slice %1005 {offsets = [0, 128], sizes = [2, 64], strides = [1, 1]} : vector<2x256xf32> to vector<2x64xf32>
    %1019 = math.tanh %1018 : vector<2x64xf32>
    %1020 = vector.extract_strided_slice %1005 {offsets = [0, 192], sizes = [2, 64], strides = [1, 1]} : vector<2x256xf32> to vector<2x64xf32>
    %1021 = arith.negf %1020 : vector<2x64xf32>
    %1022 = math.exp %1021 : vector<2x64xf32>
    %cst_327 = arith.constant 1.000000e+00 : f32
    %1023 = vector.broadcast %cst_327 : f32 to vector<2x64xf32>
    %1024 = arith.addf %1023, %1022 : vector<2x64xf32>
    %1025 = arith.divf %1023, %1024 : vector<2x64xf32>
    %1026 = arith.mulf %1017, %991 : vector<2x64xf32>
    %1027 = arith.mulf %1011, %1019 : vector<2x64xf32>
    %1028 = arith.addf %1026, %1027 : vector<2x64xf32>
    %1029 = math.tanh %1028 : vector<2x64xf32>
    %1030 = arith.mulf %1025, %1029 : vector<2x64xf32>
    %1031 = vector.extract_strided_slice %1030 {offsets = [0, 0], sizes = [2, 32], strides = [1, 1]} : vector<2x64xf32> to vector<2x32xf32>
    %c27_328 = arith.constant 27 : index
    %c0_329 = arith.constant 0 : index
    %c0_330 = arith.constant 0 : index
    %1032 = vector.load %arg2[%c27_328, %c0_329, %c0_330] : memref<32x2x64xf32, #tpu.memory_space<vmem>>, vector<1x2x32xf32>
    %1033 = vector.shape_cast %1032 : vector<1x2x32xf32> to vector<2x32xf32>
    %1034 = vector.shape_cast %1031 : vector<2x32xf32> to vector<1x2x32xf32>
    tpu.vector_store %arg2[%c27_328, %c0_329, %c0_330], %1034 {strides = array<i32>} : memref<32x2x64xf32, #tpu.memory_space<vmem>>, vector<1x2x32xf32>,
    %1035 = vector.extract_strided_slice %1030 {offsets = [0, 32], sizes = [2, 32], strides = [1, 1]} : vector<2x64xf32> to vector<2x32xf32>
    %c4_331 = arith.constant 4 : index
    %c0_332 = arith.constant 0 : index
    %c32_333 = arith.constant 32 : index
    %1036 = vector.load %arg2[%c4_331, %c0_332, %c32_333] : memref<32x2x64xf32, #tpu.memory_space<vmem>>, vector<1x2x32xf32>
    %1037 = vector.shape_cast %1036 : vector<1x2x32xf32> to vector<2x32xf32>
    %1038 = vector.shape_cast %1035 : vector<2x32xf32> to vector<1x2x32xf32>
    tpu.vector_store %arg2[%c4_331, %c0_332, %c32_333], %1038 {strides = array<i32>} : memref<32x2x64xf32, #tpu.memory_space<vmem>>, vector<1x2x32xf32>,
    %cst_334 = arith.constant dense<0.000000e+00> : vector<2x256xf32>
    %1039 = tpu.matmul %1030, %0, %cst_334 {dimension_numbers = #tpu.dot_dimension_numbers<[1], [0], [0], [1], [0, 0, 1, 1], [], []>} : vector<2x64xf32>, vector<64x256xf32>, vector<2x256xf32> -> vector<2x256xf32>
    %c28_335 = arith.constant 28 : index
    %c0_336 = arith.constant 0 : index
    %c0_337 = arith.constant 0 : index
    %1040 = vector.load %arg0[%c28_335, %c0_336, %c0_337] : memref<32x2x256xf32, #tpu.memory_space<vmem>>, vector<1x2x256xf32>
    %1041 = vector.shape_cast %1040 : vector<1x2x256xf32> to vector<2x256xf32>
    %1042 = arith.addf %1039, %1041 : vector<2x256xf32>
    %1043 = vector.extract_strided_slice %1042 {offsets = [0, 0], sizes = [2, 64], strides = [1, 1]} : vector<2x256xf32> to vector<2x64xf32>
    %1044 = arith.negf %1043 : vector<2x64xf32>
    %1045 = math.exp %1044 : vector<2x64xf32>
    %cst_338 = arith.constant 1.000000e+00 : f32
    %1046 = vector.broadcast %cst_338 : f32 to vector<2x64xf32>
    %1047 = arith.addf %1046, %1045 : vector<2x64xf32>
    %1048 = arith.divf %1046, %1047 : vector<2x64xf32>
    %1049 = vector.extract_strided_slice %1042 {offsets = [0, 64], sizes = [2, 64], strides = [1, 1]} : vector<2x256xf32> to vector<2x64xf32>
    %1050 = arith.negf %1049 : vector<2x64xf32>
    %1051 = math.exp %1050 : vector<2x64xf32>
    %cst_339 = arith.constant 1.000000e+00 : f32
    %1052 = vector.broadcast %cst_339 : f32 to vector<2x64xf32>
    %1053 = arith.addf %1052, %1051 : vector<2x64xf32>
    %1054 = arith.divf %1052, %1053 : vector<2x64xf32>
    %1055 = vector.extract_strided_slice %1042 {offsets = [0, 128], sizes = [2, 64], strides = [1, 1]} : vector<2x256xf32> to vector<2x64xf32>
    %1056 = math.tanh %1055 : vector<2x64xf32>
    %1057 = vector.extract_strided_slice %1042 {offsets = [0, 192], sizes = [2, 64], strides = [1, 1]} : vector<2x256xf32> to vector<2x64xf32>
    %1058 = arith.negf %1057 : vector<2x64xf32>
    %1059 = math.exp %1058 : vector<2x64xf32>
    %cst_340 = arith.constant 1.000000e+00 : f32
    %1060 = vector.broadcast %cst_340 : f32 to vector<2x64xf32>
    %1061 = arith.addf %1060, %1059 : vector<2x64xf32>
    %1062 = arith.divf %1060, %1061 : vector<2x64xf32>
    %1063 = arith.mulf %1054, %1028 : vector<2x64xf32>
    %1064 = arith.mulf %1048, %1056 : vector<2x64xf32>
    %1065 = arith.addf %1063, %1064 : vector<2x64xf32>
    %1066 = math.tanh %1065 : vector<2x64xf32>
    %1067 = arith.mulf %1062, %1066 : vector<2x64xf32>
    %1068 = vector.extract_strided_slice %1067 {offsets = [0, 0], sizes = [2, 32], strides = [1, 1]} : vector<2x64xf32> to vector<2x32xf32>
    %c28_341 = arith.constant 28 : index
    %c0_342 = arith.constant 0 : index
    %c0_343 = arith.constant 0 : index
    %1069 = vector.load %arg2[%c28_341, %c0_342, %c0_343] : memref<32x2x64xf32, #tpu.memory_space<vmem>>, vector<1x2x32xf32>
    %1070 = vector.shape_cast %1069 : vector<1x2x32xf32> to vector<2x32xf32>
    %1071 = vector.shape_cast %1068 : vector<2x32xf32> to vector<1x2x32xf32>
    tpu.vector_store %arg2[%c28_341, %c0_342, %c0_343], %1071 {strides = array<i32>} : memref<32x2x64xf32, #tpu.memory_space<vmem>>, vector<1x2x32xf32>,
    %1072 = vector.extract_strided_slice %1067 {offsets = [0, 32], sizes = [2, 32], strides = [1, 1]} : vector<2x64xf32> to vector<2x32xf32>
    %c3_344 = arith.constant 3 : index
    %c0_345 = arith.constant 0 : index
    %c32_346 = arith.constant 32 : index
    %1073 = vector.load %arg2[%c3_344, %c0_345, %c32_346] : memref<32x2x64xf32, #tpu.memory_space<vmem>>, vector<1x2x32xf32>
    %1074 = vector.shape_cast %1073 : vector<1x2x32xf32> to vector<2x32xf32>
    %1075 = vector.shape_cast %1072 : vector<2x32xf32> to vector<1x2x32xf32>
    tpu.vector_store %arg2[%c3_344, %c0_345, %c32_346], %1075 {strides = array<i32>} : memref<32x2x64xf32, #tpu.memory_space<vmem>>, vector<1x2x32xf32>,
    %cst_347 = arith.constant dense<0.000000e+00> : vector<2x256xf32>
    %1076 = tpu.matmul %1067, %0, %cst_347 {dimension_numbers = #tpu.dot_dimension_numbers<[1], [0], [0], [1], [0, 0, 1, 1], [], []>} : vector<2x64xf32>, vector<64x256xf32>, vector<2x256xf32> -> vector<2x256xf32>
    %c29_348 = arith.constant 29 : index
    %c0_349 = arith.constant 0 : index
    %c0_350 = arith.constant 0 : index
    %1077 = vector.load %arg0[%c29_348, %c0_349, %c0_350] : memref<32x2x256xf32, #tpu.memory_space<vmem>>, vector<1x2x256xf32>
    %1078 = vector.shape_cast %1077 : vector<1x2x256xf32> to vector<2x256xf32>
    %1079 = arith.addf %1076, %1078 : vector<2x256xf32>
    %1080 = vector.extract_strided_slice %1079 {offsets = [0, 0], sizes = [2, 64], strides = [1, 1]} : vector<2x256xf32> to vector<2x64xf32>
    %1081 = arith.negf %1080 : vector<2x64xf32>
    %1082 = math.exp %1081 : vector<2x64xf32>
    %cst_351 = arith.constant 1.000000e+00 : f32
    %1083 = vector.broadcast %cst_351 : f32 to vector<2x64xf32>
    %1084 = arith.addf %1083, %1082 : vector<2x64xf32>
    %1085 = arith.divf %1083, %1084 : vector<2x64xf32>
    %1086 = vector.extract_strided_slice %1079 {offsets = [0, 64], sizes = [2, 64], strides = [1, 1]} : vector<2x256xf32> to vector<2x64xf32>
    %1087 = arith.negf %1086 : vector<2x64xf32>
    %1088 = math.exp %1087 : vector<2x64xf32>
    %cst_352 = arith.constant 1.000000e+00 : f32
    %1089 = vector.broadcast %cst_352 : f32 to vector<2x64xf32>
    %1090 = arith.addf %1089, %1088 : vector<2x64xf32>
    %1091 = arith.divf %1089, %1090 : vector<2x64xf32>
    %1092 = vector.extract_strided_slice %1079 {offsets = [0, 128], sizes = [2, 64], strides = [1, 1]} : vector<2x256xf32> to vector<2x64xf32>
    %1093 = math.tanh %1092 : vector<2x64xf32>
    %1094 = vector.extract_strided_slice %1079 {offsets = [0, 192], sizes = [2, 64], strides = [1, 1]} : vector<2x256xf32> to vector<2x64xf32>
    %1095 = arith.negf %1094 : vector<2x64xf32>
    %1096 = math.exp %1095 : vector<2x64xf32>
    %cst_353 = arith.constant 1.000000e+00 : f32
    %1097 = vector.broadcast %cst_353 : f32 to vector<2x64xf32>
    %1098 = arith.addf %1097, %1096 : vector<2x64xf32>
    %1099 = arith.divf %1097, %1098 : vector<2x64xf32>
    %1100 = arith.mulf %1091, %1065 : vector<2x64xf32>
    %1101 = arith.mulf %1085, %1093 : vector<2x64xf32>
    %1102 = arith.addf %1100, %1101 : vector<2x64xf32>
    %1103 = math.tanh %1102 : vector<2x64xf32>
    %1104 = arith.mulf %1099, %1103 : vector<2x64xf32>
    %1105 = vector.extract_strided_slice %1104 {offsets = [0, 0], sizes = [2, 32], strides = [1, 1]} : vector<2x64xf32> to vector<2x32xf32>
    %c29_354 = arith.constant 29 : index
    %c0_355 = arith.constant 0 : index
    %c0_356 = arith.constant 0 : index
    %1106 = vector.load %arg2[%c29_354, %c0_355, %c0_356] : memref<32x2x64xf32, #tpu.memory_space<vmem>>, vector<1x2x32xf32>
    %1107 = vector.shape_cast %1106 : vector<1x2x32xf32> to vector<2x32xf32>
    %1108 = vector.shape_cast %1105 : vector<2x32xf32> to vector<1x2x32xf32>
    tpu.vector_store %arg2[%c29_354, %c0_355, %c0_356], %1108 {strides = array<i32>} : memref<32x2x64xf32, #tpu.memory_space<vmem>>, vector<1x2x32xf32>,
    %1109 = vector.extract_strided_slice %1104 {offsets = [0, 32], sizes = [2, 32], strides = [1, 1]} : vector<2x64xf32> to vector<2x32xf32>
    %c2_357 = arith.constant 2 : index
    %c0_358 = arith.constant 0 : index
    %c32_359 = arith.constant 32 : index
    %1110 = vector.load %arg2[%c2_357, %c0_358, %c32_359] : memref<32x2x64xf32, #tpu.memory_space<vmem>>, vector<1x2x32xf32>
    %1111 = vector.shape_cast %1110 : vector<1x2x32xf32> to vector<2x32xf32>
    %1112 = vector.shape_cast %1109 : vector<2x32xf32> to vector<1x2x32xf32>
    tpu.vector_store %arg2[%c2_357, %c0_358, %c32_359], %1112 {strides = array<i32>} : memref<32x2x64xf32, #tpu.memory_space<vmem>>, vector<1x2x32xf32>,
    %cst_360 = arith.constant dense<0.000000e+00> : vector<2x256xf32>
    %1113 = tpu.matmul %1104, %0, %cst_360 {dimension_numbers = #tpu.dot_dimension_numbers<[1], [0], [0], [1], [0, 0, 1, 1], [], []>} : vector<2x64xf32>, vector<64x256xf32>, vector<2x256xf32> -> vector<2x256xf32>
    %c30_361 = arith.constant 30 : index
    %c0_362 = arith.constant 0 : index
    %c0_363 = arith.constant 0 : index
    %1114 = vector.load %arg0[%c30_361, %c0_362, %c0_363] : memref<32x2x256xf32, #tpu.memory_space<vmem>>, vector<1x2x256xf32>
    %1115 = vector.shape_cast %1114 : vector<1x2x256xf32> to vector<2x256xf32>
    %1116 = arith.addf %1113, %1115 : vector<2x256xf32>
    %1117 = vector.extract_strided_slice %1116 {offsets = [0, 0], sizes = [2, 64], strides = [1, 1]} : vector<2x256xf32> to vector<2x64xf32>
    %1118 = arith.negf %1117 : vector<2x64xf32>
    %1119 = math.exp %1118 : vector<2x64xf32>
    %cst_364 = arith.constant 1.000000e+00 : f32
    %1120 = vector.broadcast %cst_364 : f32 to vector<2x64xf32>
    %1121 = arith.addf %1120, %1119 : vector<2x64xf32>
    %1122 = arith.divf %1120, %1121 : vector<2x64xf32>
    %1123 = vector.extract_strided_slice %1116 {offsets = [0, 64], sizes = [2, 64], strides = [1, 1]} : vector<2x256xf32> to vector<2x64xf32>
    %1124 = arith.negf %1123 : vector<2x64xf32>
    %1125 = math.exp %1124 : vector<2x64xf32>
    %cst_365 = arith.constant 1.000000e+00 : f32
    %1126 = vector.broadcast %cst_365 : f32 to vector<2x64xf32>
    %1127 = arith.addf %1126, %1125 : vector<2x64xf32>
    %1128 = arith.divf %1126, %1127 : vector<2x64xf32>
    %1129 = vector.extract_strided_slice %1116 {offsets = [0, 128], sizes = [2, 64], strides = [1, 1]} : vector<2x256xf32> to vector<2x64xf32>
    %1130 = math.tanh %1129 : vector<2x64xf32>
    %1131 = vector.extract_strided_slice %1116 {offsets = [0, 192], sizes = [2, 64], strides = [1, 1]} : vector<2x256xf32> to vector<2x64xf32>
    %1132 = arith.negf %1131 : vector<2x64xf32>
    %1133 = math.exp %1132 : vector<2x64xf32>
    %cst_366 = arith.constant 1.000000e+00 : f32
    %1134 = vector.broadcast %cst_366 : f32 to vector<2x64xf32>
    %1135 = arith.addf %1134, %1133 : vector<2x64xf32>
    %1136 = arith.divf %1134, %1135 : vector<2x64xf32>
    %1137 = arith.mulf %1128, %1102 : vector<2x64xf32>
    %1138 = arith.mulf %1122, %1130 : vector<2x64xf32>
    %1139 = arith.addf %1137, %1138 : vector<2x64xf32>
    %1140 = math.tanh %1139 : vector<2x64xf32>
    %1141 = arith.mulf %1136, %1140 : vector<2x64xf32>
    %1142 = vector.extract_strided_slice %1141 {offsets = [0, 0], sizes = [2, 32], strides = [1, 1]} : vector<2x64xf32> to vector<2x32xf32>
    %c30_367 = arith.constant 30 : index
    %c0_368 = arith.constant 0 : index
    %c0_369 = arith.constant 0 : index
    %1143 = vector.load %arg2[%c30_367, %c0_368, %c0_369] : memref<32x2x64xf32, #tpu.memory_space<vmem>>, vector<1x2x32xf32>
    %1144 = vector.shape_cast %1143 : vector<1x2x32xf32> to vector<2x32xf32>
    %1145 = vector.shape_cast %1142 : vector<2x32xf32> to vector<1x2x32xf32>
    tpu.vector_store %arg2[%c30_367, %c0_368, %c0_369], %1145 {strides = array<i32>} : memref<32x2x64xf32, #tpu.memory_space<vmem>>, vector<1x2x32xf32>,
    %1146 = vector.extract_strided_slice %1141 {offsets = [0, 32], sizes = [2, 32], strides = [1, 1]} : vector<2x64xf32> to vector<2x32xf32>
    %c1_370 = arith.constant 1 : index
    %c0_371 = arith.constant 0 : index
    %c32_372 = arith.constant 32 : index
    %1147 = vector.load %arg2[%c1_370, %c0_371, %c32_372] : memref<32x2x64xf32, #tpu.memory_space<vmem>>, vector<1x2x32xf32>
    %1148 = vector.shape_cast %1147 : vector<1x2x32xf32> to vector<2x32xf32>
    %1149 = vector.shape_cast %1146 : vector<2x32xf32> to vector<1x2x32xf32>
    tpu.vector_store %arg2[%c1_370, %c0_371, %c32_372], %1149 {strides = array<i32>} : memref<32x2x64xf32, #tpu.memory_space<vmem>>, vector<1x2x32xf32>,
    %cst_373 = arith.constant dense<0.000000e+00> : vector<2x256xf32>
    %1150 = tpu.matmul %1141, %0, %cst_373 {dimension_numbers = #tpu.dot_dimension_numbers<[1], [0], [0], [1], [0, 0, 1, 1], [], []>} : vector<2x64xf32>, vector<64x256xf32>, vector<2x256xf32> -> vector<2x256xf32>
    %c31_374 = arith.constant 31 : index
    %c0_375 = arith.constant 0 : index
    %c0_376 = arith.constant 0 : index
    %1151 = vector.load %arg0[%c31_374, %c0_375, %c0_376] : memref<32x2x256xf32, #tpu.memory_space<vmem>>, vector<1x2x256xf32>
    %1152 = vector.shape_cast %1151 : vector<1x2x256xf32> to vector<2x256xf32>
    %1153 = arith.addf %1150, %1152 : vector<2x256xf32>
    %1154 = vector.extract_strided_slice %1153 {offsets = [0, 0], sizes = [2, 64], strides = [1, 1]} : vector<2x256xf32> to vector<2x64xf32>
    %1155 = arith.negf %1154 : vector<2x64xf32>
    %1156 = math.exp %1155 : vector<2x64xf32>
    %cst_377 = arith.constant 1.000000e+00 : f32
    %1157 = vector.broadcast %cst_377 : f32 to vector<2x64xf32>
    %1158 = arith.addf %1157, %1156 : vector<2x64xf32>
    %1159 = arith.divf %1157, %1158 : vector<2x64xf32>
    %1160 = vector.extract_strided_slice %1153 {offsets = [0, 64], sizes = [2, 64], strides = [1, 1]} : vector<2x256xf32> to vector<2x64xf32>
    %1161 = arith.negf %1160 : vector<2x64xf32>
    %1162 = math.exp %1161 : vector<2x64xf32>
    %cst_378 = arith.constant 1.000000e+00 : f32
    %1163 = vector.broadcast %cst_378 : f32 to vector<2x64xf32>
    %1164 = arith.addf %1163, %1162 : vector<2x64xf32>
    %1165 = arith.divf %1163, %1164 : vector<2x64xf32>
    %1166 = vector.extract_strided_slice %1153 {offsets = [0, 128], sizes = [2, 64], strides = [1, 1]} : vector<2x256xf32> to vector<2x64xf32>
    %1167 = math.tanh %1166 : vector<2x64xf32>
    %1168 = vector.extract_strided_slice %1153 {offsets = [0, 192], sizes = [2, 64], strides = [1, 1]} : vector<2x256xf32> to vector<2x64xf32>
    %1169 = arith.negf %1168 : vector<2x64xf32>
    %1170 = math.exp %1169 : vector<2x64xf32>
    %cst_379 = arith.constant 1.000000e+00 : f32
    %1171 = vector.broadcast %cst_379 : f32 to vector<2x64xf32>
    %1172 = arith.addf %1171, %1170 : vector<2x64xf32>
    %1173 = arith.divf %1171, %1172 : vector<2x64xf32>
    %1174 = arith.mulf %1165, %1139 : vector<2x64xf32>
    %1175 = arith.mulf %1159, %1167 : vector<2x64xf32>
    %1176 = arith.addf %1174, %1175 : vector<2x64xf32>
    %1177 = math.tanh %1176 : vector<2x64xf32>
    %1178 = arith.mulf %1173, %1177 : vector<2x64xf32>
    %1179 = vector.extract_strided_slice %1178 {offsets = [0, 0], sizes = [2, 32], strides = [1, 1]} : vector<2x64xf32> to vector<2x32xf32>
    %c31_380 = arith.constant 31 : index
    %c0_381 = arith.constant 0 : index
    %c0_382 = arith.constant 0 : index
    %1180 = vector.load %arg2[%c31_380, %c0_381, %c0_382] : memref<32x2x64xf32, #tpu.memory_space<vmem>>, vector<1x2x32xf32>
    %1181 = vector.shape_cast %1180 : vector<1x2x32xf32> to vector<2x32xf32>
    %1182 = vector.shape_cast %1179 : vector<2x32xf32> to vector<1x2x32xf32>
    tpu.vector_store %arg2[%c31_380, %c0_381, %c0_382], %1182 {strides = array<i32>} : memref<32x2x64xf32, #tpu.memory_space<vmem>>, vector<1x2x32xf32>,
    %1183 = vector.extract_strided_slice %1178 {offsets = [0, 32], sizes = [2, 32], strides = [1, 1]} : vector<2x64xf32> to vector<2x32xf32>
    %c0_383 = arith.constant 0 : index
    %c0_384 = arith.constant 0 : index
    %c32_385 = arith.constant 32 : index
    %1184 = vector.load %arg2[%c0_383, %c0_384, %c32_385] : memref<32x2x64xf32, #tpu.memory_space<vmem>>, vector<1x2x32xf32>
    %1185 = vector.shape_cast %1184 : vector<1x2x32xf32> to vector<2x32xf32>
    %1186 = vector.shape_cast %1183 : vector<2x32xf32> to vector<1x2x32xf32>
    tpu.vector_store %arg2[%c0_383, %c0_384, %c32_385], %1186 {strides = array<i32>} : memref<32x2x64xf32, #tpu.memory_space<vmem>>, vector<1x2x32xf32>,
    return
  }
}

module attributes {stable_mosaic.version = 11 : i64} {
  func.func @_bilstm_head_kernel(%arg0: memref<32x2x256xf32, #tpu.memory_space<vmem>>, %arg1: memref<64x256xf32, #tpu.memory_space<vmem>>, %arg2: memref<64x10xf32, #tpu.memory_space<vmem>>, %arg3: memref<1x10xf32, #tpu.memory_space<vmem>>, %arg4: memref<2x10xf32, #tpu.memory_space<vmem>>) attributes {dimension_semantics = [], scalar_prefetch = 0 : i64, scratch_operands = 0 : i64, tpu.core_type = #tpu.core_type<tc>} {
    %c0 = arith.constant 0 : index
    %c0_0 = arith.constant 0 : index
    %0 = vector.load %arg1[%c0, %c0_0] : memref<64x256xf32, #tpu.memory_space<vmem>>, vector<64x256xf32>
    %cst = arith.constant 0.000000e+00 : f32
    %1 = vector.broadcast %cst : f32 to vector<2x64xf32>
    %cst_1 = arith.constant 0.000000e+00 : f32
    %2 = vector.broadcast %cst_1 : f32 to vector<2x64xf32>
    %cst_2 = arith.constant 0.000000e+00 : f32
    %3 = vector.broadcast %cst_2 : f32 to vector<2x64xf32>
    %cst_3 = arith.constant dense<0.000000e+00> : vector<2x256xf32>
    %4 = tpu.matmul %1, %0, %cst_3 {dimension_numbers = #tpu.dot_dimension_numbers<[1], [0], [0], [1], [0, 0, 1, 1], [], []>} : vector<2x64xf32>, vector<64x256xf32>, vector<2x256xf32> -> vector<2x256xf32>
    %c0_4 = arith.constant 0 : index
    %c0_5 = arith.constant 0 : index
    %c0_6 = arith.constant 0 : index
    %5 = vector.load %arg0[%c0_4, %c0_5, %c0_6] : memref<32x2x256xf32, #tpu.memory_space<vmem>>, vector<1x2x256xf32>
    %6 = vector.shape_cast %5 : vector<1x2x256xf32> to vector<2x256xf32>
    %7 = arith.addf %4, %6 : vector<2x256xf32>
    %8 = vector.extract_strided_slice %7 {offsets = [0, 0], sizes = [2, 64], strides = [1, 1]} : vector<2x256xf32> to vector<2x64xf32>
    %9 = arith.negf %8 : vector<2x64xf32>
    %10 = math.exp %9 : vector<2x64xf32>
    %cst_7 = arith.constant 1.000000e+00 : f32
    %11 = vector.broadcast %cst_7 : f32 to vector<2x64xf32>
    %12 = arith.addf %11, %10 : vector<2x64xf32>
    %13 = arith.divf %11, %12 : vector<2x64xf32>
    %14 = vector.extract_strided_slice %7 {offsets = [0, 64], sizes = [2, 64], strides = [1, 1]} : vector<2x256xf32> to vector<2x64xf32>
    %15 = arith.negf %14 : vector<2x64xf32>
    %16 = math.exp %15 : vector<2x64xf32>
    %cst_8 = arith.constant 1.000000e+00 : f32
    %17 = vector.broadcast %cst_8 : f32 to vector<2x64xf32>
    %18 = arith.addf %17, %16 : vector<2x64xf32>
    %19 = arith.divf %17, %18 : vector<2x64xf32>
    %20 = vector.extract_strided_slice %7 {offsets = [0, 128], sizes = [2, 64], strides = [1, 1]} : vector<2x256xf32> to vector<2x64xf32>
    %21 = math.tanh %20 : vector<2x64xf32>
    %22 = vector.extract_strided_slice %7 {offsets = [0, 192], sizes = [2, 64], strides = [1, 1]} : vector<2x256xf32> to vector<2x64xf32>
    %23 = arith.negf %22 : vector<2x64xf32>
    %24 = math.exp %23 : vector<2x64xf32>
    %cst_9 = arith.constant 1.000000e+00 : f32
    %25 = vector.broadcast %cst_9 : f32 to vector<2x64xf32>
    %26 = arith.addf %25, %24 : vector<2x64xf32>
    %27 = arith.divf %25, %26 : vector<2x64xf32>
    %28 = arith.mulf %19, %2 : vector<2x64xf32>
    %29 = arith.mulf %13, %21 : vector<2x64xf32>
    %30 = arith.addf %28, %29 : vector<2x64xf32>
    %31 = math.tanh %30 : vector<2x64xf32>
    %32 = arith.mulf %27, %31 : vector<2x64xf32>
    %33 = arith.addf %3, %32 : vector<2x64xf32>
    %cst_10 = arith.constant dense<0.000000e+00> : vector<2x256xf32>
    %34 = tpu.matmul %32, %0, %cst_10 {dimension_numbers = #tpu.dot_dimension_numbers<[1], [0], [0], [1], [0, 0, 1, 1], [], []>} : vector<2x64xf32>, vector<64x256xf32>, vector<2x256xf32> -> vector<2x256xf32>
    %c1 = arith.constant 1 : index
    %c0_11 = arith.constant 0 : index
    %c0_12 = arith.constant 0 : index
    %35 = vector.load %arg0[%c1, %c0_11, %c0_12] : memref<32x2x256xf32, #tpu.memory_space<vmem>>, vector<1x2x256xf32>
    %36 = vector.shape_cast %35 : vector<1x2x256xf32> to vector<2x256xf32>
    %37 = arith.addf %34, %36 : vector<2x256xf32>
    %38 = vector.extract_strided_slice %37 {offsets = [0, 0], sizes = [2, 64], strides = [1, 1]} : vector<2x256xf32> to vector<2x64xf32>
    %39 = arith.negf %38 : vector<2x64xf32>
    %40 = math.exp %39 : vector<2x64xf32>
    %cst_13 = arith.constant 1.000000e+00 : f32
    %41 = vector.broadcast %cst_13 : f32 to vector<2x64xf32>
    %42 = arith.addf %41, %40 : vector<2x64xf32>
    %43 = arith.divf %41, %42 : vector<2x64xf32>
    %44 = vector.extract_strided_slice %37 {offsets = [0, 64], sizes = [2, 64], strides = [1, 1]} : vector<2x256xf32> to vector<2x64xf32>
    %45 = arith.negf %44 : vector<2x64xf32>
    %46 = math.exp %45 : vector<2x64xf32>
    %cst_14 = arith.constant 1.000000e+00 : f32
    %47 = vector.broadcast %cst_14 : f32 to vector<2x64xf32>
    %48 = arith.addf %47, %46 : vector<2x64xf32>
    %49 = arith.divf %47, %48 : vector<2x64xf32>
    %50 = vector.extract_strided_slice %37 {offsets = [0, 128], sizes = [2, 64], strides = [1, 1]} : vector<2x256xf32> to vector<2x64xf32>
    %51 = math.tanh %50 : vector<2x64xf32>
    %52 = vector.extract_strided_slice %37 {offsets = [0, 192], sizes = [2, 64], strides = [1, 1]} : vector<2x256xf32> to vector<2x64xf32>
    %53 = arith.negf %52 : vector<2x64xf32>
    %54 = math.exp %53 : vector<2x64xf32>
    %cst_15 = arith.constant 1.000000e+00 : f32
    %55 = vector.broadcast %cst_15 : f32 to vector<2x64xf32>
    %56 = arith.addf %55, %54 : vector<2x64xf32>
    %57 = arith.divf %55, %56 : vector<2x64xf32>
    %58 = arith.mulf %49, %30 : vector<2x64xf32>
    %59 = arith.mulf %43, %51 : vector<2x64xf32>
    %60 = arith.addf %58, %59 : vector<2x64xf32>
    %61 = math.tanh %60 : vector<2x64xf32>
    %62 = arith.mulf %57, %61 : vector<2x64xf32>
    %63 = arith.addf %33, %62 : vector<2x64xf32>
    %cst_16 = arith.constant dense<0.000000e+00> : vector<2x256xf32>
    %64 = tpu.matmul %62, %0, %cst_16 {dimension_numbers = #tpu.dot_dimension_numbers<[1], [0], [0], [1], [0, 0, 1, 1], [], []>} : vector<2x64xf32>, vector<64x256xf32>, vector<2x256xf32> -> vector<2x256xf32>
    %c2 = arith.constant 2 : index
    %c0_17 = arith.constant 0 : index
    %c0_18 = arith.constant 0 : index
    %65 = vector.load %arg0[%c2, %c0_17, %c0_18] : memref<32x2x256xf32, #tpu.memory_space<vmem>>, vector<1x2x256xf32>
    %66 = vector.shape_cast %65 : vector<1x2x256xf32> to vector<2x256xf32>
    %67 = arith.addf %64, %66 : vector<2x256xf32>
    %68 = vector.extract_strided_slice %67 {offsets = [0, 0], sizes = [2, 64], strides = [1, 1]} : vector<2x256xf32> to vector<2x64xf32>
    %69 = arith.negf %68 : vector<2x64xf32>
    %70 = math.exp %69 : vector<2x64xf32>
    %cst_19 = arith.constant 1.000000e+00 : f32
    %71 = vector.broadcast %cst_19 : f32 to vector<2x64xf32>
    %72 = arith.addf %71, %70 : vector<2x64xf32>
    %73 = arith.divf %71, %72 : vector<2x64xf32>
    %74 = vector.extract_strided_slice %67 {offsets = [0, 64], sizes = [2, 64], strides = [1, 1]} : vector<2x256xf32> to vector<2x64xf32>
    %75 = arith.negf %74 : vector<2x64xf32>
    %76 = math.exp %75 : vector<2x64xf32>
    %cst_20 = arith.constant 1.000000e+00 : f32
    %77 = vector.broadcast %cst_20 : f32 to vector<2x64xf32>
    %78 = arith.addf %77, %76 : vector<2x64xf32>
    %79 = arith.divf %77, %78 : vector<2x64xf32>
    %80 = vector.extract_strided_slice %67 {offsets = [0, 128], sizes = [2, 64], strides = [1, 1]} : vector<2x256xf32> to vector<2x64xf32>
    %81 = math.tanh %80 : vector<2x64xf32>
    %82 = vector.extract_strided_slice %67 {offsets = [0, 192], sizes = [2, 64], strides = [1, 1]} : vector<2x256xf32> to vector<2x64xf32>
    %83 = arith.negf %82 : vector<2x64xf32>
    %84 = math.exp %83 : vector<2x64xf32>
    %cst_21 = arith.constant 1.000000e+00 : f32
    %85 = vector.broadcast %cst_21 : f32 to vector<2x64xf32>
    %86 = arith.addf %85, %84 : vector<2x64xf32>
    %87 = arith.divf %85, %86 : vector<2x64xf32>
    %88 = arith.mulf %79, %60 : vector<2x64xf32>
    %89 = arith.mulf %73, %81 : vector<2x64xf32>
    %90 = arith.addf %88, %89 : vector<2x64xf32>
    %91 = math.tanh %90 : vector<2x64xf32>
    %92 = arith.mulf %87, %91 : vector<2x64xf32>
    %93 = arith.addf %63, %92 : vector<2x64xf32>
    %cst_22 = arith.constant dense<0.000000e+00> : vector<2x256xf32>
    %94 = tpu.matmul %92, %0, %cst_22 {dimension_numbers = #tpu.dot_dimension_numbers<[1], [0], [0], [1], [0, 0, 1, 1], [], []>} : vector<2x64xf32>, vector<64x256xf32>, vector<2x256xf32> -> vector<2x256xf32>
    %c3 = arith.constant 3 : index
    %c0_23 = arith.constant 0 : index
    %c0_24 = arith.constant 0 : index
    %95 = vector.load %arg0[%c3, %c0_23, %c0_24] : memref<32x2x256xf32, #tpu.memory_space<vmem>>, vector<1x2x256xf32>
    %96 = vector.shape_cast %95 : vector<1x2x256xf32> to vector<2x256xf32>
    %97 = arith.addf %94, %96 : vector<2x256xf32>
    %98 = vector.extract_strided_slice %97 {offsets = [0, 0], sizes = [2, 64], strides = [1, 1]} : vector<2x256xf32> to vector<2x64xf32>
    %99 = arith.negf %98 : vector<2x64xf32>
    %100 = math.exp %99 : vector<2x64xf32>
    %cst_25 = arith.constant 1.000000e+00 : f32
    %101 = vector.broadcast %cst_25 : f32 to vector<2x64xf32>
    %102 = arith.addf %101, %100 : vector<2x64xf32>
    %103 = arith.divf %101, %102 : vector<2x64xf32>
    %104 = vector.extract_strided_slice %97 {offsets = [0, 64], sizes = [2, 64], strides = [1, 1]} : vector<2x256xf32> to vector<2x64xf32>
    %105 = arith.negf %104 : vector<2x64xf32>
    %106 = math.exp %105 : vector<2x64xf32>
    %cst_26 = arith.constant 1.000000e+00 : f32
    %107 = vector.broadcast %cst_26 : f32 to vector<2x64xf32>
    %108 = arith.addf %107, %106 : vector<2x64xf32>
    %109 = arith.divf %107, %108 : vector<2x64xf32>
    %110 = vector.extract_strided_slice %97 {offsets = [0, 128], sizes = [2, 64], strides = [1, 1]} : vector<2x256xf32> to vector<2x64xf32>
    %111 = math.tanh %110 : vector<2x64xf32>
    %112 = vector.extract_strided_slice %97 {offsets = [0, 192], sizes = [2, 64], strides = [1, 1]} : vector<2x256xf32> to vector<2x64xf32>
    %113 = arith.negf %112 : vector<2x64xf32>
    %114 = math.exp %113 : vector<2x64xf32>
    %cst_27 = arith.constant 1.000000e+00 : f32
    %115 = vector.broadcast %cst_27 : f32 to vector<2x64xf32>
    %116 = arith.addf %115, %114 : vector<2x64xf32>
    %117 = arith.divf %115, %116 : vector<2x64xf32>
    %118 = arith.mulf %109, %90 : vector<2x64xf32>
    %119 = arith.mulf %103, %111 : vector<2x64xf32>
    %120 = arith.addf %118, %119 : vector<2x64xf32>
    %121 = math.tanh %120 : vector<2x64xf32>
    %122 = arith.mulf %117, %121 : vector<2x64xf32>
    %123 = arith.addf %93, %122 : vector<2x64xf32>
    %cst_28 = arith.constant dense<0.000000e+00> : vector<2x256xf32>
    %124 = tpu.matmul %122, %0, %cst_28 {dimension_numbers = #tpu.dot_dimension_numbers<[1], [0], [0], [1], [0, 0, 1, 1], [], []>} : vector<2x64xf32>, vector<64x256xf32>, vector<2x256xf32> -> vector<2x256xf32>
    %c4 = arith.constant 4 : index
    %c0_29 = arith.constant 0 : index
    %c0_30 = arith.constant 0 : index
    %125 = vector.load %arg0[%c4, %c0_29, %c0_30] : memref<32x2x256xf32, #tpu.memory_space<vmem>>, vector<1x2x256xf32>
    %126 = vector.shape_cast %125 : vector<1x2x256xf32> to vector<2x256xf32>
    %127 = arith.addf %124, %126 : vector<2x256xf32>
    %128 = vector.extract_strided_slice %127 {offsets = [0, 0], sizes = [2, 64], strides = [1, 1]} : vector<2x256xf32> to vector<2x64xf32>
    %129 = arith.negf %128 : vector<2x64xf32>
    %130 = math.exp %129 : vector<2x64xf32>
    %cst_31 = arith.constant 1.000000e+00 : f32
    %131 = vector.broadcast %cst_31 : f32 to vector<2x64xf32>
    %132 = arith.addf %131, %130 : vector<2x64xf32>
    %133 = arith.divf %131, %132 : vector<2x64xf32>
    %134 = vector.extract_strided_slice %127 {offsets = [0, 64], sizes = [2, 64], strides = [1, 1]} : vector<2x256xf32> to vector<2x64xf32>
    %135 = arith.negf %134 : vector<2x64xf32>
    %136 = math.exp %135 : vector<2x64xf32>
    %cst_32 = arith.constant 1.000000e+00 : f32
    %137 = vector.broadcast %cst_32 : f32 to vector<2x64xf32>
    %138 = arith.addf %137, %136 : vector<2x64xf32>
    %139 = arith.divf %137, %138 : vector<2x64xf32>
    %140 = vector.extract_strided_slice %127 {offsets = [0, 128], sizes = [2, 64], strides = [1, 1]} : vector<2x256xf32> to vector<2x64xf32>
    %141 = math.tanh %140 : vector<2x64xf32>
    %142 = vector.extract_strided_slice %127 {offsets = [0, 192], sizes = [2, 64], strides = [1, 1]} : vector<2x256xf32> to vector<2x64xf32>
    %143 = arith.negf %142 : vector<2x64xf32>
    %144 = math.exp %143 : vector<2x64xf32>
    %cst_33 = arith.constant 1.000000e+00 : f32
    %145 = vector.broadcast %cst_33 : f32 to vector<2x64xf32>
    %146 = arith.addf %145, %144 : vector<2x64xf32>
    %147 = arith.divf %145, %146 : vector<2x64xf32>
    %148 = arith.mulf %139, %120 : vector<2x64xf32>
    %149 = arith.mulf %133, %141 : vector<2x64xf32>
    %150 = arith.addf %148, %149 : vector<2x64xf32>
    %151 = math.tanh %150 : vector<2x64xf32>
    %152 = arith.mulf %147, %151 : vector<2x64xf32>
    %153 = arith.addf %123, %152 : vector<2x64xf32>
    %cst_34 = arith.constant dense<0.000000e+00> : vector<2x256xf32>
    %154 = tpu.matmul %152, %0, %cst_34 {dimension_numbers = #tpu.dot_dimension_numbers<[1], [0], [0], [1], [0, 0, 1, 1], [], []>} : vector<2x64xf32>, vector<64x256xf32>, vector<2x256xf32> -> vector<2x256xf32>
    %c5 = arith.constant 5 : index
    %c0_35 = arith.constant 0 : index
    %c0_36 = arith.constant 0 : index
    %155 = vector.load %arg0[%c5, %c0_35, %c0_36] : memref<32x2x256xf32, #tpu.memory_space<vmem>>, vector<1x2x256xf32>
    %156 = vector.shape_cast %155 : vector<1x2x256xf32> to vector<2x256xf32>
    %157 = arith.addf %154, %156 : vector<2x256xf32>
    %158 = vector.extract_strided_slice %157 {offsets = [0, 0], sizes = [2, 64], strides = [1, 1]} : vector<2x256xf32> to vector<2x64xf32>
    %159 = arith.negf %158 : vector<2x64xf32>
    %160 = math.exp %159 : vector<2x64xf32>
    %cst_37 = arith.constant 1.000000e+00 : f32
    %161 = vector.broadcast %cst_37 : f32 to vector<2x64xf32>
    %162 = arith.addf %161, %160 : vector<2x64xf32>
    %163 = arith.divf %161, %162 : vector<2x64xf32>
    %164 = vector.extract_strided_slice %157 {offsets = [0, 64], sizes = [2, 64], strides = [1, 1]} : vector<2x256xf32> to vector<2x64xf32>
    %165 = arith.negf %164 : vector<2x64xf32>
    %166 = math.exp %165 : vector<2x64xf32>
    %cst_38 = arith.constant 1.000000e+00 : f32
    %167 = vector.broadcast %cst_38 : f32 to vector<2x64xf32>
    %168 = arith.addf %167, %166 : vector<2x64xf32>
    %169 = arith.divf %167, %168 : vector<2x64xf32>
    %170 = vector.extract_strided_slice %157 {offsets = [0, 128], sizes = [2, 64], strides = [1, 1]} : vector<2x256xf32> to vector<2x64xf32>
    %171 = math.tanh %170 : vector<2x64xf32>
    %172 = vector.extract_strided_slice %157 {offsets = [0, 192], sizes = [2, 64], strides = [1, 1]} : vector<2x256xf32> to vector<2x64xf32>
    %173 = arith.negf %172 : vector<2x64xf32>
    %174 = math.exp %173 : vector<2x64xf32>
    %cst_39 = arith.constant 1.000000e+00 : f32
    %175 = vector.broadcast %cst_39 : f32 to vector<2x64xf32>
    %176 = arith.addf %175, %174 : vector<2x64xf32>
    %177 = arith.divf %175, %176 : vector<2x64xf32>
    %178 = arith.mulf %169, %150 : vector<2x64xf32>
    %179 = arith.mulf %163, %171 : vector<2x64xf32>
    %180 = arith.addf %178, %179 : vector<2x64xf32>
    %181 = math.tanh %180 : vector<2x64xf32>
    %182 = arith.mulf %177, %181 : vector<2x64xf32>
    %183 = arith.addf %153, %182 : vector<2x64xf32>
    %cst_40 = arith.constant dense<0.000000e+00> : vector<2x256xf32>
    %184 = tpu.matmul %182, %0, %cst_40 {dimension_numbers = #tpu.dot_dimension_numbers<[1], [0], [0], [1], [0, 0, 1, 1], [], []>} : vector<2x64xf32>, vector<64x256xf32>, vector<2x256xf32> -> vector<2x256xf32>
    %c6 = arith.constant 6 : index
    %c0_41 = arith.constant 0 : index
    %c0_42 = arith.constant 0 : index
    %185 = vector.load %arg0[%c6, %c0_41, %c0_42] : memref<32x2x256xf32, #tpu.memory_space<vmem>>, vector<1x2x256xf32>
    %186 = vector.shape_cast %185 : vector<1x2x256xf32> to vector<2x256xf32>
    %187 = arith.addf %184, %186 : vector<2x256xf32>
    %188 = vector.extract_strided_slice %187 {offsets = [0, 0], sizes = [2, 64], strides = [1, 1]} : vector<2x256xf32> to vector<2x64xf32>
    %189 = arith.negf %188 : vector<2x64xf32>
    %190 = math.exp %189 : vector<2x64xf32>
    %cst_43 = arith.constant 1.000000e+00 : f32
    %191 = vector.broadcast %cst_43 : f32 to vector<2x64xf32>
    %192 = arith.addf %191, %190 : vector<2x64xf32>
    %193 = arith.divf %191, %192 : vector<2x64xf32>
    %194 = vector.extract_strided_slice %187 {offsets = [0, 64], sizes = [2, 64], strides = [1, 1]} : vector<2x256xf32> to vector<2x64xf32>
    %195 = arith.negf %194 : vector<2x64xf32>
    %196 = math.exp %195 : vector<2x64xf32>
    %cst_44 = arith.constant 1.000000e+00 : f32
    %197 = vector.broadcast %cst_44 : f32 to vector<2x64xf32>
    %198 = arith.addf %197, %196 : vector<2x64xf32>
    %199 = arith.divf %197, %198 : vector<2x64xf32>
    %200 = vector.extract_strided_slice %187 {offsets = [0, 128], sizes = [2, 64], strides = [1, 1]} : vector<2x256xf32> to vector<2x64xf32>
    %201 = math.tanh %200 : vector<2x64xf32>
    %202 = vector.extract_strided_slice %187 {offsets = [0, 192], sizes = [2, 64], strides = [1, 1]} : vector<2x256xf32> to vector<2x64xf32>
    %203 = arith.negf %202 : vector<2x64xf32>
    %204 = math.exp %203 : vector<2x64xf32>
    %cst_45 = arith.constant 1.000000e+00 : f32
    %205 = vector.broadcast %cst_45 : f32 to vector<2x64xf32>
    %206 = arith.addf %205, %204 : vector<2x64xf32>
    %207 = arith.divf %205, %206 : vector<2x64xf32>
    %208 = arith.mulf %199, %180 : vector<2x64xf32>
    %209 = arith.mulf %193, %201 : vector<2x64xf32>
    %210 = arith.addf %208, %209 : vector<2x64xf32>
    %211 = math.tanh %210 : vector<2x64xf32>
    %212 = arith.mulf %207, %211 : vector<2x64xf32>
    %213 = arith.addf %183, %212 : vector<2x64xf32>
    %cst_46 = arith.constant dense<0.000000e+00> : vector<2x256xf32>
    %214 = tpu.matmul %212, %0, %cst_46 {dimension_numbers = #tpu.dot_dimension_numbers<[1], [0], [0], [1], [0, 0, 1, 1], [], []>} : vector<2x64xf32>, vector<64x256xf32>, vector<2x256xf32> -> vector<2x256xf32>
    %c7 = arith.constant 7 : index
    %c0_47 = arith.constant 0 : index
    %c0_48 = arith.constant 0 : index
    %215 = vector.load %arg0[%c7, %c0_47, %c0_48] : memref<32x2x256xf32, #tpu.memory_space<vmem>>, vector<1x2x256xf32>
    %216 = vector.shape_cast %215 : vector<1x2x256xf32> to vector<2x256xf32>
    %217 = arith.addf %214, %216 : vector<2x256xf32>
    %218 = vector.extract_strided_slice %217 {offsets = [0, 0], sizes = [2, 64], strides = [1, 1]} : vector<2x256xf32> to vector<2x64xf32>
    %219 = arith.negf %218 : vector<2x64xf32>
    %220 = math.exp %219 : vector<2x64xf32>
    %cst_49 = arith.constant 1.000000e+00 : f32
    %221 = vector.broadcast %cst_49 : f32 to vector<2x64xf32>
    %222 = arith.addf %221, %220 : vector<2x64xf32>
    %223 = arith.divf %221, %222 : vector<2x64xf32>
    %224 = vector.extract_strided_slice %217 {offsets = [0, 64], sizes = [2, 64], strides = [1, 1]} : vector<2x256xf32> to vector<2x64xf32>
    %225 = arith.negf %224 : vector<2x64xf32>
    %226 = math.exp %225 : vector<2x64xf32>
    %cst_50 = arith.constant 1.000000e+00 : f32
    %227 = vector.broadcast %cst_50 : f32 to vector<2x64xf32>
    %228 = arith.addf %227, %226 : vector<2x64xf32>
    %229 = arith.divf %227, %228 : vector<2x64xf32>
    %230 = vector.extract_strided_slice %217 {offsets = [0, 128], sizes = [2, 64], strides = [1, 1]} : vector<2x256xf32> to vector<2x64xf32>
    %231 = math.tanh %230 : vector<2x64xf32>
    %232 = vector.extract_strided_slice %217 {offsets = [0, 192], sizes = [2, 64], strides = [1, 1]} : vector<2x256xf32> to vector<2x64xf32>
    %233 = arith.negf %232 : vector<2x64xf32>
    %234 = math.exp %233 : vector<2x64xf32>
    %cst_51 = arith.constant 1.000000e+00 : f32
    %235 = vector.broadcast %cst_51 : f32 to vector<2x64xf32>
    %236 = arith.addf %235, %234 : vector<2x64xf32>
    %237 = arith.divf %235, %236 : vector<2x64xf32>
    %238 = arith.mulf %229, %210 : vector<2x64xf32>
    %239 = arith.mulf %223, %231 : vector<2x64xf32>
    %240 = arith.addf %238, %239 : vector<2x64xf32>
    %241 = math.tanh %240 : vector<2x64xf32>
    %242 = arith.mulf %237, %241 : vector<2x64xf32>
    %243 = arith.addf %213, %242 : vector<2x64xf32>
    %cst_52 = arith.constant dense<0.000000e+00> : vector<2x256xf32>
    %244 = tpu.matmul %242, %0, %cst_52 {dimension_numbers = #tpu.dot_dimension_numbers<[1], [0], [0], [1], [0, 0, 1, 1], [], []>} : vector<2x64xf32>, vector<64x256xf32>, vector<2x256xf32> -> vector<2x256xf32>
    %c8 = arith.constant 8 : index
    %c0_53 = arith.constant 0 : index
    %c0_54 = arith.constant 0 : index
    %245 = vector.load %arg0[%c8, %c0_53, %c0_54] : memref<32x2x256xf32, #tpu.memory_space<vmem>>, vector<1x2x256xf32>
    %246 = vector.shape_cast %245 : vector<1x2x256xf32> to vector<2x256xf32>
    %247 = arith.addf %244, %246 : vector<2x256xf32>
    %248 = vector.extract_strided_slice %247 {offsets = [0, 0], sizes = [2, 64], strides = [1, 1]} : vector<2x256xf32> to vector<2x64xf32>
    %249 = arith.negf %248 : vector<2x64xf32>
    %250 = math.exp %249 : vector<2x64xf32>
    %cst_55 = arith.constant 1.000000e+00 : f32
    %251 = vector.broadcast %cst_55 : f32 to vector<2x64xf32>
    %252 = arith.addf %251, %250 : vector<2x64xf32>
    %253 = arith.divf %251, %252 : vector<2x64xf32>
    %254 = vector.extract_strided_slice %247 {offsets = [0, 64], sizes = [2, 64], strides = [1, 1]} : vector<2x256xf32> to vector<2x64xf32>
    %255 = arith.negf %254 : vector<2x64xf32>
    %256 = math.exp %255 : vector<2x64xf32>
    %cst_56 = arith.constant 1.000000e+00 : f32
    %257 = vector.broadcast %cst_56 : f32 to vector<2x64xf32>
    %258 = arith.addf %257, %256 : vector<2x64xf32>
    %259 = arith.divf %257, %258 : vector<2x64xf32>
    %260 = vector.extract_strided_slice %247 {offsets = [0, 128], sizes = [2, 64], strides = [1, 1]} : vector<2x256xf32> to vector<2x64xf32>
    %261 = math.tanh %260 : vector<2x64xf32>
    %262 = vector.extract_strided_slice %247 {offsets = [0, 192], sizes = [2, 64], strides = [1, 1]} : vector<2x256xf32> to vector<2x64xf32>
    %263 = arith.negf %262 : vector<2x64xf32>
    %264 = math.exp %263 : vector<2x64xf32>
    %cst_57 = arith.constant 1.000000e+00 : f32
    %265 = vector.broadcast %cst_57 : f32 to vector<2x64xf32>
    %266 = arith.addf %265, %264 : vector<2x64xf32>
    %267 = arith.divf %265, %266 : vector<2x64xf32>
    %268 = arith.mulf %259, %240 : vector<2x64xf32>
    %269 = arith.mulf %253, %261 : vector<2x64xf32>
    %270 = arith.addf %268, %269 : vector<2x64xf32>
    %271 = math.tanh %270 : vector<2x64xf32>
    %272 = arith.mulf %267, %271 : vector<2x64xf32>
    %273 = arith.addf %243, %272 : vector<2x64xf32>
    %cst_58 = arith.constant dense<0.000000e+00> : vector<2x256xf32>
    %274 = tpu.matmul %272, %0, %cst_58 {dimension_numbers = #tpu.dot_dimension_numbers<[1], [0], [0], [1], [0, 0, 1, 1], [], []>} : vector<2x64xf32>, vector<64x256xf32>, vector<2x256xf32> -> vector<2x256xf32>
    %c9 = arith.constant 9 : index
    %c0_59 = arith.constant 0 : index
    %c0_60 = arith.constant 0 : index
    %275 = vector.load %arg0[%c9, %c0_59, %c0_60] : memref<32x2x256xf32, #tpu.memory_space<vmem>>, vector<1x2x256xf32>
    %276 = vector.shape_cast %275 : vector<1x2x256xf32> to vector<2x256xf32>
    %277 = arith.addf %274, %276 : vector<2x256xf32>
    %278 = vector.extract_strided_slice %277 {offsets = [0, 0], sizes = [2, 64], strides = [1, 1]} : vector<2x256xf32> to vector<2x64xf32>
    %279 = arith.negf %278 : vector<2x64xf32>
    %280 = math.exp %279 : vector<2x64xf32>
    %cst_61 = arith.constant 1.000000e+00 : f32
    %281 = vector.broadcast %cst_61 : f32 to vector<2x64xf32>
    %282 = arith.addf %281, %280 : vector<2x64xf32>
    %283 = arith.divf %281, %282 : vector<2x64xf32>
    %284 = vector.extract_strided_slice %277 {offsets = [0, 64], sizes = [2, 64], strides = [1, 1]} : vector<2x256xf32> to vector<2x64xf32>
    %285 = arith.negf %284 : vector<2x64xf32>
    %286 = math.exp %285 : vector<2x64xf32>
    %cst_62 = arith.constant 1.000000e+00 : f32
    %287 = vector.broadcast %cst_62 : f32 to vector<2x64xf32>
    %288 = arith.addf %287, %286 : vector<2x64xf32>
    %289 = arith.divf %287, %288 : vector<2x64xf32>
    %290 = vector.extract_strided_slice %277 {offsets = [0, 128], sizes = [2, 64], strides = [1, 1]} : vector<2x256xf32> to vector<2x64xf32>
    %291 = math.tanh %290 : vector<2x64xf32>
    %292 = vector.extract_strided_slice %277 {offsets = [0, 192], sizes = [2, 64], strides = [1, 1]} : vector<2x256xf32> to vector<2x64xf32>
    %293 = arith.negf %292 : vector<2x64xf32>
    %294 = math.exp %293 : vector<2x64xf32>
    %cst_63 = arith.constant 1.000000e+00 : f32
    %295 = vector.broadcast %cst_63 : f32 to vector<2x64xf32>
    %296 = arith.addf %295, %294 : vector<2x64xf32>
    %297 = arith.divf %295, %296 : vector<2x64xf32>
    %298 = arith.mulf %289, %270 : vector<2x64xf32>
    %299 = arith.mulf %283, %291 : vector<2x64xf32>
    %300 = arith.addf %298, %299 : vector<2x64xf32>
    %301 = math.tanh %300 : vector<2x64xf32>
    %302 = arith.mulf %297, %301 : vector<2x64xf32>
    %303 = arith.addf %273, %302 : vector<2x64xf32>
    %cst_64 = arith.constant dense<0.000000e+00> : vector<2x256xf32>
    %304 = tpu.matmul %302, %0, %cst_64 {dimension_numbers = #tpu.dot_dimension_numbers<[1], [0], [0], [1], [0, 0, 1, 1], [], []>} : vector<2x64xf32>, vector<64x256xf32>, vector<2x256xf32> -> vector<2x256xf32>
    %c10 = arith.constant 10 : index
    %c0_65 = arith.constant 0 : index
    %c0_66 = arith.constant 0 : index
    %305 = vector.load %arg0[%c10, %c0_65, %c0_66] : memref<32x2x256xf32, #tpu.memory_space<vmem>>, vector<1x2x256xf32>
    %306 = vector.shape_cast %305 : vector<1x2x256xf32> to vector<2x256xf32>
    %307 = arith.addf %304, %306 : vector<2x256xf32>
    %308 = vector.extract_strided_slice %307 {offsets = [0, 0], sizes = [2, 64], strides = [1, 1]} : vector<2x256xf32> to vector<2x64xf32>
    %309 = arith.negf %308 : vector<2x64xf32>
    %310 = math.exp %309 : vector<2x64xf32>
    %cst_67 = arith.constant 1.000000e+00 : f32
    %311 = vector.broadcast %cst_67 : f32 to vector<2x64xf32>
    %312 = arith.addf %311, %310 : vector<2x64xf32>
    %313 = arith.divf %311, %312 : vector<2x64xf32>
    %314 = vector.extract_strided_slice %307 {offsets = [0, 64], sizes = [2, 64], strides = [1, 1]} : vector<2x256xf32> to vector<2x64xf32>
    %315 = arith.negf %314 : vector<2x64xf32>
    %316 = math.exp %315 : vector<2x64xf32>
    %cst_68 = arith.constant 1.000000e+00 : f32
    %317 = vector.broadcast %cst_68 : f32 to vector<2x64xf32>
    %318 = arith.addf %317, %316 : vector<2x64xf32>
    %319 = arith.divf %317, %318 : vector<2x64xf32>
    %320 = vector.extract_strided_slice %307 {offsets = [0, 128], sizes = [2, 64], strides = [1, 1]} : vector<2x256xf32> to vector<2x64xf32>
    %321 = math.tanh %320 : vector<2x64xf32>
    %322 = vector.extract_strided_slice %307 {offsets = [0, 192], sizes = [2, 64], strides = [1, 1]} : vector<2x256xf32> to vector<2x64xf32>
    %323 = arith.negf %322 : vector<2x64xf32>
    %324 = math.exp %323 : vector<2x64xf32>
    %cst_69 = arith.constant 1.000000e+00 : f32
    %325 = vector.broadcast %cst_69 : f32 to vector<2x64xf32>
    %326 = arith.addf %325, %324 : vector<2x64xf32>
    %327 = arith.divf %325, %326 : vector<2x64xf32>
    %328 = arith.mulf %319, %300 : vector<2x64xf32>
    %329 = arith.mulf %313, %321 : vector<2x64xf32>
    %330 = arith.addf %328, %329 : vector<2x64xf32>
    %331 = math.tanh %330 : vector<2x64xf32>
    %332 = arith.mulf %327, %331 : vector<2x64xf32>
    %333 = arith.addf %303, %332 : vector<2x64xf32>
    %cst_70 = arith.constant dense<0.000000e+00> : vector<2x256xf32>
    %334 = tpu.matmul %332, %0, %cst_70 {dimension_numbers = #tpu.dot_dimension_numbers<[1], [0], [0], [1], [0, 0, 1, 1], [], []>} : vector<2x64xf32>, vector<64x256xf32>, vector<2x256xf32> -> vector<2x256xf32>
    %c11 = arith.constant 11 : index
    %c0_71 = arith.constant 0 : index
    %c0_72 = arith.constant 0 : index
    %335 = vector.load %arg0[%c11, %c0_71, %c0_72] : memref<32x2x256xf32, #tpu.memory_space<vmem>>, vector<1x2x256xf32>
    %336 = vector.shape_cast %335 : vector<1x2x256xf32> to vector<2x256xf32>
    %337 = arith.addf %334, %336 : vector<2x256xf32>
    %338 = vector.extract_strided_slice %337 {offsets = [0, 0], sizes = [2, 64], strides = [1, 1]} : vector<2x256xf32> to vector<2x64xf32>
    %339 = arith.negf %338 : vector<2x64xf32>
    %340 = math.exp %339 : vector<2x64xf32>
    %cst_73 = arith.constant 1.000000e+00 : f32
    %341 = vector.broadcast %cst_73 : f32 to vector<2x64xf32>
    %342 = arith.addf %341, %340 : vector<2x64xf32>
    %343 = arith.divf %341, %342 : vector<2x64xf32>
    %344 = vector.extract_strided_slice %337 {offsets = [0, 64], sizes = [2, 64], strides = [1, 1]} : vector<2x256xf32> to vector<2x64xf32>
    %345 = arith.negf %344 : vector<2x64xf32>
    %346 = math.exp %345 : vector<2x64xf32>
    %cst_74 = arith.constant 1.000000e+00 : f32
    %347 = vector.broadcast %cst_74 : f32 to vector<2x64xf32>
    %348 = arith.addf %347, %346 : vector<2x64xf32>
    %349 = arith.divf %347, %348 : vector<2x64xf32>
    %350 = vector.extract_strided_slice %337 {offsets = [0, 128], sizes = [2, 64], strides = [1, 1]} : vector<2x256xf32> to vector<2x64xf32>
    %351 = math.tanh %350 : vector<2x64xf32>
    %352 = vector.extract_strided_slice %337 {offsets = [0, 192], sizes = [2, 64], strides = [1, 1]} : vector<2x256xf32> to vector<2x64xf32>
    %353 = arith.negf %352 : vector<2x64xf32>
    %354 = math.exp %353 : vector<2x64xf32>
    %cst_75 = arith.constant 1.000000e+00 : f32
    %355 = vector.broadcast %cst_75 : f32 to vector<2x64xf32>
    %356 = arith.addf %355, %354 : vector<2x64xf32>
    %357 = arith.divf %355, %356 : vector<2x64xf32>
    %358 = arith.mulf %349, %330 : vector<2x64xf32>
    %359 = arith.mulf %343, %351 : vector<2x64xf32>
    %360 = arith.addf %358, %359 : vector<2x64xf32>
    %361 = math.tanh %360 : vector<2x64xf32>
    %362 = arith.mulf %357, %361 : vector<2x64xf32>
    %363 = arith.addf %333, %362 : vector<2x64xf32>
    %cst_76 = arith.constant dense<0.000000e+00> : vector<2x256xf32>
    %364 = tpu.matmul %362, %0, %cst_76 {dimension_numbers = #tpu.dot_dimension_numbers<[1], [0], [0], [1], [0, 0, 1, 1], [], []>} : vector<2x64xf32>, vector<64x256xf32>, vector<2x256xf32> -> vector<2x256xf32>
    %c12 = arith.constant 12 : index
    %c0_77 = arith.constant 0 : index
    %c0_78 = arith.constant 0 : index
    %365 = vector.load %arg0[%c12, %c0_77, %c0_78] : memref<32x2x256xf32, #tpu.memory_space<vmem>>, vector<1x2x256xf32>
    %366 = vector.shape_cast %365 : vector<1x2x256xf32> to vector<2x256xf32>
    %367 = arith.addf %364, %366 : vector<2x256xf32>
    %368 = vector.extract_strided_slice %367 {offsets = [0, 0], sizes = [2, 64], strides = [1, 1]} : vector<2x256xf32> to vector<2x64xf32>
    %369 = arith.negf %368 : vector<2x64xf32>
    %370 = math.exp %369 : vector<2x64xf32>
    %cst_79 = arith.constant 1.000000e+00 : f32
    %371 = vector.broadcast %cst_79 : f32 to vector<2x64xf32>
    %372 = arith.addf %371, %370 : vector<2x64xf32>
    %373 = arith.divf %371, %372 : vector<2x64xf32>
    %374 = vector.extract_strided_slice %367 {offsets = [0, 64], sizes = [2, 64], strides = [1, 1]} : vector<2x256xf32> to vector<2x64xf32>
    %375 = arith.negf %374 : vector<2x64xf32>
    %376 = math.exp %375 : vector<2x64xf32>
    %cst_80 = arith.constant 1.000000e+00 : f32
    %377 = vector.broadcast %cst_80 : f32 to vector<2x64xf32>
    %378 = arith.addf %377, %376 : vector<2x64xf32>
    %379 = arith.divf %377, %378 : vector<2x64xf32>
    %380 = vector.extract_strided_slice %367 {offsets = [0, 128], sizes = [2, 64], strides = [1, 1]} : vector<2x256xf32> to vector<2x64xf32>
    %381 = math.tanh %380 : vector<2x64xf32>
    %382 = vector.extract_strided_slice %367 {offsets = [0, 192], sizes = [2, 64], strides = [1, 1]} : vector<2x256xf32> to vector<2x64xf32>
    %383 = arith.negf %382 : vector<2x64xf32>
    %384 = math.exp %383 : vector<2x64xf32>
    %cst_81 = arith.constant 1.000000e+00 : f32
    %385 = vector.broadcast %cst_81 : f32 to vector<2x64xf32>
    %386 = arith.addf %385, %384 : vector<2x64xf32>
    %387 = arith.divf %385, %386 : vector<2x64xf32>
    %388 = arith.mulf %379, %360 : vector<2x64xf32>
    %389 = arith.mulf %373, %381 : vector<2x64xf32>
    %390 = arith.addf %388, %389 : vector<2x64xf32>
    %391 = math.tanh %390 : vector<2x64xf32>
    %392 = arith.mulf %387, %391 : vector<2x64xf32>
    %393 = arith.addf %363, %392 : vector<2x64xf32>
    %cst_82 = arith.constant dense<0.000000e+00> : vector<2x256xf32>
    %394 = tpu.matmul %392, %0, %cst_82 {dimension_numbers = #tpu.dot_dimension_numbers<[1], [0], [0], [1], [0, 0, 1, 1], [], []>} : vector<2x64xf32>, vector<64x256xf32>, vector<2x256xf32> -> vector<2x256xf32>
    %c13 = arith.constant 13 : index
    %c0_83 = arith.constant 0 : index
    %c0_84 = arith.constant 0 : index
    %395 = vector.load %arg0[%c13, %c0_83, %c0_84] : memref<32x2x256xf32, #tpu.memory_space<vmem>>, vector<1x2x256xf32>
    %396 = vector.shape_cast %395 : vector<1x2x256xf32> to vector<2x256xf32>
    %397 = arith.addf %394, %396 : vector<2x256xf32>
    %398 = vector.extract_strided_slice %397 {offsets = [0, 0], sizes = [2, 64], strides = [1, 1]} : vector<2x256xf32> to vector<2x64xf32>
    %399 = arith.negf %398 : vector<2x64xf32>
    %400 = math.exp %399 : vector<2x64xf32>
    %cst_85 = arith.constant 1.000000e+00 : f32
    %401 = vector.broadcast %cst_85 : f32 to vector<2x64xf32>
    %402 = arith.addf %401, %400 : vector<2x64xf32>
    %403 = arith.divf %401, %402 : vector<2x64xf32>
    %404 = vector.extract_strided_slice %397 {offsets = [0, 64], sizes = [2, 64], strides = [1, 1]} : vector<2x256xf32> to vector<2x64xf32>
    %405 = arith.negf %404 : vector<2x64xf32>
    %406 = math.exp %405 : vector<2x64xf32>
    %cst_86 = arith.constant 1.000000e+00 : f32
    %407 = vector.broadcast %cst_86 : f32 to vector<2x64xf32>
    %408 = arith.addf %407, %406 : vector<2x64xf32>
    %409 = arith.divf %407, %408 : vector<2x64xf32>
    %410 = vector.extract_strided_slice %397 {offsets = [0, 128], sizes = [2, 64], strides = [1, 1]} : vector<2x256xf32> to vector<2x64xf32>
    %411 = math.tanh %410 : vector<2x64xf32>
    %412 = vector.extract_strided_slice %397 {offsets = [0, 192], sizes = [2, 64], strides = [1, 1]} : vector<2x256xf32> to vector<2x64xf32>
    %413 = arith.negf %412 : vector<2x64xf32>
    %414 = math.exp %413 : vector<2x64xf32>
    %cst_87 = arith.constant 1.000000e+00 : f32
    %415 = vector.broadcast %cst_87 : f32 to vector<2x64xf32>
    %416 = arith.addf %415, %414 : vector<2x64xf32>
    %417 = arith.divf %415, %416 : vector<2x64xf32>
    %418 = arith.mulf %409, %390 : vector<2x64xf32>
    %419 = arith.mulf %403, %411 : vector<2x64xf32>
    %420 = arith.addf %418, %419 : vector<2x64xf32>
    %421 = math.tanh %420 : vector<2x64xf32>
    %422 = arith.mulf %417, %421 : vector<2x64xf32>
    %423 = arith.addf %393, %422 : vector<2x64xf32>
    %cst_88 = arith.constant dense<0.000000e+00> : vector<2x256xf32>
    %424 = tpu.matmul %422, %0, %cst_88 {dimension_numbers = #tpu.dot_dimension_numbers<[1], [0], [0], [1], [0, 0, 1, 1], [], []>} : vector<2x64xf32>, vector<64x256xf32>, vector<2x256xf32> -> vector<2x256xf32>
    %c14 = arith.constant 14 : index
    %c0_89 = arith.constant 0 : index
    %c0_90 = arith.constant 0 : index
    %425 = vector.load %arg0[%c14, %c0_89, %c0_90] : memref<32x2x256xf32, #tpu.memory_space<vmem>>, vector<1x2x256xf32>
    %426 = vector.shape_cast %425 : vector<1x2x256xf32> to vector<2x256xf32>
    %427 = arith.addf %424, %426 : vector<2x256xf32>
    %428 = vector.extract_strided_slice %427 {offsets = [0, 0], sizes = [2, 64], strides = [1, 1]} : vector<2x256xf32> to vector<2x64xf32>
    %429 = arith.negf %428 : vector<2x64xf32>
    %430 = math.exp %429 : vector<2x64xf32>
    %cst_91 = arith.constant 1.000000e+00 : f32
    %431 = vector.broadcast %cst_91 : f32 to vector<2x64xf32>
    %432 = arith.addf %431, %430 : vector<2x64xf32>
    %433 = arith.divf %431, %432 : vector<2x64xf32>
    %434 = vector.extract_strided_slice %427 {offsets = [0, 64], sizes = [2, 64], strides = [1, 1]} : vector<2x256xf32> to vector<2x64xf32>
    %435 = arith.negf %434 : vector<2x64xf32>
    %436 = math.exp %435 : vector<2x64xf32>
    %cst_92 = arith.constant 1.000000e+00 : f32
    %437 = vector.broadcast %cst_92 : f32 to vector<2x64xf32>
    %438 = arith.addf %437, %436 : vector<2x64xf32>
    %439 = arith.divf %437, %438 : vector<2x64xf32>
    %440 = vector.extract_strided_slice %427 {offsets = [0, 128], sizes = [2, 64], strides = [1, 1]} : vector<2x256xf32> to vector<2x64xf32>
    %441 = math.tanh %440 : vector<2x64xf32>
    %442 = vector.extract_strided_slice %427 {offsets = [0, 192], sizes = [2, 64], strides = [1, 1]} : vector<2x256xf32> to vector<2x64xf32>
    %443 = arith.negf %442 : vector<2x64xf32>
    %444 = math.exp %443 : vector<2x64xf32>
    %cst_93 = arith.constant 1.000000e+00 : f32
    %445 = vector.broadcast %cst_93 : f32 to vector<2x64xf32>
    %446 = arith.addf %445, %444 : vector<2x64xf32>
    %447 = arith.divf %445, %446 : vector<2x64xf32>
    %448 = arith.mulf %439, %420 : vector<2x64xf32>
    %449 = arith.mulf %433, %441 : vector<2x64xf32>
    %450 = arith.addf %448, %449 : vector<2x64xf32>
    %451 = math.tanh %450 : vector<2x64xf32>
    %452 = arith.mulf %447, %451 : vector<2x64xf32>
    %453 = arith.addf %423, %452 : vector<2x64xf32>
    %cst_94 = arith.constant dense<0.000000e+00> : vector<2x256xf32>
    %454 = tpu.matmul %452, %0, %cst_94 {dimension_numbers = #tpu.dot_dimension_numbers<[1], [0], [0], [1], [0, 0, 1, 1], [], []>} : vector<2x64xf32>, vector<64x256xf32>, vector<2x256xf32> -> vector<2x256xf32>
    %c15 = arith.constant 15 : index
    %c0_95 = arith.constant 0 : index
    %c0_96 = arith.constant 0 : index
    %455 = vector.load %arg0[%c15, %c0_95, %c0_96] : memref<32x2x256xf32, #tpu.memory_space<vmem>>, vector<1x2x256xf32>
    %456 = vector.shape_cast %455 : vector<1x2x256xf32> to vector<2x256xf32>
    %457 = arith.addf %454, %456 : vector<2x256xf32>
    %458 = vector.extract_strided_slice %457 {offsets = [0, 0], sizes = [2, 64], strides = [1, 1]} : vector<2x256xf32> to vector<2x64xf32>
    %459 = arith.negf %458 : vector<2x64xf32>
    %460 = math.exp %459 : vector<2x64xf32>
    %cst_97 = arith.constant 1.000000e+00 : f32
    %461 = vector.broadcast %cst_97 : f32 to vector<2x64xf32>
    %462 = arith.addf %461, %460 : vector<2x64xf32>
    %463 = arith.divf %461, %462 : vector<2x64xf32>
    %464 = vector.extract_strided_slice %457 {offsets = [0, 64], sizes = [2, 64], strides = [1, 1]} : vector<2x256xf32> to vector<2x64xf32>
    %465 = arith.negf %464 : vector<2x64xf32>
    %466 = math.exp %465 : vector<2x64xf32>
    %cst_98 = arith.constant 1.000000e+00 : f32
    %467 = vector.broadcast %cst_98 : f32 to vector<2x64xf32>
    %468 = arith.addf %467, %466 : vector<2x64xf32>
    %469 = arith.divf %467, %468 : vector<2x64xf32>
    %470 = vector.extract_strided_slice %457 {offsets = [0, 128], sizes = [2, 64], strides = [1, 1]} : vector<2x256xf32> to vector<2x64xf32>
    %471 = math.tanh %470 : vector<2x64xf32>
    %472 = vector.extract_strided_slice %457 {offsets = [0, 192], sizes = [2, 64], strides = [1, 1]} : vector<2x256xf32> to vector<2x64xf32>
    %473 = arith.negf %472 : vector<2x64xf32>
    %474 = math.exp %473 : vector<2x64xf32>
    %cst_99 = arith.constant 1.000000e+00 : f32
    %475 = vector.broadcast %cst_99 : f32 to vector<2x64xf32>
    %476 = arith.addf %475, %474 : vector<2x64xf32>
    %477 = arith.divf %475, %476 : vector<2x64xf32>
    %478 = arith.mulf %469, %450 : vector<2x64xf32>
    %479 = arith.mulf %463, %471 : vector<2x64xf32>
    %480 = arith.addf %478, %479 : vector<2x64xf32>
    %481 = math.tanh %480 : vector<2x64xf32>
    %482 = arith.mulf %477, %481 : vector<2x64xf32>
    %483 = arith.addf %453, %482 : vector<2x64xf32>
    %cst_100 = arith.constant dense<0.000000e+00> : vector<2x256xf32>
    %484 = tpu.matmul %482, %0, %cst_100 {dimension_numbers = #tpu.dot_dimension_numbers<[1], [0], [0], [1], [0, 0, 1, 1], [], []>} : vector<2x64xf32>, vector<64x256xf32>, vector<2x256xf32> -> vector<2x256xf32>
    %c16 = arith.constant 16 : index
    %c0_101 = arith.constant 0 : index
    %c0_102 = arith.constant 0 : index
    %485 = vector.load %arg0[%c16, %c0_101, %c0_102] : memref<32x2x256xf32, #tpu.memory_space<vmem>>, vector<1x2x256xf32>
    %486 = vector.shape_cast %485 : vector<1x2x256xf32> to vector<2x256xf32>
    %487 = arith.addf %484, %486 : vector<2x256xf32>
    %488 = vector.extract_strided_slice %487 {offsets = [0, 0], sizes = [2, 64], strides = [1, 1]} : vector<2x256xf32> to vector<2x64xf32>
    %489 = arith.negf %488 : vector<2x64xf32>
    %490 = math.exp %489 : vector<2x64xf32>
    %cst_103 = arith.constant 1.000000e+00 : f32
    %491 = vector.broadcast %cst_103 : f32 to vector<2x64xf32>
    %492 = arith.addf %491, %490 : vector<2x64xf32>
    %493 = arith.divf %491, %492 : vector<2x64xf32>
    %494 = vector.extract_strided_slice %487 {offsets = [0, 64], sizes = [2, 64], strides = [1, 1]} : vector<2x256xf32> to vector<2x64xf32>
    %495 = arith.negf %494 : vector<2x64xf32>
    %496 = math.exp %495 : vector<2x64xf32>
    %cst_104 = arith.constant 1.000000e+00 : f32
    %497 = vector.broadcast %cst_104 : f32 to vector<2x64xf32>
    %498 = arith.addf %497, %496 : vector<2x64xf32>
    %499 = arith.divf %497, %498 : vector<2x64xf32>
    %500 = vector.extract_strided_slice %487 {offsets = [0, 128], sizes = [2, 64], strides = [1, 1]} : vector<2x256xf32> to vector<2x64xf32>
    %501 = math.tanh %500 : vector<2x64xf32>
    %502 = vector.extract_strided_slice %487 {offsets = [0, 192], sizes = [2, 64], strides = [1, 1]} : vector<2x256xf32> to vector<2x64xf32>
    %503 = arith.negf %502 : vector<2x64xf32>
    %504 = math.exp %503 : vector<2x64xf32>
    %cst_105 = arith.constant 1.000000e+00 : f32
    %505 = vector.broadcast %cst_105 : f32 to vector<2x64xf32>
    %506 = arith.addf %505, %504 : vector<2x64xf32>
    %507 = arith.divf %505, %506 : vector<2x64xf32>
    %508 = arith.mulf %499, %480 : vector<2x64xf32>
    %509 = arith.mulf %493, %501 : vector<2x64xf32>
    %510 = arith.addf %508, %509 : vector<2x64xf32>
    %511 = math.tanh %510 : vector<2x64xf32>
    %512 = arith.mulf %507, %511 : vector<2x64xf32>
    %513 = arith.addf %483, %512 : vector<2x64xf32>
    %cst_106 = arith.constant dense<0.000000e+00> : vector<2x256xf32>
    %514 = tpu.matmul %512, %0, %cst_106 {dimension_numbers = #tpu.dot_dimension_numbers<[1], [0], [0], [1], [0, 0, 1, 1], [], []>} : vector<2x64xf32>, vector<64x256xf32>, vector<2x256xf32> -> vector<2x256xf32>
    %c17 = arith.constant 17 : index
    %c0_107 = arith.constant 0 : index
    %c0_108 = arith.constant 0 : index
    %515 = vector.load %arg0[%c17, %c0_107, %c0_108] : memref<32x2x256xf32, #tpu.memory_space<vmem>>, vector<1x2x256xf32>
    %516 = vector.shape_cast %515 : vector<1x2x256xf32> to vector<2x256xf32>
    %517 = arith.addf %514, %516 : vector<2x256xf32>
    %518 = vector.extract_strided_slice %517 {offsets = [0, 0], sizes = [2, 64], strides = [1, 1]} : vector<2x256xf32> to vector<2x64xf32>
    %519 = arith.negf %518 : vector<2x64xf32>
    %520 = math.exp %519 : vector<2x64xf32>
    %cst_109 = arith.constant 1.000000e+00 : f32
    %521 = vector.broadcast %cst_109 : f32 to vector<2x64xf32>
    %522 = arith.addf %521, %520 : vector<2x64xf32>
    %523 = arith.divf %521, %522 : vector<2x64xf32>
    %524 = vector.extract_strided_slice %517 {offsets = [0, 64], sizes = [2, 64], strides = [1, 1]} : vector<2x256xf32> to vector<2x64xf32>
    %525 = arith.negf %524 : vector<2x64xf32>
    %526 = math.exp %525 : vector<2x64xf32>
    %cst_110 = arith.constant 1.000000e+00 : f32
    %527 = vector.broadcast %cst_110 : f32 to vector<2x64xf32>
    %528 = arith.addf %527, %526 : vector<2x64xf32>
    %529 = arith.divf %527, %528 : vector<2x64xf32>
    %530 = vector.extract_strided_slice %517 {offsets = [0, 128], sizes = [2, 64], strides = [1, 1]} : vector<2x256xf32> to vector<2x64xf32>
    %531 = math.tanh %530 : vector<2x64xf32>
    %532 = vector.extract_strided_slice %517 {offsets = [0, 192], sizes = [2, 64], strides = [1, 1]} : vector<2x256xf32> to vector<2x64xf32>
    %533 = arith.negf %532 : vector<2x64xf32>
    %534 = math.exp %533 : vector<2x64xf32>
    %cst_111 = arith.constant 1.000000e+00 : f32
    %535 = vector.broadcast %cst_111 : f32 to vector<2x64xf32>
    %536 = arith.addf %535, %534 : vector<2x64xf32>
    %537 = arith.divf %535, %536 : vector<2x64xf32>
    %538 = arith.mulf %529, %510 : vector<2x64xf32>
    %539 = arith.mulf %523, %531 : vector<2x64xf32>
    %540 = arith.addf %538, %539 : vector<2x64xf32>
    %541 = math.tanh %540 : vector<2x64xf32>
    %542 = arith.mulf %537, %541 : vector<2x64xf32>
    %543 = arith.addf %513, %542 : vector<2x64xf32>
    %cst_112 = arith.constant dense<0.000000e+00> : vector<2x256xf32>
    %544 = tpu.matmul %542, %0, %cst_112 {dimension_numbers = #tpu.dot_dimension_numbers<[1], [0], [0], [1], [0, 0, 1, 1], [], []>} : vector<2x64xf32>, vector<64x256xf32>, vector<2x256xf32> -> vector<2x256xf32>
    %c18 = arith.constant 18 : index
    %c0_113 = arith.constant 0 : index
    %c0_114 = arith.constant 0 : index
    %545 = vector.load %arg0[%c18, %c0_113, %c0_114] : memref<32x2x256xf32, #tpu.memory_space<vmem>>, vector<1x2x256xf32>
    %546 = vector.shape_cast %545 : vector<1x2x256xf32> to vector<2x256xf32>
    %547 = arith.addf %544, %546 : vector<2x256xf32>
    %548 = vector.extract_strided_slice %547 {offsets = [0, 0], sizes = [2, 64], strides = [1, 1]} : vector<2x256xf32> to vector<2x64xf32>
    %549 = arith.negf %548 : vector<2x64xf32>
    %550 = math.exp %549 : vector<2x64xf32>
    %cst_115 = arith.constant 1.000000e+00 : f32
    %551 = vector.broadcast %cst_115 : f32 to vector<2x64xf32>
    %552 = arith.addf %551, %550 : vector<2x64xf32>
    %553 = arith.divf %551, %552 : vector<2x64xf32>
    %554 = vector.extract_strided_slice %547 {offsets = [0, 64], sizes = [2, 64], strides = [1, 1]} : vector<2x256xf32> to vector<2x64xf32>
    %555 = arith.negf %554 : vector<2x64xf32>
    %556 = math.exp %555 : vector<2x64xf32>
    %cst_116 = arith.constant 1.000000e+00 : f32
    %557 = vector.broadcast %cst_116 : f32 to vector<2x64xf32>
    %558 = arith.addf %557, %556 : vector<2x64xf32>
    %559 = arith.divf %557, %558 : vector<2x64xf32>
    %560 = vector.extract_strided_slice %547 {offsets = [0, 128], sizes = [2, 64], strides = [1, 1]} : vector<2x256xf32> to vector<2x64xf32>
    %561 = math.tanh %560 : vector<2x64xf32>
    %562 = vector.extract_strided_slice %547 {offsets = [0, 192], sizes = [2, 64], strides = [1, 1]} : vector<2x256xf32> to vector<2x64xf32>
    %563 = arith.negf %562 : vector<2x64xf32>
    %564 = math.exp %563 : vector<2x64xf32>
    %cst_117 = arith.constant 1.000000e+00 : f32
    %565 = vector.broadcast %cst_117 : f32 to vector<2x64xf32>
    %566 = arith.addf %565, %564 : vector<2x64xf32>
    %567 = arith.divf %565, %566 : vector<2x64xf32>
    %568 = arith.mulf %559, %540 : vector<2x64xf32>
    %569 = arith.mulf %553, %561 : vector<2x64xf32>
    %570 = arith.addf %568, %569 : vector<2x64xf32>
    %571 = math.tanh %570 : vector<2x64xf32>
    %572 = arith.mulf %567, %571 : vector<2x64xf32>
    %573 = arith.addf %543, %572 : vector<2x64xf32>
    %cst_118 = arith.constant dense<0.000000e+00> : vector<2x256xf32>
    %574 = tpu.matmul %572, %0, %cst_118 {dimension_numbers = #tpu.dot_dimension_numbers<[1], [0], [0], [1], [0, 0, 1, 1], [], []>} : vector<2x64xf32>, vector<64x256xf32>, vector<2x256xf32> -> vector<2x256xf32>
    %c19 = arith.constant 19 : index
    %c0_119 = arith.constant 0 : index
    %c0_120 = arith.constant 0 : index
    %575 = vector.load %arg0[%c19, %c0_119, %c0_120] : memref<32x2x256xf32, #tpu.memory_space<vmem>>, vector<1x2x256xf32>
    %576 = vector.shape_cast %575 : vector<1x2x256xf32> to vector<2x256xf32>
    %577 = arith.addf %574, %576 : vector<2x256xf32>
    %578 = vector.extract_strided_slice %577 {offsets = [0, 0], sizes = [2, 64], strides = [1, 1]} : vector<2x256xf32> to vector<2x64xf32>
    %579 = arith.negf %578 : vector<2x64xf32>
    %580 = math.exp %579 : vector<2x64xf32>
    %cst_121 = arith.constant 1.000000e+00 : f32
    %581 = vector.broadcast %cst_121 : f32 to vector<2x64xf32>
    %582 = arith.addf %581, %580 : vector<2x64xf32>
    %583 = arith.divf %581, %582 : vector<2x64xf32>
    %584 = vector.extract_strided_slice %577 {offsets = [0, 64], sizes = [2, 64], strides = [1, 1]} : vector<2x256xf32> to vector<2x64xf32>
    %585 = arith.negf %584 : vector<2x64xf32>
    %586 = math.exp %585 : vector<2x64xf32>
    %cst_122 = arith.constant 1.000000e+00 : f32
    %587 = vector.broadcast %cst_122 : f32 to vector<2x64xf32>
    %588 = arith.addf %587, %586 : vector<2x64xf32>
    %589 = arith.divf %587, %588 : vector<2x64xf32>
    %590 = vector.extract_strided_slice %577 {offsets = [0, 128], sizes = [2, 64], strides = [1, 1]} : vector<2x256xf32> to vector<2x64xf32>
    %591 = math.tanh %590 : vector<2x64xf32>
    %592 = vector.extract_strided_slice %577 {offsets = [0, 192], sizes = [2, 64], strides = [1, 1]} : vector<2x256xf32> to vector<2x64xf32>
    %593 = arith.negf %592 : vector<2x64xf32>
    %594 = math.exp %593 : vector<2x64xf32>
    %cst_123 = arith.constant 1.000000e+00 : f32
    %595 = vector.broadcast %cst_123 : f32 to vector<2x64xf32>
    %596 = arith.addf %595, %594 : vector<2x64xf32>
    %597 = arith.divf %595, %596 : vector<2x64xf32>
    %598 = arith.mulf %589, %570 : vector<2x64xf32>
    %599 = arith.mulf %583, %591 : vector<2x64xf32>
    %600 = arith.addf %598, %599 : vector<2x64xf32>
    %601 = math.tanh %600 : vector<2x64xf32>
    %602 = arith.mulf %597, %601 : vector<2x64xf32>
    %603 = arith.addf %573, %602 : vector<2x64xf32>
    %cst_124 = arith.constant dense<0.000000e+00> : vector<2x256xf32>
    %604 = tpu.matmul %602, %0, %cst_124 {dimension_numbers = #tpu.dot_dimension_numbers<[1], [0], [0], [1], [0, 0, 1, 1], [], []>} : vector<2x64xf32>, vector<64x256xf32>, vector<2x256xf32> -> vector<2x256xf32>
    %c20 = arith.constant 20 : index
    %c0_125 = arith.constant 0 : index
    %c0_126 = arith.constant 0 : index
    %605 = vector.load %arg0[%c20, %c0_125, %c0_126] : memref<32x2x256xf32, #tpu.memory_space<vmem>>, vector<1x2x256xf32>
    %606 = vector.shape_cast %605 : vector<1x2x256xf32> to vector<2x256xf32>
    %607 = arith.addf %604, %606 : vector<2x256xf32>
    %608 = vector.extract_strided_slice %607 {offsets = [0, 0], sizes = [2, 64], strides = [1, 1]} : vector<2x256xf32> to vector<2x64xf32>
    %609 = arith.negf %608 : vector<2x64xf32>
    %610 = math.exp %609 : vector<2x64xf32>
    %cst_127 = arith.constant 1.000000e+00 : f32
    %611 = vector.broadcast %cst_127 : f32 to vector<2x64xf32>
    %612 = arith.addf %611, %610 : vector<2x64xf32>
    %613 = arith.divf %611, %612 : vector<2x64xf32>
    %614 = vector.extract_strided_slice %607 {offsets = [0, 64], sizes = [2, 64], strides = [1, 1]} : vector<2x256xf32> to vector<2x64xf32>
    %615 = arith.negf %614 : vector<2x64xf32>
    %616 = math.exp %615 : vector<2x64xf32>
    %cst_128 = arith.constant 1.000000e+00 : f32
    %617 = vector.broadcast %cst_128 : f32 to vector<2x64xf32>
    %618 = arith.addf %617, %616 : vector<2x64xf32>
    %619 = arith.divf %617, %618 : vector<2x64xf32>
    %620 = vector.extract_strided_slice %607 {offsets = [0, 128], sizes = [2, 64], strides = [1, 1]} : vector<2x256xf32> to vector<2x64xf32>
    %621 = math.tanh %620 : vector<2x64xf32>
    %622 = vector.extract_strided_slice %607 {offsets = [0, 192], sizes = [2, 64], strides = [1, 1]} : vector<2x256xf32> to vector<2x64xf32>
    %623 = arith.negf %622 : vector<2x64xf32>
    %624 = math.exp %623 : vector<2x64xf32>
    %cst_129 = arith.constant 1.000000e+00 : f32
    %625 = vector.broadcast %cst_129 : f32 to vector<2x64xf32>
    %626 = arith.addf %625, %624 : vector<2x64xf32>
    %627 = arith.divf %625, %626 : vector<2x64xf32>
    %628 = arith.mulf %619, %600 : vector<2x64xf32>
    %629 = arith.mulf %613, %621 : vector<2x64xf32>
    %630 = arith.addf %628, %629 : vector<2x64xf32>
    %631 = math.tanh %630 : vector<2x64xf32>
    %632 = arith.mulf %627, %631 : vector<2x64xf32>
    %633 = arith.addf %603, %632 : vector<2x64xf32>
    %cst_130 = arith.constant dense<0.000000e+00> : vector<2x256xf32>
    %634 = tpu.matmul %632, %0, %cst_130 {dimension_numbers = #tpu.dot_dimension_numbers<[1], [0], [0], [1], [0, 0, 1, 1], [], []>} : vector<2x64xf32>, vector<64x256xf32>, vector<2x256xf32> -> vector<2x256xf32>
    %c21 = arith.constant 21 : index
    %c0_131 = arith.constant 0 : index
    %c0_132 = arith.constant 0 : index
    %635 = vector.load %arg0[%c21, %c0_131, %c0_132] : memref<32x2x256xf32, #tpu.memory_space<vmem>>, vector<1x2x256xf32>
    %636 = vector.shape_cast %635 : vector<1x2x256xf32> to vector<2x256xf32>
    %637 = arith.addf %634, %636 : vector<2x256xf32>
    %638 = vector.extract_strided_slice %637 {offsets = [0, 0], sizes = [2, 64], strides = [1, 1]} : vector<2x256xf32> to vector<2x64xf32>
    %639 = arith.negf %638 : vector<2x64xf32>
    %640 = math.exp %639 : vector<2x64xf32>
    %cst_133 = arith.constant 1.000000e+00 : f32
    %641 = vector.broadcast %cst_133 : f32 to vector<2x64xf32>
    %642 = arith.addf %641, %640 : vector<2x64xf32>
    %643 = arith.divf %641, %642 : vector<2x64xf32>
    %644 = vector.extract_strided_slice %637 {offsets = [0, 64], sizes = [2, 64], strides = [1, 1]} : vector<2x256xf32> to vector<2x64xf32>
    %645 = arith.negf %644 : vector<2x64xf32>
    %646 = math.exp %645 : vector<2x64xf32>
    %cst_134 = arith.constant 1.000000e+00 : f32
    %647 = vector.broadcast %cst_134 : f32 to vector<2x64xf32>
    %648 = arith.addf %647, %646 : vector<2x64xf32>
    %649 = arith.divf %647, %648 : vector<2x64xf32>
    %650 = vector.extract_strided_slice %637 {offsets = [0, 128], sizes = [2, 64], strides = [1, 1]} : vector<2x256xf32> to vector<2x64xf32>
    %651 = math.tanh %650 : vector<2x64xf32>
    %652 = vector.extract_strided_slice %637 {offsets = [0, 192], sizes = [2, 64], strides = [1, 1]} : vector<2x256xf32> to vector<2x64xf32>
    %653 = arith.negf %652 : vector<2x64xf32>
    %654 = math.exp %653 : vector<2x64xf32>
    %cst_135 = arith.constant 1.000000e+00 : f32
    %655 = vector.broadcast %cst_135 : f32 to vector<2x64xf32>
    %656 = arith.addf %655, %654 : vector<2x64xf32>
    %657 = arith.divf %655, %656 : vector<2x64xf32>
    %658 = arith.mulf %649, %630 : vector<2x64xf32>
    %659 = arith.mulf %643, %651 : vector<2x64xf32>
    %660 = arith.addf %658, %659 : vector<2x64xf32>
    %661 = math.tanh %660 : vector<2x64xf32>
    %662 = arith.mulf %657, %661 : vector<2x64xf32>
    %663 = arith.addf %633, %662 : vector<2x64xf32>
    %cst_136 = arith.constant dense<0.000000e+00> : vector<2x256xf32>
    %664 = tpu.matmul %662, %0, %cst_136 {dimension_numbers = #tpu.dot_dimension_numbers<[1], [0], [0], [1], [0, 0, 1, 1], [], []>} : vector<2x64xf32>, vector<64x256xf32>, vector<2x256xf32> -> vector<2x256xf32>
    %c22 = arith.constant 22 : index
    %c0_137 = arith.constant 0 : index
    %c0_138 = arith.constant 0 : index
    %665 = vector.load %arg0[%c22, %c0_137, %c0_138] : memref<32x2x256xf32, #tpu.memory_space<vmem>>, vector<1x2x256xf32>
    %666 = vector.shape_cast %665 : vector<1x2x256xf32> to vector<2x256xf32>
    %667 = arith.addf %664, %666 : vector<2x256xf32>
    %668 = vector.extract_strided_slice %667 {offsets = [0, 0], sizes = [2, 64], strides = [1, 1]} : vector<2x256xf32> to vector<2x64xf32>
    %669 = arith.negf %668 : vector<2x64xf32>
    %670 = math.exp %669 : vector<2x64xf32>
    %cst_139 = arith.constant 1.000000e+00 : f32
    %671 = vector.broadcast %cst_139 : f32 to vector<2x64xf32>
    %672 = arith.addf %671, %670 : vector<2x64xf32>
    %673 = arith.divf %671, %672 : vector<2x64xf32>
    %674 = vector.extract_strided_slice %667 {offsets = [0, 64], sizes = [2, 64], strides = [1, 1]} : vector<2x256xf32> to vector<2x64xf32>
    %675 = arith.negf %674 : vector<2x64xf32>
    %676 = math.exp %675 : vector<2x64xf32>
    %cst_140 = arith.constant 1.000000e+00 : f32
    %677 = vector.broadcast %cst_140 : f32 to vector<2x64xf32>
    %678 = arith.addf %677, %676 : vector<2x64xf32>
    %679 = arith.divf %677, %678 : vector<2x64xf32>
    %680 = vector.extract_strided_slice %667 {offsets = [0, 128], sizes = [2, 64], strides = [1, 1]} : vector<2x256xf32> to vector<2x64xf32>
    %681 = math.tanh %680 : vector<2x64xf32>
    %682 = vector.extract_strided_slice %667 {offsets = [0, 192], sizes = [2, 64], strides = [1, 1]} : vector<2x256xf32> to vector<2x64xf32>
    %683 = arith.negf %682 : vector<2x64xf32>
    %684 = math.exp %683 : vector<2x64xf32>
    %cst_141 = arith.constant 1.000000e+00 : f32
    %685 = vector.broadcast %cst_141 : f32 to vector<2x64xf32>
    %686 = arith.addf %685, %684 : vector<2x64xf32>
    %687 = arith.divf %685, %686 : vector<2x64xf32>
    %688 = arith.mulf %679, %660 : vector<2x64xf32>
    %689 = arith.mulf %673, %681 : vector<2x64xf32>
    %690 = arith.addf %688, %689 : vector<2x64xf32>
    %691 = math.tanh %690 : vector<2x64xf32>
    %692 = arith.mulf %687, %691 : vector<2x64xf32>
    %693 = arith.addf %663, %692 : vector<2x64xf32>
    %cst_142 = arith.constant dense<0.000000e+00> : vector<2x256xf32>
    %694 = tpu.matmul %692, %0, %cst_142 {dimension_numbers = #tpu.dot_dimension_numbers<[1], [0], [0], [1], [0, 0, 1, 1], [], []>} : vector<2x64xf32>, vector<64x256xf32>, vector<2x256xf32> -> vector<2x256xf32>
    %c23 = arith.constant 23 : index
    %c0_143 = arith.constant 0 : index
    %c0_144 = arith.constant 0 : index
    %695 = vector.load %arg0[%c23, %c0_143, %c0_144] : memref<32x2x256xf32, #tpu.memory_space<vmem>>, vector<1x2x256xf32>
    %696 = vector.shape_cast %695 : vector<1x2x256xf32> to vector<2x256xf32>
    %697 = arith.addf %694, %696 : vector<2x256xf32>
    %698 = vector.extract_strided_slice %697 {offsets = [0, 0], sizes = [2, 64], strides = [1, 1]} : vector<2x256xf32> to vector<2x64xf32>
    %699 = arith.negf %698 : vector<2x64xf32>
    %700 = math.exp %699 : vector<2x64xf32>
    %cst_145 = arith.constant 1.000000e+00 : f32
    %701 = vector.broadcast %cst_145 : f32 to vector<2x64xf32>
    %702 = arith.addf %701, %700 : vector<2x64xf32>
    %703 = arith.divf %701, %702 : vector<2x64xf32>
    %704 = vector.extract_strided_slice %697 {offsets = [0, 64], sizes = [2, 64], strides = [1, 1]} : vector<2x256xf32> to vector<2x64xf32>
    %705 = arith.negf %704 : vector<2x64xf32>
    %706 = math.exp %705 : vector<2x64xf32>
    %cst_146 = arith.constant 1.000000e+00 : f32
    %707 = vector.broadcast %cst_146 : f32 to vector<2x64xf32>
    %708 = arith.addf %707, %706 : vector<2x64xf32>
    %709 = arith.divf %707, %708 : vector<2x64xf32>
    %710 = vector.extract_strided_slice %697 {offsets = [0, 128], sizes = [2, 64], strides = [1, 1]} : vector<2x256xf32> to vector<2x64xf32>
    %711 = math.tanh %710 : vector<2x64xf32>
    %712 = vector.extract_strided_slice %697 {offsets = [0, 192], sizes = [2, 64], strides = [1, 1]} : vector<2x256xf32> to vector<2x64xf32>
    %713 = arith.negf %712 : vector<2x64xf32>
    %714 = math.exp %713 : vector<2x64xf32>
    %cst_147 = arith.constant 1.000000e+00 : f32
    %715 = vector.broadcast %cst_147 : f32 to vector<2x64xf32>
    %716 = arith.addf %715, %714 : vector<2x64xf32>
    %717 = arith.divf %715, %716 : vector<2x64xf32>
    %718 = arith.mulf %709, %690 : vector<2x64xf32>
    %719 = arith.mulf %703, %711 : vector<2x64xf32>
    %720 = arith.addf %718, %719 : vector<2x64xf32>
    %721 = math.tanh %720 : vector<2x64xf32>
    %722 = arith.mulf %717, %721 : vector<2x64xf32>
    %723 = arith.addf %693, %722 : vector<2x64xf32>
    %cst_148 = arith.constant dense<0.000000e+00> : vector<2x256xf32>
    %724 = tpu.matmul %722, %0, %cst_148 {dimension_numbers = #tpu.dot_dimension_numbers<[1], [0], [0], [1], [0, 0, 1, 1], [], []>} : vector<2x64xf32>, vector<64x256xf32>, vector<2x256xf32> -> vector<2x256xf32>
    %c24 = arith.constant 24 : index
    %c0_149 = arith.constant 0 : index
    %c0_150 = arith.constant 0 : index
    %725 = vector.load %arg0[%c24, %c0_149, %c0_150] : memref<32x2x256xf32, #tpu.memory_space<vmem>>, vector<1x2x256xf32>
    %726 = vector.shape_cast %725 : vector<1x2x256xf32> to vector<2x256xf32>
    %727 = arith.addf %724, %726 : vector<2x256xf32>
    %728 = vector.extract_strided_slice %727 {offsets = [0, 0], sizes = [2, 64], strides = [1, 1]} : vector<2x256xf32> to vector<2x64xf32>
    %729 = arith.negf %728 : vector<2x64xf32>
    %730 = math.exp %729 : vector<2x64xf32>
    %cst_151 = arith.constant 1.000000e+00 : f32
    %731 = vector.broadcast %cst_151 : f32 to vector<2x64xf32>
    %732 = arith.addf %731, %730 : vector<2x64xf32>
    %733 = arith.divf %731, %732 : vector<2x64xf32>
    %734 = vector.extract_strided_slice %727 {offsets = [0, 64], sizes = [2, 64], strides = [1, 1]} : vector<2x256xf32> to vector<2x64xf32>
    %735 = arith.negf %734 : vector<2x64xf32>
    %736 = math.exp %735 : vector<2x64xf32>
    %cst_152 = arith.constant 1.000000e+00 : f32
    %737 = vector.broadcast %cst_152 : f32 to vector<2x64xf32>
    %738 = arith.addf %737, %736 : vector<2x64xf32>
    %739 = arith.divf %737, %738 : vector<2x64xf32>
    %740 = vector.extract_strided_slice %727 {offsets = [0, 128], sizes = [2, 64], strides = [1, 1]} : vector<2x256xf32> to vector<2x64xf32>
    %741 = math.tanh %740 : vector<2x64xf32>
    %742 = vector.extract_strided_slice %727 {offsets = [0, 192], sizes = [2, 64], strides = [1, 1]} : vector<2x256xf32> to vector<2x64xf32>
    %743 = arith.negf %742 : vector<2x64xf32>
    %744 = math.exp %743 : vector<2x64xf32>
    %cst_153 = arith.constant 1.000000e+00 : f32
    %745 = vector.broadcast %cst_153 : f32 to vector<2x64xf32>
    %746 = arith.addf %745, %744 : vector<2x64xf32>
    %747 = arith.divf %745, %746 : vector<2x64xf32>
    %748 = arith.mulf %739, %720 : vector<2x64xf32>
    %749 = arith.mulf %733, %741 : vector<2x64xf32>
    %750 = arith.addf %748, %749 : vector<2x64xf32>
    %751 = math.tanh %750 : vector<2x64xf32>
    %752 = arith.mulf %747, %751 : vector<2x64xf32>
    %753 = arith.addf %723, %752 : vector<2x64xf32>
    %cst_154 = arith.constant dense<0.000000e+00> : vector<2x256xf32>
    %754 = tpu.matmul %752, %0, %cst_154 {dimension_numbers = #tpu.dot_dimension_numbers<[1], [0], [0], [1], [0, 0, 1, 1], [], []>} : vector<2x64xf32>, vector<64x256xf32>, vector<2x256xf32> -> vector<2x256xf32>
    %c25 = arith.constant 25 : index
    %c0_155 = arith.constant 0 : index
    %c0_156 = arith.constant 0 : index
    %755 = vector.load %arg0[%c25, %c0_155, %c0_156] : memref<32x2x256xf32, #tpu.memory_space<vmem>>, vector<1x2x256xf32>
    %756 = vector.shape_cast %755 : vector<1x2x256xf32> to vector<2x256xf32>
    %757 = arith.addf %754, %756 : vector<2x256xf32>
    %758 = vector.extract_strided_slice %757 {offsets = [0, 0], sizes = [2, 64], strides = [1, 1]} : vector<2x256xf32> to vector<2x64xf32>
    %759 = arith.negf %758 : vector<2x64xf32>
    %760 = math.exp %759 : vector<2x64xf32>
    %cst_157 = arith.constant 1.000000e+00 : f32
    %761 = vector.broadcast %cst_157 : f32 to vector<2x64xf32>
    %762 = arith.addf %761, %760 : vector<2x64xf32>
    %763 = arith.divf %761, %762 : vector<2x64xf32>
    %764 = vector.extract_strided_slice %757 {offsets = [0, 64], sizes = [2, 64], strides = [1, 1]} : vector<2x256xf32> to vector<2x64xf32>
    %765 = arith.negf %764 : vector<2x64xf32>
    %766 = math.exp %765 : vector<2x64xf32>
    %cst_158 = arith.constant 1.000000e+00 : f32
    %767 = vector.broadcast %cst_158 : f32 to vector<2x64xf32>
    %768 = arith.addf %767, %766 : vector<2x64xf32>
    %769 = arith.divf %767, %768 : vector<2x64xf32>
    %770 = vector.extract_strided_slice %757 {offsets = [0, 128], sizes = [2, 64], strides = [1, 1]} : vector<2x256xf32> to vector<2x64xf32>
    %771 = math.tanh %770 : vector<2x64xf32>
    %772 = vector.extract_strided_slice %757 {offsets = [0, 192], sizes = [2, 64], strides = [1, 1]} : vector<2x256xf32> to vector<2x64xf32>
    %773 = arith.negf %772 : vector<2x64xf32>
    %774 = math.exp %773 : vector<2x64xf32>
    %cst_159 = arith.constant 1.000000e+00 : f32
    %775 = vector.broadcast %cst_159 : f32 to vector<2x64xf32>
    %776 = arith.addf %775, %774 : vector<2x64xf32>
    %777 = arith.divf %775, %776 : vector<2x64xf32>
    %778 = arith.mulf %769, %750 : vector<2x64xf32>
    %779 = arith.mulf %763, %771 : vector<2x64xf32>
    %780 = arith.addf %778, %779 : vector<2x64xf32>
    %781 = math.tanh %780 : vector<2x64xf32>
    %782 = arith.mulf %777, %781 : vector<2x64xf32>
    %783 = arith.addf %753, %782 : vector<2x64xf32>
    %cst_160 = arith.constant dense<0.000000e+00> : vector<2x256xf32>
    %784 = tpu.matmul %782, %0, %cst_160 {dimension_numbers = #tpu.dot_dimension_numbers<[1], [0], [0], [1], [0, 0, 1, 1], [], []>} : vector<2x64xf32>, vector<64x256xf32>, vector<2x256xf32> -> vector<2x256xf32>
    %c26 = arith.constant 26 : index
    %c0_161 = arith.constant 0 : index
    %c0_162 = arith.constant 0 : index
    %785 = vector.load %arg0[%c26, %c0_161, %c0_162] : memref<32x2x256xf32, #tpu.memory_space<vmem>>, vector<1x2x256xf32>
    %786 = vector.shape_cast %785 : vector<1x2x256xf32> to vector<2x256xf32>
    %787 = arith.addf %784, %786 : vector<2x256xf32>
    %788 = vector.extract_strided_slice %787 {offsets = [0, 0], sizes = [2, 64], strides = [1, 1]} : vector<2x256xf32> to vector<2x64xf32>
    %789 = arith.negf %788 : vector<2x64xf32>
    %790 = math.exp %789 : vector<2x64xf32>
    %cst_163 = arith.constant 1.000000e+00 : f32
    %791 = vector.broadcast %cst_163 : f32 to vector<2x64xf32>
    %792 = arith.addf %791, %790 : vector<2x64xf32>
    %793 = arith.divf %791, %792 : vector<2x64xf32>
    %794 = vector.extract_strided_slice %787 {offsets = [0, 64], sizes = [2, 64], strides = [1, 1]} : vector<2x256xf32> to vector<2x64xf32>
    %795 = arith.negf %794 : vector<2x64xf32>
    %796 = math.exp %795 : vector<2x64xf32>
    %cst_164 = arith.constant 1.000000e+00 : f32
    %797 = vector.broadcast %cst_164 : f32 to vector<2x64xf32>
    %798 = arith.addf %797, %796 : vector<2x64xf32>
    %799 = arith.divf %797, %798 : vector<2x64xf32>
    %800 = vector.extract_strided_slice %787 {offsets = [0, 128], sizes = [2, 64], strides = [1, 1]} : vector<2x256xf32> to vector<2x64xf32>
    %801 = math.tanh %800 : vector<2x64xf32>
    %802 = vector.extract_strided_slice %787 {offsets = [0, 192], sizes = [2, 64], strides = [1, 1]} : vector<2x256xf32> to vector<2x64xf32>
    %803 = arith.negf %802 : vector<2x64xf32>
    %804 = math.exp %803 : vector<2x64xf32>
    %cst_165 = arith.constant 1.000000e+00 : f32
    %805 = vector.broadcast %cst_165 : f32 to vector<2x64xf32>
    %806 = arith.addf %805, %804 : vector<2x64xf32>
    %807 = arith.divf %805, %806 : vector<2x64xf32>
    %808 = arith.mulf %799, %780 : vector<2x64xf32>
    %809 = arith.mulf %793, %801 : vector<2x64xf32>
    %810 = arith.addf %808, %809 : vector<2x64xf32>
    %811 = math.tanh %810 : vector<2x64xf32>
    %812 = arith.mulf %807, %811 : vector<2x64xf32>
    %813 = arith.addf %783, %812 : vector<2x64xf32>
    %cst_166 = arith.constant dense<0.000000e+00> : vector<2x256xf32>
    %814 = tpu.matmul %812, %0, %cst_166 {dimension_numbers = #tpu.dot_dimension_numbers<[1], [0], [0], [1], [0, 0, 1, 1], [], []>} : vector<2x64xf32>, vector<64x256xf32>, vector<2x256xf32> -> vector<2x256xf32>
    %c27 = arith.constant 27 : index
    %c0_167 = arith.constant 0 : index
    %c0_168 = arith.constant 0 : index
    %815 = vector.load %arg0[%c27, %c0_167, %c0_168] : memref<32x2x256xf32, #tpu.memory_space<vmem>>, vector<1x2x256xf32>
    %816 = vector.shape_cast %815 : vector<1x2x256xf32> to vector<2x256xf32>
    %817 = arith.addf %814, %816 : vector<2x256xf32>
    %818 = vector.extract_strided_slice %817 {offsets = [0, 0], sizes = [2, 64], strides = [1, 1]} : vector<2x256xf32> to vector<2x64xf32>
    %819 = arith.negf %818 : vector<2x64xf32>
    %820 = math.exp %819 : vector<2x64xf32>
    %cst_169 = arith.constant 1.000000e+00 : f32
    %821 = vector.broadcast %cst_169 : f32 to vector<2x64xf32>
    %822 = arith.addf %821, %820 : vector<2x64xf32>
    %823 = arith.divf %821, %822 : vector<2x64xf32>
    %824 = vector.extract_strided_slice %817 {offsets = [0, 64], sizes = [2, 64], strides = [1, 1]} : vector<2x256xf32> to vector<2x64xf32>
    %825 = arith.negf %824 : vector<2x64xf32>
    %826 = math.exp %825 : vector<2x64xf32>
    %cst_170 = arith.constant 1.000000e+00 : f32
    %827 = vector.broadcast %cst_170 : f32 to vector<2x64xf32>
    %828 = arith.addf %827, %826 : vector<2x64xf32>
    %829 = arith.divf %827, %828 : vector<2x64xf32>
    %830 = vector.extract_strided_slice %817 {offsets = [0, 128], sizes = [2, 64], strides = [1, 1]} : vector<2x256xf32> to vector<2x64xf32>
    %831 = math.tanh %830 : vector<2x64xf32>
    %832 = vector.extract_strided_slice %817 {offsets = [0, 192], sizes = [2, 64], strides = [1, 1]} : vector<2x256xf32> to vector<2x64xf32>
    %833 = arith.negf %832 : vector<2x64xf32>
    %834 = math.exp %833 : vector<2x64xf32>
    %cst_171 = arith.constant 1.000000e+00 : f32
    %835 = vector.broadcast %cst_171 : f32 to vector<2x64xf32>
    %836 = arith.addf %835, %834 : vector<2x64xf32>
    %837 = arith.divf %835, %836 : vector<2x64xf32>
    %838 = arith.mulf %829, %810 : vector<2x64xf32>
    %839 = arith.mulf %823, %831 : vector<2x64xf32>
    %840 = arith.addf %838, %839 : vector<2x64xf32>
    %841 = math.tanh %840 : vector<2x64xf32>
    %842 = arith.mulf %837, %841 : vector<2x64xf32>
    %843 = arith.addf %813, %842 : vector<2x64xf32>
    %cst_172 = arith.constant dense<0.000000e+00> : vector<2x256xf32>
    %844 = tpu.matmul %842, %0, %cst_172 {dimension_numbers = #tpu.dot_dimension_numbers<[1], [0], [0], [1], [0, 0, 1, 1], [], []>} : vector<2x64xf32>, vector<64x256xf32>, vector<2x256xf32> -> vector<2x256xf32>
    %c28 = arith.constant 28 : index
    %c0_173 = arith.constant 0 : index
    %c0_174 = arith.constant 0 : index
    %845 = vector.load %arg0[%c28, %c0_173, %c0_174] : memref<32x2x256xf32, #tpu.memory_space<vmem>>, vector<1x2x256xf32>
    %846 = vector.shape_cast %845 : vector<1x2x256xf32> to vector<2x256xf32>
    %847 = arith.addf %844, %846 : vector<2x256xf32>
    %848 = vector.extract_strided_slice %847 {offsets = [0, 0], sizes = [2, 64], strides = [1, 1]} : vector<2x256xf32> to vector<2x64xf32>
    %849 = arith.negf %848 : vector<2x64xf32>
    %850 = math.exp %849 : vector<2x64xf32>
    %cst_175 = arith.constant 1.000000e+00 : f32
    %851 = vector.broadcast %cst_175 : f32 to vector<2x64xf32>
    %852 = arith.addf %851, %850 : vector<2x64xf32>
    %853 = arith.divf %851, %852 : vector<2x64xf32>
    %854 = vector.extract_strided_slice %847 {offsets = [0, 64], sizes = [2, 64], strides = [1, 1]} : vector<2x256xf32> to vector<2x64xf32>
    %855 = arith.negf %854 : vector<2x64xf32>
    %856 = math.exp %855 : vector<2x64xf32>
    %cst_176 = arith.constant 1.000000e+00 : f32
    %857 = vector.broadcast %cst_176 : f32 to vector<2x64xf32>
    %858 = arith.addf %857, %856 : vector<2x64xf32>
    %859 = arith.divf %857, %858 : vector<2x64xf32>
    %860 = vector.extract_strided_slice %847 {offsets = [0, 128], sizes = [2, 64], strides = [1, 1]} : vector<2x256xf32> to vector<2x64xf32>
    %861 = math.tanh %860 : vector<2x64xf32>
    %862 = vector.extract_strided_slice %847 {offsets = [0, 192], sizes = [2, 64], strides = [1, 1]} : vector<2x256xf32> to vector<2x64xf32>
    %863 = arith.negf %862 : vector<2x64xf32>
    %864 = math.exp %863 : vector<2x64xf32>
    %cst_177 = arith.constant 1.000000e+00 : f32
    %865 = vector.broadcast %cst_177 : f32 to vector<2x64xf32>
    %866 = arith.addf %865, %864 : vector<2x64xf32>
    %867 = arith.divf %865, %866 : vector<2x64xf32>
    %868 = arith.mulf %859, %840 : vector<2x64xf32>
    %869 = arith.mulf %853, %861 : vector<2x64xf32>
    %870 = arith.addf %868, %869 : vector<2x64xf32>
    %871 = math.tanh %870 : vector<2x64xf32>
    %872 = arith.mulf %867, %871 : vector<2x64xf32>
    %873 = arith.addf %843, %872 : vector<2x64xf32>
    %cst_178 = arith.constant dense<0.000000e+00> : vector<2x256xf32>
    %874 = tpu.matmul %872, %0, %cst_178 {dimension_numbers = #tpu.dot_dimension_numbers<[1], [0], [0], [1], [0, 0, 1, 1], [], []>} : vector<2x64xf32>, vector<64x256xf32>, vector<2x256xf32> -> vector<2x256xf32>
    %c29 = arith.constant 29 : index
    %c0_179 = arith.constant 0 : index
    %c0_180 = arith.constant 0 : index
    %875 = vector.load %arg0[%c29, %c0_179, %c0_180] : memref<32x2x256xf32, #tpu.memory_space<vmem>>, vector<1x2x256xf32>
    %876 = vector.shape_cast %875 : vector<1x2x256xf32> to vector<2x256xf32>
    %877 = arith.addf %874, %876 : vector<2x256xf32>
    %878 = vector.extract_strided_slice %877 {offsets = [0, 0], sizes = [2, 64], strides = [1, 1]} : vector<2x256xf32> to vector<2x64xf32>
    %879 = arith.negf %878 : vector<2x64xf32>
    %880 = math.exp %879 : vector<2x64xf32>
    %cst_181 = arith.constant 1.000000e+00 : f32
    %881 = vector.broadcast %cst_181 : f32 to vector<2x64xf32>
    %882 = arith.addf %881, %880 : vector<2x64xf32>
    %883 = arith.divf %881, %882 : vector<2x64xf32>
    %884 = vector.extract_strided_slice %877 {offsets = [0, 64], sizes = [2, 64], strides = [1, 1]} : vector<2x256xf32> to vector<2x64xf32>
    %885 = arith.negf %884 : vector<2x64xf32>
    %886 = math.exp %885 : vector<2x64xf32>
    %cst_182 = arith.constant 1.000000e+00 : f32
    %887 = vector.broadcast %cst_182 : f32 to vector<2x64xf32>
    %888 = arith.addf %887, %886 : vector<2x64xf32>
    %889 = arith.divf %887, %888 : vector<2x64xf32>
    %890 = vector.extract_strided_slice %877 {offsets = [0, 128], sizes = [2, 64], strides = [1, 1]} : vector<2x256xf32> to vector<2x64xf32>
    %891 = math.tanh %890 : vector<2x64xf32>
    %892 = vector.extract_strided_slice %877 {offsets = [0, 192], sizes = [2, 64], strides = [1, 1]} : vector<2x256xf32> to vector<2x64xf32>
    %893 = arith.negf %892 : vector<2x64xf32>
    %894 = math.exp %893 : vector<2x64xf32>
    %cst_183 = arith.constant 1.000000e+00 : f32
    %895 = vector.broadcast %cst_183 : f32 to vector<2x64xf32>
    %896 = arith.addf %895, %894 : vector<2x64xf32>
    %897 = arith.divf %895, %896 : vector<2x64xf32>
    %898 = arith.mulf %889, %870 : vector<2x64xf32>
    %899 = arith.mulf %883, %891 : vector<2x64xf32>
    %900 = arith.addf %898, %899 : vector<2x64xf32>
    %901 = math.tanh %900 : vector<2x64xf32>
    %902 = arith.mulf %897, %901 : vector<2x64xf32>
    %903 = arith.addf %873, %902 : vector<2x64xf32>
    %cst_184 = arith.constant dense<0.000000e+00> : vector<2x256xf32>
    %904 = tpu.matmul %902, %0, %cst_184 {dimension_numbers = #tpu.dot_dimension_numbers<[1], [0], [0], [1], [0, 0, 1, 1], [], []>} : vector<2x64xf32>, vector<64x256xf32>, vector<2x256xf32> -> vector<2x256xf32>
    %c30 = arith.constant 30 : index
    %c0_185 = arith.constant 0 : index
    %c0_186 = arith.constant 0 : index
    %905 = vector.load %arg0[%c30, %c0_185, %c0_186] : memref<32x2x256xf32, #tpu.memory_space<vmem>>, vector<1x2x256xf32>
    %906 = vector.shape_cast %905 : vector<1x2x256xf32> to vector<2x256xf32>
    %907 = arith.addf %904, %906 : vector<2x256xf32>
    %908 = vector.extract_strided_slice %907 {offsets = [0, 0], sizes = [2, 64], strides = [1, 1]} : vector<2x256xf32> to vector<2x64xf32>
    %909 = arith.negf %908 : vector<2x64xf32>
    %910 = math.exp %909 : vector<2x64xf32>
    %cst_187 = arith.constant 1.000000e+00 : f32
    %911 = vector.broadcast %cst_187 : f32 to vector<2x64xf32>
    %912 = arith.addf %911, %910 : vector<2x64xf32>
    %913 = arith.divf %911, %912 : vector<2x64xf32>
    %914 = vector.extract_strided_slice %907 {offsets = [0, 64], sizes = [2, 64], strides = [1, 1]} : vector<2x256xf32> to vector<2x64xf32>
    %915 = arith.negf %914 : vector<2x64xf32>
    %916 = math.exp %915 : vector<2x64xf32>
    %cst_188 = arith.constant 1.000000e+00 : f32
    %917 = vector.broadcast %cst_188 : f32 to vector<2x64xf32>
    %918 = arith.addf %917, %916 : vector<2x64xf32>
    %919 = arith.divf %917, %918 : vector<2x64xf32>
    %920 = vector.extract_strided_slice %907 {offsets = [0, 128], sizes = [2, 64], strides = [1, 1]} : vector<2x256xf32> to vector<2x64xf32>
    %921 = math.tanh %920 : vector<2x64xf32>
    %922 = vector.extract_strided_slice %907 {offsets = [0, 192], sizes = [2, 64], strides = [1, 1]} : vector<2x256xf32> to vector<2x64xf32>
    %923 = arith.negf %922 : vector<2x64xf32>
    %924 = math.exp %923 : vector<2x64xf32>
    %cst_189 = arith.constant 1.000000e+00 : f32
    %925 = vector.broadcast %cst_189 : f32 to vector<2x64xf32>
    %926 = arith.addf %925, %924 : vector<2x64xf32>
    %927 = arith.divf %925, %926 : vector<2x64xf32>
    %928 = arith.mulf %919, %900 : vector<2x64xf32>
    %929 = arith.mulf %913, %921 : vector<2x64xf32>
    %930 = arith.addf %928, %929 : vector<2x64xf32>
    %931 = math.tanh %930 : vector<2x64xf32>
    %932 = arith.mulf %927, %931 : vector<2x64xf32>
    %933 = arith.addf %903, %932 : vector<2x64xf32>
    %cst_190 = arith.constant dense<0.000000e+00> : vector<2x256xf32>
    %934 = tpu.matmul %932, %0, %cst_190 {dimension_numbers = #tpu.dot_dimension_numbers<[1], [0], [0], [1], [0, 0, 1, 1], [], []>} : vector<2x64xf32>, vector<64x256xf32>, vector<2x256xf32> -> vector<2x256xf32>
    %c31 = arith.constant 31 : index
    %c0_191 = arith.constant 0 : index
    %c0_192 = arith.constant 0 : index
    %935 = vector.load %arg0[%c31, %c0_191, %c0_192] : memref<32x2x256xf32, #tpu.memory_space<vmem>>, vector<1x2x256xf32>
    %936 = vector.shape_cast %935 : vector<1x2x256xf32> to vector<2x256xf32>
    %937 = arith.addf %934, %936 : vector<2x256xf32>
    %938 = vector.extract_strided_slice %937 {offsets = [0, 0], sizes = [2, 64], strides = [1, 1]} : vector<2x256xf32> to vector<2x64xf32>
    %939 = arith.negf %938 : vector<2x64xf32>
    %940 = math.exp %939 : vector<2x64xf32>
    %cst_193 = arith.constant 1.000000e+00 : f32
    %941 = vector.broadcast %cst_193 : f32 to vector<2x64xf32>
    %942 = arith.addf %941, %940 : vector<2x64xf32>
    %943 = arith.divf %941, %942 : vector<2x64xf32>
    %944 = vector.extract_strided_slice %937 {offsets = [0, 64], sizes = [2, 64], strides = [1, 1]} : vector<2x256xf32> to vector<2x64xf32>
    %945 = arith.negf %944 : vector<2x64xf32>
    %946 = math.exp %945 : vector<2x64xf32>
    %cst_194 = arith.constant 1.000000e+00 : f32
    %947 = vector.broadcast %cst_194 : f32 to vector<2x64xf32>
    %948 = arith.addf %947, %946 : vector<2x64xf32>
    %949 = arith.divf %947, %948 : vector<2x64xf32>
    %950 = vector.extract_strided_slice %937 {offsets = [0, 128], sizes = [2, 64], strides = [1, 1]} : vector<2x256xf32> to vector<2x64xf32>
    %951 = math.tanh %950 : vector<2x64xf32>
    %952 = vector.extract_strided_slice %937 {offsets = [0, 192], sizes = [2, 64], strides = [1, 1]} : vector<2x256xf32> to vector<2x64xf32>
    %953 = arith.negf %952 : vector<2x64xf32>
    %954 = math.exp %953 : vector<2x64xf32>
    %cst_195 = arith.constant 1.000000e+00 : f32
    %955 = vector.broadcast %cst_195 : f32 to vector<2x64xf32>
    %956 = arith.addf %955, %954 : vector<2x64xf32>
    %957 = arith.divf %955, %956 : vector<2x64xf32>
    %958 = arith.mulf %949, %930 : vector<2x64xf32>
    %959 = arith.mulf %943, %951 : vector<2x64xf32>
    %960 = arith.addf %958, %959 : vector<2x64xf32>
    %961 = math.tanh %960 : vector<2x64xf32>
    %962 = arith.mulf %957, %961 : vector<2x64xf32>
    %963 = arith.addf %933, %962 : vector<2x64xf32>
    %cst_196 = arith.constant 3.125000e-02 : f32
    %964 = vector.broadcast %cst_196 : f32 to vector<2x64xf32>
    %965 = arith.mulf %963, %964 : vector<2x64xf32>
    %c0_197 = arith.constant 0 : index
    %c0_198 = arith.constant 0 : index
    %966 = vector.load %arg2[%c0_197, %c0_198] : memref<64x10xf32, #tpu.memory_space<vmem>>, vector<64x10xf32>
    %cst_199 = arith.constant dense<0.000000e+00> : vector<2x10xf32>
    %967 = tpu.matmul %965, %966, %cst_199 {dimension_numbers = #tpu.dot_dimension_numbers<[1], [0], [0], [1], [0, 0, 1, 1], [], []>} : vector<2x64xf32>, vector<64x10xf32>, vector<2x10xf32> -> vector<2x10xf32>
    %c0_200 = arith.constant 0 : index
    %c0_201 = arith.constant 0 : index
    %968 = vector.load %arg3[%c0_200, %c0_201] : memref<1x10xf32, #tpu.memory_space<vmem>>, vector<1x10xf32>
    %969 = vector.broadcast %968 : vector<1x10xf32> to vector<2x10xf32>
    %970 = arith.addf %967, %969 : vector<2x10xf32>
    %c0_202 = arith.constant 0 : index
    %c0_203 = arith.constant 0 : index
    %971 = vector.load %arg4[%c0_202, %c0_203] : memref<2x10xf32, #tpu.memory_space<vmem>>, vector<2x10xf32>
    tpu.vector_store %arg4[%c0_202, %c0_203], %970 {strides = array<i32>} : memref<2x10xf32, #tpu.memory_space<vmem>>, vector<2x10xf32>,
    return
  }
}

</mosaic_0001>

<bundles_post_ra>
// kernel: forward.5
= control target key start
LH: loop header
LB: loop body
LE: loop exit
PB: predicated region body
PF: predicated region fallthrough
CT: control target
= control target key end

     0   :  { %vm17_vm0 = vcmask 1043456   ;;  %vm18_vm1 = vcmask 31748   ;;  %s502_s17 = smov 2   ;;  %v503_v1 = vmov 0.0   ;;  %vm37_vm3 = vcmask 1043472   ;;  %s504_s20 = smov 125   ;;  %s625_s0 = inlined_call_operand.vmem [shape: f32[2,4,128], index: 0, kind: input, shape index: {}]   ;;  %s626_s1 = inlined_call_operand.vmem [shape: f32[32,20], index: 1, kind: input, shape index: {}]   ;;  %s627_s2 = inlined_call_operand.vmem [shape: f32[32,1], index: 2, kind: input, shape index: {}]   ;;  %s628_s3 = inlined_call_operand.vmem [shape: f32[32,1], index: 3, kind: input, shape index: {}]   ;;  %s629_s4 = inlined_call_operand.vmem [shape: f32[2,32,128], index: 4, kind: output, shape index: {}]  }
   0x1   :  { %v22_v0 = vld [vmem:[%s625_s0] sm:$0xf]  ;;  %vm19_vm2 = vmor %vm18_vm1, %vm17_vm0  ;;  %v23_v2 = vld [vmem:[%s625_s0 + $0x4] sm:$0xf]  ;;  %vm38_vm4 = vcmask 15364   ;;  %vm32_vm5 = vcmask 15360  }
   0x2   :  { %26 = vrot.lane.b32.xlu0 %v22_v0, %s502_s17  ;;  %20 = vst.msk [vmem:[#allocation2] sm:$0xff] %vm19_vm2, %v503_v1  ;;  %21 = vst.msk [vmem:[#allocation2 + $0x8] sm:$0xff] %vm19_vm2, %v503_v1  ;;  %s505_s0 = smov 127   ;;  %s506_s21 = smov 126   ;;  %v42_v18 = vld [vmem:[%s626_s1] sm:$0xff]  ;;  %vm88_vm7 = vcmask 162816  }
   0x3   :  { %vm39_vm6 = vmor %vm38_vm4, %vm37_vm3  ;;  %433 = vmatprep.mubr.msk.f32.mxu0 %vm88_vm7, %v42_v18  ;;  %445 = vmatprep.mubr.msk.f32.mxu1 %vm88_vm7, %v42_v18  ;;  %s507_s24 = smov 124   ;;  %v508_v20 = vmov 0   ;;  %v46_v21 = vld [vmem:[%s627_s2] sm:$0xff]  ;;  %v49_v22 = vld [vmem:[%s627_s2 + $0x18] sm:$0xff]  ;;  %vm62_vm8 = vcmask 1039360   ;;  %vm70_vm9 = vcmask 1031168  }
   0x4   :  { %496 = vset.pattern.permute.xlu0 %v508_v20  ;;  %497 = vset.pattern.permute.xlu1 %v508_v20  ;;  %v47_v23 = vld [vmem:[%s627_s2 + $0x8] sm:$0xff]  ;;  %v48_v25 = vld [vmem:[%s627_s2 + $0x10] sm:$0xff]  ;;  %v53_v26 = vld [vmem:[%s628_s3 + $0x18] sm:$0xff]  ;;  %vm77_vm10 = vcmask 1022976   ;;  %vm84_vm11 = vcmask 1014784  }
   0x5   :  { %v51_v24 = vld [vmem:[%s628_s3 + $0x8] sm:$0xff]  ;;  %v50_v27 = vld [vmem:[%s628_s3] sm:$0xff]  ;;  %v52_v28 = vld [vmem:[%s628_s3 + $0x10] sm:$0xff] }
   0x6   :  { %28 = vrot.lane.b32.xlu0 %v23_v2, %s502_s17  ;;  %v43_v0 = vld [vmem:[%s626_s1 + $0x8] sm:$0xff]  ;;  %v44_v1 = vld [vmem:[%s626_s1 + $0x10] sm:$0xff] }
  0x74   :  { %v27_v3 = vpop.permute.xlu0 %26 }
  0x75   :  { %v30_v4 = vrot.slane %v27_v3, 4 }
  0x77   :  { %v33_v5 = vsel %vm32_vm5, %v30_v4, %v27_v3 }
  0x78   :  { %40 = vst.msk [vmem:[#allocation2] sm:$0xff] %vm39_vm6, %v33_v5  ;;  %v29_v6 = vpop.permute.xlu0 %28  ;;  %v45_v5 = vld [vmem:[%s626_s1 + $0x18] sm:$0xff] }
  0x79   :  { %v31_v7 = vrot.slane %v29_v6, 4 }
  0x7b   :  { %v34_v8 = vsel %vm32_vm5, %v31_v7, %v29_v6 }
  0x7c   :  { %41 = vst.msk [vmem:[#allocation2 + $0x8] sm:$0xff] %vm39_vm6, %v34_v8 }
  0x7f   :  { %v55_v9 = vld [vmem:[#allocation2] sm:$0xff] }
  0x80   :  { %v57_v10 = vcombine.low %v55_v9, %v55_v9  ;;  %v65_v12 = vcombine.high %v55_v9, %v55_v9  ;;  %v54_v39 = vld [vmem:[#allocation2] sm:$0xf] }
  0x82   :  { %v476_v11 = vpack.i.bf16 %v55_v9, %v57_v10  ;;  %v471_v15 = vpack.i.bf16 %v65_v12, %v55_v9 }
  0x83   :  { %v254_v13 = vld [vmem:[#allocation2 + $0x8] sm:$0xff] }
  0x84   :  { %477 = vrot.lane.b32.xlu0 %v476_v11, %s504_s20  ;;  %467 = vrot.lane.b32.xlu1 %v476_v11, %s505_s0  ;;  %v263_v14 = vcombine.high %v254_v13, %v254_v13  ;;  %v256_v17 = vcombine.low %v254_v13, %v254_v13  ;;  %v253_v56 = vld [vmem:[#allocation2 + $0x8] sm:$0xf] }
  0x86   :  { %v486_v16 = vpack.i.bf16 %v263_v14, %v254_v13  ;;  %v481_v19 = vpack.i.bf16 %v254_v13, %v256_v17 }
  0x88   :  { %472 = vrot.lane.b32.xlu1 %v471_v15, %s506_s21  ;;  %487 = vrot.lane.b32.xlu0 %v486_v16, %s506_s21 }
  0x8c   :  { %80 = vrot.lane.b32.xlu0 %v55_v9, %s507_s24  ;;  %482 = vrot.lane.b32.xlu1 %v481_v19, %s505_s0 }
  0x90   :  { %276 = vrot.lane.b32.xlu0 %v254_v13, %s507_s24  ;;  %492 = vrot.lane.b32.xlu1 %v481_v19, %s504_s20 }
  0x94   :  { %82 = vrot.lane.b32.xlu1 %v65_v12, %s507_s24  ;;  %190 = vperm.xlu0 %496, %v46_v21  }
  0x98   :  { %278 = vrot.lane.b32.xlu1 %v263_v14, %s507_s24  ;;  %205 = vperm.xlu0 %496, %v49_v22  }
  0x9c   :  { %195 = vperm.xlu1 %497, %v47_v23   ;;  %219 = vperm.xlu0 %496, %v51_v24  }
  0xa0   :  { %200 = vperm.xlu1 %497, %v48_v25   ;;  %229 = vperm.xlu0 %496, %v53_v26  }
  0xa4   :  { %214 = vperm.xlu1 %497, %v50_v27  }
  0xa8   :  { %224 = vperm.xlu1 %497, %v52_v28  }
  0xf6   :  { %v468_v29 = vpop.permute.xlu1 %467  ;;  %v478_v30 = vpop.permute.xlu0 %477 }
  0xf7   :  { %v470_v31 = vunpack.i.h.bf16 %v468_v29  ;;  %v469_v32 = vunpack.i.l.bf16 %v468_v29  ;;  %v480_v33 = vunpack.i.h.bf16 %v478_v30  ;;  %v479_v34 = vunpack.i.l.bf16 %v478_v30 }
  0xf9   :  { %v63_v38 = vsel %vm62_vm8, %v469_v32, %v470_v31  ;;  %v78_v41 = vsel %vm77_vm10, %v479_v34, %v480_v33 }
  0xfa   :  { %v473_v35 = vpop.permute.xlu1 %472  ;;  %v488_v42 = vpop.permute.xlu0 %487  ;;  %v86_v44 = vsel %vm17_vm0, %v54_v39, %v63_v38 }
  0xfb   :  { %v475_v36 = vunpack.i.h.bf16 %v473_v35  ;;  %v474_v37 = vunpack.i.l.bf16 %v473_v35  ;;  %v490_v49 = vunpack.i.h.bf16 %v488_v42  ;;  %v489_v50 = vunpack.i.l.bf16 %v488_v42 }
  0xfd   :  { %v71_v40 = vsel %vm70_vm9, %v474_v37, %v475_v36  ;;  %v268_v57 = vsel %vm70_vm9, %v489_v50, %v490_v49 }
  0xfe   :  { %v483_v43 = vpop.permute.xlu1 %482  ;;  %v87_v45 = vsel %vm17_vm0, %v71_v40, %v78_v41  ;;  %v81_v55 = vpop.permute.xlu0 %80 }
  0xff   :  { %v485_v46 = vunpack.i.h.bf16 %v483_v43  ;;  %v484_v47 = vunpack.i.l.bf16 %v483_v43  ;;  %v451_v48 = vpack.c.bf16 %v87_v45, %v86_v44 }
 0x101   :  { %452 = vmatprep.subr.bf16.mxu0 %v451_v48  ;;  %v261_v54 = vsel %vm62_vm8, %v484_v47, %v485_v46 }
 0x102   :  { %v493_v51 = vpop.permute.xlu1 %492  ;;  %454 = vmatpush3.bf16.msra.mxu0 %v451_v48  ;;  %v281_v60 = vsel %vm17_vm0, %v253_v56, %v261_v54  ;;  %v277_v2 = vpop.permute.xlu0 %276 }
 0x103   :  { %v495_v52 = vunpack.i.h.bf16 %v493_v51  ;;  %v494_v53 = vunpack.i.l.bf16 %v493_v51 }
 0x105   :  { %v274_v58 = vsel %vm77_vm10, %v494_v53, %v495_v52 }
 0x106   :  { %v83_v59 = vpop.permute.xlu1 %82  ;;  %v282_v61 = vsel %vm17_vm0, %v268_v57, %v274_v58 }
 0x107   :  { %v85_v62 = vsel %vm84_vm11, %v81_v55, %v83_v59  ;;  %v455_v63 = vpack.c.bf16 %v282_v61, %v281_v60 }
 0x108   :  { %431 = vmatprep.subr.msk.mxu0 %vm17_vm0, %v85_v62 }
 0x109   :  { %432 = vmatpush3.msk.msra.mxu0 %vm17_vm0, %v85_v62  ;;  %456 = vmatprep.subr.bf16.mxu1 %v455_v63 }
 0x10a   :  { %v279_v3 = vpop.permute.xlu1 %278  ;;  %434 = vmatmul.mubr.msk.f32.vlgmr.msra.gmra.mrb[0].mxu0 %vm88_vm7, %v43_v0  ;;  %458 = vmatpush3.bf16.msra.mxu1 %v455_v63 }
 0x10b   :  { %v280_v4 = vsel %vm84_vm11, %v277_v2, %v279_v3  ;;  %436 = vmatprep.mubr.msk.f32.mxu0 %vm88_vm7, %v44_v1 }
 0x10c   :  { %443 = vmatprep.subr.msk.mxu1 %vm17_vm0, %v280_v4 }
 0x10e   :  { %437 = vmatmul.mubr.msk.f32.gmra.mrb[2].mxu0 %vm88_vm7, %v45_v5  ;;  %444 = vmatpush3.msk.msra.mxu1 %vm17_vm0, %v280_v4 }
 0x10f   :  { %446 = vmatmul.mubr.msk.f32.vlgmr.msra.gmra.mrb[0].mxu1 %vm88_vm7, %v43_v0 }
 0x110   :  { %448 = vmatprep.mubr.msk.f32.mxu1 %vm88_vm7, %v44_v1 }
 0x113   :  { %449 = vmatmul.mubr.msk.f32.gmra.mrb[2].mxu1 %vm88_vm7, %v45_v5  ;;  %v191_v6 = vpop.permute.xlu0 %190 }
 0x117   :  { %v206_v8 = vpop.permute.xlu0 %205 }
 0x11b   :  { %v196_v7 = vpop.permute.xlu1 %195  ;;  %v220_v10 = vpop.permute.xlu0 %219 }
 0x11f   :  { %v201_v9 = vpop.permute.xlu1 %200  ;;  %v230_v23 = vpop.permute.xlu0 %229 }
 0x123   :  { %v215_v12 = vpop.permute.xlu1 %214 }
 0x127   :  { %v225_v28 = vpop.permute.xlu1 %224 }
 0x1dd   :  { %v435_v11 = vpop.f32.mrb[0].mxu0 }
 0x1de   :  { %v209_v13 = vmul.f32 %v435_v11, %v196_v7  ;;  %v169_v14 = vpop.f32.mrb[1].mxu0 }
 0x1df   :  { %v208_v15 = vmul.f32 %v191_v6, %v169_v14 }
 0x1e0   :  { %v233_v16 = vadd.f32 %v220_v10, %v209_v13 }
 0x1e1   :  { %v232_v17 = vadd.f32 %v215_v12, %v208_v15  ;;  %v438_v18 = vpop.f32.mrb[2].mxu0 }
 0x1e2   :  { %vm237_vm12 = vcmp.ge.f32.partialorder %v233_v16, 0.0  ;;  %v241_v19 = vmul.f32 0.01, %v233_v16  ;;  %v211_v20 = vmul.f32 %v438_v18, %v206_v8  ;;  %v179_v21 = vpop.f32.mrb[3].mxu0  ;;  %v447_v22 = vpop.f32.mrb[0].mxu1 }
 0x1e3   :  { %vm236_vm13 = vcmp.ge.f32.partialorder %v232_v17, 0.0  ;;  %v240_v24 = vmul.f32 0.01, %v232_v17  ;;  %v210_v25 = vmul.f32 %v201_v9, %v179_v21  ;;  %v371_v26 = vmul.f32 %v447_v22, %v196_v7  ;;  %v351_v27 = vpop.f32.mrb[1].mxu1 }
 0x1e4   :  { %v245_v29 = vsel %vm237_vm12, %v233_v16, %v241_v19  ;;  %v235_v30 = vadd.f32 %v230_v23, %v211_v20  ;;  %v370_v31 = vmul.f32 %v351_v27, %v191_v6 }
 0x1e5   :  { %249 = vst [vmem:[%s629_s4 + $0x8] sm:$0xff] %v245_v29  ;;  %v244_v32 = vsel %vm236_vm13, %v232_v17, %v240_v24  ;;  %v234_v33 = vadd.f32 %v225_v28, %v210_v25  ;;  %v375_v34 = vadd.f32 %v371_v26, %v220_v10 }
 0x1e6   :  { %248 = vst [vmem:[%s629_s4] sm:$0xff] %v244_v32  ;;  %vm239_vm14 = vcmp.ge.f32.partialorder %v235_v30, 0.0  ;;  %v243_v35 = vmul.f32 0.01, %v235_v30  ;;  %v374_v36 = vadd.f32 %v370_v31, %v215_v12  ;;  %v450_v37 = vpop.f32.mrb[2].mxu1 }
 0x1e7   :  { %vm238_vm15 = vcmp.ge.f32.partialorder %v234_v33, 0.0  ;;  %v242_v38 = vmul.f32 0.01, %v234_v33  ;;  %vm379_vm0 = vcmp.ge.f32.partialorder %v375_v34, 0.0  ;;  %v383_v39 = vmul.f32 0.01, %v375_v34 }
 0x1e8   :  { %v247_v40 = vsel %vm239_vm14, %v235_v30, %v243_v35  ;;  %vm378_vm1 = vcmp.ge.f32.partialorder %v374_v36, 0.0  ;;  %v382_v41 = vmul.f32 0.01, %v374_v36  ;;  %v373_v42 = vmul.f32 %v450_v37, %v206_v8  ;;  %v361_v43 = vpop.f32.mrb[3].mxu1 }
 0x1e9   :  { %251 = vst [vmem:[%s629_s4 + $0x18] sm:$0xff] %v247_v40  ;;  %v246_v44 = vsel %vm238_vm15, %v234_v33, %v242_v38  ;;  %v387_v45 = vsel %vm379_vm0, %v375_v34, %v383_v39  ;;  %v372_v46 = vmul.f32 %v361_v43, %v201_v9 }
 0x1ea   :  { %250 = vst [vmem:[%s629_s4 + $0x10] sm:$0xff] %v246_v44  ;;  %410 = vst [vmem:[%s629_s4 + $0x28] sm:$0xff] %v387_v45  ;;  %v386_v47 = vsel %vm378_vm1, %v374_v36, %v382_v41  ;;  %v377_v48 = vadd.f32 %v373_v42, %v230_v23 }
 0x1eb   :  { %409 = vst [vmem:[%s629_s4 + $0x20] sm:$0xff] %v386_v47  ;;  %v376_v49 = vadd.f32 %v372_v46, %v225_v28 }
 0x1ec   :  { %vm381_vm2 = vcmp.ge.f32.partialorder %v377_v48, 0.0  ;;  %v385_v50 = vmul.f32 0.01, %v377_v48 }
 0x1ed   :  { %vm380_vm3 = vcmp.ge.f32.partialorder %v376_v49, 0.0  ;;  %v384_v51 = vmul.f32 0.01, %v376_v49 }
 0x1ee   :  { %v389_v52 = vsel %vm381_vm2, %v377_v48, %v385_v50 }
 0x1ef   :  { %412 = vst [vmem:[%s629_s4 + $0x38] sm:$0xff] %v389_v52  ;;  %v388_v53 = vsel %vm380_vm3, %v376_v49, %v384_v51 }
 0x1f0   :  { %411 = vst [vmem:[%s629_s4 + $0x30] sm:$0xff] %v388_v53 }

// kernel: forward.6
= control target key start
LH: loop header
LB: loop body
LE: loop exit
PB: predicated region body
PF: predicated region fallthrough
CT: control target
= control target key end

     0   :  { %vm17_vm0 = vcmask 556032   ;;  %v643_v2 = vmov 0.0   ;;  %s644_s19 = smov 2   ;;  %v645_v5 = vmov 0.0|0.0   ;;  %vm66_vm1 = vcmask 539664   ;;  %s647_s6 = smov 126   ;;  %s816_s0 = inlined_call_operand.vmem [shape: f32[2,32,64], index: 0, kind: input, shape index: {}]   ;;  %s817_s1 = inlined_call_operand.vmem [shape: f32[32,160], index: 1, kind: input, shape index: {}]   ;;  %s818_s2 = inlined_call_operand.vmem [shape: f32[32,1], index: 2, kind: input, shape index: {}]   ;;  %s819_s3 = inlined_call_operand.vmem [shape: f32[32,1], index: 3, kind: input, shape index: {}]   ;;  %s820_s4 = inlined_call_operand.vmem [shape: f32[2,32,64], index: 4, kind: output, shape index: {}]  }
   0x1   :  { %v30_v0 = vld [vmem:[%s816_s0 + $0x20] sm:$0xff]  ;;  %22 = vst.msk [vmem:[#allocation2 + $0x20] sm:$0xff] %vm17_vm0, %v643_v2  ;;  %18 = vst.msk [vmem:[#allocation2] sm:$0xff] %vm17_vm0, %v643_v2  ;;  %v31_v3 = vld [vmem:[%s816_s0 + $0x28] sm:$0xff]  ;;  %493 = vmatprep.subr.bf16.mxu0 %v645_v5  ;;  %523 = vmatprep.subr.bf16.mxu1 %v645_v5  ;;  %s648_s7 = smov 125   ;;  %vm147_vm2 = vcmask 261120  }
   0x2   :  { %v26_v1 = vld [vmem:[%s816_s0] sm:$0xff]  ;;  %19 = vst.msk [vmem:[#allocation2 + $0x8] sm:$0xff] %vm17_vm0, %v643_v2  ;;  %20 = vst.msk [vmem:[#allocation2 + $0x10] sm:$0xff] %vm17_vm0, %v643_v2  ;;  %50 = vrot.lane.b32.xlu1 %v30_v0, %s644_s19  ;;  %v27_v4 = vld [vmem:[%s816_s0 + $0x8] sm:$0xff]  ;;  %s649_s10 = smov 124   ;;  %v650_v35 = vmov 0  }
   0x3   :  { %21 = vst.msk [vmem:[#allocation2 + $0x18] sm:$0xff] %vm17_vm0, %v643_v2  ;;  %23 = vst.msk [vmem:[#allocation2 + $0x28] sm:$0xff] %vm17_vm0, %v643_v2  ;;  %42 = vrot.lane.b32.xlu0 %v26_v1, %s644_s19  ;;  %v29_v6 = vld [vmem:[%s816_s0 + $0x18] sm:$0xff]  ;;  %v28_v7 = vld [vmem:[%s816_s0 + $0x10] sm:$0xff]  ;;  %642 = vset.pattern.permute.xlu1 %v650_v35  ;;  %vm305_vm4 = vcmask 523264  }
   0x4   :  { %24 = vst.msk [vmem:[#allocation2 + $0x30] sm:$0xff] %vm17_vm0, %v643_v2  ;;  %25 = vst.msk [vmem:[#allocation2 + $0x38] sm:$0xff] %vm17_vm0, %v643_v2  ;;  %v33_v8 = vld [vmem:[%s816_s0 + $0x38] sm:$0xff]  ;;  %v32_v9 = vld [vmem:[%s816_s0 + $0x30] sm:$0xff]  ;;  %s646_s0 = smov 127   ;;  %641 = vset.pattern.permute.xlu0 %v650_v35 }
   0x5   :  { %v76_v34 = vld [vmem:[%s817_s1 + $0x8] sm:$0xff]  ;;  %v83_v36 = vld [vmem:[%s818_s2] sm:$0xff]  ;;  %v86_v38 = vld [vmem:[%s818_s2 + $0x18] sm:$0xff] }
   0x6   :  { %52 = vrot.lane.b32.xlu1 %v31_v3, %s644_s19  ;;  %481 = vmatprep.mubr.msk.f32.mxu0 %vm147_vm2, %v76_v34  ;;  %v84_v37 = vld [vmem:[%s818_s2 + $0x8] sm:$0xff]  ;;  %v85_v39 = vld [vmem:[%s818_s2 + $0x10] sm:$0xff]  ;;  %v87_v41 = vld [vmem:[%s819_s3] sm:$0xff] }
   0x7   :  { %44 = vrot.lane.b32.xlu0 %v27_v4, %s644_s19  ;;  %485 = vmatprep.mubr.msk.f32.mxu1 %vm147_vm2, %v76_v34  ;;  %v88_v40 = vld [vmem:[%s819_s3 + $0x8] sm:$0xff]  ;;  %v90_v42 = vld [vmem:[%s819_s3 + $0x18] sm:$0xff]  ;;  %v89_v43 = vld [vmem:[%s819_s3 + $0x10] sm:$0xff] }
   0xa   :  { %48 = vrot.lane.b32.xlu1 %v29_v6, %s644_s19 }
   0xb   :  { %46 = vrot.lane.b32.xlu0 %v28_v7, %s644_s19 }
   0xe   :  { %56 = vrot.lane.b32.xlu1 %v33_v8, %s644_s19 }
   0xf   :  { %54 = vrot.lane.b32.xlu0 %v32_v9, %s644_s19 }
  0x74   :  { %v51_v10 = vpop.permute.xlu1 %50 }
  0x75   :  { %v43_v11 = vpop.permute.xlu0 %42  ;;  %71 = vst.msk [vmem:[#allocation2 + $0x20] sm:$0xff] %vm66_vm1, %v51_v10 }
  0x76   :  { %67 = vst.msk [vmem:[#allocation2] sm:$0xff] %vm66_vm1, %v43_v11 }
  0x78   :  { %v53_v12 = vpop.permute.xlu1 %52 }
  0x79   :  { %v45_v13 = vpop.permute.xlu0 %44  ;;  %72 = vst.msk [vmem:[#allocation2 + $0x28] sm:$0xff] %vm66_vm1, %v53_v12 }
  0x7a   :  { %68 = vst.msk [vmem:[#allocation2 + $0x8] sm:$0xff] %vm66_vm1, %v45_v13 }
  0x7c   :  { %v49_v14 = vpop.permute.xlu1 %48  ;;  %v311_v16 = vld [vmem:[#allocation2 + $0x20] sm:$0xff] }
  0x7d   :  { %v47_v15 = vpop.permute.xlu0 %46  ;;  %70 = vst.msk [vmem:[#allocation2 + $0x18] sm:$0xff] %vm66_vm1, %v49_v14  ;;  %v91_v20 = vld [vmem:[#allocation2] sm:$0xff] }
  0x7e   :  { %69 = vst.msk [vmem:[#allocation2 + $0x10] sm:$0xff] %vm66_vm1, %v47_v15 }
  0x80   :  { %v57_v17 = vpop.permute.xlu1 %56  ;;  %v312_v19 = vld [vmem:[#allocation2 + $0x28] sm:$0xff] }
  0x81   :  { %v55_v18 = vpop.permute.xlu0 %54  ;;  %v92_v21 = vld [vmem:[#allocation2 + $0x8] sm:$0xff]  ;;  %74 = vst.msk [vmem:[#allocation2 + $0x38] sm:$0xff] %vm66_vm1, %v57_v17  ;;  %v524_v22 = vpack.c.bf16 %v312_v19, %v311_v16  ;;  %v566_v23 = vpack.i.bf16 %v312_v19, %v311_v16 }
  0x82   :  { %73 = vst.msk [vmem:[#allocation2 + $0x30] sm:$0xff] %vm66_vm1, %v55_v18  ;;  %v561_v24 = vpack.i.bf16 %v92_v21, %v91_v20  ;;  %v494_v25 = vpack.c.bf16 %v92_v21, %v91_v20 }
  0x83   :  { %525 = vmatpush1.bf16.msra.mxu1 %v524_v22  ;;  %567 = vrot.lane.b32.xlu1 %v566_v23, %s646_s0 }
  0x84   :  { %562 = vrot.lane.b32.xlu0 %v561_v24, %s646_s0  ;;  %495 = vmatpush1.bf16.msra.mxu0 %v494_v25  ;;  %v94_v27 = vld [vmem:[#allocation2 + $0x18] sm:$0xff] }
  0x85   :  { %v93_v26 = vld [vmem:[#allocation2 + $0x10] sm:$0xff]  ;;  %496 = vmatprep.subr.bf16.mxu0 %v645_v5  ;;  %526 = vmatprep.subr.bf16.mxu1 %v645_v5 }
  0x86   :  { %v571_v28 = vpack.i.bf16 %v94_v27, %v93_v26  ;;  %v497_v29 = vpack.c.bf16 %v94_v27, %v93_v26 }
  0x88   :  { %572 = vrot.lane.b32.xlu0 %v571_v28, %s646_s0  ;;  %498 = vmatpush1.bf16.msra.mxu0 %v497_v29  ;;  %v314_v31 = vld [vmem:[#allocation2 + $0x38] sm:$0xff] }
  0x89   :  { %v313_v30 = vld [vmem:[#allocation2 + $0x30] sm:$0xff]  ;;  %499 = vmatprep.subr.bf16.mxu0 %v645_v5 }
  0x8a   :  { %v576_v32 = vpack.i.bf16 %v314_v31, %v313_v30  ;;  %v527_v33 = vpack.c.bf16 %v314_v31, %v313_v30 }
  0x8c   :  { %577 = vrot.lane.b32.xlu1 %v576_v32, %s646_s0  ;;  %528 = vmatpush1.bf16.msra.mxu1 %v527_v33 }
  0x8d   :  { %582 = vrot.lane.b32.xlu0 %v561_v24, %s647_s6  ;;  %529 = vmatprep.subr.bf16.mxu1 %v645_v5 }
  0x90   :  { %587 = vrot.lane.b32.xlu1 %v566_v23, %s647_s6 }
  0x91   :  { %592 = vrot.lane.b32.xlu0 %v571_v28, %s647_s6 }
  0x94   :  { %597 = vrot.lane.b32.xlu1 %v576_v32, %s647_s6 }
  0x95   :  { %602 = vrot.lane.b32.xlu0 %v561_v24, %s648_s7 }
  0x98   :  { %607 = vrot.lane.b32.xlu1 %v566_v23, %s648_s7 }
  0x99   :  { %612 = vrot.lane.b32.xlu0 %v571_v28, %s648_s7 }
  0x9c   :  { %617 = vrot.lane.b32.xlu1 %v576_v32, %s648_s7 }
  0x9d   :  { %622 = vrot.lane.b32.xlu0 %v561_v24, %s649_s10 }
  0xa0   :  { %627 = vrot.lane.b32.xlu1 %v566_v23, %s649_s10 }
  0xa1   :  { %632 = vrot.lane.b32.xlu0 %v571_v28, %s649_s10 }
  0xa4   :  { %637 = vrot.lane.b32.xlu1 %v576_v32, %s649_s10 }
  0xa5   :  { %247 = vperm.xlu0 %641, %v83_v36  }
  0xa8   :  { %252 = vperm.xlu1 %642, %v84_v37  }
  0xa9   :  { %262 = vperm.xlu0 %641, %v86_v38  }
  0xac   :  { %257 = vperm.xlu1 %642, %v85_v39  }
  0xad   :  { %276 = vperm.xlu0 %641, %v88_v40  }
  0xb0   :  { %271 = vperm.xlu1 %642, %v87_v41  }
  0xb1   :  { %286 = vperm.xlu0 %641, %v90_v42  }
  0xb4   :  { %281 = vperm.xlu1 %642, %v89_v43  }
  0xf5   :  { %v568_v44 = vpop.permute.xlu1 %567 }
  0xf6   :  { %v570_v45 = vunpack.i.h.bf16 %v568_v44  ;;  %v569_v46 = vunpack.i.l.bf16 %v568_v44  ;;  %v563_v47 = vpop.permute.xlu0 %562  ;;  %v75_v44 = vld [vmem:[%s817_s1] sm:$0xff] }
  0xf7   :  { %v565_v48 = vunpack.i.h.bf16 %v563_v47  ;;  %v564_v49 = vunpack.i.l.bf16 %v563_v47  ;;  %v77_v47 = vld [vmem:[%s817_s1 + $0x10] sm:$0xff] }
  0xf8   :  { %v530_v50 = vpack.c.bf16 %v570_v45, %v569_v46  ;;  %v78_v46 = vld [vmem:[%s817_s1 + $0x18] sm:$0xff] }
  0xf9   :  { %v500_v51 = vpack.c.bf16 %v565_v48, %v564_v49  ;;  %v80_v48 = vld [vmem:[%s817_s1 + $0x28] sm:$0xff]  ;;  %v82_v49 = vld [vmem:[%s817_s1 + $0x38] sm:$0xff] }
  0xfa   :  { %v573_v52 = vpop.permute.xlu0 %572  ;;  %531 = vmatpush1.bf16.msra.mxu1 %v530_v50  ;;  %v81_v50 = vld [vmem:[%s817_s1 + $0x30] sm:$0xff] }
  0xfb   :  { %v575_v53 = vunpack.i.h.bf16 %v573_v52  ;;  %v574_v54 = vunpack.i.l.bf16 %v573_v52  ;;  %501 = vmatpush1.bf16.msra.mxu0 %v500_v51  ;;  %532 = vmatprep.subr.bf16.mxu1 %v645_v5 }
  0xfc   :  { %502 = vmatprep.subr.bf16.mxu0 %v645_v5 }
  0xfd   :  { %v503_v55 = vpack.c.bf16 %v575_v53, %v574_v54 }
  0xfe   :  { %v578_v56 = vpop.permute.xlu1 %577 }
  0xff   :  { %v580_v57 = vunpack.i.h.bf16 %v578_v56  ;;  %v579_v58 = vunpack.i.l.bf16 %v578_v56  ;;  %v583_v59 = vpop.permute.xlu0 %582  ;;  %504 = vmatpush1.bf16.msra.mxu0 %v503_v55 }
 0x100   :  { %v585_v60 = vunpack.i.h.bf16 %v583_v59  ;;  %v584_v61 = vunpack.i.l.bf16 %v583_v59  ;;  %505 = vmatprep.subr.bf16.mxu0 %v645_v5 }
 0x101   :  { %v533_v62 = vpack.c.bf16 %v580_v57, %v579_v58 }
 0x102   :  { %v506_v63 = vpack.c.bf16 %v585_v60, %v584_v61  ;;  %v588_v0 = vpop.permute.xlu1 %587 }
 0x103   :  { %v590_v1 = vunpack.i.h.bf16 %v588_v0  ;;  %v589_v2 = vunpack.i.l.bf16 %v588_v0  ;;  %v593_v3 = vpop.permute.xlu0 %592  ;;  %534 = vmatpush1.bf16.msra.mxu1 %v533_v62 }
 0x104   :  { %v595_v4 = vunpack.i.h.bf16 %v593_v3  ;;  %v594_v6 = vunpack.i.l.bf16 %v593_v3  ;;  %507 = vmatpush1.bf16.msra.mxu0 %v506_v63  ;;  %535 = vmatprep.subr.bf16.mxu1 %v645_v5 }
 0x105   :  { %v536_v7 = vpack.c.bf16 %v590_v1, %v589_v2  ;;  %508 = vmatprep.subr.bf16.mxu0 %v645_v5 }
 0x106   :  { %v509_v8 = vpack.c.bf16 %v595_v4, %v594_v6  ;;  %v598_v9 = vpop.permute.xlu1 %597 }
 0x107   :  { %v600_v10 = vunpack.i.h.bf16 %v598_v9  ;;  %v599_v11 = vunpack.i.l.bf16 %v598_v9  ;;  %v603_v12 = vpop.permute.xlu0 %602  ;;  %537 = vmatpush1.bf16.msra.mxu1 %v536_v7 }
 0x108   :  { %v605_v13 = vunpack.i.h.bf16 %v603_v12  ;;  %v604_v14 = vunpack.i.l.bf16 %v603_v12  ;;  %510 = vmatpush1.bf16.msra.mxu0 %v509_v8  ;;  %538 = vmatprep.subr.bf16.mxu1 %v645_v5 }
 0x109   :  { %v539_v15 = vpack.c.bf16 %v600_v10, %v599_v11  ;;  %511 = vmatprep.subr.bf16.mxu0 %v645_v5 }
 0x10a   :  { %v512_v16 = vpack.c.bf16 %v605_v13, %v604_v14  ;;  %v608_v17 = vpop.permute.xlu1 %607 }
 0x10b   :  { %v610_v18 = vunpack.i.h.bf16 %v608_v17  ;;  %v609_v19 = vunpack.i.l.bf16 %v608_v17  ;;  %v613_v20 = vpop.permute.xlu0 %612  ;;  %540 = vmatpush1.bf16.msra.mxu1 %v539_v15 }
 0x10c   :  { %v615_v21 = vunpack.i.h.bf16 %v613_v20  ;;  %v614_v22 = vunpack.i.l.bf16 %v613_v20  ;;  %513 = vmatpush1.bf16.msra.mxu0 %v512_v16  ;;  %541 = vmatprep.subr.bf16.mxu1 %v645_v5 }
 0x10d   :  { %v542_v23 = vpack.c.bf16 %v610_v18, %v609_v19  ;;  %514 = vmatprep.subr.bf16.mxu0 %v645_v5 }
 0x10e   :  { %v515_v24 = vpack.c.bf16 %v615_v21, %v614_v22  ;;  %v618_v25 = vpop.permute.xlu1 %617 }
 0x10f   :  { %v620_v26 = vunpack.i.h.bf16 %v618_v25  ;;  %v619_v27 = vunpack.i.l.bf16 %v618_v25  ;;  %v623_v28 = vpop.permute.xlu0 %622  ;;  %543 = vmatpush1.bf16.msra.mxu1 %v542_v23 }
 0x110   :  { %v625_v29 = vunpack.i.h.bf16 %v623_v28  ;;  %v624_v30 = vunpack.i.l.bf16 %v623_v28  ;;  %516 = vmatpush1.bf16.msra.mxu0 %v515_v24  ;;  %544 = vmatprep.subr.bf16.mxu1 %v645_v5 }
 0x111   :  { %v545_v31 = vpack.c.bf16 %v620_v26, %v619_v27  ;;  %517 = vmatprep.subr.bf16.mxu0 %v645_v5 }
 0x112   :  { %v518_v32 = vpack.c.bf16 %v625_v29, %v624_v30  ;;  %v628_v33 = vpop.permute.xlu1 %627 }
 0x113   :  { %v630_v34 = vunpack.i.h.bf16 %v628_v33  ;;  %v629_v35 = vunpack.i.l.bf16 %v628_v33  ;;  %v633_v36 = vpop.permute.xlu0 %632  ;;  %546 = vmatpush1.bf16.msra.mxu1 %v545_v31 }
 0x114   :  { %v635_v37 = vunpack.i.h.bf16 %v633_v36  ;;  %v634_v38 = vunpack.i.l.bf16 %v633_v36  ;;  %519 = vmatpush1.bf16.msra.mxu0 %v518_v32  ;;  %547 = vmatprep.subr.bf16.mxu1 %v645_v5 }
 0x115   :  { %v548_v39 = vpack.c.bf16 %v630_v34, %v629_v35  ;;  %520 = vmatprep.subr.bf16.mxu0 %v645_v5 }
 0x116   :  { %v521_v40 = vpack.c.bf16 %v635_v37, %v634_v38  ;;  %v638_v41 = vpop.permute.xlu1 %637 }
 0x117   :  { %v640_v42 = vunpack.i.h.bf16 %v638_v41  ;;  %v639_v43 = vunpack.i.l.bf16 %v638_v41  ;;  %549 = vmatpush1.bf16.msra.mxu1 %v548_v39 }
 0x118   :  { %522 = vmatpush1.bf16.msra.mxu0 %v521_v40  ;;  %550 = vmatprep.subr.bf16.mxu1 %v645_v5  ;;  %v79_v5 = vld [vmem:[%s817_s1 + $0x20] sm:$0xff] }
 0x119   :  { %v551_v45 = vpack.c.bf16 %v640_v42, %v639_v43 }
 0x11b   :  { %225 = vmatmul.mubr.f32.vlgmr.msra.gmra.mrb[0].mxu0 %v75_v44  ;;  %552 = vmatpush1.bf16.msra.mxu1 %v551_v45 }
 0x11c   :  { %482 = vmatprep.mubr.msk.f32.mxu0 %vm147_vm2, %v78_v46 }
 0x11e   :  { %432 = vmatmul.mubr.f32.vlgmr.msra.gmra.mrb[0].mxu1 %v75_v44 }
 0x11f   :  { %230 = vmatmul.mubr.f32.gmra.mrb[2].mxu0 %v77_v47  ;;  %486 = vmatprep.mubr.msk.f32.mxu1 %vm147_vm2, %v78_v46 }
 0x120   :  { %483 = vmatprep.mubr.msk.f32.mxu0 %vm147_vm2, %v80_v48 }
 0x122   :  { %437 = vmatmul.mubr.f32.gmra.mrb[2].mxu1 %v77_v47 }
 0x123   :  { %235 = vmatmul.mubr.f32.gmra.mrb[4].mxu0 %v79_v5  ;;  %487 = vmatprep.mubr.msk.f32.mxu1 %vm147_vm2, %v80_v48 }
 0x124   :  { %484 = vmatprep.mubr.msk.f32.mxu0 %vm147_vm2, %v82_v49  ;;  %v248_v52 = vpop.permute.xlu0 %247 }
 0x126   :  { %442 = vmatmul.mubr.f32.gmra.mrb[4].mxu1 %v79_v5 }
 0x127   :  { %240 = vmatmul.mubr.f32.gmra.mrb[6].mxu0 %v81_v50  ;;  %488 = vmatprep.mubr.msk.f32.mxu1 %vm147_vm2, %v82_v49  ;;  %v253_v51 = vpop.permute.xlu1 %252 }
 0x128   :  { %v263_v54 = vpop.permute.xlu0 %262 }
 0x12a   :  { %447 = vmatmul.mubr.f32.gmra.mrb[6].mxu1 %v81_v50 }
 0x12b   :  { %v258_v53 = vpop.permute.xlu1 %257 }
 0x12c   :  { %v277_v3 = vpop.permute.xlu0 %276 }
 0x12f   :  { %v272_v58 = vpop.permute.xlu1 %271 }
 0x130   :  { %v287_v29 = vpop.permute.xlu0 %286 }
 0x133   :  { %v282_v17 = vpop.permute.xlu1 %281 }
 0x1ee   :  { %v226_v55 = vpop.f32.mrb[0].mxu0 }
 0x1ef   :  { %v265_v56 = vmul.f32 %v248_v52, %v226_v55  ;;  %v228_v57 = vpop.f32.mrb[1].mxu0 }
 0x1f1   :  { %v289_v59 = vadd.f32 %v272_v58, %v265_v56  ;;  %v433_v60 = vpop.f32.mrb[0].mxu1 }
 0x1f2   :  { %v231_v61 = vpop.f32.mrb[2].mxu0  ;;  %v452_v62 = vmul.f32 %v433_v60, %v248_v52  ;;  %v435_v63 = vpop.f32.mrb[1].mxu1 }
 0x1f3   :  { %vm293_vm3 = vcmp.ge.f32.partialorder %v289_v59, 0.0  ;;  %v297_v0 = vmul.f32 0.01, %v289_v59  ;;  %v266_v1 = vmul.f32 %v253_v51, %v231_v61  ;;  %v233_v2 = vpop.f32.mrb[3].mxu0 }
 0x1f4   :  { %v456_v4 = vadd.f32 %v452_v62, %v272_v58 }
 0x1f5   :  { %v301_v6 = vsel %vm293_vm3, %v289_v59, %v297_v0  ;;  %v290_v7 = vadd.f32 %v277_v3, %v266_v1  ;;  %v438_v8 = vpop.f32.mrb[2].mxu1 }
 0x1f6   :  { %306 = vst.msk [vmem:[%s820_s4] sm:$0xff] %vm305_vm4, %v301_v6  ;;  %vm460_vm5 = vcmp.ge.f32.partialorder %v456_v4, 0.0  ;;  %v464_v9 = vmul.f32 0.01, %v456_v4  ;;  %v236_v10 = vpop.f32.mrb[4].mxu0  ;;  %v453_v11 = vmul.f32 %v438_v8, %v253_v51  ;;  %v440_v12 = vpop.f32.mrb[3].mxu1 }
 0x1f7   :  { %vm294_vm6 = vcmp.ge.f32.partialorder %v290_v7, 0.0  ;;  %v298_v13 = vmul.f32 0.01, %v290_v7  ;;  %v267_v14 = vmul.f32 %v258_v53, %v236_v10  ;;  %v238_v15 = vpop.f32.mrb[5].mxu0 }
 0x1f8   :  { %v468_v16 = vsel %vm460_vm5, %v456_v4, %v464_v9  ;;  %v457_v18 = vadd.f32 %v453_v11, %v277_v3 }
 0x1f9   :  { %v302_v19 = vsel %vm294_vm6, %v290_v7, %v298_v13  ;;  %489 = vst.msk [vmem:[%s820_s4 + $0x20] sm:$0xff] %vm305_vm4, %v468_v16  ;;  %v291_v20 = vadd.f32 %v282_v17, %v267_v14  ;;  %v443_v21 = vpop.f32.mrb[4].mxu1 }
 0x1fa   :  { %307 = vst.msk [vmem:[%s820_s4 + $0x8] sm:$0xff] %vm305_vm4, %v302_v19  ;;  %vm461_vm7 = vcmp.ge.f32.partialorder %v457_v18, 0.0  ;;  %v465_v22 = vmul.f32 0.01, %v457_v18  ;;  %v241_v23 = vpop.f32.mrb[6].mxu0  ;;  %v454_v24 = vmul.f32 %v443_v21, %v258_v53  ;;  %v445_v25 = vpop.f32.mrb[5].mxu1 }
 0x1fb   :  { %vm295_vm8 = vcmp.ge.f32.partialorder %v291_v20, 0.0  ;;  %v299_v26 = vmul.f32 0.01, %v291_v20  ;;  %v268_v27 = vmul.f32 %v263_v54, %v241_v23  ;;  %v243_v28 = vpop.f32.mrb[7].mxu0 }
 0x1fc   :  { %v469_v30 = vsel %vm461_vm7, %v457_v18, %v465_v22  ;;  %v458_v31 = vadd.f32 %v454_v24, %v282_v17 }
 0x1fd   :  { %v303_v32 = vsel %vm295_vm8, %v291_v20, %v299_v26  ;;  %490 = vst.msk [vmem:[%s820_s4 + $0x28] sm:$0xff] %vm305_vm4, %v469_v30  ;;  %v292_v33 = vadd.f32 %v287_v29, %v268_v27  ;;  %v448_v34 = vpop.f32.mrb[6].mxu1 }
 0x1fe   :  { %308 = vst.msk [vmem:[%s820_s4 + $0x10] sm:$0xff] %vm305_vm4, %v303_v32  ;;  %vm462_vm9 = vcmp.ge.f32.partialorder %v458_v31, 0.0  ;;  %v466_v35 = vmul.f32 0.01, %v458_v31  ;;  %v455_v36 = vmul.f32 %v448_v34, %v263_v54  ;;  %v450_v37 = vpop.f32.mrb[7].mxu1 }
 0x1ff   :  { %vm296_vm10 = vcmp.ge.f32.partialorder %v292_v33, 0.0  ;;  %v300_v38 = vmul.f32 0.01, %v292_v33 }
 0x200   :  { %v470_v39 = vsel %vm462_vm9, %v458_v31, %v466_v35  ;;  %v459_v40 = vadd.f32 %v455_v36, %v287_v29 }
 0x201   :  { %v304_v41 = vsel %vm296_vm10, %v292_v33, %v300_v38  ;;  %491 = vst.msk [vmem:[%s820_s4 + $0x30] sm:$0xff] %vm305_vm4, %v470_v39 }
 0x202   :  { %309 = vst.msk [vmem:[%s820_s4 + $0x18] sm:$0xff] %vm305_vm4, %v304_v41  ;;  %vm463_vm11 = vcmp.ge.f32.partialorder %v459_v40, 0.0  ;;  %v467_v42 = vmul.f32 0.01, %v459_v40 }
 0x204   :  { %v471_v43 = vsel %vm463_vm11, %v459_v40, %v467_v42 }
 0x205   :  { %492 = vst.msk [vmem:[%s820_s4 + $0x38] sm:$0xff] %vm305_vm4, %v471_v43 }

// kernel: forward.7
= control target key start
LH: loop header
LB: loop body
LE: loop exit
PB: predicated region body
PF: predicated region fallthrough
CT: control target
= control target key end

     0   :  { %vm17_vm0 = vcmask 293888   ;;  %v642_v2 = vmov 0.0   ;;  %s643_s19 = smov 2   ;;  %v644_v5 = vmov 0.0|0.0   ;;  %vm66_vm1 = vcmask 277520   ;;  %s646_s6 = smov 126   ;;  %s815_s0 = inlined_call_operand.vmem [shape: f32[2,32,32], index: 0, kind: input, shape index: {}]   ;;  %s816_s1 = inlined_call_operand.vmem [shape: f32[32,160], index: 1, kind: input, shape index: {}]   ;;  %s817_s2 = inlined_call_operand.vmem [shape: f32[32,1], index: 2, kind: input, shape index: {}]   ;;  %s818_s3 = inlined_call_operand.vmem [shape: f32[32,1], index: 3, kind: input, shape index: {}]   ;;  %s819_s4 = inlined_call_operand.vmem [shape: f32[2,32,32], index: 4, kind: output, shape index: {}]  }
   0x1   :  { %v30_v0 = vld [vmem:[%s815_s0 + $0x20] sm:$0xff]  ;;  %22 = vst.msk [vmem:[#allocation2 + $0x20] sm:$0xff] %vm17_vm0, %v642_v2  ;;  %18 = vst.msk [vmem:[#allocation2] sm:$0xff] %vm17_vm0, %v642_v2  ;;  %v31_v3 = vld [vmem:[%s815_s0 + $0x28] sm:$0xff]  ;;  %492 = vmatprep.subr.bf16.mxu0 %v644_v5  ;;  %522 = vmatprep.subr.bf16.mxu1 %v644_v5  ;;  %s647_s7 = smov 125   ;;  %vm147_vm2 = vcmask 261120  }
   0x2   :  { %v26_v1 = vld [vmem:[%s815_s0] sm:$0xff]  ;;  %19 = vst.msk [vmem:[#allocation2 + $0x8] sm:$0xff] %vm17_vm0, %v642_v2  ;;  %20 = vst.msk [vmem:[#allocation2 + $0x10] sm:$0xff] %vm17_vm0, %v642_v2  ;;  %50 = vrot.lane.b32.xlu1 %v30_v0, %s643_s19  ;;  %v27_v4 = vld [vmem:[%s815_s0 + $0x8] sm:$0xff]  ;;  %s648_s10 = smov 124   ;;  %v649_v35 = vmov 0  }
   0x3   :  { %21 = vst.msk [vmem:[#allocation2 + $0x18] sm:$0xff] %vm17_vm0, %v642_v2  ;;  %23 = vst.msk [vmem:[#allocation2 + $0x28] sm:$0xff] %vm17_vm0, %v642_v2  ;;  %42 = vrot.lane.b32.xlu0 %v26_v1, %s643_s19  ;;  %v29_v6 = vld [vmem:[%s815_s0 + $0x18] sm:$0xff]  ;;  %v28_v7 = vld [vmem:[%s815_s0 + $0x10] sm:$0xff]  ;;  %641 = vset.pattern.permute.xlu1 %v649_v35 }
   0x4   :  { %24 = vst.msk [vmem:[#allocation2 + $0x30] sm:$0xff] %vm17_vm0, %v642_v2  ;;  %25 = vst.msk [vmem:[#allocation2 + $0x38] sm:$0xff] %vm17_vm0, %v642_v2  ;;  %v33_v8 = vld [vmem:[%s815_s0 + $0x38] sm:$0xff]  ;;  %v32_v9 = vld [vmem:[%s815_s0 + $0x30] sm:$0xff]  ;;  %s645_s0 = smov 127   ;;  %640 = vset.pattern.permute.xlu0 %v649_v35 }
   0x5   :  { %v76_v34 = vld [vmem:[%s816_s1 + $0x8] sm:$0xff]  ;;  %v83_v36 = vld [vmem:[%s817_s2] sm:$0xff]  ;;  %v86_v38 = vld [vmem:[%s817_s2 + $0x18] sm:$0xff] }
   0x6   :  { %52 = vrot.lane.b32.xlu1 %v31_v3, %s643_s19  ;;  %480 = vmatprep.mubr.msk.f32.mxu0 %vm147_vm2, %v76_v34  ;;  %v84_v37 = vld [vmem:[%s817_s2 + $0x8] sm:$0xff]  ;;  %v85_v39 = vld [vmem:[%s817_s2 + $0x10] sm:$0xff]  ;;  %v87_v41 = vld [vmem:[%s818_s3] sm:$0xff] }
   0x7   :  { %44 = vrot.lane.b32.xlu0 %v27_v4, %s643_s19  ;;  %484 = vmatprep.mubr.msk.f32.mxu1 %vm147_vm2, %v76_v34  ;;  %v88_v40 = vld [vmem:[%s818_s3 + $0x8] sm:$0xff]  ;;  %v90_v42 = vld [vmem:[%s818_s3 + $0x18] sm:$0xff]  ;;  %v89_v43 = vld [vmem:[%s818_s3 + $0x10] sm:$0xff] }
   0xa   :  { %48 = vrot.lane.b32.xlu1 %v29_v6, %s643_s19 }
   0xb   :  { %46 = vrot.lane.b32.xlu0 %v28_v7, %s643_s19 }
   0xe   :  { %56 = vrot.lane.b32.xlu1 %v33_v8, %s643_s19 }
   0xf   :  { %54 = vrot.lane.b32.xlu0 %v32_v9, %s643_s19 }
  0x74   :  { %v51_v10 = vpop.permute.xlu1 %50 }
  0x75   :  { %v43_v11 = vpop.permute.xlu0 %42  ;;  %71 = vst.msk [vmem:[#allocation2 + $0x20] sm:$0xff] %vm66_vm1, %v51_v10 }
  0x76   :  { %67 = vst.msk [vmem:[#allocation2] sm:$0xff] %vm66_vm1, %v43_v11 }
  0x78   :  { %v53_v12 = vpop.permute.xlu1 %52 }
  0x79   :  { %v45_v13 = vpop.permute.xlu0 %44  ;;  %72 = vst.msk [vmem:[#allocation2 + $0x28] sm:$0xff] %vm66_vm1, %v53_v12 }
  0x7a   :  { %68 = vst.msk [vmem:[#allocation2 + $0x8] sm:$0xff] %vm66_vm1, %v45_v13 }
  0x7c   :  { %v49_v14 = vpop.permute.xlu1 %48  ;;  %v310_v16 = vld [vmem:[#allocation2 + $0x20] sm:$0xff] }
  0x7d   :  { %v47_v15 = vpop.permute.xlu0 %46  ;;  %70 = vst.msk [vmem:[#allocation2 + $0x18] sm:$0xff] %vm66_vm1, %v49_v14  ;;  %v91_v20 = vld [vmem:[#allocation2] sm:$0xff] }
  0x7e   :  { %69 = vst.msk [vmem:[#allocation2 + $0x10] sm:$0xff] %vm66_vm1, %v47_v15 }
  0x80   :  { %v57_v17 = vpop.permute.xlu1 %56  ;;  %v311_v19 = vld [vmem:[#allocation2 + $0x28] sm:$0xff] }
  0x81   :  { %v55_v18 = vpop.permute.xlu0 %54  ;;  %v92_v21 = vld [vmem:[#allocation2 + $0x8] sm:$0xff]  ;;  %74 = vst.msk [vmem:[#allocation2 + $0x38] sm:$0xff] %vm66_vm1, %v57_v17  ;;  %v523_v22 = vpack.c.bf16 %v311_v19, %v310_v16  ;;  %v565_v23 = vpack.i.bf16 %v311_v19, %v310_v16 }
  0x82   :  { %73 = vst.msk [vmem:[#allocation2 + $0x30] sm:$0xff] %vm66_vm1, %v55_v18  ;;  %v560_v24 = vpack.i.bf16 %v92_v21, %v91_v20  ;;  %v493_v25 = vpack.c.bf16 %v92_v21, %v91_v20 }
  0x83   :  { %524 = vmatpush1.bf16.msra.mxu1 %v523_v22  ;;  %566 = vrot.lane.b32.xlu1 %v565_v23, %s645_s0 }
  0x84   :  { %561 = vrot.lane.b32.xlu0 %v560_v24, %s645_s0  ;;  %494 = vmatpush1.bf16.msra.mxu0 %v493_v25  ;;  %v94_v27 = vld [vmem:[#allocation2 + $0x18] sm:$0xff] }
  0x85   :  { %v93_v26 = vld [vmem:[#allocation2 + $0x10] sm:$0xff]  ;;  %495 = vmatprep.subr.bf16.mxu0 %v644_v5  ;;  %525 = vmatprep.subr.bf16.mxu1 %v644_v5 }
  0x86   :  { %v570_v28 = vpack.i.bf16 %v94_v27, %v93_v26  ;;  %v496_v29 = vpack.c.bf16 %v94_v27, %v93_v26 }
  0x88   :  { %571 = vrot.lane.b32.xlu0 %v570_v28, %s645_s0  ;;  %497 = vmatpush1.bf16.msra.mxu0 %v496_v29  ;;  %v313_v31 = vld [vmem:[#allocation2 + $0x38] sm:$0xff] }
  0x89   :  { %v312_v30 = vld [vmem:[#allocation2 + $0x30] sm:$0xff]  ;;  %498 = vmatprep.subr.bf16.mxu0 %v644_v5 }
  0x8a   :  { %v575_v32 = vpack.i.bf16 %v313_v31, %v312_v30  ;;  %v526_v33 = vpack.c.bf16 %v313_v31, %v312_v30 }
  0x8c   :  { %576 = vrot.lane.b32.xlu1 %v575_v32, %s645_s0  ;;  %527 = vmatpush1.bf16.msra.mxu1 %v526_v33 }
  0x8d   :  { %581 = vrot.lane.b32.xlu0 %v560_v24, %s646_s6  ;;  %528 = vmatprep.subr.bf16.mxu1 %v644_v5 }
  0x90   :  { %586 = vrot.lane.b32.xlu1 %v565_v23, %s646_s6 }
  0x91   :  { %591 = vrot.lane.b32.xlu0 %v570_v28, %s646_s6 }
  0x94   :  { %596 = vrot.lane.b32.xlu1 %v575_v32, %s646_s6 }
  0x95   :  { %601 = vrot.lane.b32.xlu0 %v560_v24, %s647_s7 }
  0x98   :  { %606 = vrot.lane.b32.xlu1 %v565_v23, %s647_s7 }
  0x99   :  { %611 = vrot.lane.b32.xlu0 %v570_v28, %s647_s7 }
  0x9c   :  { %616 = vrot.lane.b32.xlu1 %v575_v32, %s647_s7 }
  0x9d   :  { %621 = vrot.lane.b32.xlu0 %v560_v24, %s648_s10 }
  0xa0   :  { %626 = vrot.lane.b32.xlu1 %v565_v23, %s648_s10 }
  0xa1   :  { %631 = vrot.lane.b32.xlu0 %v570_v28, %s648_s10 }
  0xa4   :  { %636 = vrot.lane.b32.xlu1 %v575_v32, %s648_s10 }
  0xa5   :  { %247 = vperm.xlu0 %640, %v83_v36  }
  0xa8   :  { %252 = vperm.xlu1 %641, %v84_v37  }
  0xa9   :  { %262 = vperm.xlu0 %640, %v86_v38  }
  0xac   :  { %257 = vperm.xlu1 %641, %v85_v39  }
  0xad   :  { %276 = vperm.xlu0 %640, %v88_v40  }
  0xb0   :  { %271 = vperm.xlu1 %641, %v87_v41  }
  0xb1   :  { %286 = vperm.xlu0 %640, %v90_v42  }
  0xb4   :  { %281 = vperm.xlu1 %641, %v89_v43  }
  0xf5   :  { %v567_v44 = vpop.permute.xlu1 %566 }
  0xf6   :  { %v569_v45 = vunpack.i.h.bf16 %v567_v44  ;;  %v568_v46 = vunpack.i.l.bf16 %v567_v44  ;;  %v562_v47 = vpop.permute.xlu0 %561  ;;  %v75_v44 = vld [vmem:[%s816_s1] sm:$0xff] }
  0xf7   :  { %v564_v48 = vunpack.i.h.bf16 %v562_v47  ;;  %v563_v49 = vunpack.i.l.bf16 %v562_v47  ;;  %v77_v47 = vld [vmem:[%s816_s1 + $0x10] sm:$0xff] }
  0xf8   :  { %v529_v50 = vpack.c.bf16 %v569_v45, %v568_v46  ;;  %v78_v46 = vld [vmem:[%s816_s1 + $0x18] sm:$0xff] }
  0xf9   :  { %v499_v51 = vpack.c.bf16 %v564_v48, %v563_v49  ;;  %v80_v48 = vld [vmem:[%s816_s1 + $0x28] sm:$0xff]  ;;  %v82_v49 = vld [vmem:[%s816_s1 + $0x38] sm:$0xff] }
  0xfa   :  { %v572_v52 = vpop.permute.xlu0 %571  ;;  %530 = vmatpush1.bf16.msra.mxu1 %v529_v50  ;;  %v81_v50 = vld [vmem:[%s816_s1 + $0x30] sm:$0xff] }
  0xfb   :  { %v574_v53 = vunpack.i.h.bf16 %v572_v52  ;;  %v573_v54 = vunpack.i.l.bf16 %v572_v52  ;;  %500 = vmatpush1.bf16.msra.mxu0 %v499_v51  ;;  %531 = vmatprep.subr.bf16.mxu1 %v644_v5 }
  0xfc   :  { %501 = vmatprep.subr.bf16.mxu0 %v644_v5 }
  0xfd   :  { %v502_v55 = vpack.c.bf16 %v574_v53, %v573_v54 }
  0xfe   :  { %v577_v56 = vpop.permute.xlu1 %576 }
  0xff   :  { %v579_v57 = vunpack.i.h.bf16 %v577_v56  ;;  %v578_v58 = vunpack.i.l.bf16 %v577_v56  ;;  %v582_v59 = vpop.permute.xlu0 %581  ;;  %503 = vmatpush1.bf16.msra.mxu0 %v502_v55 }
 0x100   :  { %v584_v60 = vunpack.i.h.bf16 %v582_v59  ;;  %v583_v61 = vunpack.i.l.bf16 %v582_v59  ;;  %504 = vmatprep.subr.bf16.mxu0 %v644_v5 }
 0x101   :  { %v532_v62 = vpack.c.bf16 %v579_v57, %v578_v58 }
 0x102   :  { %v505_v63 = vpack.c.bf16 %v584_v60, %v583_v61  ;;  %v587_v0 = vpop.permute.xlu1 %586 }
 0x103   :  { %v589_v1 = vunpack.i.h.bf16 %v587_v0  ;;  %v588_v2 = vunpack.i.l.bf16 %v587_v0  ;;  %v592_v3 = vpop.permute.xlu0 %591  ;;  %533 = vmatpush1.bf16.msra.mxu1 %v532_v62 }
 0x104   :  { %v594_v4 = vunpack.i.h.bf16 %v592_v3  ;;  %v593_v6 = vunpack.i.l.bf16 %v592_v3  ;;  %506 = vmatpush1.bf16.msra.mxu0 %v505_v63  ;;  %534 = vmatprep.subr.bf16.mxu1 %v644_v5 }
 0x105   :  { %v535_v7 = vpack.c.bf16 %v589_v1, %v588_v2  ;;  %507 = vmatprep.subr.bf16.mxu0 %v644_v5 }
 0x106   :  { %v508_v8 = vpack.c.bf16 %v594_v4, %v593_v6  ;;  %v597_v9 = vpop.permute.xlu1 %596 }
 0x107   :  { %v599_v10 = vunpack.i.h.bf16 %v597_v9  ;;  %v598_v11 = vunpack.i.l.bf16 %v597_v9  ;;  %v602_v12 = vpop.permute.xlu0 %601  ;;  %536 = vmatpush1.bf16.msra.mxu1 %v535_v7 }
 0x108   :  { %v604_v13 = vunpack.i.h.bf16 %v602_v12  ;;  %v603_v14 = vunpack.i.l.bf16 %v602_v12  ;;  %509 = vmatpush1.bf16.msra.mxu0 %v508_v8  ;;  %537 = vmatprep.subr.bf16.mxu1 %v644_v5 }
 0x109   :  { %v538_v15 = vpack.c.bf16 %v599_v10, %v598_v11  ;;  %510 = vmatprep.subr.bf16.mxu0 %v644_v5 }
 0x10a   :  { %v511_v16 = vpack.c.bf16 %v604_v13, %v603_v14  ;;  %v607_v17 = vpop.permute.xlu1 %606 }
 0x10b   :  { %v609_v18 = vunpack.i.h.bf16 %v607_v17  ;;  %v608_v19 = vunpack.i.l.bf16 %v607_v17  ;;  %v612_v20 = vpop.permute.xlu0 %611  ;;  %539 = vmatpush1.bf16.msra.mxu1 %v538_v15 }
 0x10c   :  { %v614_v21 = vunpack.i.h.bf16 %v612_v20  ;;  %v613_v22 = vunpack.i.l.bf16 %v612_v20  ;;  %512 = vmatpush1.bf16.msra.mxu0 %v511_v16  ;;  %540 = vmatprep.subr.bf16.mxu1 %v644_v5 }
 0x10d   :  { %v541_v23 = vpack.c.bf16 %v609_v18, %v608_v19  ;;  %513 = vmatprep.subr.bf16.mxu0 %v644_v5 }
 0x10e   :  { %v514_v24 = vpack.c.bf16 %v614_v21, %v613_v22  ;;  %v617_v25 = vpop.permute.xlu1 %616 }
 0x10f   :  { %v619_v26 = vunpack.i.h.bf16 %v617_v25  ;;  %v618_v27 = vunpack.i.l.bf16 %v617_v25  ;;  %v622_v28 = vpop.permute.xlu0 %621  ;;  %542 = vmatpush1.bf16.msra.mxu1 %v541_v23 }
 0x110   :  { %v624_v29 = vunpack.i.h.bf16 %v622_v28  ;;  %v623_v30 = vunpack.i.l.bf16 %v622_v28  ;;  %515 = vmatpush1.bf16.msra.mxu0 %v514_v24  ;;  %543 = vmatprep.subr.bf16.mxu1 %v644_v5 }
 0x111   :  { %v544_v31 = vpack.c.bf16 %v619_v26, %v618_v27  ;;  %516 = vmatprep.subr.bf16.mxu0 %v644_v5 }
 0x112   :  { %v517_v32 = vpack.c.bf16 %v624_v29, %v623_v30  ;;  %v627_v33 = vpop.permute.xlu1 %626 }
 0x113   :  { %v629_v34 = vunpack.i.h.bf16 %v627_v33  ;;  %v628_v35 = vunpack.i.l.bf16 %v627_v33  ;;  %v632_v36 = vpop.permute.xlu0 %631  ;;  %545 = vmatpush1.bf16.msra.mxu1 %v544_v31 }
 0x114   :  { %v634_v37 = vunpack.i.h.bf16 %v632_v36  ;;  %v633_v38 = vunpack.i.l.bf16 %v632_v36  ;;  %518 = vmatpush1.bf16.msra.mxu0 %v517_v32  ;;  %546 = vmatprep.subr.bf16.mxu1 %v644_v5 }
 0x115   :  { %v547_v39 = vpack.c.bf16 %v629_v34, %v628_v35  ;;  %519 = vmatprep.subr.bf16.mxu0 %v644_v5 }
 0x116   :  { %v520_v40 = vpack.c.bf16 %v634_v37, %v633_v38  ;;  %v637_v41 = vpop.permute.xlu1 %636 }
 0x117   :  { %v639_v42 = vunpack.i.h.bf16 %v637_v41  ;;  %v638_v43 = vunpack.i.l.bf16 %v637_v41  ;;  %548 = vmatpush1.bf16.msra.mxu1 %v547_v39 }
 0x118   :  { %521 = vmatpush1.bf16.msra.mxu0 %v520_v40  ;;  %549 = vmatprep.subr.bf16.mxu1 %v644_v5  ;;  %v79_v5 = vld [vmem:[%s816_s1 + $0x20] sm:$0xff] }
 0x119   :  { %v550_v45 = vpack.c.bf16 %v639_v42, %v638_v43 }
 0x11b   :  { %225 = vmatmul.mubr.f32.vlgmr.msra.gmra.mrb[0].mxu0 %v75_v44  ;;  %551 = vmatpush1.bf16.msra.mxu1 %v550_v45 }
 0x11c   :  { %481 = vmatprep.mubr.msk.f32.mxu0 %vm147_vm2, %v78_v46 }
 0x11e   :  { %431 = vmatmul.mubr.f32.vlgmr.msra.gmra.mrb[0].mxu1 %v75_v44 }
 0x11f   :  { %230 = vmatmul.mubr.f32.gmra.mrb[2].mxu0 %v77_v47  ;;  %485 = vmatprep.mubr.msk.f32.mxu1 %vm147_vm2, %v78_v46 }
 0x120   :  { %482 = vmatprep.mubr.msk.f32.mxu0 %vm147_vm2, %v80_v48 }
 0x122   :  { %436 = vmatmul.mubr.f32.gmra.mrb[2].mxu1 %v77_v47 }
 0x123   :  { %235 = vmatmul.mubr.f32.gmra.mrb[4].mxu0 %v79_v5  ;;  %486 = vmatprep.mubr.msk.f32.mxu1 %vm147_vm2, %v80_v48 }
 0x124   :  { %483 = vmatprep.mubr.msk.f32.mxu0 %vm147_vm2, %v82_v49  ;;  %v248_v52 = vpop.permute.xlu0 %247 }
 0x126   :  { %441 = vmatmul.mubr.f32.gmra.mrb[4].mxu1 %v79_v5 }
 0x127   :  { %240 = vmatmul.mubr.f32.gmra.mrb[6].mxu0 %v81_v50  ;;  %487 = vmatprep.mubr.msk.f32.mxu1 %vm147_vm2, %v82_v49  ;;  %v253_v51 = vpop.permute.xlu1 %252 }
 0x128   :  { %v263_v54 = vpop.permute.xlu0 %262 }
 0x12a   :  { %446 = vmatmul.mubr.f32.gmra.mrb[6].mxu1 %v81_v50 }
 0x12b   :  { %v258_v53 = vpop.permute.xlu1 %257 }
 0x12c   :  { %v277_v3 = vpop.permute.xlu0 %276 }
 0x12f   :  { %v272_v58 = vpop.permute.xlu1 %271 }
 0x130   :  { %v287_v29 = vpop.permute.xlu0 %286 }
 0x133   :  { %v282_v17 = vpop.permute.xlu1 %281 }
 0x1ee   :  { %v226_v55 = vpop.f32.mrb[0].mxu0 }
 0x1ef   :  { %v265_v56 = vmul.f32 %v248_v52, %v226_v55  ;;  %v228_v57 = vpop.f32.mrb[1].mxu0 }
 0x1f1   :  { %v289_v59 = vadd.f32 %v272_v58, %v265_v56  ;;  %v432_v60 = vpop.f32.mrb[0].mxu1 }
 0x1f2   :  { %v231_v61 = vpop.f32.mrb[2].mxu0  ;;  %v451_v62 = vmul.f32 %v432_v60, %v248_v52  ;;  %v434_v63 = vpop.f32.mrb[1].mxu1 }
 0x1f3   :  { %vm293_vm3 = vcmp.ge.f32.partialorder %v289_v59, 0.0  ;;  %v297_v0 = vmul.f32 0.01, %v289_v59  ;;  %v266_v1 = vmul.f32 %v253_v51, %v231_v61  ;;  %v233_v2 = vpop.f32.mrb[3].mxu0 }
 0x1f4   :  { %v455_v4 = vadd.f32 %v451_v62, %v272_v58 }
 0x1f5   :  { %v301_v6 = vsel %vm293_vm3, %v289_v59, %v297_v0  ;;  %v290_v7 = vadd.f32 %v277_v3, %v266_v1  ;;  %v437_v8 = vpop.f32.mrb[2].mxu1 }
 0x1f6   :  { %305 = vst.msk [vmem:[%s819_s4] sm:$0xff] %vm147_vm2, %v301_v6  ;;  %vm459_vm4 = vcmp.ge.f32.partialorder %v455_v4, 0.0  ;;  %v463_v9 = vmul.f32 0.01, %v455_v4  ;;  %v236_v10 = vpop.f32.mrb[4].mxu0  ;;  %v452_v11 = vmul.f32 %v437_v8, %v253_v51  ;;  %v439_v12 = vpop.f32.mrb[3].mxu1 }
 0x1f7   :  { %vm294_vm5 = vcmp.ge.f32.partialorder %v290_v7, 0.0  ;;  %v298_v13 = vmul.f32 0.01, %v290_v7  ;;  %v267_v14 = vmul.f32 %v258_v53, %v236_v10  ;;  %v238_v15 = vpop.f32.mrb[5].mxu0 }
 0x1f8   :  { %v467_v16 = vsel %vm459_vm4, %v455_v4, %v463_v9  ;;  %v456_v18 = vadd.f32 %v452_v11, %v277_v3 }
 0x1f9   :  { %v302_v19 = vsel %vm294_vm5, %v290_v7, %v298_v13  ;;  %488 = vst.msk [vmem:[%s819_s4 + $0x20] sm:$0xff] %vm147_vm2, %v467_v16  ;;  %v291_v20 = vadd.f32 %v282_v17, %v267_v14  ;;  %v442_v21 = vpop.f32.mrb[4].mxu1 }
 0x1fa   :  { %306 = vst.msk [vmem:[%s819_s4 + $0x8] sm:$0xff] %vm147_vm2, %v302_v19  ;;  %vm460_vm6 = vcmp.ge.f32.partialorder %v456_v18, 0.0  ;;  %v464_v22 = vmul.f32 0.01, %v456_v18  ;;  %v241_v23 = vpop.f32.mrb[6].mxu0  ;;  %v453_v24 = vmul.f32 %v442_v21, %v258_v53  ;;  %v444_v25 = vpop.f32.mrb[5].mxu1 }
 0x1fb   :  { %vm295_vm7 = vcmp.ge.f32.partialorder %v291_v20, 0.0  ;;  %v299_v26 = vmul.f32 0.01, %v291_v20  ;;  %v268_v27 = vmul.f32 %v263_v54, %v241_v23  ;;  %v243_v28 = vpop.f32.mrb[7].mxu0 }
 0x1fc   :  { %v468_v30 = vsel %vm460_vm6, %v456_v18, %v464_v22  ;;  %v457_v31 = vadd.f32 %v453_v24, %v282_v17 }
 0x1fd   :  { %v303_v32 = vsel %vm295_vm7, %v291_v20, %v299_v26  ;;  %489 = vst.msk [vmem:[%s819_s4 + $0x28] sm:$0xff] %vm147_vm2, %v468_v30  ;;  %v292_v33 = vadd.f32 %v287_v29, %v268_v27  ;;  %v447_v34 = vpop.f32.mrb[6].mxu1 }
 0x1fe   :  { %307 = vst.msk [vmem:[%s819_s4 + $0x10] sm:$0xff] %vm147_vm2, %v303_v32  ;;  %vm461_vm8 = vcmp.ge.f32.partialorder %v457_v31, 0.0  ;;  %v465_v35 = vmul.f32 0.01, %v457_v31  ;;  %v454_v36 = vmul.f32 %v447_v34, %v263_v54  ;;  %v449_v37 = vpop.f32.mrb[7].mxu1 }
 0x1ff   :  { %vm296_vm9 = vcmp.ge.f32.partialorder %v292_v33, 0.0  ;;  %v300_v38 = vmul.f32 0.01, %v292_v33 }
 0x200   :  { %v469_v39 = vsel %vm461_vm8, %v457_v31, %v465_v35  ;;  %v458_v40 = vadd.f32 %v454_v36, %v287_v29 }
 0x201   :  { %v304_v41 = vsel %vm296_vm9, %v292_v33, %v300_v38  ;;  %490 = vst.msk [vmem:[%s819_s4 + $0x30] sm:$0xff] %vm147_vm2, %v469_v39 }
 0x202   :  { %308 = vst.msk [vmem:[%s819_s4 + $0x18] sm:$0xff] %vm147_vm2, %v304_v41  ;;  %vm462_vm10 = vcmp.ge.f32.partialorder %v458_v40, 0.0  ;;  %v466_v42 = vmul.f32 0.01, %v458_v40 }
 0x204   :  { %v470_v43 = vsel %vm462_vm10, %v458_v40, %v466_v42 }
 0x205   :  { %491 = vst.msk [vmem:[%s819_s4 + $0x38] sm:$0xff] %vm147_vm2, %v470_v43 }

// kernel: forward.8
= control target key start
LH: loop header
LB: loop body
LE: loop exit
PB: predicated region body
PF: predicated region fallthrough
CT: control target
= control target key end

     0   :  { %v4831_v3 = vmov 0.0   ;;  %s4832_s14 = smov 64   ;;  %vm140_vm0 = vcmask 254976   ;;  %vm143_vm1 = vcmask 517376   ;;  %vm39_vm2 = vcmask 523264   ;;  %s5648_s1 = inlined_call_operand.vmem [shape: f32[64,256], index: 1, kind: input, shape index: {}]   ;;  %s5649_s0 = inlined_call_operand.vmem [shape: f32[32,2,256], index: 0, kind: input, shape index: {}]   ;;  %s5650_s2 = inlined_call_operand.vmem [shape: f32[32,2,64], index: 2, kind: output, shape index: {}]  }
   0x1   :  { %v12_v0 = vld [vmem:[%s5648_s1 + $0x8] sm:$0xff]  ;;  %v14_v1 = vld [vmem:[%s5648_s1 + $0x18] sm:$0xff]  ;;  %v11_v2 = vld [vmem:[%s5648_s1] sm:$0xff]  ;;  %107 = vmatprep.mubr.f32.mxu0 %v4831_v3  ;;  %224 = vmatprep.mubr.f32.mxu1 %v4831_v3 }
   0x2   :  { %v4859_v4 = vpack.c.bf16 %v14_v1, %v12_v0  ;;  %v13_v5 = vld [vmem:[%s5648_s1 + $0x10] sm:$0xff]  ;;  %v16_v6 = vld [vmem:[%s5648_s1 + $0x28] sm:$0xff]  ;;  %v18_v7 = vld [vmem:[%s5648_s1 + $0x38] sm:$0xff] }
   0x3   :  { %v4870_v8 = vpack.c.bf16 %v13_v5, %v11_v2  ;;  %v4872_v9 = vpack.c.bf16 %v18_v7, %v16_v6  ;;  %v15_v10 = vld [vmem:[%s5648_s1 + $0x20] sm:$0xff]  ;;  %v17_v11 = vld [vmem:[%s5648_s1 + $0x30] sm:$0xff]  ;;  %v20_v12 = vld [vmem:[%s5648_s1 + $0x48] sm:$0xff] }
   0x4   :  { %3934 = vmatprep.subr.bf16.mxu0 %v4859_v4  ;;  %v22_v13 = vld [vmem:[%s5648_s1 + $0x58] sm:$0xff]  ;;  %3950 = vmatprep.subr.bf16.mxu1 %v4859_v4  ;;  %v4889_v14 = vpack.c.bf16 %v17_v11, %v15_v10  ;;  %v19_v16 = vld [vmem:[%s5648_s1 + $0x40] sm:$0xff]  ;;  %v21_v17 = vld [vmem:[%s5648_s1 + $0x50] sm:$0xff] }
   0x5   :  { %3936 = vmatpush1.bf16.msra.mxu0 %v4870_v8  ;;  %3952 = vmatpush1.bf16.msra.mxu1 %v4870_v8  ;;  %v4893_v15 = vpack.c.bf16 %v22_v13, %v20_v12  ;;  %v24_v18 = vld [vmem:[%s5648_s1 + $0x68] sm:$0xff]  ;;  %v26_v19 = vld [vmem:[%s5648_s1 + $0x78] sm:$0xff]  ;;  %v4909_v20 = vpack.c.bf16 %v21_v17, %v19_v16  ;;  %v23_v22 = vld [vmem:[%s5648_s1 + $0x60] sm:$0xff] }
   0x6   :  { %3938 = vmatprep.subr.bf16.mxu0 %v4872_v9  ;;  %3954 = vmatprep.subr.bf16.mxu1 %v4872_v9  ;;  %v4913_v21 = vpack.c.bf16 %v26_v19, %v24_v18  ;;  %v25_v23 = vld [vmem:[%s5648_s1 + $0x70] sm:$0xff]  ;;  %v3713_v25 = vld.sshfl [vmem:[%s5649_s0] sm:$0x33 pattern:$0x76325410] }
   0x7   :  { %v4923_v24 = vpack.c.bf16 %v25_v23, %v23_v22  ;;  %v36_v30 = vcombine.high %v3713_v25, %v3713_v25  ;;  %v3718_v47 = vld.sshfl [vmem:[%s5649_s0 + $0x4] sm:$0x33 pattern:$0x76325410] }
   0x8   :  { %v155_v52 = vcombine.high %v3718_v47, %v3718_v47  ;;  %v3725_v7 = vld.sshfl [vmem:[%s5649_s0 + $0x8] sm:$0x33 pattern:$0x76325410] }
   0x9   :  { %3940 = vmatpush1.bf16.msra.mxu0 %v4889_v14  ;;  %3956 = vmatpush1.bf16.msra.mxu1 %v4889_v14  ;;  %v271_v16 = vcombine.high %v3725_v7, %v3725_v7 }
   0xa   :  { %3942 = vmatprep.subr.bf16.mxu0 %v4893_v15  ;;  %3958 = vmatprep.subr.bf16.mxu1 %v4893_v15 }
   0xd   :  { %3944 = vmatpush1.bf16.msra.mxu0 %v4909_v20  ;;  %3960 = vmatpush1.bf16.msra.mxu1 %v4909_v20 }
   0xe   :  { %3946 = vmatprep.subr.bf16.mxu0 %v4913_v21  ;;  %3962 = vmatprep.subr.bf16.mxu1 %v4913_v21 }
  0x11   :  { %3948 = vmatpush1.bf16.msra.mxu0 %v4923_v24  ;;  %3964 = vmatpush1.bf16.msra.mxu1 %v4923_v24 }
  0x12   :  { %3966 = vmatprep.subr.bf16.mxu0 %v4859_v4  ;;  %3982 = vmatprep.subr.bf16.mxu1 %v4859_v4 }
  0x14   :  { %108 = vmatmul.mubr.f32.vlgmr.msra.gmra.mrb[0].mxu0 %v4831_v3 }
  0x15   :  { %3968 = vmatpush1.bf16.msra.mxu0 %v4870_v8  ;;  %340 = vmatprep.mubr.f32.mxu0 %v4831_v3 }
  0x16   :  { %3970 = vmatprep.subr.bf16.mxu0 %v4872_v9 }
  0x19   :  { %3972 = vmatpush1.bf16.msra.mxu0 %v4889_v14 }
  0x1a   :  { %3974 = vmatprep.subr.bf16.mxu0 %v4893_v15 }
  0x1d   :  { %3976 = vmatpush1.bf16.msra.mxu0 %v4909_v20 }
  0x1e   :  { %3978 = vmatprep.subr.bf16.mxu0 %v4913_v21 }
  0x21   :  { %3980 = vmatpush1.bf16.msra.mxu0 %v4923_v24 }
  0x22   :  { %3998 = vmatprep.subr.bf16.mxu0 %v4859_v4 }
  0xe7   :  { %v109_v26 = vpop.f32.mrb[0].mxu0 }
  0xe8   :  { %v110_v27 = vadd.f32 %v3713_v25, %v109_v26  ;;  %v111_v28 = vpop.f32.mrb[1].mxu0 }
  0xe9   :  { %v112_v31 = vadd.f32 %v111_v28, %v36_v30 }
  0xea   :  { %v3714_v29 = vmul.f32 -1.442695, %v110_v27 }
  0xeb   :  { %v3715_v37 = vmul.f32 -1.442695, %v112_v31 }
  0xec   :  { %4447 = vpow2.f32 %v3714_v29 }
  0xed   :  { %4449 = vtanh.f32 %v112_v31 }
  0xf6   :  { %v4448_v32 = vpop.eup %4447 }
  0xf7   :  { %v117_v33 = vadd.f32 1.0, %v4448_v32  ;;  %v4450_v34 = vpop.eup %4449 }
  0xf9   :  { %4451 = vrcp.f32 %v117_v33 }
  0xfa   :  { %4453 = vpow2.f32 %v3715_v37 }
 0x103   :  { %v4452_v35 = vpop.eup %4451 }
 0x104   :  { %v128_v36 = vmul.f32 %v4452_v35, %v4450_v34  ;;  %v4454_v38 = vpop.eup %4453  ;;  %v127_v40 = vmul.f32 0.0, %v4452_v35 }
 0x105   :  { %v124_v39 = vadd.f32 1.0, %v4454_v38 }
 0x106   :  { %130 = vrot.lane.b32.xlu0 %v128_v36, %s4832_s14  ;;  %v3732_v36 = vld.sshfl [vmem:[%s5649_s0 + $0xc] sm:$0x33 pattern:$0x76325410] }
 0x107   :  { %4455 = vrcp.f32 %v124_v39 }
 0x111   :  { %v4456_v43 = vpop.eup %4455 }
 0x178   :  { %v131_v41 = vpop.permute.xlu0 %130 }
 0x179   :  { %v133_v42 = vadd.f32 %v131_v41, %v127_v40  ;;  %v387_v41 = vcombine.high %v3732_v36, %v3732_v36 }
 0x17b   :  { %4457 = vtanh.f32 %v133_v42 }
 0x185   :  { %v4458_v44 = vpop.eup %4457 }
 0x186   :  { %v135_v45 = vmul.f32 %v4458_v44, %v4456_v43 }
 0x188   :  { %137 = vrot.lane.b32.xlu0 %v135_v45, %s4832_s14 }
 0x1fa   :  { %v138_v46 = vpop.permute.xlu0 %137 }
 0x1fb   :  { %141 = vst.msk [vmem:[%s5650_s2] sm:$0x3] %vm140_vm0, %v138_v46  ;;  %3719 = vmatmul.mubr.msk.f32.vlgmr.msra.gmra.mrb[0].mxu1 %vm39_vm2, %v138_v46 }
 0x1fc   :  { %3716 = vst.msk [vmem:[%s5650_s2 + $0x3e] sm:$0x3] %vm143_vm1, %v138_v46  ;;  %3984 = vmatpush1.bf16.msra.mxu1 %v4870_v8  ;;  %456 = vmatprep.mubr.f32.mxu1 %v4831_v3 }
 0x1fd   :  { %3986 = vmatprep.subr.bf16.mxu1 %v4872_v9 }
 0x200   :  { %3988 = vmatpush1.bf16.msra.mxu1 %v4889_v14 }
 0x201   :  { %3990 = vmatprep.subr.bf16.mxu1 %v4893_v15 }
 0x204   :  { %3992 = vmatpush1.bf16.msra.mxu1 %v4909_v20 }
 0x205   :  { %3994 = vmatprep.subr.bf16.mxu1 %v4913_v21 }
 0x208   :  { %3996 = vmatpush1.bf16.msra.mxu1 %v4923_v24 }
 0x209   :  { %4014 = vmatprep.subr.bf16.mxu1 %v4859_v4 }
 0x2ce   :  { %v226_v48 = vpop.f32.mrb[0].mxu1 }
 0x2cf   :  { %v227_v49 = vadd.f32 %v3718_v47, %v226_v48  ;;  %v228_v50 = vpop.f32.mrb[1].mxu1 }
 0x2d0   :  { %v229_v53 = vadd.f32 %v228_v50, %v155_v52 }
 0x2d1   :  { %v3720_v51 = vmul.f32 -1.442695, %v227_v49 }
 0x2d2   :  { %v3721_v59 = vmul.f32 -1.442695, %v229_v53 }
 0x2d3   :  { %4459 = vpow2.f32 %v3720_v51 }
 0x2d4   :  { %4461 = vtanh.f32 %v229_v53 }
 0x2dd   :  { %v4460_v54 = vpop.eup %4459 }
 0x2de   :  { %v234_v55 = vadd.f32 1.0, %v4460_v54  ;;  %v4462_v56 = vpop.eup %4461 }
 0x2e0   :  { %4463 = vrcp.f32 %v234_v55 }
 0x2e1   :  { %4465 = vpow2.f32 %v3721_v59 }
 0x2ea   :  { %v4464_v57 = vpop.eup %4463 }
 0x2eb   :  { %v245_v58 = vmul.f32 %v4464_v57, %v4462_v56  ;;  %v4466_v60 = vpop.eup %4465  ;;  %v244_v62 = vmul.f32 %v4464_v57, %v133_v42 }
 0x2ec   :  { %v241_v61 = vadd.f32 1.0, %v4466_v60 }
 0x2ed   :  { %247 = vrot.lane.b32.xlu1 %v245_v58, %s4832_s14  ;;  %v3739_v58 = vld.sshfl [vmem:[%s5649_s0 + $0x10] sm:$0x33 pattern:$0x76325410] }
 0x2ee   :  { %4467 = vrcp.f32 %v241_v61 }
 0x2f8   :  { %v4468_v1 = vpop.eup %4467 }
 0x35f   :  { %v248_v63 = vpop.permute.xlu1 %247 }
 0x360   :  { %v250_v0 = vadd.f32 %v248_v63, %v244_v62  ;;  %v503_v63 = vcombine.high %v3739_v58, %v3739_v58 }
 0x362   :  { %4469 = vtanh.f32 %v250_v0 }
 0x36c   :  { %v4470_v2 = vpop.eup %4469 }
 0x36d   :  { %v252_v5 = vmul.f32 %v4470_v2, %v4468_v1 }
 0x36f   :  { %254 = vrot.lane.b32.xlu1 %v252_v5, %s4832_s14 }
 0x3e1   :  { %v255_v6 = vpop.permute.xlu1 %254 }
 0x3e2   :  { %3722 = vst.msk [vmem:[%s5650_s2 + $0x2] sm:$0x3] %vm140_vm0, %v255_v6  ;;  %3726 = vmatmul.mubr.msk.f32.vlgmr.msra.gmra.mrb[2].mxu0 %vm39_vm2, %v255_v6 }
 0x3e3   :  { %3723 = vst.msk [vmem:[%s5650_s2 + $0x3c] sm:$0x3] %vm143_vm1, %v255_v6  ;;  %4000 = vmatpush1.bf16.msra.mxu0 %v4870_v8  ;;  %572 = vmatprep.mubr.f32.mxu0 %v4831_v3 }
 0x3e4   :  { %4002 = vmatprep.subr.bf16.mxu0 %v4872_v9 }
 0x3e7   :  { %4004 = vmatpush1.bf16.msra.mxu0 %v4889_v14 }
 0x3e8   :  { %4006 = vmatprep.subr.bf16.mxu0 %v4893_v15 }
 0x3eb   :  { %4008 = vmatpush1.bf16.msra.mxu0 %v4909_v20 }
 0x3ec   :  { %4010 = vmatprep.subr.bf16.mxu0 %v4913_v21 }
 0x3ef   :  { %4012 = vmatpush1.bf16.msra.mxu0 %v4923_v24 }
 0x3f0   :  { %4030 = vmatprep.subr.bf16.mxu0 %v4859_v4 }
 0x4b5   :  { %v342_v10 = vpop.f32.mrb[2].mxu0 }
 0x4b6   :  { %v343_v11 = vadd.f32 %v3725_v7, %v342_v10  ;;  %v344_v12 = vpop.f32.mrb[3].mxu0 }
 0x4b7   :  { %v345_v17 = vadd.f32 %v344_v12, %v271_v16 }
 0x4b8   :  { %v3727_v13 = vmul.f32 -1.442695, %v343_v11 }
 0x4b9   :  { %v3728_v26 = vmul.f32 -1.442695, %v345_v17 }
 0x4ba   :  { %4471 = vpow2.f32 %v3727_v13 }
 0x4bb   :  { %4473 = vtanh.f32 %v345_v17 }
 0x4c4   :  { %v4472_v18 = vpop.eup %4471 }
 0x4c5   :  { %v350_v19 = vadd.f32 1.0, %v4472_v18  ;;  %v4474_v22 = vpop.eup %4473 }
 0x4c7   :  { %4475 = vrcp.f32 %v350_v19 }
 0x4c8   :  { %4477 = vpow2.f32 %v3728_v26 }
 0x4d1   :  { %v4476_v23 = vpop.eup %4475 }
 0x4d2   :  { %v361_v25 = vmul.f32 %v4476_v23, %v4474_v22  ;;  %v4478_v27 = vpop.eup %4477  ;;  %v360_v29 = vmul.f32 %v4476_v23, %v250_v0 }
 0x4d3   :  { %v357_v28 = vadd.f32 1.0, %v4478_v27 }
 0x4d4   :  { %363 = vrot.lane.b32.xlu0 %v361_v25, %s4832_s14  ;;  %v3746_v25 = vld.sshfl [vmem:[%s5649_s0 + $0x14] sm:$0x33 pattern:$0x76325410] }
 0x4d5   :  { %4479 = vrcp.f32 %v357_v28 }
 0x4df   :  { %v4480_v32 = vpop.eup %4479 }
 0x546   :  { %v364_v30 = vpop.permute.xlu0 %363 }
 0x547   :  { %v366_v31 = vadd.f32 %v364_v30, %v360_v29  ;;  %v619_v30 = vcombine.high %v3746_v25, %v3746_v25 }
 0x549   :  { %4481 = vtanh.f32 %v366_v31 }
 0x553   :  { %v4482_v33 = vpop.eup %4481 }
 0x554   :  { %v368_v34 = vmul.f32 %v4482_v33, %v4480_v32 }
 0x556   :  { %370 = vrot.lane.b32.xlu1 %v368_v34, %s4832_s14 }
 0x5c8   :  { %v371_v35 = vpop.permute.xlu1 %370 }
 0x5c9   :  { %3729 = vst.msk [vmem:[%s5650_s2 + $0x4] sm:$0x3] %vm140_vm0, %v371_v35  ;;  %3733 = vmatmul.mubr.msk.f32.vlgmr.msra.gmra.mrb[2].mxu1 %vm39_vm2, %v371_v35 }
 0x5ca   :  { %3730 = vst.msk [vmem:[%s5650_s2 + $0x3a] sm:$0x3] %vm143_vm1, %v371_v35  ;;  %4016 = vmatpush1.bf16.msra.mxu1 %v4870_v8  ;;  %688 = vmatprep.mubr.f32.mxu1 %v4831_v3 }
 0x5cb   :  { %4018 = vmatprep.subr.bf16.mxu1 %v4872_v9 }
 0x5ce   :  { %4020 = vmatpush1.bf16.msra.mxu1 %v4889_v14 }
 0x5cf   :  { %4022 = vmatprep.subr.bf16.mxu1 %v4893_v15 }
 0x5d2   :  { %4024 = vmatpush1.bf16.msra.mxu1 %v4909_v20 }
 0x5d3   :  { %4026 = vmatprep.subr.bf16.mxu1 %v4913_v21 }
 0x5d6   :  { %4028 = vmatpush1.bf16.msra.mxu1 %v4923_v24 }
 0x5d7   :  { %4046 = vmatprep.subr.bf16.mxu1 %v4859_v4 }
 0x69c   :  { %v458_v37 = vpop.f32.mrb[2].mxu1 }
 0x69d   :  { %v459_v38 = vadd.f32 %v3732_v36, %v458_v37  ;;  %v460_v39 = vpop.f32.mrb[3].mxu1 }
 0x69e   :  { %v461_v42 = vadd.f32 %v460_v39, %v387_v41 }
 0x69f   :  { %v3734_v40 = vmul.f32 -1.442695, %v459_v38 }
 0x6a0   :  { %v3735_v48 = vmul.f32 -1.442695, %v461_v42 }
 0x6a1   :  { %4483 = vpow2.f32 %v3734_v40 }
 0x6a2   :  { %4485 = vtanh.f32 %v461_v42 }
 0x6ab   :  { %v4484_v43 = vpop.eup %4483 }
 0x6ac   :  { %v466_v44 = vadd.f32 1.0, %v4484_v43  ;;  %v4486_v45 = vpop.eup %4485 }
 0x6ae   :  { %4487 = vrcp.f32 %v466_v44 }
 0x6af   :  { %4489 = vpow2.f32 %v3735_v48 }
 0x6b8   :  { %v4488_v46 = vpop.eup %4487 }
 0x6b9   :  { %v477_v47 = vmul.f32 %v4488_v46, %v4486_v45  ;;  %v4490_v49 = vpop.eup %4489  ;;  %v476_v51 = vmul.f32 %v4488_v46, %v366_v31 }
 0x6ba   :  { %v473_v50 = vadd.f32 1.0, %v4490_v49 }
 0x6bb   :  { %479 = vrot.lane.b32.xlu0 %v477_v47, %s4832_s14  ;;  %v3753_v47 = vld.sshfl [vmem:[%s5649_s0 + $0x18] sm:$0x33 pattern:$0x76325410] }
 0x6bc   :  { %4491 = vrcp.f32 %v473_v50 }
 0x6c6   :  { %v4492_v54 = vpop.eup %4491 }
 0x72d   :  { %v480_v52 = vpop.permute.xlu0 %479 }
 0x72e   :  { %v482_v53 = vadd.f32 %v480_v52, %v476_v51  ;;  %v735_v52 = vcombine.high %v3753_v47, %v3753_v47 }
 0x730   :  { %4493 = vtanh.f32 %v482_v53 }
 0x73a   :  { %v4494_v55 = vpop.eup %4493 }
 0x73b   :  { %v484_v56 = vmul.f32 %v4494_v55, %v4492_v54 }
 0x73d   :  { %486 = vrot.lane.b32.xlu1 %v484_v56, %s4832_s14 }
 0x7af   :  { %v487_v57 = vpop.permute.xlu1 %486 }
 0x7b0   :  { %3736 = vst.msk [vmem:[%s5650_s2 + $0x6] sm:$0x3] %vm140_vm0, %v487_v57  ;;  %3740 = vmatmul.mubr.msk.f32.vlgmr.msra.gmra.mrb[4].mxu0 %vm39_vm2, %v487_v57 }
 0x7b1   :  { %3737 = vst.msk [vmem:[%s5650_s2 + $0x38] sm:$0x3] %vm143_vm1, %v487_v57  ;;  %4032 = vmatpush1.bf16.msra.mxu0 %v4870_v8  ;;  %804 = vmatprep.mubr.f32.mxu0 %v4831_v3 }
 0x7b2   :  { %4034 = vmatprep.subr.bf16.mxu0 %v4872_v9 }
 0x7b5   :  { %4036 = vmatpush1.bf16.msra.mxu0 %v4889_v14 }
 0x7b6   :  { %4038 = vmatprep.subr.bf16.mxu0 %v4893_v15 }
 0x7b9   :  { %4040 = vmatpush1.bf16.msra.mxu0 %v4909_v20 }
 0x7ba   :  { %4042 = vmatprep.subr.bf16.mxu0 %v4913_v21 }
 0x7bd   :  { %4044 = vmatpush1.bf16.msra.mxu0 %v4923_v24 }
 0x7be   :  { %4062 = vmatprep.subr.bf16.mxu0 %v4859_v4 }
 0x883   :  { %v574_v59 = vpop.f32.mrb[4].mxu0 }
 0x884   :  { %v575_v60 = vadd.f32 %v3739_v58, %v574_v59  ;;  %v576_v61 = vpop.f32.mrb[5].mxu0 }
 0x885   :  { %v577_v0 = vadd.f32 %v576_v61, %v503_v63 }
 0x886   :  { %v3741_v62 = vmul.f32 -1.442695, %v575_v60 }
 0x887   :  { %v3742_v10 = vmul.f32 -1.442695, %v577_v0 }
 0x888   :  { %4495 = vpow2.f32 %v3741_v62 }
 0x889   :  { %4497 = vtanh.f32 %v577_v0 }
 0x892   :  { %v4496_v1 = vpop.eup %4495 }
 0x893   :  { %v582_v2 = vadd.f32 1.0, %v4496_v1  ;;  %v4498_v5 = vpop.eup %4497 }
 0x895   :  { %4499 = vrcp.f32 %v582_v2 }
 0x896   :  { %4501 = vpow2.f32 %v3742_v10 }
 0x89f   :  { %v4500_v6 = vpop.eup %4499 }
 0x8a0   :  { %v593_v7 = vmul.f32 %v4500_v6, %v4498_v5  ;;  %v4502_v11 = vpop.eup %4501  ;;  %v592_v13 = vmul.f32 %v4500_v6, %v482_v53 }
 0x8a1   :  { %v589_v12 = vadd.f32 1.0, %v4502_v11 }
 0x8a2   :  { %595 = vrot.lane.b32.xlu0 %v593_v7, %s4832_s14  ;;  %v3760_v7 = vld.sshfl [vmem:[%s5649_s0 + $0x1c] sm:$0x33 pattern:$0x76325410] }
 0x8a3   :  { %4503 = vrcp.f32 %v589_v12 }
 0x8ad   :  { %v4504_v18 = vpop.eup %4503 }
 0x914   :  { %v596_v16 = vpop.permute.xlu0 %595 }
 0x915   :  { %v598_v17 = vadd.f32 %v596_v16, %v592_v13  ;;  %v851_v16 = vcombine.high %v3760_v7, %v3760_v7 }
 0x917   :  { %4505 = vtanh.f32 %v598_v17 }
 0x921   :  { %v4506_v19 = vpop.eup %4505 }
 0x922   :  { %v600_v22 = vmul.f32 %v4506_v19, %v4504_v18 }
 0x924   :  { %602 = vrot.lane.b32.xlu1 %v600_v22, %s4832_s14 }
 0x996   :  { %v603_v23 = vpop.permute.xlu1 %602 }
 0x997   :  { %3743 = vst.msk [vmem:[%s5650_s2 + $0x8] sm:$0x3] %vm140_vm0, %v603_v23  ;;  %3747 = vmatmul.mubr.msk.f32.vlgmr.msra.gmra.mrb[4].mxu1 %vm39_vm2, %v603_v23 }
 0x998   :  { %3744 = vst.msk [vmem:[%s5650_s2 + $0x36] sm:$0x3] %vm143_vm1, %v603_v23  ;;  %4048 = vmatpush1.bf16.msra.mxu1 %v4870_v8  ;;  %920 = vmatprep.mubr.f32.mxu1 %v4831_v3 }
 0x999   :  { %4050 = vmatprep.subr.bf16.mxu1 %v4872_v9 }
 0x99c   :  { %4052 = vmatpush1.bf16.msra.mxu1 %v4889_v14 }
 0x99d   :  { %4054 = vmatprep.subr.bf16.mxu1 %v4893_v15 }
 0x9a0   :  { %4056 = vmatpush1.bf16.msra.mxu1 %v4909_v20 }
 0x9a1   :  { %4058 = vmatprep.subr.bf16.mxu1 %v4913_v21 }
 0x9a4   :  { %4060 = vmatpush1.bf16.msra.mxu1 %v4923_v24 }
 0x9a5   :  { %4078 = vmatprep.subr.bf16.mxu1 %v4859_v4 }
 0xa6a   :  { %v690_v26 = vpop.f32.mrb[4].mxu1 }
 0xa6b   :  { %v691_v27 = vadd.f32 %v3746_v25, %v690_v26  ;;  %v692_v28 = vpop.f32.mrb[5].mxu1 }
 0xa6c   :  { %v693_v31 = vadd.f32 %v692_v28, %v619_v30 }
 0xa6d   :  { %v3748_v29 = vmul.f32 -1.442695, %v691_v27 }
 0xa6e   :  { %v3749_v37 = vmul.f32 -1.442695, %v693_v31 }
 0xa6f   :  { %4507 = vpow2.f32 %v3748_v29 }
 0xa70   :  { %4509 = vtanh.f32 %v693_v31 }
 0xa79   :  { %v4508_v32 = vpop.eup %4507 }
 0xa7a   :  { %v698_v33 = vadd.f32 1.0, %v4508_v32  ;;  %v4510_v34 = vpop.eup %4509 }
 0xa7c   :  { %4511 = vrcp.f32 %v698_v33 }
 0xa7d   :  { %4513 = vpow2.f32 %v3749_v37 }
 0xa86   :  { %v4512_v35 = vpop.eup %4511 }
 0xa87   :  { %v709_v36 = vmul.f32 %v4512_v35, %v4510_v34  ;;  %v4514_v38 = vpop.eup %4513  ;;  %v708_v40 = vmul.f32 %v4512_v35, %v598_v17 }
 0xa88   :  { %v705_v39 = vadd.f32 1.0, %v4514_v38 }
 0xa89   :  { %711 = vrot.lane.b32.xlu0 %v709_v36, %s4832_s14  ;;  %v3767_v36 = vld.sshfl [vmem:[%s5649_s0 + $0x20] sm:$0x33 pattern:$0x76325410] }
 0xa8a   :  { %4515 = vrcp.f32 %v705_v39 }
 0xa94   :  { %v4516_v43 = vpop.eup %4515 }
 0xafb   :  { %v712_v41 = vpop.permute.xlu0 %711 }
 0xafc   :  { %v714_v42 = vadd.f32 %v712_v41, %v708_v40  ;;  %v967_v41 = vcombine.high %v3767_v36, %v3767_v36 }
 0xafe   :  { %4517 = vtanh.f32 %v714_v42 }
 0xb08   :  { %v4518_v44 = vpop.eup %4517 }
 0xb09   :  { %v716_v45 = vmul.f32 %v4518_v44, %v4516_v43 }
 0xb0b   :  { %718 = vrot.lane.b32.xlu1 %v716_v45, %s4832_s14 }
 0xb7d   :  { %v719_v46 = vpop.permute.xlu1 %718 }
 0xb7e   :  { %3750 = vst.msk [vmem:[%s5650_s2 + $0xa] sm:$0x3] %vm140_vm0, %v719_v46  ;;  %3754 = vmatmul.mubr.msk.f32.vlgmr.msra.gmra.mrb[6].mxu0 %vm39_vm2, %v719_v46 }
 0xb7f   :  { %3751 = vst.msk [vmem:[%s5650_s2 + $0x34] sm:$0x3] %vm143_vm1, %v719_v46  ;;  %4064 = vmatpush1.bf16.msra.mxu0 %v4870_v8  ;;  %1036 = vmatprep.mubr.f32.mxu0 %v4831_v3 }
 0xb80   :  { %4066 = vmatprep.subr.bf16.mxu0 %v4872_v9 }
 0xb83   :  { %4068 = vmatpush1.bf16.msra.mxu0 %v4889_v14 }
 0xb84   :  { %4070 = vmatprep.subr.bf16.mxu0 %v4893_v15 }
 0xb87   :  { %4072 = vmatpush1.bf16.msra.mxu0 %v4909_v20 }
 0xb88   :  { %4074 = vmatprep.subr.bf16.mxu0 %v4913_v21 }
 0xb8b   :  { %4076 = vmatpush1.bf16.msra.mxu0 %v4923_v24 }
 0xb8c   :  { %4094 = vmatprep.subr.bf16.mxu0 %v4859_v4 }
 0xc51   :  { %v806_v48 = vpop.f32.mrb[6].mxu0 }
 0xc52   :  { %v807_v49 = vadd.f32 %v3753_v47, %v806_v48  ;;  %v808_v50 = vpop.f32.mrb[7].mxu0 }
 0xc53   :  { %v809_v53 = vadd.f32 %v808_v50, %v735_v52 }
 0xc54   :  { %v3755_v51 = vmul.f32 -1.442695, %v807_v49 }
 0xc55   :  { %v3756_v59 = vmul.f32 -1.442695, %v809_v53 }
 0xc56   :  { %4519 = vpow2.f32 %v3755_v51 }
 0xc57   :  { %4521 = vtanh.f32 %v809_v53 }
 0xc60   :  { %v4520_v54 = vpop.eup %4519 }
 0xc61   :  { %v814_v55 = vadd.f32 1.0, %v4520_v54  ;;  %v4522_v56 = vpop.eup %4521 }
 0xc63   :  { %4523 = vrcp.f32 %v814_v55 }
 0xc64   :  { %4525 = vpow2.f32 %v3756_v59 }
 0xc6d   :  { %v4524_v57 = vpop.eup %4523 }
 0xc6e   :  { %v825_v58 = vmul.f32 %v4524_v57, %v4522_v56  ;;  %v4526_v60 = vpop.eup %4525  ;;  %v824_v62 = vmul.f32 %v4524_v57, %v714_v42 }
 0xc6f   :  { %v821_v61 = vadd.f32 1.0, %v4526_v60 }
 0xc70   :  { %827 = vrot.lane.b32.xlu0 %v825_v58, %s4832_s14  ;;  %v3774_v58 = vld.sshfl [vmem:[%s5649_s0 + $0x24] sm:$0x33 pattern:$0x76325410] }
 0xc71   :  { %4527 = vrcp.f32 %v821_v61 }
 0xc7b   :  { %v4528_v1 = vpop.eup %4527 }
 0xce2   :  { %v828_v63 = vpop.permute.xlu0 %827 }
 0xce3   :  { %v830_v0 = vadd.f32 %v828_v63, %v824_v62  ;;  %v1083_v63 = vcombine.high %v3774_v58, %v3774_v58 }
 0xce5   :  { %4529 = vtanh.f32 %v830_v0 }
 0xcef   :  { %v4530_v2 = vpop.eup %4529 }
 0xcf0   :  { %v832_v5 = vmul.f32 %v4530_v2, %v4528_v1 }
 0xcf2   :  { %834 = vrot.lane.b32.xlu1 %v832_v5, %s4832_s14 }
 0xd64   :  { %v835_v6 = vpop.permute.xlu1 %834 }
 0xd65   :  { %3757 = vst.msk [vmem:[%s5650_s2 + $0xc] sm:$0x3] %vm140_vm0, %v835_v6  ;;  %3761 = vmatmul.mubr.msk.f32.vlgmr.msra.gmra.mrb[6].mxu1 %vm39_vm2, %v835_v6 }
 0xd66   :  { %3758 = vst.msk [vmem:[%s5650_s2 + $0x32] sm:$0x3] %vm143_vm1, %v835_v6  ;;  %4080 = vmatpush1.bf16.msra.mxu1 %v4870_v8  ;;  %1152 = vmatprep.mubr.f32.mxu1 %v4831_v3 }
 0xd67   :  { %4082 = vmatprep.subr.bf16.mxu1 %v4872_v9 }
 0xd6a   :  { %4084 = vmatpush1.bf16.msra.mxu1 %v4889_v14 }
 0xd6b   :  { %4086 = vmatprep.subr.bf16.mxu1 %v4893_v15 }
 0xd6e   :  { %4088 = vmatpush1.bf16.msra.mxu1 %v4909_v20 }
 0xd6f   :  { %4090 = vmatprep.subr.bf16.mxu1 %v4913_v21 }
 0xd72   :  { %4092 = vmatpush1.bf16.msra.mxu1 %v4923_v24 }
 0xd73   :  { %4110 = vmatprep.subr.bf16.mxu1 %v4859_v4 }
 0xe38   :  { %v922_v10 = vpop.f32.mrb[6].mxu1 }
 0xe39   :  { %v923_v11 = vadd.f32 %v3760_v7, %v922_v10  ;;  %v924_v12 = vpop.f32.mrb[7].mxu1 }
 0xe3a   :  { %v925_v17 = vadd.f32 %v924_v12, %v851_v16 }
 0xe3b   :  { %v3762_v13 = vmul.f32 -1.442695, %v923_v11 }
 0xe3c   :  { %v3763_v26 = vmul.f32 -1.442695, %v925_v17 }
 0xe3d   :  { %4531 = vpow2.f32 %v3762_v13 }
 0xe3e   :  { %4533 = vtanh.f32 %v925_v17 }
 0xe47   :  { %v4532_v18 = vpop.eup %4531 }
 0xe48   :  { %v930_v19 = vadd.f32 1.0, %v4532_v18  ;;  %v4534_v22 = vpop.eup %4533 }
 0xe4a   :  { %4535 = vrcp.f32 %v930_v19 }
 0xe4b   :  { %4537 = vpow2.f32 %v3763_v26 }
 0xe54   :  { %v4536_v23 = vpop.eup %4535 }
 0xe55   :  { %v941_v25 = vmul.f32 %v4536_v23, %v4534_v22  ;;  %v4538_v27 = vpop.eup %4537  ;;  %v940_v29 = vmul.f32 %v4536_v23, %v830_v0 }
 0xe56   :  { %v937_v28 = vadd.f32 1.0, %v4538_v27 }
 0xe57   :  { %943 = vrot.lane.b32.xlu0 %v941_v25, %s4832_s14  ;;  %v3781_v25 = vld.sshfl [vmem:[%s5649_s0 + $0x28] sm:$0x33 pattern:$0x76325410] }
 0xe58   :  { %4539 = vrcp.f32 %v937_v28 }
 0xe62   :  { %v4540_v32 = vpop.eup %4539 }
 0xec9   :  { %v944_v30 = vpop.permute.xlu0 %943 }
 0xeca   :  { %v946_v31 = vadd.f32 %v944_v30, %v940_v29  ;;  %v1199_v30 = vcombine.high %v3781_v25, %v3781_v25 }
 0xecc   :  { %4541 = vtanh.f32 %v946_v31 }
 0xed6   :  { %v4542_v33 = vpop.eup %4541 }
 0xed7   :  { %v948_v34 = vmul.f32 %v4542_v33, %v4540_v32 }
 0xed9   :  { %950 = vrot.lane.b32.xlu1 %v948_v34, %s4832_s14 }
 0xf4b   :  { %v951_v35 = vpop.permute.xlu1 %950 }
 0xf4c   :  { %3764 = vst.msk [vmem:[%s5650_s2 + $0xe] sm:$0x3] %vm140_vm0, %v951_v35  ;;  %3768 = vmatmul.mubr.msk.f32.vlgmr.msra.gmra.mrb[8].mxu0 %vm39_vm2, %v951_v35 }
 0xf4d   :  { %3765 = vst.msk [vmem:[%s5650_s2 + $0x30] sm:$0x3] %vm143_vm1, %v951_v35  ;;  %4096 = vmatpush1.bf16.msra.mxu0 %v4870_v8  ;;  %1268 = vmatprep.mubr.f32.mxu0 %v4831_v3 }
 0xf4e   :  { %4098 = vmatprep.subr.bf16.mxu0 %v4872_v9 }
 0xf51   :  { %4100 = vmatpush1.bf16.msra.mxu0 %v4889_v14 }
 0xf52   :  { %4102 = vmatprep.subr.bf16.mxu0 %v4893_v15 }
 0xf55   :  { %4104 = vmatpush1.bf16.msra.mxu0 %v4909_v20 }
 0xf56   :  { %4106 = vmatprep.subr.bf16.mxu0 %v4913_v21 }
 0xf59   :  { %4108 = vmatpush1.bf16.msra.mxu0 %v4923_v24 }
 0xf5a   :  { %4126 = vmatprep.subr.bf16.mxu0 %v4859_v4 }
0x101f   :  { %v1038_v37 = vpop.f32.mrb[8].mxu0 }
0x1020   :  { %v1039_v38 = vadd.f32 %v3767_v36, %v1038_v37  ;;  %v1040_v39 = vpop.f32.mrb[9].mxu0 }
0x1021   :  { %v1041_v42 = vadd.f32 %v1040_v39, %v967_v41 }
0x1022   :  { %v3769_v40 = vmul.f32 -1.442695, %v1039_v38 }
0x1023   :  { %v3770_v48 = vmul.f32 -1.442695, %v1041_v42 }
0x1024   :  { %4543 = vpow2.f32 %v3769_v40 }
0x1025   :  { %4545 = vtanh.f32 %v1041_v42 }
0x102e   :  { %v4544_v43 = vpop.eup %4543 }
0x102f   :  { %v1046_v44 = vadd.f32 1.0, %v4544_v43  ;;  %v4546_v45 = vpop.eup %4545 }
0x1031   :  { %4547 = vrcp.f32 %v1046_v44 }
0x1032   :  { %4549 = vpow2.f32 %v3770_v48 }
0x103b   :  { %v4548_v46 = vpop.eup %4547 }
0x103c   :  { %v1057_v47 = vmul.f32 %v4548_v46, %v4546_v45  ;;  %v4550_v49 = vpop.eup %4549  ;;  %v1056_v51 = vmul.f32 %v4548_v46, %v946_v31 }
0x103d   :  { %v1053_v50 = vadd.f32 1.0, %v4550_v49 }
0x103e   :  { %1059 = vrot.lane.b32.xlu0 %v1057_v47, %s4832_s14  ;;  %v3788_v47 = vld.sshfl [vmem:[%s5649_s0 + $0x2c] sm:$0x33 pattern:$0x76325410] }
0x103f   :  { %4551 = vrcp.f32 %v1053_v50 }
0x1049   :  { %v4552_v54 = vpop.eup %4551 }
0x10b0   :  { %v1060_v52 = vpop.permute.xlu0 %1059 }
0x10b1   :  { %v1062_v53 = vadd.f32 %v1060_v52, %v1056_v51  ;;  %v1315_v52 = vcombine.high %v3788_v47, %v3788_v47 }
0x10b3   :  { %4553 = vtanh.f32 %v1062_v53 }
0x10bd   :  { %v4554_v55 = vpop.eup %4553 }
0x10be   :  { %v1064_v56 = vmul.f32 %v4554_v55, %v4552_v54 }
0x10c0   :  { %1066 = vrot.lane.b32.xlu1 %v1064_v56, %s4832_s14 }
0x1132   :  { %v1067_v57 = vpop.permute.xlu1 %1066 }
0x1133   :  { %3771 = vst.msk [vmem:[%s5650_s2 + $0x10] sm:$0x3] %vm140_vm0, %v1067_v57  ;;  %3775 = vmatmul.mubr.msk.f32.vlgmr.msra.gmra.mrb[8].mxu1 %vm39_vm2, %v1067_v57 }
0x1134   :  { %3772 = vst.msk [vmem:[%s5650_s2 + $0x2e] sm:$0x3] %vm143_vm1, %v1067_v57  ;;  %4112 = vmatpush1.bf16.msra.mxu1 %v4870_v8  ;;  %1384 = vmatprep.mubr.f32.mxu1 %v4831_v3 }
0x1135   :  { %4114 = vmatprep.subr.bf16.mxu1 %v4872_v9 }
0x1138   :  { %4116 = vmatpush1.bf16.msra.mxu1 %v4889_v14 }
0x1139   :  { %4118 = vmatprep.subr.bf16.mxu1 %v4893_v15 }
0x113c   :  { %4120 = vmatpush1.bf16.msra.mxu1 %v4909_v20 }
0x113d   :  { %4122 = vmatprep.subr.bf16.mxu1 %v4913_v21 }
0x1140   :  { %4124 = vmatpush1.bf16.msra.mxu1 %v4923_v24 }
0x1141   :  { %4142 = vmatprep.subr.bf16.mxu1 %v4859_v4 }
0x1206   :  { %v1154_v59 = vpop.f32.mrb[8].mxu1 }
0x1207   :  { %v1155_v60 = vadd.f32 %v3774_v58, %v1154_v59  ;;  %v1156_v61 = vpop.f32.mrb[9].mxu1 }
0x1208   :  { %v1157_v0 = vadd.f32 %v1156_v61, %v1083_v63 }
0x1209   :  { %v3776_v62 = vmul.f32 -1.442695, %v1155_v60 }
0x120a   :  { %v3777_v10 = vmul.f32 -1.442695, %v1157_v0 }
0x120b   :  { %4555 = vpow2.f32 %v3776_v62 }
0x120c   :  { %4557 = vtanh.f32 %v1157_v0 }
0x1215   :  { %v4556_v1 = vpop.eup %4555 }
0x1216   :  { %v1162_v2 = vadd.f32 1.0, %v4556_v1  ;;  %v4558_v5 = vpop.eup %4557 }
0x1218   :  { %4559 = vrcp.f32 %v1162_v2 }
0x1219   :  { %4561 = vpow2.f32 %v3777_v10 }
0x1222   :  { %v4560_v6 = vpop.eup %4559 }
0x1223   :  { %v1173_v7 = vmul.f32 %v4560_v6, %v4558_v5  ;;  %v4562_v11 = vpop.eup %4561  ;;  %v1172_v13 = vmul.f32 %v4560_v6, %v1062_v53 }
0x1224   :  { %v1169_v12 = vadd.f32 1.0, %v4562_v11 }
0x1225   :  { %1175 = vrot.lane.b32.xlu0 %v1173_v7, %s4832_s14  ;;  %v3795_v7 = vld.sshfl [vmem:[%s5649_s0 + $0x30] sm:$0x33 pattern:$0x76325410] }
0x1226   :  { %4563 = vrcp.f32 %v1169_v12 }
0x1230   :  { %v4564_v18 = vpop.eup %4563 }
0x1297   :  { %v1176_v16 = vpop.permute.xlu0 %1175 }
0x1298   :  { %v1178_v17 = vadd.f32 %v1176_v16, %v1172_v13  ;;  %v1431_v16 = vcombine.high %v3795_v7, %v3795_v7 }
0x129a   :  { %4565 = vtanh.f32 %v1178_v17 }
0x12a4   :  { %v4566_v19 = vpop.eup %4565 }
0x12a5   :  { %v1180_v22 = vmul.f32 %v4566_v19, %v4564_v18 }
0x12a7   :  { %1182 = vrot.lane.b32.xlu1 %v1180_v22, %s4832_s14 }
0x1319   :  { %v1183_v23 = vpop.permute.xlu1 %1182 }
0x131a   :  { %3778 = vst.msk [vmem:[%s5650_s2 + $0x12] sm:$0x3] %vm140_vm0, %v1183_v23  ;;  %3782 = vmatmul.mubr.msk.f32.vlgmr.msra.gmra.mrb[10].mxu0 %vm39_vm2, %v1183_v23 }
0x131b   :  { %3779 = vst.msk [vmem:[%s5650_s2 + $0x2c] sm:$0x3] %vm143_vm1, %v1183_v23  ;;  %4128 = vmatpush1.bf16.msra.mxu0 %v4870_v8  ;;  %1500 = vmatprep.mubr.f32.mxu0 %v4831_v3 }
0x131c   :  { %4130 = vmatprep.subr.bf16.mxu0 %v4872_v9 }
0x131f   :  { %4132 = vmatpush1.bf16.msra.mxu0 %v4889_v14 }
0x1320   :  { %4134 = vmatprep.subr.bf16.mxu0 %v4893_v15 }
0x1323   :  { %4136 = vmatpush1.bf16.msra.mxu0 %v4909_v20 }
0x1324   :  { %4138 = vmatprep.subr.bf16.mxu0 %v4913_v21 }
0x1327   :  { %4140 = vmatpush1.bf16.msra.mxu0 %v4923_v24 }
0x1328   :  { %4158 = vmatprep.subr.bf16.mxu0 %v4859_v4 }
0x13ed   :  { %v1270_v26 = vpop.f32.mrb[10].mxu0 }
0x13ee   :  { %v1271_v27 = vadd.f32 %v3781_v25, %v1270_v26  ;;  %v1272_v28 = vpop.f32.mrb[11].mxu0 }
0x13ef   :  { %v1273_v31 = vadd.f32 %v1272_v28, %v1199_v30 }
0x13f0   :  { %v3783_v29 = vmul.f32 -1.442695, %v1271_v27 }
0x13f1   :  { %v3784_v37 = vmul.f32 -1.442695, %v1273_v31 }
0x13f2   :  { %4567 = vpow2.f32 %v3783_v29 }
0x13f3   :  { %4569 = vtanh.f32 %v1273_v31 }
0x13fc   :  { %v4568_v32 = vpop.eup %4567 }
0x13fd   :  { %v1278_v33 = vadd.f32 1.0, %v4568_v32  ;;  %v4570_v34 = vpop.eup %4569 }
0x13ff   :  { %4571 = vrcp.f32 %v1278_v33 }
0x1400   :  { %4573 = vpow2.f32 %v3784_v37 }
0x1409   :  { %v4572_v35 = vpop.eup %4571 }
0x140a   :  { %v1289_v36 = vmul.f32 %v4572_v35, %v4570_v34  ;;  %v4574_v38 = vpop.eup %4573  ;;  %v1288_v40 = vmul.f32 %v4572_v35, %v1178_v17 }
0x140b   :  { %v1285_v39 = vadd.f32 1.0, %v4574_v38 }
0x140c   :  { %1291 = vrot.lane.b32.xlu0 %v1289_v36, %s4832_s14  ;;  %v3802_v36 = vld.sshfl [vmem:[%s5649_s0 + $0x34] sm:$0x33 pattern:$0x76325410] }
0x140d   :  { %4575 = vrcp.f32 %v1285_v39 }
0x1417   :  { %v4576_v43 = vpop.eup %4575 }
0x147e   :  { %v1292_v41 = vpop.permute.xlu0 %1291 }
0x147f   :  { %v1294_v42 = vadd.f32 %v1292_v41, %v1288_v40  ;;  %v1547_v41 = vcombine.high %v3802_v36, %v3802_v36 }
0x1481   :  { %4577 = vtanh.f32 %v1294_v42 }
0x148b   :  { %v4578_v44 = vpop.eup %4577 }
0x148c   :  { %v1296_v45 = vmul.f32 %v4578_v44, %v4576_v43 }
0x148e   :  { %1298 = vrot.lane.b32.xlu1 %v1296_v45, %s4832_s14 }
0x1500   :  { %v1299_v46 = vpop.permute.xlu1 %1298 }
0x1501   :  { %3785 = vst.msk [vmem:[%s5650_s2 + $0x14] sm:$0x3] %vm140_vm0, %v1299_v46  ;;  %3789 = vmatmul.mubr.msk.f32.vlgmr.msra.gmra.mrb[10].mxu1 %vm39_vm2, %v1299_v46 }
0x1502   :  { %3786 = vst.msk [vmem:[%s5650_s2 + $0x2a] sm:$0x3] %vm143_vm1, %v1299_v46  ;;  %4144 = vmatpush1.bf16.msra.mxu1 %v4870_v8  ;;  %1616 = vmatprep.mubr.f32.mxu1 %v4831_v3 }
0x1503   :  { %4146 = vmatprep.subr.bf16.mxu1 %v4872_v9 }
0x1506   :  { %4148 = vmatpush1.bf16.msra.mxu1 %v4889_v14 }
0x1507   :  { %4150 = vmatprep.subr.bf16.mxu1 %v4893_v15 }
0x150a   :  { %4152 = vmatpush1.bf16.msra.mxu1 %v4909_v20 }
0x150b   :  { %4154 = vmatprep.subr.bf16.mxu1 %v4913_v21 }
0x150e   :  { %4156 = vmatpush1.bf16.msra.mxu1 %v4923_v24 }
0x150f   :  { %4174 = vmatprep.subr.bf16.mxu1 %v4859_v4 }
0x15d4   :  { %v1386_v48 = vpop.f32.mrb[10].mxu1 }
0x15d5   :  { %v1387_v49 = vadd.f32 %v3788_v47, %v1386_v48  ;;  %v1388_v50 = vpop.f32.mrb[11].mxu1 }
0x15d6   :  { %v1389_v53 = vadd.f32 %v1388_v50, %v1315_v52 }
0x15d7   :  { %v3790_v51 = vmul.f32 -1.442695, %v1387_v49 }
0x15d8   :  { %v3791_v59 = vmul.f32 -1.442695, %v1389_v53 }
0x15d9   :  { %4579 = vpow2.f32 %v3790_v51 }
0x15da   :  { %4581 = vtanh.f32 %v1389_v53 }
0x15e3   :  { %v4580_v54 = vpop.eup %4579 }
0x15e4   :  { %v1394_v55 = vadd.f32 1.0, %v4580_v54  ;;  %v4582_v56 = vpop.eup %4581 }
0x15e6   :  { %4583 = vrcp.f32 %v1394_v55 }
0x15e7   :  { %4585 = vpow2.f32 %v3791_v59 }
0x15f0   :  { %v4584_v57 = vpop.eup %4583 }
0x15f1   :  { %v1405_v58 = vmul.f32 %v4584_v57, %v4582_v56  ;;  %v4586_v60 = vpop.eup %4585  ;;  %v1404_v62 = vmul.f32 %v4584_v57, %v1294_v42 }
0x15f2   :  { %v1401_v61 = vadd.f32 1.0, %v4586_v60 }
0x15f3   :  { %1407 = vrot.lane.b32.xlu0 %v1405_v58, %s4832_s14  ;;  %v3809_v58 = vld.sshfl [vmem:[%s5649_s0 + $0x38] sm:$0x33 pattern:$0x76325410] }
0x15f4   :  { %4587 = vrcp.f32 %v1401_v61 }
0x15fe   :  { %v4588_v1 = vpop.eup %4587 }
0x1665   :  { %v1408_v63 = vpop.permute.xlu0 %1407 }
0x1666   :  { %v1410_v0 = vadd.f32 %v1408_v63, %v1404_v62  ;;  %v1663_v63 = vcombine.high %v3809_v58, %v3809_v58 }
0x1668   :  { %4589 = vtanh.f32 %v1410_v0 }
0x1672   :  { %v4590_v2 = vpop.eup %4589 }
0x1673   :  { %v1412_v5 = vmul.f32 %v4590_v2, %v4588_v1 }
0x1675   :  { %1414 = vrot.lane.b32.xlu1 %v1412_v5, %s4832_s14 }
0x16e7   :  { %v1415_v6 = vpop.permute.xlu1 %1414 }
0x16e8   :  { %3792 = vst.msk [vmem:[%s5650_s2 + $0x16] sm:$0x3] %vm140_vm0, %v1415_v6  ;;  %3796 = vmatmul.mubr.msk.f32.vlgmr.msra.gmra.mrb[12].mxu0 %vm39_vm2, %v1415_v6 }
0x16e9   :  { %3793 = vst.msk [vmem:[%s5650_s2 + $0x28] sm:$0x3] %vm143_vm1, %v1415_v6  ;;  %4160 = vmatpush1.bf16.msra.mxu0 %v4870_v8  ;;  %1732 = vmatprep.mubr.f32.mxu0 %v4831_v3 }
0x16ea   :  { %4162 = vmatprep.subr.bf16.mxu0 %v4872_v9 }
0x16ed   :  { %4164 = vmatpush1.bf16.msra.mxu0 %v4889_v14 }
0x16ee   :  { %4166 = vmatprep.subr.bf16.mxu0 %v4893_v15 }
0x16f1   :  { %4168 = vmatpush1.bf16.msra.mxu0 %v4909_v20 }
0x16f2   :  { %4170 = vmatprep.subr.bf16.mxu0 %v4913_v21 }
0x16f5   :  { %4172 = vmatpush1.bf16.msra.mxu0 %v4923_v24 }
0x16f6   :  { %4190 = vmatprep.subr.bf16.mxu0 %v4859_v4 }
0x17bb   :  { %v1502_v10 = vpop.f32.mrb[12].mxu0 }
0x17bc   :  { %v1503_v11 = vadd.f32 %v3795_v7, %v1502_v10  ;;  %v1504_v12 = vpop.f32.mrb[13].mxu0 }
0x17bd   :  { %v1505_v17 = vadd.f32 %v1504_v12, %v1431_v16 }
0x17be   :  { %v3797_v13 = vmul.f32 -1.442695, %v1503_v11 }
0x17bf   :  { %v3798_v26 = vmul.f32 -1.442695, %v1505_v17 }
0x17c0   :  { %4591 = vpow2.f32 %v3797_v13 }
0x17c1   :  { %4593 = vtanh.f32 %v1505_v17 }
0x17ca   :  { %v4592_v18 = vpop.eup %4591 }
0x17cb   :  { %v1510_v19 = vadd.f32 1.0, %v4592_v18  ;;  %v4594_v22 = vpop.eup %4593 }
0x17cd   :  { %4595 = vrcp.f32 %v1510_v19 }
0x17ce   :  { %4597 = vpow2.f32 %v3798_v26 }
0x17d7   :  { %v4596_v23 = vpop.eup %4595 }
0x17d8   :  { %v1521_v25 = vmul.f32 %v4596_v23, %v4594_v22  ;;  %v4598_v27 = vpop.eup %4597  ;;  %v1520_v29 = vmul.f32 %v4596_v23, %v1410_v0 }
0x17d9   :  { %v1517_v28 = vadd.f32 1.0, %v4598_v27 }
0x17da   :  { %1523 = vrot.lane.b32.xlu0 %v1521_v25, %s4832_s14  ;;  %v3816_v25 = vld.sshfl [vmem:[%s5649_s0 + $0x3c] sm:$0x33 pattern:$0x76325410] }
0x17db   :  { %4599 = vrcp.f32 %v1517_v28 }
0x17e5   :  { %v4600_v32 = vpop.eup %4599 }
0x184c   :  { %v1524_v30 = vpop.permute.xlu0 %1523 }
0x184d   :  { %v1526_v31 = vadd.f32 %v1524_v30, %v1520_v29  ;;  %v1779_v30 = vcombine.high %v3816_v25, %v3816_v25 }
0x184f   :  { %4601 = vtanh.f32 %v1526_v31 }
0x1859   :  { %v4602_v33 = vpop.eup %4601 }
0x185a   :  { %v1528_v34 = vmul.f32 %v4602_v33, %v4600_v32 }
0x185c   :  { %1530 = vrot.lane.b32.xlu1 %v1528_v34, %s4832_s14 }
0x18ce   :  { %v1531_v35 = vpop.permute.xlu1 %1530 }
0x18cf   :  { %3799 = vst.msk [vmem:[%s5650_s2 + $0x18] sm:$0x3] %vm140_vm0, %v1531_v35  ;;  %3803 = vmatmul.mubr.msk.f32.vlgmr.msra.gmra.mrb[12].mxu1 %vm39_vm2, %v1531_v35 }
0x18d0   :  { %3800 = vst.msk [vmem:[%s5650_s2 + $0x26] sm:$0x3] %vm143_vm1, %v1531_v35  ;;  %4176 = vmatpush1.bf16.msra.mxu1 %v4870_v8  ;;  %1848 = vmatprep.mubr.f32.mxu1 %v4831_v3 }
0x18d1   :  { %4178 = vmatprep.subr.bf16.mxu1 %v4872_v9 }
0x18d4   :  { %4180 = vmatpush1.bf16.msra.mxu1 %v4889_v14 }
0x18d5   :  { %4182 = vmatprep.subr.bf16.mxu1 %v4893_v15 }
0x18d8   :  { %4184 = vmatpush1.bf16.msra.mxu1 %v4909_v20 }
0x18d9   :  { %4186 = vmatprep.subr.bf16.mxu1 %v4913_v21 }
0x18dc   :  { %4188 = vmatpush1.bf16.msra.mxu1 %v4923_v24 }
0x18dd   :  { %4206 = vmatprep.subr.bf16.mxu1 %v4859_v4 }
0x19a2   :  { %v1618_v37 = vpop.f32.mrb[12].mxu1 }
0x19a3   :  { %v1619_v38 = vadd.f32 %v3802_v36, %v1618_v37  ;;  %v1620_v39 = vpop.f32.mrb[13].mxu1 }
0x19a4   :  { %v1621_v42 = vadd.f32 %v1620_v39, %v1547_v41 }
0x19a5   :  { %v3804_v40 = vmul.f32 -1.442695, %v1619_v38 }
0x19a6   :  { %v3805_v48 = vmul.f32 -1.442695, %v1621_v42 }
0x19a7   :  { %4603 = vpow2.f32 %v3804_v40 }
0x19a8   :  { %4605 = vtanh.f32 %v1621_v42 }
0x19b1   :  { %v4604_v43 = vpop.eup %4603 }
0x19b2   :  { %v1626_v44 = vadd.f32 1.0, %v4604_v43  ;;  %v4606_v45 = vpop.eup %4605 }
0x19b4   :  { %4607 = vrcp.f32 %v1626_v44 }
0x19b5   :  { %4609 = vpow2.f32 %v3805_v48 }
0x19be   :  { %v4608_v46 = vpop.eup %4607 }
0x19bf   :  { %v1637_v47 = vmul.f32 %v4608_v46, %v4606_v45  ;;  %v4610_v49 = vpop.eup %4609  ;;  %v1636_v51 = vmul.f32 %v4608_v46, %v1526_v31 }
0x19c0   :  { %v1633_v50 = vadd.f32 1.0, %v4610_v49 }
0x19c1   :  { %1639 = vrot.lane.b32.xlu0 %v1637_v47, %s4832_s14  ;;  %v3823_v47 = vld.sshfl [vmem:[%s5649_s0 + $0x40] sm:$0x33 pattern:$0x76325410] }
0x19c2   :  { %4611 = vrcp.f32 %v1633_v50 }
0x19cc   :  { %v4612_v54 = vpop.eup %4611 }
0x1a33   :  { %v1640_v52 = vpop.permute.xlu0 %1639 }
0x1a34   :  { %v1642_v53 = vadd.f32 %v1640_v52, %v1636_v51  ;;  %v1895_v52 = vcombine.high %v3823_v47, %v3823_v47 }
0x1a36   :  { %4613 = vtanh.f32 %v1642_v53 }
0x1a40   :  { %v4614_v55 = vpop.eup %4613 }
0x1a41   :  { %v1644_v56 = vmul.f32 %v4614_v55, %v4612_v54 }
0x1a43   :  { %1646 = vrot.lane.b32.xlu1 %v1644_v56, %s4832_s14 }
0x1ab5   :  { %v1647_v57 = vpop.permute.xlu1 %1646 }
0x1ab6   :  { %3806 = vst.msk [vmem:[%s5650_s2 + $0x1a] sm:$0x3] %vm140_vm0, %v1647_v57  ;;  %3810 = vmatmul.mubr.msk.f32.vlgmr.msra.gmra.mrb[14].mxu0 %vm39_vm2, %v1647_v57 }
0x1ab7   :  { %3807 = vst.msk [vmem:[%s5650_s2 + $0x24] sm:$0x3] %vm143_vm1, %v1647_v57  ;;  %4192 = vmatpush1.bf16.msra.mxu0 %v4870_v8  ;;  %1964 = vmatprep.mubr.f32.mxu0 %v4831_v3 }
0x1ab8   :  { %4194 = vmatprep.subr.bf16.mxu0 %v4872_v9 }
0x1abb   :  { %4196 = vmatpush1.bf16.msra.mxu0 %v4889_v14 }
0x1abc   :  { %4198 = vmatprep.subr.bf16.mxu0 %v4893_v15 }
0x1abf   :  { %4200 = vmatpush1.bf16.msra.mxu0 %v4909_v20 }
0x1ac0   :  { %4202 = vmatprep.subr.bf16.mxu0 %v4913_v21 }
0x1ac3   :  { %4204 = vmatpush1.bf16.msra.mxu0 %v4923_v24 }
0x1ac4   :  { %4222 = vmatprep.subr.bf16.mxu0 %v4859_v4 }
0x1b89   :  { %v1734_v59 = vpop.f32.mrb[14].mxu0 }
0x1b8a   :  { %v1735_v60 = vadd.f32 %v3809_v58, %v1734_v59  ;;  %v1736_v61 = vpop.f32.mrb[15].mxu0 }
0x1b8b   :  { %v1737_v0 = vadd.f32 %v1736_v61, %v1663_v63 }
0x1b8c   :  { %v3811_v62 = vmul.f32 -1.442695, %v1735_v60 }
0x1b8d   :  { %v3812_v10 = vmul.f32 -1.442695, %v1737_v0 }
0x1b8e   :  { %4615 = vpow2.f32 %v3811_v62 }
0x1b8f   :  { %4617 = vtanh.f32 %v1737_v0 }
0x1b98   :  { %v4616_v1 = vpop.eup %4615 }
0x1b99   :  { %v1742_v2 = vadd.f32 1.0, %v4616_v1  ;;  %v4618_v5 = vpop.eup %4617 }
0x1b9b   :  { %4619 = vrcp.f32 %v1742_v2 }
0x1b9c   :  { %4621 = vpow2.f32 %v3812_v10 }
0x1ba5   :  { %v4620_v6 = vpop.eup %4619 }
0x1ba6   :  { %v1753_v7 = vmul.f32 %v4620_v6, %v4618_v5  ;;  %v4622_v11 = vpop.eup %4621  ;;  %v1752_v13 = vmul.f32 %v4620_v6, %v1642_v53 }
0x1ba7   :  { %v1749_v12 = vadd.f32 1.0, %v4622_v11 }
0x1ba8   :  { %1755 = vrot.lane.b32.xlu0 %v1753_v7, %s4832_s14  ;;  %v3830_v7 = vld.sshfl [vmem:[%s5649_s0 + $0x44] sm:$0x33 pattern:$0x76325410] }
0x1ba9   :  { %4623 = vrcp.f32 %v1749_v12 }
0x1bb3   :  { %v4624_v18 = vpop.eup %4623 }
0x1c1a   :  { %v1756_v16 = vpop.permute.xlu0 %1755 }
0x1c1b   :  { %v1758_v17 = vadd.f32 %v1756_v16, %v1752_v13  ;;  %v2009_v16 = vcombine.high %v3830_v7, %v3830_v7 }
0x1c1d   :  { %4625 = vtanh.f32 %v1758_v17 }
0x1c27   :  { %v4626_v19 = vpop.eup %4625 }
0x1c28   :  { %v1760_v22 = vmul.f32 %v4626_v19, %v4624_v18 }
0x1c2a   :  { %1762 = vrot.lane.b32.xlu1 %v1760_v22, %s4832_s14 }
0x1c9c   :  { %v1763_v23 = vpop.permute.xlu1 %1762 }
0x1c9d   :  { %3813 = vst.msk [vmem:[%s5650_s2 + $0x1c] sm:$0x3] %vm140_vm0, %v1763_v23  ;;  %3817 = vmatmul.mubr.msk.f32.vlgmr.msra.gmra.mrb[14].mxu1 %vm39_vm2, %v1763_v23 }
0x1c9e   :  { %3814 = vst.msk [vmem:[%s5650_s2 + $0x22] sm:$0x3] %vm143_vm1, %v1763_v23  ;;  %4208 = vmatpush1.bf16.msra.mxu1 %v4870_v8  ;;  %2078 = vmatprep.mubr.f32.mxu1 %v4831_v3 }
0x1c9f   :  { %4210 = vmatprep.subr.bf16.mxu1 %v4872_v9 }
0x1ca2   :  { %4212 = vmatpush1.bf16.msra.mxu1 %v4889_v14 }
0x1ca3   :  { %4214 = vmatprep.subr.bf16.mxu1 %v4893_v15 }
0x1ca6   :  { %4216 = vmatpush1.bf16.msra.mxu1 %v4909_v20 }
0x1ca7   :  { %4218 = vmatprep.subr.bf16.mxu1 %v4913_v21 }
0x1caa   :  { %4220 = vmatpush1.bf16.msra.mxu1 %v4923_v24 }
0x1cab   :  { %4238 = vmatprep.subr.bf16.mxu1 %v4859_v4 }
0x1d70   :  { %v1850_v26 = vpop.f32.mrb[14].mxu1 }
0x1d71   :  { %v1851_v27 = vadd.f32 %v3816_v25, %v1850_v26  ;;  %v1852_v28 = vpop.f32.mrb[15].mxu1 }
0x1d72   :  { %v1853_v31 = vadd.f32 %v1852_v28, %v1779_v30 }
0x1d73   :  { %v3818_v29 = vmul.f32 -1.442695, %v1851_v27 }
0x1d74   :  { %v3819_v37 = vmul.f32 -1.442695, %v1853_v31 }
0x1d75   :  { %4627 = vpow2.f32 %v3818_v29 }
0x1d76   :  { %4629 = vtanh.f32 %v1853_v31 }
0x1d7f   :  { %v4628_v32 = vpop.eup %4627 }
0x1d80   :  { %v1858_v33 = vadd.f32 1.0, %v4628_v32  ;;  %v4630_v34 = vpop.eup %4629 }
0x1d82   :  { %4631 = vrcp.f32 %v1858_v33 }
0x1d83   :  { %4633 = vpow2.f32 %v3819_v37 }
0x1d8c   :  { %v4632_v35 = vpop.eup %4631 }
0x1d8d   :  { %v1869_v36 = vmul.f32 %v4632_v35, %v4630_v34  ;;  %v4634_v38 = vpop.eup %4633  ;;  %v1868_v40 = vmul.f32 %v4632_v35, %v1758_v17 }
0x1d8e   :  { %v1865_v39 = vadd.f32 1.0, %v4634_v38 }
0x1d8f   :  { %1871 = vrot.lane.b32.xlu0 %v1869_v36, %s4832_s14  ;;  %v3837_v36 = vld.sshfl [vmem:[%s5649_s0 + $0x48] sm:$0x33 pattern:$0x76325410] }
0x1d90   :  { %4635 = vrcp.f32 %v1865_v39 }
0x1d9a   :  { %v4636_v43 = vpop.eup %4635 }
0x1e01   :  { %v1872_v41 = vpop.permute.xlu0 %1871 }
0x1e02   :  { %v1874_v42 = vadd.f32 %v1872_v41, %v1868_v40  ;;  %v2123_v41 = vcombine.high %v3837_v36, %v3837_v36 }
0x1e04   :  { %4637 = vtanh.f32 %v1874_v42 }
0x1e0e   :  { %v4638_v44 = vpop.eup %4637 }
0x1e0f   :  { %v1876_v45 = vmul.f32 %v4638_v44, %v4636_v43 }
0x1e11   :  { %1878 = vrot.lane.b32.xlu1 %v1876_v45, %s4832_s14 }
0x1e83   :  { %v1879_v46 = vpop.permute.xlu1 %1878 }
0x1e84   :  { %3820 = vst.msk [vmem:[%s5650_s2 + $0x1e] sm:$0x3] %vm140_vm0, %v1879_v46  ;;  %3824 = vmatmul.mubr.msk.f32.vlgmr.msra.gmra.mrb[16].mxu0 %vm39_vm2, %v1879_v46 }
0x1e85   :  { %3821 = vst.msk [vmem:[%s5650_s2 + $0x20] sm:$0x3] %vm143_vm1, %v1879_v46  ;;  %4224 = vmatpush1.bf16.msra.mxu0 %v4870_v8  ;;  %2192 = vmatprep.mubr.f32.mxu0 %v4831_v3 }
0x1e86   :  { %4226 = vmatprep.subr.bf16.mxu0 %v4872_v9 }
0x1e89   :  { %4228 = vmatpush1.bf16.msra.mxu0 %v4889_v14 }
0x1e8a   :  { %4230 = vmatprep.subr.bf16.mxu0 %v4893_v15 }
0x1e8d   :  { %4232 = vmatpush1.bf16.msra.mxu0 %v4909_v20 }
0x1e8e   :  { %4234 = vmatprep.subr.bf16.mxu0 %v4913_v21 }
0x1e91   :  { %4236 = vmatpush1.bf16.msra.mxu0 %v4923_v24 }
0x1e92   :  { %4254 = vmatprep.subr.bf16.mxu0 %v4859_v4 }
0x1f57   :  { %v1966_v48 = vpop.f32.mrb[16].mxu0 }
0x1f58   :  { %v1967_v49 = vadd.f32 %v3823_v47, %v1966_v48  ;;  %v1968_v50 = vpop.f32.mrb[17].mxu0 }
0x1f59   :  { %v1969_v53 = vadd.f32 %v1968_v50, %v1895_v52 }
0x1f5a   :  { %v3825_v51 = vmul.f32 -1.442695, %v1967_v49 }
0x1f5b   :  { %v3826_v59 = vmul.f32 -1.442695, %v1969_v53 }
0x1f5c   :  { %4639 = vpow2.f32 %v3825_v51 }
0x1f5d   :  { %4641 = vtanh.f32 %v1969_v53 }
0x1f66   :  { %v4640_v54 = vpop.eup %4639 }
0x1f67   :  { %v1974_v55 = vadd.f32 1.0, %v4640_v54  ;;  %v4642_v56 = vpop.eup %4641 }
0x1f69   :  { %4643 = vrcp.f32 %v1974_v55 }
0x1f6a   :  { %4645 = vpow2.f32 %v3826_v59 }
0x1f73   :  { %v4644_v57 = vpop.eup %4643 }
0x1f74   :  { %v1985_v58 = vmul.f32 %v4644_v57, %v4642_v56  ;;  %v4646_v60 = vpop.eup %4645  ;;  %v1984_v62 = vmul.f32 %v4644_v57, %v1874_v42 }
0x1f75   :  { %v1981_v61 = vadd.f32 1.0, %v4646_v60 }
0x1f76   :  { %1987 = vrot.lane.b32.xlu0 %v1985_v58, %s4832_s14  ;;  %v3844_v58 = vld.sshfl [vmem:[%s5649_s0 + $0x4c] sm:$0x33 pattern:$0x76325410] }
0x1f77   :  { %4647 = vrcp.f32 %v1981_v61 }
0x1f81   :  { %v4648_v1 = vpop.eup %4647 }
0x1fe8   :  { %v1988_v63 = vpop.permute.xlu0 %1987 }
0x1fe9   :  { %v1990_v0 = vadd.f32 %v1988_v63, %v1984_v62  ;;  %v2237_v63 = vcombine.high %v3844_v58, %v3844_v58 }
0x1feb   :  { %4649 = vtanh.f32 %v1990_v0 }
0x1ff5   :  { %v4650_v2 = vpop.eup %4649 }
0x1ff6   :  { %v1992_v5 = vmul.f32 %v4650_v2, %v4648_v1 }
0x1ff8   :  { %1994 = vrot.lane.b32.xlu1 %v1992_v5, %s4832_s14 }
0x206a   :  { %v1995_v6 = vpop.permute.xlu1 %1994 }
0x206b   :  { %3827 = vst.msk [vmem:[%s5650_s2 + $0x20] sm:$0x3] %vm140_vm0, %v1995_v6  ;;  %3831 = vmatmul.mubr.msk.f32.vlgmr.msra.gmra.mrb[16].mxu1 %vm39_vm2, %v1995_v6 }
0x206c   :  { %3828 = vst.msk [vmem:[%s5650_s2 + $0x1e] sm:$0x3] %vm143_vm1, %v1995_v6  ;;  %4240 = vmatpush1.bf16.msra.mxu1 %v4870_v8  ;;  %2306 = vmatprep.mubr.f32.mxu1 %v4831_v3 }
0x206d   :  { %4242 = vmatprep.subr.bf16.mxu1 %v4872_v9 }
0x2070   :  { %4244 = vmatpush1.bf16.msra.mxu1 %v4889_v14 }
0x2071   :  { %4246 = vmatprep.subr.bf16.mxu1 %v4893_v15 }
0x2074   :  { %4248 = vmatpush1.bf16.msra.mxu1 %v4909_v20 }
0x2075   :  { %4250 = vmatprep.subr.bf16.mxu1 %v4913_v21 }
0x2078   :  { %4252 = vmatpush1.bf16.msra.mxu1 %v4923_v24 }
0x2079   :  { %4270 = vmatprep.subr.bf16.mxu1 %v4859_v4 }
0x213e   :  { %v2080_v10 = vpop.f32.mrb[16].mxu1 }
0x213f   :  { %v2081_v11 = vadd.f32 %v3830_v7, %v2080_v10  ;;  %v2082_v12 = vpop.f32.mrb[17].mxu1 }
0x2140   :  { %v2083_v17 = vadd.f32 %v2082_v12, %v2009_v16 }
0x2141   :  { %v3832_v13 = vmul.f32 -1.442695, %v2081_v11 }
0x2142   :  { %v3833_v26 = vmul.f32 -1.442695, %v2083_v17 }
0x2143   :  { %4651 = vpow2.f32 %v3832_v13 }
0x2144   :  { %4653 = vtanh.f32 %v2083_v17 }
0x214d   :  { %v4652_v18 = vpop.eup %4651 }
0x214e   :  { %v2088_v19 = vadd.f32 1.0, %v4652_v18  ;;  %v4654_v22 = vpop.eup %4653 }
0x2150   :  { %4655 = vrcp.f32 %v2088_v19 }
0x2151   :  { %4657 = vpow2.f32 %v3833_v26 }
0x215a   :  { %v4656_v23 = vpop.eup %4655 }
0x215b   :  { %v2099_v25 = vmul.f32 %v4656_v23, %v4654_v22  ;;  %v4658_v27 = vpop.eup %4657  ;;  %v2098_v29 = vmul.f32 %v4656_v23, %v1990_v0 }
0x215c   :  { %v2095_v28 = vadd.f32 1.0, %v4658_v27 }
0x215d   :  { %2101 = vrot.lane.b32.xlu0 %v2099_v25, %s4832_s14  ;;  %v3851_v25 = vld.sshfl [vmem:[%s5649_s0 + $0x50] sm:$0x33 pattern:$0x76325410] }
0x215e   :  { %4659 = vrcp.f32 %v2095_v28 }
0x2168   :  { %v4660_v32 = vpop.eup %4659 }
0x21cf   :  { %v2102_v30 = vpop.permute.xlu0 %2101 }
0x21d0   :  { %v2104_v31 = vadd.f32 %v2102_v30, %v2098_v29  ;;  %v2351_v30 = vcombine.high %v3851_v25, %v3851_v25 }
0x21d2   :  { %4661 = vtanh.f32 %v2104_v31 }
0x21dc   :  { %v4662_v33 = vpop.eup %4661 }
0x21dd   :  { %v2106_v34 = vmul.f32 %v4662_v33, %v4660_v32 }
0x21df   :  { %2108 = vrot.lane.b32.xlu1 %v2106_v34, %s4832_s14 }
0x2251   :  { %v2109_v35 = vpop.permute.xlu1 %2108 }
0x2252   :  { %3834 = vst.msk [vmem:[%s5650_s2 + $0x22] sm:$0x3] %vm140_vm0, %v2109_v35  ;;  %3838 = vmatmul.mubr.msk.f32.vlgmr.msra.gmra.mrb[18].mxu0 %vm39_vm2, %v2109_v35 }
0x2253   :  { %3835 = vst.msk [vmem:[%s5650_s2 + $0x1c] sm:$0x3] %vm143_vm1, %v2109_v35  ;;  %4256 = vmatpush1.bf16.msra.mxu0 %v4870_v8  ;;  %2420 = vmatprep.mubr.f32.mxu0 %v4831_v3 }
0x2254   :  { %4258 = vmatprep.subr.bf16.mxu0 %v4872_v9 }
0x2257   :  { %4260 = vmatpush1.bf16.msra.mxu0 %v4889_v14 }
0x2258   :  { %4262 = vmatprep.subr.bf16.mxu0 %v4893_v15 }
0x225b   :  { %4264 = vmatpush1.bf16.msra.mxu0 %v4909_v20 }
0x225c   :  { %4266 = vmatprep.subr.bf16.mxu0 %v4913_v21 }
0x225f   :  { %4268 = vmatpush1.bf16.msra.mxu0 %v4923_v24 }
0x2260   :  { %4286 = vmatprep.subr.bf16.mxu0 %v4859_v4 }
0x2325   :  { %v2194_v37 = vpop.f32.mrb[18].mxu0 }
0x2326   :  { %v2195_v38 = vadd.f32 %v3837_v36, %v2194_v37  ;;  %v2196_v39 = vpop.f32.mrb[19].mxu0 }
0x2327   :  { %v2197_v42 = vadd.f32 %v2196_v39, %v2123_v41 }
0x2328   :  { %v3839_v40 = vmul.f32 -1.442695, %v2195_v38 }
0x2329   :  { %v3840_v48 = vmul.f32 -1.442695, %v2197_v42 }
0x232a   :  { %4663 = vpow2.f32 %v3839_v40 }
0x232b   :  { %4665 = vtanh.f32 %v2197_v42 }
0x2334   :  { %v4664_v43 = vpop.eup %4663 }
0x2335   :  { %v2202_v44 = vadd.f32 1.0, %v4664_v43  ;;  %v4666_v45 = vpop.eup %4665 }
0x2337   :  { %4667 = vrcp.f32 %v2202_v44 }
0x2338   :  { %4669 = vpow2.f32 %v3840_v48 }
0x2341   :  { %v4668_v46 = vpop.eup %4667 }
0x2342   :  { %v2213_v47 = vmul.f32 %v4668_v46, %v4666_v45  ;;  %v4670_v49 = vpop.eup %4669  ;;  %v2212_v51 = vmul.f32 %v4668_v46, %v2104_v31 }
0x2343   :  { %v2209_v50 = vadd.f32 1.0, %v4670_v49 }
0x2344   :  { %2215 = vrot.lane.b32.xlu0 %v2213_v47, %s4832_s14  ;;  %v3858_v47 = vld.sshfl [vmem:[%s5649_s0 + $0x54] sm:$0x33 pattern:$0x76325410] }
0x2345   :  { %4671 = vrcp.f32 %v2209_v50 }
0x234f   :  { %v4672_v54 = vpop.eup %4671 }
0x23b6   :  { %v2216_v52 = vpop.permute.xlu0 %2215 }
0x23b7   :  { %v2218_v53 = vadd.f32 %v2216_v52, %v2212_v51  ;;  %v2465_v52 = vcombine.high %v3858_v47, %v3858_v47 }
0x23b9   :  { %4673 = vtanh.f32 %v2218_v53 }
0x23c3   :  { %v4674_v55 = vpop.eup %4673 }
0x23c4   :  { %v2220_v56 = vmul.f32 %v4674_v55, %v4672_v54 }
0x23c6   :  { %2222 = vrot.lane.b32.xlu1 %v2220_v56, %s4832_s14 }
0x2438   :  { %v2223_v57 = vpop.permute.xlu1 %2222 }
0x2439   :  { %3841 = vst.msk [vmem:[%s5650_s2 + $0x24] sm:$0x3] %vm140_vm0, %v2223_v57  ;;  %3845 = vmatmul.mubr.msk.f32.vlgmr.msra.gmra.mrb[18].mxu1 %vm39_vm2, %v2223_v57 }
0x243a   :  { %3842 = vst.msk [vmem:[%s5650_s2 + $0x1a] sm:$0x3] %vm143_vm1, %v2223_v57  ;;  %4272 = vmatpush1.bf16.msra.mxu1 %v4870_v8  ;;  %2534 = vmatprep.mubr.f32.mxu1 %v4831_v3 }
0x243b   :  { %4274 = vmatprep.subr.bf16.mxu1 %v4872_v9 }
0x243e   :  { %4276 = vmatpush1.bf16.msra.mxu1 %v4889_v14 }
0x243f   :  { %4278 = vmatprep.subr.bf16.mxu1 %v4893_v15 }
0x2442   :  { %4280 = vmatpush1.bf16.msra.mxu1 %v4909_v20 }
0x2443   :  { %4282 = vmatprep.subr.bf16.mxu1 %v4913_v21 }
0x2446   :  { %4284 = vmatpush1.bf16.msra.mxu1 %v4923_v24 }
0x2447   :  { %4302 = vmatprep.subr.bf16.mxu1 %v4859_v4 }
0x250c   :  { %v2308_v59 = vpop.f32.mrb[18].mxu1 }
0x250d   :  { %v2309_v60 = vadd.f32 %v3844_v58, %v2308_v59  ;;  %v2310_v61 = vpop.f32.mrb[19].mxu1 }
0x250e   :  { %v2311_v0 = vadd.f32 %v2310_v61, %v2237_v63 }
0x250f   :  { %v3846_v62 = vmul.f32 -1.442695, %v2309_v60 }
0x2510   :  { %v3847_v10 = vmul.f32 -1.442695, %v2311_v0 }
0x2511   :  { %4675 = vpow2.f32 %v3846_v62 }
0x2512   :  { %4677 = vtanh.f32 %v2311_v0 }
0x251b   :  { %v4676_v1 = vpop.eup %4675 }
0x251c   :  { %v2316_v2 = vadd.f32 1.0, %v4676_v1  ;;  %v4678_v5 = vpop.eup %4677 }
0x251e   :  { %4679 = vrcp.f32 %v2316_v2 }
0x251f   :  { %4681 = vpow2.f32 %v3847_v10 }
0x2528   :  { %v4680_v6 = vpop.eup %4679 }
0x2529   :  { %v2327_v7 = vmul.f32 %v4680_v6, %v4678_v5  ;;  %v4682_v11 = vpop.eup %4681  ;;  %v2326_v13 = vmul.f32 %v4680_v6, %v2218_v53 }
0x252a   :  { %v2323_v12 = vadd.f32 1.0, %v4682_v11 }
0x252b   :  { %2329 = vrot.lane.b32.xlu0 %v2327_v7, %s4832_s14  ;;  %v3865_v7 = vld.sshfl [vmem:[%s5649_s0 + $0x58] sm:$0x33 pattern:$0x76325410] }
0x252c   :  { %4683 = vrcp.f32 %v2323_v12 }
0x2536   :  { %v4684_v18 = vpop.eup %4683 }
0x259d   :  { %v2330_v16 = vpop.permute.xlu0 %2329 }
0x259e   :  { %v2332_v17 = vadd.f32 %v2330_v16, %v2326_v13  ;;  %v2579_v16 = vcombine.high %v3865_v7, %v3865_v7 }
0x25a0   :  { %4685 = vtanh.f32 %v2332_v17 }
0x25aa   :  { %v4686_v19 = vpop.eup %4685 }
0x25ab   :  { %v2334_v22 = vmul.f32 %v4686_v19, %v4684_v18 }
0x25ad   :  { %2336 = vrot.lane.b32.xlu1 %v2334_v22, %s4832_s14 }
0x261f   :  { %v2337_v23 = vpop.permute.xlu1 %2336 }
0x2620   :  { %3848 = vst.msk [vmem:[%s5650_s2 + $0x26] sm:$0x3] %vm140_vm0, %v2337_v23  ;;  %3852 = vmatmul.mubr.msk.f32.vlgmr.msra.gmra.mrb[20].mxu0 %vm39_vm2, %v2337_v23 }
0x2621   :  { %3849 = vst.msk [vmem:[%s5650_s2 + $0x18] sm:$0x3] %vm143_vm1, %v2337_v23  ;;  %4288 = vmatpush1.bf16.msra.mxu0 %v4870_v8  ;;  %2648 = vmatprep.mubr.f32.mxu0 %v4831_v3 }
0x2622   :  { %4290 = vmatprep.subr.bf16.mxu0 %v4872_v9 }
0x2625   :  { %4292 = vmatpush1.bf16.msra.mxu0 %v4889_v14 }
0x2626   :  { %4294 = vmatprep.subr.bf16.mxu0 %v4893_v15 }
0x2629   :  { %4296 = vmatpush1.bf16.msra.mxu0 %v4909_v20 }
0x262a   :  { %4298 = vmatprep.subr.bf16.mxu0 %v4913_v21 }
0x262d   :  { %4300 = vmatpush1.bf16.msra.mxu0 %v4923_v24 }
0x262e   :  { %4318 = vmatprep.subr.bf16.mxu0 %v4859_v4 }
0x26f3   :  { %v2422_v26 = vpop.f32.mrb[20].mxu0 }
0x26f4   :  { %v2423_v27 = vadd.f32 %v3851_v25, %v2422_v26  ;;  %v2424_v28 = vpop.f32.mrb[21].mxu0 }
0x26f5   :  { %v2425_v31 = vadd.f32 %v2424_v28, %v2351_v30 }
0x26f6   :  { %v3853_v29 = vmul.f32 -1.442695, %v2423_v27 }
0x26f7   :  { %v3854_v37 = vmul.f32 -1.442695, %v2425_v31 }
0x26f8   :  { %4687 = vpow2.f32 %v3853_v29 }
0x26f9   :  { %4689 = vtanh.f32 %v2425_v31 }
0x2702   :  { %v4688_v32 = vpop.eup %4687 }
0x2703   :  { %v2430_v33 = vadd.f32 1.0, %v4688_v32  ;;  %v4690_v34 = vpop.eup %4689 }
0x2705   :  { %4691 = vrcp.f32 %v2430_v33 }
0x2706   :  { %4693 = vpow2.f32 %v3854_v37 }
0x270f   :  { %v4692_v35 = vpop.eup %4691 }
0x2710   :  { %v2441_v36 = vmul.f32 %v4692_v35, %v4690_v34  ;;  %v4694_v38 = vpop.eup %4693  ;;  %v2440_v40 = vmul.f32 %v4692_v35, %v2332_v17 }
0x2711   :  { %v2437_v39 = vadd.f32 1.0, %v4694_v38 }
0x2712   :  { %2443 = vrot.lane.b32.xlu0 %v2441_v36, %s4832_s14  ;;  %v3872_v36 = vld.sshfl [vmem:[%s5649_s0 + $0x5c] sm:$0x33 pattern:$0x76325410] }
0x2713   :  { %4695 = vrcp.f32 %v2437_v39 }
0x271d   :  { %v4696_v43 = vpop.eup %4695 }
0x2784   :  { %v2444_v41 = vpop.permute.xlu0 %2443 }
0x2785   :  { %v2446_v42 = vadd.f32 %v2444_v41, %v2440_v40  ;;  %v2693_v41 = vcombine.high %v3872_v36, %v3872_v36 }
0x2787   :  { %4697 = vtanh.f32 %v2446_v42 }
0x2791   :  { %v4698_v44 = vpop.eup %4697 }
0x2792   :  { %v2448_v45 = vmul.f32 %v4698_v44, %v4696_v43 }
0x2794   :  { %2450 = vrot.lane.b32.xlu1 %v2448_v45, %s4832_s14 }
0x2806   :  { %v2451_v46 = vpop.permute.xlu1 %2450 }
0x2807   :  { %3855 = vst.msk [vmem:[%s5650_s2 + $0x28] sm:$0x3] %vm140_vm0, %v2451_v46  ;;  %3859 = vmatmul.mubr.msk.f32.vlgmr.msra.gmra.mrb[20].mxu1 %vm39_vm2, %v2451_v46 }
0x2808   :  { %3856 = vst.msk [vmem:[%s5650_s2 + $0x16] sm:$0x3] %vm143_vm1, %v2451_v46  ;;  %4304 = vmatpush1.bf16.msra.mxu1 %v4870_v8  ;;  %2762 = vmatprep.mubr.f32.mxu1 %v4831_v3 }
0x2809   :  { %4306 = vmatprep.subr.bf16.mxu1 %v4872_v9 }
0x280c   :  { %4308 = vmatpush1.bf16.msra.mxu1 %v4889_v14 }
0x280d   :  { %4310 = vmatprep.subr.bf16.mxu1 %v4893_v15 }
0x2810   :  { %4312 = vmatpush1.bf16.msra.mxu1 %v4909_v20 }
0x2811   :  { %4314 = vmatprep.subr.bf16.mxu1 %v4913_v21 }
0x2814   :  { %4316 = vmatpush1.bf16.msra.mxu1 %v4923_v24 }
0x2815   :  { %4334 = vmatprep.subr.bf16.mxu1 %v4859_v4 }
0x28da   :  { %v2536_v48 = vpop.f32.mrb[20].mxu1 }
0x28db   :  { %v2537_v49 = vadd.f32 %v3858_v47, %v2536_v48  ;;  %v2538_v50 = vpop.f32.mrb[21].mxu1 }
0x28dc   :  { %v2539_v53 = vadd.f32 %v2538_v50, %v2465_v52 }
0x28dd   :  { %v3860_v51 = vmul.f32 -1.442695, %v2537_v49 }
0x28de   :  { %v3861_v59 = vmul.f32 -1.442695, %v2539_v53 }
0x28df   :  { %4699 = vpow2.f32 %v3860_v51 }
0x28e0   :  { %4701 = vtanh.f32 %v2539_v53 }
0x28e9   :  { %v4700_v54 = vpop.eup %4699 }
0x28ea   :  { %v2544_v55 = vadd.f32 1.0, %v4700_v54  ;;  %v4702_v56 = vpop.eup %4701 }
0x28ec   :  { %4703 = vrcp.f32 %v2544_v55 }
0x28ed   :  { %4705 = vpow2.f32 %v3861_v59 }
0x28f6   :  { %v4704_v57 = vpop.eup %4703 }
0x28f7   :  { %v2555_v58 = vmul.f32 %v4704_v57, %v4702_v56  ;;  %v4706_v60 = vpop.eup %4705  ;;  %v2554_v62 = vmul.f32 %v4704_v57, %v2446_v42 }
0x28f8   :  { %v2551_v61 = vadd.f32 1.0, %v4706_v60 }
0x28f9   :  { %2557 = vrot.lane.b32.xlu0 %v2555_v58, %s4832_s14  ;;  %v3879_v58 = vld.sshfl [vmem:[%s5649_s0 + $0x60] sm:$0x33 pattern:$0x76325410] }
0x28fa   :  { %4707 = vrcp.f32 %v2551_v61 }
0x2904   :  { %v4708_v1 = vpop.eup %4707 }
0x296b   :  { %v2558_v63 = vpop.permute.xlu0 %2557 }
0x296c   :  { %v2560_v0 = vadd.f32 %v2558_v63, %v2554_v62  ;;  %v2807_v63 = vcombine.high %v3879_v58, %v3879_v58 }
0x296e   :  { %4709 = vtanh.f32 %v2560_v0 }
0x2978   :  { %v4710_v2 = vpop.eup %4709 }
0x2979   :  { %v2562_v5 = vmul.f32 %v4710_v2, %v4708_v1 }
0x297b   :  { %2564 = vrot.lane.b32.xlu1 %v2562_v5, %s4832_s14 }
0x29ed   :  { %v2565_v6 = vpop.permute.xlu1 %2564 }
0x29ee   :  { %3862 = vst.msk [vmem:[%s5650_s2 + $0x2a] sm:$0x3] %vm140_vm0, %v2565_v6  ;;  %3866 = vmatmul.mubr.msk.f32.vlgmr.msra.gmra.mrb[22].mxu0 %vm39_vm2, %v2565_v6 }
0x29ef   :  { %3863 = vst.msk [vmem:[%s5650_s2 + $0x14] sm:$0x3] %vm143_vm1, %v2565_v6  ;;  %4320 = vmatpush1.bf16.msra.mxu0 %v4870_v8  ;;  %2876 = vmatprep.mubr.f32.mxu0 %v4831_v3 }
0x29f0   :  { %4322 = vmatprep.subr.bf16.mxu0 %v4872_v9 }
0x29f3   :  { %4324 = vmatpush1.bf16.msra.mxu0 %v4889_v14 }
0x29f4   :  { %4326 = vmatprep.subr.bf16.mxu0 %v4893_v15 }
0x29f7   :  { %4328 = vmatpush1.bf16.msra.mxu0 %v4909_v20 }
0x29f8   :  { %4330 = vmatprep.subr.bf16.mxu0 %v4913_v21 }
0x29fb   :  { %4332 = vmatpush1.bf16.msra.mxu0 %v4923_v24 }
0x29fc   :  { %4350 = vmatprep.subr.bf16.mxu0 %v4859_v4 }
0x2ac1   :  { %v2650_v10 = vpop.f32.mrb[22].mxu0 }
0x2ac2   :  { %v2651_v11 = vadd.f32 %v3865_v7, %v2650_v10  ;;  %v2652_v12 = vpop.f32.mrb[23].mxu0 }
0x2ac3   :  { %v2653_v17 = vadd.f32 %v2652_v12, %v2579_v16 }
0x2ac4   :  { %v3867_v13 = vmul.f32 -1.442695, %v2651_v11 }
0x2ac5   :  { %v3868_v26 = vmul.f32 -1.442695, %v2653_v17 }
0x2ac6   :  { %4711 = vpow2.f32 %v3867_v13 }
0x2ac7   :  { %4713 = vtanh.f32 %v2653_v17 }
0x2ad0   :  { %v4712_v18 = vpop.eup %4711 }
0x2ad1   :  { %v2658_v19 = vadd.f32 1.0, %v4712_v18  ;;  %v4714_v22 = vpop.eup %4713 }
0x2ad3   :  { %4715 = vrcp.f32 %v2658_v19 }
0x2ad4   :  { %4717 = vpow2.f32 %v3868_v26 }
0x2add   :  { %v4716_v23 = vpop.eup %4715 }
0x2ade   :  { %v2669_v25 = vmul.f32 %v4716_v23, %v4714_v22  ;;  %v4718_v27 = vpop.eup %4717  ;;  %v2668_v29 = vmul.f32 %v4716_v23, %v2560_v0 }
0x2adf   :  { %v2665_v28 = vadd.f32 1.0, %v4718_v27 }
0x2ae0   :  { %2671 = vrot.lane.b32.xlu0 %v2669_v25, %s4832_s14  ;;  %v3886_v25 = vld.sshfl [vmem:[%s5649_s0 + $0x64] sm:$0x33 pattern:$0x76325410] }
0x2ae1   :  { %4719 = vrcp.f32 %v2665_v28 }
0x2aeb   :  { %v4720_v32 = vpop.eup %4719 }
0x2b52   :  { %v2672_v30 = vpop.permute.xlu0 %2671 }
0x2b53   :  { %v2674_v31 = vadd.f32 %v2672_v30, %v2668_v29  ;;  %v2921_v30 = vcombine.high %v3886_v25, %v3886_v25 }
0x2b55   :  { %4721 = vtanh.f32 %v2674_v31 }
0x2b5f   :  { %v4722_v33 = vpop.eup %4721 }
0x2b60   :  { %v2676_v34 = vmul.f32 %v4722_v33, %v4720_v32 }
0x2b62   :  { %2678 = vrot.lane.b32.xlu1 %v2676_v34, %s4832_s14 }
0x2bd4   :  { %v2679_v35 = vpop.permute.xlu1 %2678 }
0x2bd5   :  { %3869 = vst.msk [vmem:[%s5650_s2 + $0x2c] sm:$0x3] %vm140_vm0, %v2679_v35  ;;  %3873 = vmatmul.mubr.msk.f32.vlgmr.msra.gmra.mrb[22].mxu1 %vm39_vm2, %v2679_v35 }
0x2bd6   :  { %3870 = vst.msk [vmem:[%s5650_s2 + $0x12] sm:$0x3] %vm143_vm1, %v2679_v35  ;;  %4336 = vmatpush1.bf16.msra.mxu1 %v4870_v8  ;;  %2990 = vmatprep.mubr.f32.mxu1 %v4831_v3 }
0x2bd7   :  { %4338 = vmatprep.subr.bf16.mxu1 %v4872_v9 }
0x2bda   :  { %4340 = vmatpush1.bf16.msra.mxu1 %v4889_v14 }
0x2bdb   :  { %4342 = vmatprep.subr.bf16.mxu1 %v4893_v15 }
0x2bde   :  { %4344 = vmatpush1.bf16.msra.mxu1 %v4909_v20 }
0x2bdf   :  { %4346 = vmatprep.subr.bf16.mxu1 %v4913_v21 }
0x2be2   :  { %4348 = vmatpush1.bf16.msra.mxu1 %v4923_v24 }
0x2be3   :  { %4366 = vmatprep.subr.bf16.mxu1 %v4859_v4 }
0x2ca8   :  { %v2764_v37 = vpop.f32.mrb[22].mxu1 }
0x2ca9   :  { %v2765_v38 = vadd.f32 %v3872_v36, %v2764_v37  ;;  %v2766_v39 = vpop.f32.mrb[23].mxu1 }
0x2caa   :  { %v2767_v42 = vadd.f32 %v2766_v39, %v2693_v41 }
0x2cab   :  { %v3874_v40 = vmul.f32 -1.442695, %v2765_v38 }
0x2cac   :  { %v3875_v48 = vmul.f32 -1.442695, %v2767_v42 }
0x2cad   :  { %4723 = vpow2.f32 %v3874_v40 }
0x2cae   :  { %4725 = vtanh.f32 %v2767_v42 }
0x2cb7   :  { %v4724_v43 = vpop.eup %4723 }
0x2cb8   :  { %v2772_v44 = vadd.f32 1.0, %v4724_v43  ;;  %v4726_v45 = vpop.eup %4725 }
0x2cba   :  { %4727 = vrcp.f32 %v2772_v44 }
0x2cbb   :  { %4729 = vpow2.f32 %v3875_v48 }
0x2cc4   :  { %v4728_v46 = vpop.eup %4727 }
0x2cc5   :  { %v2783_v47 = vmul.f32 %v4728_v46, %v4726_v45  ;;  %v4730_v49 = vpop.eup %4729  ;;  %v2782_v51 = vmul.f32 %v4728_v46, %v2674_v31 }
0x2cc6   :  { %v2779_v50 = vadd.f32 1.0, %v4730_v49 }
0x2cc7   :  { %2785 = vrot.lane.b32.xlu0 %v2783_v47, %s4832_s14  ;;  %v3893_v47 = vld.sshfl [vmem:[%s5649_s0 + $0x68] sm:$0x33 pattern:$0x76325410] }
0x2cc8   :  { %4731 = vrcp.f32 %v2779_v50 }
0x2cd2   :  { %v4732_v54 = vpop.eup %4731 }
0x2d39   :  { %v2786_v52 = vpop.permute.xlu0 %2785 }
0x2d3a   :  { %v2788_v53 = vadd.f32 %v2786_v52, %v2782_v51  ;;  %v3035_v52 = vcombine.high %v3893_v47, %v3893_v47 }
0x2d3c   :  { %4733 = vtanh.f32 %v2788_v53 }
0x2d46   :  { %v4734_v55 = vpop.eup %4733 }
0x2d47   :  { %v2790_v56 = vmul.f32 %v4734_v55, %v4732_v54 }
0x2d49   :  { %2792 = vrot.lane.b32.xlu1 %v2790_v56, %s4832_s14 }
0x2dbb   :  { %v2793_v57 = vpop.permute.xlu1 %2792 }
0x2dbc   :  { %3876 = vst.msk [vmem:[%s5650_s2 + $0x2e] sm:$0x3] %vm140_vm0, %v2793_v57  ;;  %3880 = vmatmul.mubr.msk.f32.vlgmr.msra.gmra.mrb[24].mxu0 %vm39_vm2, %v2793_v57 }
0x2dbd   :  { %3877 = vst.msk [vmem:[%s5650_s2 + $0x10] sm:$0x3] %vm143_vm1, %v2793_v57  ;;  %4352 = vmatpush1.bf16.msra.mxu0 %v4870_v8  ;;  %3104 = vmatprep.mubr.f32.mxu0 %v4831_v3 }
0x2dbe   :  { %4354 = vmatprep.subr.bf16.mxu0 %v4872_v9 }
0x2dc1   :  { %4356 = vmatpush1.bf16.msra.mxu0 %v4889_v14 }
0x2dc2   :  { %4358 = vmatprep.subr.bf16.mxu0 %v4893_v15 }
0x2dc5   :  { %4360 = vmatpush1.bf16.msra.mxu0 %v4909_v20 }
0x2dc6   :  { %4362 = vmatprep.subr.bf16.mxu0 %v4913_v21 }
0x2dc9   :  { %4364 = vmatpush1.bf16.msra.mxu0 %v4923_v24 }
0x2dca   :  { %4382 = vmatprep.subr.bf16.mxu0 %v4859_v4 }
0x2e8f   :  { %v2878_v59 = vpop.f32.mrb[24].mxu0 }
0x2e90   :  { %v2879_v60 = vadd.f32 %v3879_v58, %v2878_v59  ;;  %v2880_v61 = vpop.f32.mrb[25].mxu0 }
0x2e91   :  { %v2881_v0 = vadd.f32 %v2880_v61, %v2807_v63 }
0x2e92   :  { %v3881_v62 = vmul.f32 -1.442695, %v2879_v60 }
0x2e93   :  { %v3882_v10 = vmul.f32 -1.442695, %v2881_v0 }
0x2e94   :  { %4735 = vpow2.f32 %v3881_v62 }
0x2e95   :  { %4737 = vtanh.f32 %v2881_v0 }
0x2e9e   :  { %v4736_v1 = vpop.eup %4735 }
0x2e9f   :  { %v2886_v2 = vadd.f32 1.0, %v4736_v1  ;;  %v4738_v5 = vpop.eup %4737 }
0x2ea1   :  { %4739 = vrcp.f32 %v2886_v2 }
0x2ea2   :  { %4741 = vpow2.f32 %v3882_v10 }
0x2eab   :  { %v4740_v6 = vpop.eup %4739 }
0x2eac   :  { %v2897_v7 = vmul.f32 %v4740_v6, %v4738_v5  ;;  %v4742_v11 = vpop.eup %4741  ;;  %v2896_v13 = vmul.f32 %v4740_v6, %v2788_v53 }
0x2ead   :  { %v2893_v12 = vadd.f32 1.0, %v4742_v11 }
0x2eae   :  { %2899 = vrot.lane.b32.xlu0 %v2897_v7, %s4832_s14  ;;  %v3900_v7 = vld.sshfl [vmem:[%s5649_s0 + $0x6c] sm:$0x33 pattern:$0x76325410] }
0x2eaf   :  { %4743 = vrcp.f32 %v2893_v12 }
0x2eb9   :  { %v4744_v18 = vpop.eup %4743 }
0x2f20   :  { %v2900_v16 = vpop.permute.xlu0 %2899 }
0x2f21   :  { %v2902_v17 = vadd.f32 %v2900_v16, %v2896_v13  ;;  %v3149_v16 = vcombine.high %v3900_v7, %v3900_v7 }
0x2f23   :  { %4745 = vtanh.f32 %v2902_v17 }
0x2f2d   :  { %v4746_v19 = vpop.eup %4745 }
0x2f2e   :  { %v2904_v22 = vmul.f32 %v4746_v19, %v4744_v18 }
0x2f30   :  { %2906 = vrot.lane.b32.xlu1 %v2904_v22, %s4832_s14 }
0x2fa2   :  { %v2907_v23 = vpop.permute.xlu1 %2906 }
0x2fa3   :  { %3883 = vst.msk [vmem:[%s5650_s2 + $0x30] sm:$0x3] %vm140_vm0, %v2907_v23  ;;  %3887 = vmatmul.mubr.msk.f32.vlgmr.msra.gmra.mrb[24].mxu1 %vm39_vm2, %v2907_v23 }
0x2fa4   :  { %3884 = vst.msk [vmem:[%s5650_s2 + $0xe] sm:$0x3] %vm143_vm1, %v2907_v23  ;;  %4368 = vmatpush1.bf16.msra.mxu1 %v4870_v8  ;;  %3218 = vmatprep.mubr.f32.mxu1 %v4831_v3 }
0x2fa5   :  { %4370 = vmatprep.subr.bf16.mxu1 %v4872_v9 }
0x2fa8   :  { %4372 = vmatpush1.bf16.msra.mxu1 %v4889_v14 }
0x2fa9   :  { %4374 = vmatprep.subr.bf16.mxu1 %v4893_v15 }
0x2fac   :  { %4376 = vmatpush1.bf16.msra.mxu1 %v4909_v20 }
0x2fad   :  { %4378 = vmatprep.subr.bf16.mxu1 %v4913_v21 }
0x2fb0   :  { %4380 = vmatpush1.bf16.msra.mxu1 %v4923_v24 }
0x2fb1   :  { %4398 = vmatprep.subr.bf16.mxu1 %v4859_v4 }
0x3076   :  { %v2992_v26 = vpop.f32.mrb[24].mxu1 }
0x3077   :  { %v2993_v27 = vadd.f32 %v3886_v25, %v2992_v26  ;;  %v2994_v28 = vpop.f32.mrb[25].mxu1 }
0x3078   :  { %v2995_v31 = vadd.f32 %v2994_v28, %v2921_v30 }
0x3079   :  { %v3888_v29 = vmul.f32 -1.442695, %v2993_v27 }
0x307a   :  { %v3889_v37 = vmul.f32 -1.442695, %v2995_v31 }
0x307b   :  { %4747 = vpow2.f32 %v3888_v29 }
0x307c   :  { %4749 = vtanh.f32 %v2995_v31 }
0x3085   :  { %v4748_v32 = vpop.eup %4747 }
0x3086   :  { %v3000_v33 = vadd.f32 1.0, %v4748_v32  ;;  %v4750_v34 = vpop.eup %4749 }
0x3088   :  { %4751 = vrcp.f32 %v3000_v33 }
0x3089   :  { %4753 = vpow2.f32 %v3889_v37 }
0x3092   :  { %v4752_v35 = vpop.eup %4751 }
0x3093   :  { %v3011_v36 = vmul.f32 %v4752_v35, %v4750_v34  ;;  %v4754_v38 = vpop.eup %4753  ;;  %v3010_v40 = vmul.f32 %v4752_v35, %v2902_v17  ;;  %v3907_v35 = vld.sshfl [vmem:[%s5649_s0 + $0x70] sm:$0x33 pattern:$0x76325410] }
0x3094   :  { %v3007_v39 = vadd.f32 1.0, %v4754_v38 }
0x3095   :  { %3013 = vrot.lane.b32.xlu0 %v3011_v36, %s4832_s14 }
0x3096   :  { %4755 = vrcp.f32 %v3007_v39 }
0x30a0   :  { %v4756_v43 = vpop.eup %4755 }
0x3107   :  { %v3014_v41 = vpop.permute.xlu0 %3013 }
0x3108   :  { %v3016_v42 = vadd.f32 %v3014_v41, %v3010_v40  ;;  %v3263_v40 = vcombine.high %v3907_v35, %v3907_v35 }
0x310a   :  { %4757 = vtanh.f32 %v3016_v42 }
0x3114   :  { %v4758_v44 = vpop.eup %4757 }
0x3115   :  { %v3018_v45 = vmul.f32 %v4758_v44, %v4756_v43 }
0x3117   :  { %3020 = vrot.lane.b32.xlu1 %v3018_v45, %s4832_s14 }
0x3189   :  { %v3021_v46 = vpop.permute.xlu1 %3020 }
0x318a   :  { %3890 = vst.msk [vmem:[%s5650_s2 + $0x32] sm:$0x3] %vm140_vm0, %v3021_v46  ;;  %3894 = vmatmul.mubr.msk.f32.vlgmr.msra.gmra.mrb[26].mxu0 %vm39_vm2, %v3021_v46 }
0x318b   :  { %3891 = vst.msk [vmem:[%s5650_s2 + $0xc] sm:$0x3] %vm143_vm1, %v3021_v46  ;;  %4384 = vmatpush1.bf16.msra.mxu0 %v4870_v8  ;;  %3332 = vmatprep.mubr.f32.mxu0 %v4831_v3 }
0x318c   :  { %4386 = vmatprep.subr.bf16.mxu0 %v4872_v9 }
0x318f   :  { %4388 = vmatpush1.bf16.msra.mxu0 %v4889_v14 }
0x3190   :  { %4390 = vmatprep.subr.bf16.mxu0 %v4893_v15 }
0x3193   :  { %4392 = vmatpush1.bf16.msra.mxu0 %v4909_v20 }
0x3194   :  { %4394 = vmatprep.subr.bf16.mxu0 %v4913_v21 }
0x3197   :  { %4396 = vmatpush1.bf16.msra.mxu0 %v4923_v24 }
0x3198   :  { %4414 = vmatprep.subr.bf16.mxu0 %v4859_v4 }
0x325d   :  { %v3106_v48 = vpop.f32.mrb[26].mxu0 }
0x325e   :  { %v3107_v49 = vadd.f32 %v3893_v47, %v3106_v48  ;;  %v3108_v50 = vpop.f32.mrb[27].mxu0 }
0x325f   :  { %v3109_v53 = vadd.f32 %v3108_v50, %v3035_v52 }
0x3260   :  { %v3895_v51 = vmul.f32 -1.442695, %v3107_v49 }
0x3261   :  { %v3896_v59 = vmul.f32 -1.442695, %v3109_v53 }
0x3262   :  { %4759 = vpow2.f32 %v3895_v51 }
0x3263   :  { %4761 = vtanh.f32 %v3109_v53 }
0x326c   :  { %v4760_v54 = vpop.eup %4759 }
0x326d   :  { %v3114_v55 = vadd.f32 1.0, %v4760_v54  ;;  %v4762_v56 = vpop.eup %4761 }
0x326f   :  { %4763 = vrcp.f32 %v3114_v55 }
0x3270   :  { %4765 = vpow2.f32 %v3896_v59 }
0x3279   :  { %v4764_v57 = vpop.eup %4763 }
0x327a   :  { %v3125_v58 = vmul.f32 %v4764_v57, %v4762_v56  ;;  %v4766_v60 = vpop.eup %4765  ;;  %v3124_v62 = vmul.f32 %v4764_v57, %v3016_v42  ;;  %v3914_v57 = vld.sshfl [vmem:[%s5649_s0 + $0x74] sm:$0x33 pattern:$0x76325410] }
0x327b   :  { %v3121_v61 = vadd.f32 1.0, %v4766_v60 }
0x327c   :  { %3127 = vrot.lane.b32.xlu0 %v3125_v58, %s4832_s14 }
0x327d   :  { %4767 = vrcp.f32 %v3121_v61 }
0x3287   :  { %v4768_v1 = vpop.eup %4767 }
0x32ee   :  { %v3128_v63 = vpop.permute.xlu0 %3127 }
0x32ef   :  { %v3130_v0 = vadd.f32 %v3128_v63, %v3124_v62 }
0x32f1   :  { %4769 = vtanh.f32 %v3130_v0 }
0x32fb   :  { %v4770_v2 = vpop.eup %4769 }
0x32fc   :  { %v3132_v5 = vmul.f32 %v4770_v2, %v4768_v1 }
0x32fe   :  { %3134 = vrot.lane.b32.xlu1 %v3132_v5, %s4832_s14 }
0x3370   :  { %v3135_v6 = vpop.permute.xlu1 %3134 }
0x3371   :  { %3897 = vst.msk [vmem:[%s5650_s2 + $0x34] sm:$0x3] %vm140_vm0, %v3135_v6  ;;  %3901 = vmatmul.mubr.msk.f32.vlgmr.msra.gmra.mrb[26].mxu1 %vm39_vm2, %v3135_v6 }
0x3372   :  { %3898 = vst.msk [vmem:[%s5650_s2 + $0xa] sm:$0x3] %vm143_vm1, %v3135_v6  ;;  %4400 = vmatpush1.bf16.msra.mxu1 %v4870_v8  ;;  %3446 = vmatprep.mubr.f32.mxu1 %v4831_v3 }
0x3373   :  { %4402 = vmatprep.subr.bf16.mxu1 %v4872_v9 }
0x3376   :  { %4404 = vmatpush1.bf16.msra.mxu1 %v4889_v14 }
0x3377   :  { %4406 = vmatprep.subr.bf16.mxu1 %v4893_v15 }
0x337a   :  { %4408 = vmatpush1.bf16.msra.mxu1 %v4909_v20 }
0x337b   :  { %4410 = vmatprep.subr.bf16.mxu1 %v4913_v21 }
0x337e   :  { %4412 = vmatpush1.bf16.msra.mxu1 %v4923_v24 }
0x337f   :  { %4430 = vmatprep.subr.bf16.mxu1 %v4859_v4 }
0x3444   :  { %v3220_v10 = vpop.f32.mrb[26].mxu1 }
0x3445   :  { %v3221_v11 = vadd.f32 %v3900_v7, %v3220_v10  ;;  %v3222_v12 = vpop.f32.mrb[27].mxu1 }
0x3446   :  { %v3223_v17 = vadd.f32 %v3222_v12, %v3149_v16 }
0x3447   :  { %v3902_v13 = vmul.f32 -1.442695, %v3221_v11  ;;  %v3921_v11 = vld.sshfl [vmem:[%s5649_s0 + $0x78] sm:$0x33 pattern:$0x76325410] }
0x3448   :  { %v3903_v4 = vmul.f32 -1.442695, %v3223_v17 }
0x3449   :  { %4771 = vpow2.f32 %v3902_v13 }
0x344a   :  { %4773 = vtanh.f32 %v3223_v17 }
0x3453   :  { %v4772_v18 = vpop.eup %4771 }
0x3454   :  { %v3228_v19 = vadd.f32 1.0, %v4772_v18  ;;  %v4774_v22 = vpop.eup %4773  ;;  %v3491_v18 = vcombine.high %v3921_v11, %v3921_v11 }
0x3456   :  { %4775 = vrcp.f32 %v3228_v19 }
0x3457   :  { %4777 = vpow2.f32 %v3903_v4 }
0x3460   :  { %v4776_v23 = vpop.eup %4775 }
0x3461   :  { %v3239_v25 = vmul.f32 %v4776_v23, %v4774_v22  ;;  %v4778_v26 = vpop.eup %4777  ;;  %v3238_v28 = vmul.f32 %v4776_v23, %v3130_v0 }
0x3462   :  { %v3235_v27 = vadd.f32 1.0, %v4778_v26 }
0x3463   :  { %3241 = vrot.lane.b32.xlu0 %v3239_v25, %s4832_s14 }
0x3464   :  { %4779 = vrcp.f32 %v3235_v27 }
0x346e   :  { %v4780_v31 = vpop.eup %4779 }
0x34d5   :  { %v3242_v29 = vpop.permute.xlu0 %3241 }
0x34d6   :  { %v3244_v30 = vadd.f32 %v3242_v29, %v3238_v28 }
0x34d8   :  { %4781 = vtanh.f32 %v3244_v30 }
0x34e2   :  { %v4782_v32 = vpop.eup %4781 }
0x34e3   :  { %v3246_v33 = vmul.f32 %v4782_v32, %v4780_v31 }
0x34e5   :  { %3248 = vrot.lane.b32.xlu1 %v3246_v33, %s4832_s14 }
0x3557   :  { %v3249_v34 = vpop.permute.xlu1 %3248 }
0x3558   :  { %3904 = vst.msk [vmem:[%s5650_s2 + $0x36] sm:$0x3] %vm140_vm0, %v3249_v34  ;;  %3908 = vmatmul.mubr.msk.f32.vlgmr.msra.gmra.mrb[28].mxu0 %vm39_vm2, %v3249_v34 }
0x3559   :  { %3905 = vst.msk [vmem:[%s5650_s2 + $0x8] sm:$0x3] %vm143_vm1, %v3249_v34  ;;  %4416 = vmatpush1.bf16.msra.mxu0 %v4870_v8  ;;  %3560 = vmatprep.mubr.f32.mxu0 %v4831_v3 }
0x355a   :  { %4418 = vmatprep.subr.bf16.mxu0 %v4872_v9 }
0x355d   :  { %4420 = vmatpush1.bf16.msra.mxu0 %v4889_v14 }
0x355e   :  { %4422 = vmatprep.subr.bf16.mxu0 %v4893_v15 }
0x3561   :  { %4424 = vmatpush1.bf16.msra.mxu0 %v4909_v20 }
0x3562   :  { %4426 = vmatprep.subr.bf16.mxu0 %v4913_v21 }
0x3565   :  { %4428 = vmatpush1.bf16.msra.mxu0 %v4923_v24 }
0x362b   :  { %v3334_v36 = vpop.f32.mrb[28].mxu0 }
0x362c   :  { %v3335_v37 = vadd.f32 %v3907_v35, %v3334_v36  ;;  %v3336_v38 = vpop.f32.mrb[29].mxu0 }
0x362d   :  { %v3337_v41 = vadd.f32 %v3336_v38, %v3263_v40 }
0x362e   :  { %v3909_v39 = vmul.f32 -1.442695, %v3335_v37  ;;  %v3928_v37 = vld.sshfl [vmem:[%s5649_s0 + $0x7c] sm:$0x33 pattern:$0x76325410] }
0x362f   :  { %v3910_v47 = vmul.f32 -1.442695, %v3337_v41 }
0x3630   :  { %4783 = vpow2.f32 %v3909_v39 }
0x3631   :  { %4785 = vtanh.f32 %v3337_v41 }
0x363a   :  { %v4784_v42 = vpop.eup %4783 }
0x363b   :  { %v3342_v43 = vadd.f32 1.0, %v4784_v42  ;;  %v4786_v44 = vpop.eup %4785  ;;  %v3605_v42 = vcombine.high %v3928_v37, %v3928_v37 }
0x363d   :  { %4787 = vrcp.f32 %v3342_v43 }
0x363e   :  { %4789 = vpow2.f32 %v3910_v47 }
0x3647   :  { %v4788_v45 = vpop.eup %4787 }
0x3648   :  { %v3353_v46 = vmul.f32 %v4788_v45, %v4786_v44  ;;  %v4790_v48 = vpop.eup %4789  ;;  %v3352_v50 = vmul.f32 %v4788_v45, %v3244_v30 }
0x3649   :  { %v3349_v49 = vadd.f32 1.0, %v4790_v48 }
0x364a   :  { %3355 = vrot.lane.b32.xlu0 %v3353_v46, %s4832_s14 }
0x364b   :  { %4791 = vrcp.f32 %v3349_v49 }
0x3655   :  { %v4792_v53 = vpop.eup %4791 }
0x36bc   :  { %v3356_v51 = vpop.permute.xlu0 %3355 }
0x36bd   :  { %v3358_v52 = vadd.f32 %v3356_v51, %v3352_v50 }
0x36bf   :  { %4793 = vtanh.f32 %v3358_v52 }
0x36c9   :  { %v4794_v54 = vpop.eup %4793 }
0x36ca   :  { %v3360_v55 = vmul.f32 %v4794_v54, %v4792_v53 }
0x36cc   :  { %3362 = vrot.lane.b32.xlu1 %v3360_v55, %s4832_s14 }
0x373e   :  { %v3363_v56 = vpop.permute.xlu1 %3362 }
0x373f   :  { %3911 = vst.msk [vmem:[%s5650_s2 + $0x38] sm:$0x3] %vm140_vm0, %v3363_v56  ;;  %3915 = vmatmul.mubr.msk.f32.vlgmr.msra.gmra.mrb[28].mxu1 %vm39_vm2, %v3363_v56 }
0x3740   :  { %3912 = vst.msk [vmem:[%s5650_s2 + $0x6] sm:$0x3] %vm143_vm1, %v3363_v56  ;;  %4432 = vmatpush1.bf16.msra.mxu1 %v4870_v8  ;;  %3674 = vmatprep.mubr.f32.mxu1 %v4831_v3 }
0x3741   :  { %4434 = vmatprep.subr.bf16.mxu1 %v4872_v9  ;;  %v3377_v9 = vcombine.high %v3914_v57, %v3914_v57 }
0x3744   :  { %4436 = vmatpush1.bf16.msra.mxu1 %v4889_v14 }
0x3745   :  { %4438 = vmatprep.subr.bf16.mxu1 %v4893_v15 }
0x3748   :  { %4440 = vmatpush1.bf16.msra.mxu1 %v4909_v20 }
0x3749   :  { %4442 = vmatprep.subr.bf16.mxu1 %v4913_v21 }
0x374c   :  { %4444 = vmatpush1.bf16.msra.mxu1 %v4923_v24 }
0x3812   :  { %v3448_v58 = vpop.f32.mrb[28].mxu1 }
0x3813   :  { %v3449_v8 = vadd.f32 %v3914_v57, %v3448_v58  ;;  %v3450_v59 = vpop.f32.mrb[29].mxu1 }
0x3814   :  { %v3451_v60 = vadd.f32 %v3450_v59, %v3377_v9 }
0x3815   :  { %v3916_v3 = vmul.f32 -1.442695, %v3449_v8 }
0x3816   :  { %v3917_v24 = vmul.f32 -1.442695, %v3451_v60 }
0x3817   :  { %4795 = vpow2.f32 %v3916_v3 }
0x3818   :  { %4797 = vtanh.f32 %v3451_v60 }
0x3821   :  { %v4796_v14 = vpop.eup %4795 }
0x3822   :  { %v3456_v61 = vadd.f32 1.0, %v4796_v14  ;;  %v4798_v15 = vpop.eup %4797 }
0x3824   :  { %4799 = vrcp.f32 %v3456_v61 }
0x3825   :  { %4801 = vpow2.f32 %v3917_v24 }
0x382e   :  { %v4800_v20 = vpop.eup %4799 }
0x382f   :  { %v3467_v21 = vmul.f32 %v4800_v20, %v4798_v15  ;;  %v4802_v62 = vpop.eup %4801  ;;  %v3466_v0 = vmul.f32 %v4800_v20, %v3358_v52 }
0x3830   :  { %v3463_v63 = vadd.f32 1.0, %v4802_v62 }
0x3831   :  { %3469 = vrot.lane.b32.xlu0 %v3467_v21, %s4832_s14 }
0x3832   :  { %4803 = vrcp.f32 %v3463_v63 }
0x383c   :  { %v4804_v5 = vpop.eup %4803 }
0x38a3   :  { %v3470_v1 = vpop.permute.xlu0 %3469 }
0x38a4   :  { %v3472_v2 = vadd.f32 %v3470_v1, %v3466_v0 }
0x38a6   :  { %4805 = vtanh.f32 %v3472_v2 }
0x38b0   :  { %v4806_v6 = vpop.eup %4805 }
0x38b1   :  { %v3474_v7 = vmul.f32 %v4806_v6, %v4804_v5 }
0x38b3   :  { %3476 = vrot.lane.b32.xlu1 %v3474_v7, %s4832_s14 }
0x3925   :  { %v3477_v10 = vpop.permute.xlu1 %3476 }
0x3926   :  { %3918 = vst.msk [vmem:[%s5650_s2 + $0x3a] sm:$0x3] %vm140_vm0, %v3477_v10  ;;  %3922 = vmatmul.mubr.msk.f32.vlgmr.msra.gmra.mrb[30].mxu0 %vm39_vm2, %v3477_v10 }
0x3927   :  { %3919 = vst.msk [vmem:[%s5650_s2 + $0x4] sm:$0x3] %vm143_vm1, %v3477_v10 }
0x39f9   :  { %v3562_v12 = vpop.f32.mrb[30].mxu0 }
0x39fa   :  { %v3563_v13 = vadd.f32 %v3921_v11, %v3562_v12  ;;  %v3564_v16 = vpop.f32.mrb[31].mxu0 }
0x39fb   :  { %v3565_v19 = vadd.f32 %v3564_v16, %v3491_v18 }
0x39fc   :  { %v3923_v17 = vmul.f32 -1.442695, %v3563_v13 }
0x39fd   :  { %v3924_v27 = vmul.f32 -1.442695, %v3565_v19 }
0x39fe   :  { %4807 = vpow2.f32 %v3923_v17 }
0x39ff   :  { %4809 = vtanh.f32 %v3565_v19 }
0x3a08   :  { %v4808_v22 = vpop.eup %4807 }
0x3a09   :  { %v3570_v23 = vadd.f32 1.0, %v4808_v22  ;;  %v4810_v25 = vpop.eup %4809 }
0x3a0b   :  { %4811 = vrcp.f32 %v3570_v23 }
0x3a0c   :  { %4813 = vpow2.f32 %v3924_v27 }
0x3a15   :  { %v4812_v4 = vpop.eup %4811 }
0x3a16   :  { %v3581_v26 = vmul.f32 %v4812_v4, %v4810_v25  ;;  %v4814_v28 = vpop.eup %4813  ;;  %v3580_v30 = vmul.f32 %v4812_v4, %v3472_v2 }
0x3a17   :  { %v3577_v29 = vadd.f32 1.0, %v4814_v28 }
0x3a18   :  { %3583 = vrot.lane.b32.xlu0 %v3581_v26, %s4832_s14 }
0x3a19   :  { %4815 = vrcp.f32 %v3577_v29 }
0x3a23   :  { %v4816_v33 = vpop.eup %4815 }
0x3a8a   :  { %v3584_v31 = vpop.permute.xlu0 %3583 }
0x3a8b   :  { %v3586_v32 = vadd.f32 %v3584_v31, %v3580_v30 }
0x3a8d   :  { %4817 = vtanh.f32 %v3586_v32 }
0x3a97   :  { %v4818_v34 = vpop.eup %4817 }
0x3a98   :  { %v3588_v35 = vmul.f32 %v4818_v34, %v4816_v33 }
0x3a9a   :  { %3590 = vrot.lane.b32.xlu1 %v3588_v35, %s4832_s14 }
0x3b0c   :  { %v3591_v36 = vpop.permute.xlu1 %3590 }
0x3b0d   :  { %3925 = vst.msk [vmem:[%s5650_s2 + $0x3c] sm:$0x3] %vm140_vm0, %v3591_v36  ;;  %3929 = vmatmul.mubr.msk.f32.vlgmr.msra.gmra.mrb[30].mxu1 %vm39_vm2, %v3591_v36 }
0x3b0e   :  { %3926 = vst.msk [vmem:[%s5650_s2 + $0x2] sm:$0x3] %vm143_vm1, %v3591_v36 }
0x3be0   :  { %v3676_v38 = vpop.f32.mrb[30].mxu1 }
0x3be1   :  { %v3677_v39 = vadd.f32 %v3928_v37, %v3676_v38  ;;  %v3678_v40 = vpop.f32.mrb[31].mxu1 }
0x3be2   :  { %v3679_v43 = vadd.f32 %v3678_v40, %v3605_v42 }
0x3be3   :  { %v3930_v41 = vmul.f32 -1.442695, %v3677_v39 }
0x3be4   :  { %v3931_v49 = vmul.f32 -1.442695, %v3679_v43 }
0x3be5   :  { %4819 = vpow2.f32 %v3930_v41 }
0x3be6   :  { %4821 = vtanh.f32 %v3679_v43 }
0x3bef   :  { %v4820_v44 = vpop.eup %4819 }
0x3bf0   :  { %v3684_v45 = vadd.f32 1.0, %v4820_v44  ;;  %v4822_v46 = vpop.eup %4821 }
0x3bf2   :  { %4823 = vrcp.f32 %v3684_v45 }
0x3bf3   :  { %4825 = vpow2.f32 %v3931_v49 }
0x3bfc   :  { %v4824_v47 = vpop.eup %4823 }
0x3bfd   :  { %v3695_v48 = vmul.f32 %v4824_v47, %v4822_v46  ;;  %v4826_v50 = vpop.eup %4825  ;;  %v3694_v52 = vmul.f32 %v4824_v47, %v3586_v32 }
0x3bfe   :  { %v3691_v51 = vadd.f32 1.0, %v4826_v50 }
0x3bff   :  { %3697 = vrot.lane.b32.xlu0 %v3695_v48, %s4832_s14 }
0x3c00   :  { %4827 = vrcp.f32 %v3691_v51 }
0x3c0a   :  { %v4828_v55 = vpop.eup %4827 }
0x3c71   :  { %v3698_v53 = vpop.permute.xlu0 %3697 }
0x3c72   :  { %v3700_v54 = vadd.f32 %v3698_v53, %v3694_v52 }
0x3c74   :  { %4829 = vtanh.f32 %v3700_v54 }
0x3c7e   :  { %v4830_v56 = vpop.eup %4829 }
0x3c7f   :  { %v3702_v57 = vmul.f32 %v4830_v56, %v4828_v55 }
0x3c81   :  { %3704 = vrot.lane.b32.xlu1 %v3702_v57, %s4832_s14 }
0x3cf3   :  { %v3705_v58 = vpop.permute.xlu1 %3704 }
0x3cf4   :  { %3932 = vst.msk [vmem:[%s5650_s2 + $0x3e] sm:$0x3] %vm140_vm0, %v3705_v58 }
0x3cf5   :  { %3708 = vst.msk [vmem:[%s5650_s2] sm:$0x3] %vm143_vm1, %v3705_v58 }

// kernel: forward.9
= control target key start
LH: loop header
LB: loop body
LE: loop exit
PB: predicated region body
PF: predicated region fallthrough
CT: control target
= control target key end

     0   :  { %v4848_v7 = vmov 0.0   ;;  %s5467_s0 = inlined_call_operand.vmem [shape: f32[32,2,256], index: 0, kind: input, shape index: {}]   ;;  %s5468_s1 = inlined_call_operand.vmem [shape: f32[64,256], index: 1, kind: input, shape index: {}]   ;;  %s5469_s2 = inlined_call_operand.vmem [shape: f32[64,10], index: 2, kind: input, shape index: {}]   ;;  %s5470_s3 = inlined_call_operand.vmem [shape: f32[1,10], index: 3, kind: input, shape index: {}]   ;;  %s5471_s4 = inlined_call_operand.hbm [shape: f32[2,10], index: 4, kind: output, shape index: {}]  }
   0x1   :  { %v19_v0 = vld [vmem:[%s5468_s1 + $0x8] sm:$0xff]  ;;  %v21_v1 = vld [vmem:[%s5468_s1 + $0x18] sm:$0xff]  ;;  %v18_v2 = vld [vmem:[%s5468_s1] sm:$0xff]  ;;  %114 = vmatprep.mubr.f32.mxu0 %v4848_v7  ;;  %226 = vmatprep.mubr.f32.mxu1 %v4848_v7 }
   0x2   :  { %v4887_v3 = vpack.c.bf16 %v21_v1, %v19_v0  ;;  %v20_v4 = vld [vmem:[%s5468_s1 + $0x10] sm:$0xff]  ;;  %v23_v5 = vld [vmem:[%s5468_s1 + $0x28] sm:$0xff]  ;;  %v25_v6 = vld [vmem:[%s5468_s1 + $0x38] sm:$0xff] }
   0x3   :  { %v4900_v8 = vpack.c.bf16 %v20_v4, %v18_v2  ;;  %v4902_v9 = vpack.c.bf16 %v25_v6, %v23_v5  ;;  %v22_v10 = vld [vmem:[%s5468_s1 + $0x20] sm:$0xff]  ;;  %v24_v11 = vld [vmem:[%s5468_s1 + $0x30] sm:$0xff]  ;;  %v27_v12 = vld [vmem:[%s5468_s1 + $0x48] sm:$0xff] }
   0x4   :  { %3912 = vmatprep.subr.bf16.mxu0 %v4887_v3  ;;  %v29_v13 = vld [vmem:[%s5468_s1 + $0x58] sm:$0xff]  ;;  %3928 = vmatprep.subr.bf16.mxu1 %v4887_v3  ;;  %v4919_v14 = vpack.c.bf16 %v24_v11, %v22_v10  ;;  %v26_v16 = vld [vmem:[%s5468_s1 + $0x40] sm:$0xff]  ;;  %v28_v17 = vld [vmem:[%s5468_s1 + $0x50] sm:$0xff] }
   0x5   :  { %3914 = vmatpush1.bf16.msra.mxu0 %v4900_v8  ;;  %3930 = vmatpush1.bf16.msra.mxu1 %v4900_v8  ;;  %v4923_v15 = vpack.c.bf16 %v29_v13, %v27_v12  ;;  %v31_v18 = vld [vmem:[%s5468_s1 + $0x68] sm:$0xff]  ;;  %v33_v19 = vld [vmem:[%s5468_s1 + $0x78] sm:$0xff] }
   0x6   :  { %3916 = vmatprep.subr.bf16.mxu0 %v4902_v9  ;;  %3932 = vmatprep.subr.bf16.mxu1 %v4902_v9 }
   0x7   :  { %9 = vsyncpa [#allocation3], 0  ;;  %v4939_v20 = vpack.c.bf16 %v28_v17, %v26_v16  ;;  %v4943_v21 = vpack.c.bf16 %v33_v19, %v31_v18  ;;  %v30_v22 = vld [vmem:[%s5468_s1 + $0x60] sm:$0xff]  ;;  %v32_v23 = vld [vmem:[%s5468_s1 + $0x70] sm:$0xff]  ;;  %s4849_s22 = smov 64   ;;  %vm46_vm0 = vcmask 523264  }
   0x8   :  { %v4953_v24 = vpack.c.bf16 %v32_v23, %v30_v22  ;;  %v3723_v25 = vld.sshfl [vmem:[%s5467_s0] sm:$0x33 pattern:$0x76325410]  ;;  %vm4851_vm1 = vmmov 0   ;;  %s4852_s23 = smov [#allocation2]  }
   0x9   :  { %3918 = vmatpush1.bf16.msra.mxu0 %v4919_v14  ;;  %3934 = vmatpush1.bf16.msra.mxu1 %v4919_v14  ;;  %v43_v30 = vcombine.high %v3723_v25, %v3723_v25  ;;  %v3727_v47 = vld.sshfl [vmem:[%s5467_s0 + $0x4] sm:$0x33 pattern:$0x76325410]  ;;  %s3715_s24 = sshll.u32 %s4852_s23, 4  ;;  %vm3707_vm2 = vcmask 74752   ;;  %s3716_s24 = int_to_ptr.vmem [resolvable:$true] %s3715_s24 }
   0xa   :  { %3920 = vmatprep.subr.bf16.mxu0 %v4923_v15  ;;  %3936 = vmatprep.subr.bf16.mxu1 %v4923_v15  ;;  %v157_v52 = vcombine.high %v3727_v47, %v3727_v47  ;;  %v3732_v6 = vld.sshfl [vmem:[%s5467_s0 + $0x8] sm:$0x33 pattern:$0x76325410]  ;;  %s4824_s25 = scalar_lea.vmem %s3716_s24, 32  ;;  %p4829_p1 = scmp.lt.s32.totalorder %s3716_s24, %s3716_s24 }
   0xb   :  { %v269_v16 = vcombine.high %v3732_v6, %v3732_v6  ;;  %p4825_p0 = scmp.ne.s32.totalorder %s3716_s24, %s4824_s25  ;;  %p4830_p2 = scmp.lt.s32.totalorder %s4824_s25, %s4824_s25 }
   0xd   :  { %3922 = vmatpush1.bf16.msra.mxu0 %v4939_v20  ;;  %3938 = vmatpush1.bf16.msra.mxu1 %v4939_v20  ;;  %p4831_p3 = por %p4830_p2, %p4829_p1 }
   0xe   :  { %3924 = vmatprep.subr.bf16.mxu0 %v4943_v21  ;;  %3940 = vmatprep.subr.bf16.mxu1 %v4943_v21 }
   0xf   :  { %p4832_p4 = pnand %p4831_p3, %p4825_p0 }
  0x11   :  { %3926 = vmatpush1.bf16.msra.mxu0 %v4953_v24  ;;  %3942 = vmatpush1.bf16.msra.mxu1 %v4953_v24 }
  0x12   :  { %3944 = vmatprep.subr.bf16.mxu0 %v4887_v3  ;;  %3960 = vmatprep.subr.bf16.mxu1 %v4887_v3 }
  0x14   :  { %115 = vmatmul.mubr.f32.vlgmr.msra.gmra.mrb[0].mxu0 %v4848_v7 }
  0x15   :  { %3946 = vmatpush1.bf16.msra.mxu0 %v4900_v8  ;;  %338 = vmatprep.mubr.f32.mxu0 %v4848_v7 }
  0x16   :  { %3948 = vmatprep.subr.bf16.mxu0 %v4902_v9 }
  0x19   :  { %3950 = vmatpush1.bf16.msra.mxu0 %v4919_v14 }
  0x1a   :  { %3952 = vmatprep.subr.bf16.mxu0 %v4923_v15 }
  0x1d   :  { %3954 = vmatpush1.bf16.msra.mxu0 %v4939_v20 }
  0x1e   :  { %3956 = vmatprep.subr.bf16.mxu0 %v4943_v21 }
  0x21   :  { %3958 = vmatpush1.bf16.msra.mxu0 %v4953_v24 }
  0x22   :  { %3976 = vmatprep.subr.bf16.mxu0 %v4887_v3 }
  0xe7   :  { %v116_v26 = vpop.f32.mrb[0].mxu0 }
  0xe8   :  { %v117_v27 = vadd.f32 %v3723_v25, %v116_v26  ;;  %v118_v28 = vpop.f32.mrb[1].mxu0 }
  0xe9   :  { %v119_v31 = vadd.f32 %v118_v28, %v43_v30 }
  0xea   :  { %v3724_v29 = vmul.f32 -1.442695, %v117_v27 }
  0xeb   :  { %v3725_v37 = vmul.f32 -1.442695, %v119_v31 }
  0xec   :  { %4440 = vpow2.f32 %v3724_v29 }
  0xed   :  { %4442 = vtanh.f32 %v119_v31 }
  0xf6   :  { %v4441_v32 = vpop.eup %4440 }
  0xf7   :  { %v124_v33 = vadd.f32 1.0, %v4441_v32  ;;  %v4443_v34 = vpop.eup %4442 }
  0xf9   :  { %4444 = vrcp.f32 %v124_v33 }
  0xfa   :  { %4446 = vpow2.f32 %v3725_v37 }
 0x103   :  { %v4445_v35 = vpop.eup %4444 }
 0x104   :  { %v135_v36 = vmul.f32 %v4445_v35, %v4443_v34  ;;  %v4447_v38 = vpop.eup %4446  ;;  %v134_v40 = vmul.f32 0.0, %v4445_v35 }
 0x105   :  { %v131_v39 = vadd.f32 1.0, %v4447_v38  ;;  %v3737_v38 = vld.sshfl [vmem:[%s5467_s0 + $0xc] sm:$0x33 pattern:$0x76325410] }
 0x106   :  { %137 = vrot.lane.b32.xlu0 %v135_v36, %s4849_s22 }
 0x107   :  { %4448 = vrcp.f32 %v131_v39 }
 0x111   :  { %v4449_v43 = vpop.eup %4448 }
 0x178   :  { %v138_v41 = vpop.permute.xlu0 %137 }
 0x179   :  { %v140_v42 = vadd.f32 %v138_v41, %v134_v40 }
 0x17b   :  { %4450 = vtanh.f32 %v140_v42 }
 0x185   :  { %v4451_v44 = vpop.eup %4450 }
 0x186   :  { %v4976_v45 = vmul.f32 %v4451_v44, %v4449_v43  ;;  %v381_v43 = vcombine.high %v3737_v38, %v3737_v38 }
 0x188   :  { %147 = vrot.lane.b32.xlu0 %v4976_v45, %s4849_s22 }
 0x1fa   :  { %v148_v46 = vpop.permute.xlu0 %147 }
 0x1fb   :  { %3728 = vmatmul.mubr.msk.f32.vlgmr.msra.gmra.mrb[0].mxu1 %vm46_vm0, %v148_v46 }
 0x1fc   :  { %3962 = vmatpush1.bf16.msra.mxu1 %v4900_v8  ;;  %450 = vmatprep.mubr.f32.mxu1 %v4848_v7 }
 0x1fd   :  { %3964 = vmatprep.subr.bf16.mxu1 %v4902_v9 }
 0x200   :  { %3966 = vmatpush1.bf16.msra.mxu1 %v4919_v14 }
 0x201   :  { %3968 = vmatprep.subr.bf16.mxu1 %v4923_v15 }
 0x204   :  { %3970 = vmatpush1.bf16.msra.mxu1 %v4939_v20 }
 0x205   :  { %3972 = vmatprep.subr.bf16.mxu1 %v4943_v21 }
 0x208   :  { %3974 = vmatpush1.bf16.msra.mxu1 %v4953_v24 }
 0x209   :  { %3992 = vmatprep.subr.bf16.mxu1 %v4887_v3 }
 0x2ce   :  { %v228_v48 = vpop.f32.mrb[0].mxu1 }
 0x2cf   :  { %v229_v49 = vadd.f32 %v3727_v47, %v228_v48  ;;  %v230_v50 = vpop.f32.mrb[1].mxu1 }
 0x2d0   :  { %v231_v53 = vadd.f32 %v230_v50, %v157_v52 }
 0x2d1   :  { %v3729_v51 = vmul.f32 -1.442695, %v229_v49 }
 0x2d2   :  { %v3730_v59 = vmul.f32 -1.442695, %v231_v53 }
 0x2d3   :  { %4452 = vpow2.f32 %v3729_v51 }
 0x2d4   :  { %4454 = vtanh.f32 %v231_v53 }
 0x2dd   :  { %v4453_v54 = vpop.eup %4452 }
 0x2de   :  { %v236_v55 = vadd.f32 1.0, %v4453_v54  ;;  %v4455_v56 = vpop.eup %4454 }
 0x2e0   :  { %4456 = vrcp.f32 %v236_v55 }
 0x2e1   :  { %4458 = vpow2.f32 %v3730_v59 }
 0x2ea   :  { %v4457_v57 = vpop.eup %4456 }
 0x2eb   :  { %v247_v58 = vmul.f32 %v4457_v57, %v4455_v56  ;;  %v4459_v60 = vpop.eup %4458  ;;  %v246_v62 = vmul.f32 %v4457_v57, %v140_v42 }
 0x2ec   :  { %v243_v61 = vadd.f32 1.0, %v4459_v60 }
 0x2ed   :  { %249 = vrot.lane.b32.xlu1 %v247_v58, %s4849_s22 }
 0x2ee   :  { %4460 = vrcp.f32 %v243_v61  ;;  %v3742_v61 = vld.sshfl [vmem:[%s5467_s0 + $0x10] sm:$0x33 pattern:$0x76325410] }
 0x2f8   :  { %v4461_v1 = vpop.eup %4460 }
 0x35f   :  { %v250_v63 = vpop.permute.xlu1 %249 }
 0x360   :  { %v252_v0 = vadd.f32 %v250_v63, %v246_v62 }
 0x362   :  { %4462 = vtanh.f32 %v252_v0 }
 0x36c   :  { %v4463_v2 = vpop.eup %4462 }
 0x36d   :  { %v254_v4 = vmul.f32 %v4463_v2, %v4461_v1  ;;  %v493_v2 = vcombine.high %v3742_v61, %v3742_v61 }
 0x36f   :  { %259 = vrot.lane.b32.xlu1 %v254_v4, %s4849_s22  ;;  %v255_v34 = vadd.f32 %v254_v4, %v4976_v45 }
 0x3e1   :  { %v260_v5 = vpop.permute.xlu1 %259 }
 0x3e2   :  { %3733 = vmatmul.mubr.msk.f32.vlgmr.msra.gmra.mrb[2].mxu0 %vm46_vm0, %v260_v5 }
 0x3e3   :  { %3978 = vmatpush1.bf16.msra.mxu0 %v4900_v8  ;;  %562 = vmatprep.mubr.f32.mxu0 %v4848_v7 }
 0x3e4   :  { %3980 = vmatprep.subr.bf16.mxu0 %v4902_v9 }
 0x3e7   :  { %3982 = vmatpush1.bf16.msra.mxu0 %v4919_v14 }
 0x3e8   :  { %3984 = vmatprep.subr.bf16.mxu0 %v4923_v15 }
 0x3eb   :  { %3986 = vmatpush1.bf16.msra.mxu0 %v4939_v20 }
 0x3ec   :  { %3988 = vmatprep.subr.bf16.mxu0 %v4943_v21 }
 0x3ef   :  { %3990 = vmatpush1.bf16.msra.mxu0 %v4953_v24 }
 0x3f0   :  { %4008 = vmatprep.subr.bf16.mxu0 %v4887_v3 }
 0x4b5   :  { %v340_v10 = vpop.f32.mrb[2].mxu0 }
 0x4b6   :  { %v341_v11 = vadd.f32 %v3732_v6, %v340_v10  ;;  %v342_v12 = vpop.f32.mrb[3].mxu0 }
 0x4b7   :  { %v343_v17 = vadd.f32 %v342_v12, %v269_v16 }
 0x4b8   :  { %v3734_v13 = vmul.f32 -1.442695, %v341_v11 }
 0x4b9   :  { %v3735_v26 = vmul.f32 -1.442695, %v343_v17 }
 0x4ba   :  { %4464 = vpow2.f32 %v3734_v13 }
 0x4bb   :  { %4466 = vtanh.f32 %v343_v17 }
 0x4c4   :  { %v4465_v18 = vpop.eup %4464 }
 0x4c5   :  { %v348_v19 = vadd.f32 1.0, %v4465_v18  ;;  %v4467_v22 = vpop.eup %4466 }
 0x4c7   :  { %4468 = vrcp.f32 %v348_v19 }
 0x4c8   :  { %4470 = vpow2.f32 %v3735_v26 }
 0x4d1   :  { %v4469_v23 = vpop.eup %4468 }
 0x4d2   :  { %v359_v25 = vmul.f32 %v4469_v23, %v4467_v22  ;;  %v4471_v27 = vpop.eup %4470  ;;  %v358_v29 = vmul.f32 %v4469_v23, %v252_v0 }
 0x4d3   :  { %v355_v28 = vadd.f32 1.0, %v4471_v27 }
 0x4d4   :  { %361 = vrot.lane.b32.xlu0 %v359_v25, %s4849_s22 }
 0x4d5   :  { %4472 = vrcp.f32 %v355_v28 }
 0x4df   :  { %v4473_v32 = vpop.eup %4472 }
 0x546   :  { %v362_v30 = vpop.permute.xlu0 %361 }
 0x547   :  { %v364_v31 = vadd.f32 %v362_v30, %v358_v29  ;;  %v3747_v29 = vld.sshfl [vmem:[%s5467_s0 + $0x14] sm:$0x33 pattern:$0x76325410] }
 0x549   :  { %4474 = vtanh.f32 %v364_v31 }
 0x553   :  { %v4475_v33 = vpop.eup %4474 }
 0x554   :  { %v366_v35 = vmul.f32 %v4475_v33, %v4473_v32 }
 0x556   :  { %371 = vrot.lane.b32.xlu1 %v366_v35, %s4849_s22  ;;  %v367_v36 = vadd.f32 %v366_v35, %v255_v34  ;;  %v605_v34 = vcombine.high %v3747_v29, %v3747_v29 }
 0x5c8   :  { %v372_v37 = vpop.permute.xlu1 %371 }
 0x5c9   :  { %3738 = vmatmul.mubr.msk.f32.vlgmr.msra.gmra.mrb[2].mxu1 %vm46_vm0, %v372_v37 }
 0x5ca   :  { %3994 = vmatpush1.bf16.msra.mxu1 %v4900_v8  ;;  %674 = vmatprep.mubr.f32.mxu1 %v4848_v7 }
 0x5cb   :  { %3996 = vmatprep.subr.bf16.mxu1 %v4902_v9 }
 0x5ce   :  { %3998 = vmatpush1.bf16.msra.mxu1 %v4919_v14 }
 0x5cf   :  { %4000 = vmatprep.subr.bf16.mxu1 %v4923_v15 }
 0x5d2   :  { %4002 = vmatpush1.bf16.msra.mxu1 %v4939_v20 }
 0x5d3   :  { %4004 = vmatprep.subr.bf16.mxu1 %v4943_v21 }
 0x5d6   :  { %4006 = vmatpush1.bf16.msra.mxu1 %v4953_v24 }
 0x5d7   :  { %4024 = vmatprep.subr.bf16.mxu1 %v4887_v3 }
 0x69c   :  { %v452_v39 = vpop.f32.mrb[2].mxu1 }
 0x69d   :  { %v453_v40 = vadd.f32 %v3737_v38, %v452_v39  ;;  %v454_v41 = vpop.f32.mrb[3].mxu1 }
 0x69e   :  { %v455_v44 = vadd.f32 %v454_v41, %v381_v43 }
 0x69f   :  { %v3739_v42 = vmul.f32 -1.442695, %v453_v40 }
 0x6a0   :  { %v3740_v50 = vmul.f32 -1.442695, %v455_v44 }
 0x6a1   :  { %4476 = vpow2.f32 %v3739_v42 }
 0x6a2   :  { %4478 = vtanh.f32 %v455_v44 }
 0x6ab   :  { %v4477_v45 = vpop.eup %4476 }
 0x6ac   :  { %v460_v46 = vadd.f32 1.0, %v4477_v45  ;;  %v4479_v47 = vpop.eup %4478 }
 0x6ae   :  { %4480 = vrcp.f32 %v460_v46 }
 0x6af   :  { %4482 = vpow2.f32 %v3740_v50 }
 0x6b8   :  { %v4481_v48 = vpop.eup %4480 }
 0x6b9   :  { %v471_v49 = vmul.f32 %v4481_v48, %v4479_v47  ;;  %v4483_v51 = vpop.eup %4482  ;;  %v470_v53 = vmul.f32 %v4481_v48, %v364_v31 }
 0x6ba   :  { %v467_v52 = vadd.f32 1.0, %v4483_v51 }
 0x6bb   :  { %473 = vrot.lane.b32.xlu0 %v471_v49, %s4849_s22 }
 0x6bc   :  { %4484 = vrcp.f32 %v467_v52  ;;  %v3752_v52 = vld.sshfl [vmem:[%s5467_s0 + $0x18] sm:$0x33 pattern:$0x76325410] }
 0x6c6   :  { %v4485_v56 = vpop.eup %4484 }
 0x72d   :  { %v474_v54 = vpop.permute.xlu0 %473 }
 0x72e   :  { %v476_v55 = vadd.f32 %v474_v54, %v470_v53 }
 0x730   :  { %4486 = vtanh.f32 %v476_v55 }
 0x73a   :  { %v4487_v57 = vpop.eup %4486 }
 0x73b   :  { %v478_v58 = vmul.f32 %v4487_v57, %v4485_v56  ;;  %v717_v57 = vcombine.high %v3752_v52, %v3752_v52 }
 0x73d   :  { %483 = vrot.lane.b32.xlu1 %v478_v58, %s4849_s22  ;;  %v479_v59 = vadd.f32 %v478_v58, %v367_v36 }
 0x7af   :  { %v484_v60 = vpop.permute.xlu1 %483 }
 0x7b0   :  { %3743 = vmatmul.mubr.msk.f32.vlgmr.msra.gmra.mrb[4].mxu0 %vm46_vm0, %v484_v60 }
 0x7b1   :  { %4010 = vmatpush1.bf16.msra.mxu0 %v4900_v8  ;;  %786 = vmatprep.mubr.f32.mxu0 %v4848_v7 }
 0x7b2   :  { %4012 = vmatprep.subr.bf16.mxu0 %v4902_v9 }
 0x7b5   :  { %4014 = vmatpush1.bf16.msra.mxu0 %v4919_v14 }
 0x7b6   :  { %4016 = vmatprep.subr.bf16.mxu0 %v4923_v15 }
 0x7b9   :  { %4018 = vmatpush1.bf16.msra.mxu0 %v4939_v20 }
 0x7ba   :  { %4020 = vmatprep.subr.bf16.mxu0 %v4943_v21 }
 0x7bd   :  { %4022 = vmatpush1.bf16.msra.mxu0 %v4953_v24 }
 0x7be   :  { %4040 = vmatprep.subr.bf16.mxu0 %v4887_v3 }
 0x883   :  { %v564_v62 = vpop.f32.mrb[4].mxu0 }
 0x884   :  { %v565_v63 = vadd.f32 %v3742_v61, %v564_v62  ;;  %v566_v0 = vpop.f32.mrb[5].mxu0 }
 0x885   :  { %v567_v4 = vadd.f32 %v566_v0, %v493_v2 }
 0x886   :  { %v3744_v1 = vmul.f32 -1.442695, %v565_v63 }
 0x887   :  { %v3745_v13 = vmul.f32 -1.442695, %v567_v4 }
 0x888   :  { %4488 = vpow2.f32 %v3744_v1 }
 0x889   :  { %4490 = vtanh.f32 %v567_v4 }
 0x892   :  { %v4489_v5 = vpop.eup %4488 }
 0x893   :  { %v572_v6 = vadd.f32 1.0, %v4489_v5  ;;  %v4491_v10 = vpop.eup %4490 }
 0x895   :  { %4492 = vrcp.f32 %v572_v6 }
 0x896   :  { %4494 = vpow2.f32 %v3745_v13 }
 0x89f   :  { %v4493_v11 = vpop.eup %4492 }
 0x8a0   :  { %v583_v12 = vmul.f32 %v4493_v11, %v4491_v10  ;;  %v4495_v16 = vpop.eup %4494  ;;  %v582_v18 = vmul.f32 %v4493_v11, %v476_v55 }
 0x8a1   :  { %v579_v17 = vadd.f32 1.0, %v4495_v16 }
 0x8a2   :  { %585 = vrot.lane.b32.xlu0 %v583_v12, %s4849_s22 }
 0x8a3   :  { %4496 = vrcp.f32 %v579_v17  ;;  %v3757_v17 = vld.sshfl [vmem:[%s5467_s0 + $0x1c] sm:$0x33 pattern:$0x76325410] }
 0x8ad   :  { %v4497_v23 = vpop.eup %4496 }
 0x914   :  { %v586_v19 = vpop.permute.xlu0 %585 }
 0x915   :  { %v588_v22 = vadd.f32 %v586_v19, %v582_v18 }
 0x917   :  { %4498 = vtanh.f32 %v588_v22 }
 0x921   :  { %v4499_v25 = vpop.eup %4498 }
 0x922   :  { %v590_v26 = vmul.f32 %v4499_v25, %v4497_v23  ;;  %v829_v25 = vcombine.high %v3757_v17, %v3757_v17 }
 0x924   :  { %595 = vrot.lane.b32.xlu1 %v590_v26, %s4849_s22  ;;  %v591_v27 = vadd.f32 %v590_v26, %v479_v59 }
 0x996   :  { %v596_v28 = vpop.permute.xlu1 %595 }
 0x997   :  { %3748 = vmatmul.mubr.msk.f32.vlgmr.msra.gmra.mrb[4].mxu1 %vm46_vm0, %v596_v28 }
 0x998   :  { %4026 = vmatpush1.bf16.msra.mxu1 %v4900_v8  ;;  %898 = vmatprep.mubr.f32.mxu1 %v4848_v7 }
 0x999   :  { %4028 = vmatprep.subr.bf16.mxu1 %v4902_v9 }
 0x99c   :  { %4030 = vmatpush1.bf16.msra.mxu1 %v4919_v14 }
 0x99d   :  { %4032 = vmatprep.subr.bf16.mxu1 %v4923_v15 }
 0x9a0   :  { %4034 = vmatpush1.bf16.msra.mxu1 %v4939_v20 }
 0x9a1   :  { %4036 = vmatprep.subr.bf16.mxu1 %v4943_v21 }
 0x9a4   :  { %4038 = vmatpush1.bf16.msra.mxu1 %v4953_v24 }
 0x9a5   :  { %4056 = vmatprep.subr.bf16.mxu1 %v4887_v3 }
 0xa6a   :  { %v676_v30 = vpop.f32.mrb[4].mxu1 }
 0xa6b   :  { %v677_v31 = vadd.f32 %v3747_v29, %v676_v30  ;;  %v678_v32 = vpop.f32.mrb[5].mxu1 }
 0xa6c   :  { %v679_v35 = vadd.f32 %v678_v32, %v605_v34 }
 0xa6d   :  { %v3749_v33 = vmul.f32 -1.442695, %v677_v31 }
 0xa6e   :  { %v3750_v41 = vmul.f32 -1.442695, %v679_v35 }
 0xa6f   :  { %4500 = vpow2.f32 %v3749_v33 }
 0xa70   :  { %4502 = vtanh.f32 %v679_v35 }
 0xa79   :  { %v4501_v36 = vpop.eup %4500 }
 0xa7a   :  { %v684_v37 = vadd.f32 1.0, %v4501_v36  ;;  %v4503_v38 = vpop.eup %4502 }
 0xa7c   :  { %4504 = vrcp.f32 %v684_v37 }
 0xa7d   :  { %4506 = vpow2.f32 %v3750_v41 }
 0xa86   :  { %v4505_v39 = vpop.eup %4504 }
 0xa87   :  { %v695_v40 = vmul.f32 %v4505_v39, %v4503_v38  ;;  %v4507_v42 = vpop.eup %4506  ;;  %v694_v44 = vmul.f32 %v4505_v39, %v588_v22 }
 0xa88   :  { %v691_v43 = vadd.f32 1.0, %v4507_v42 }
 0xa89   :  { %697 = vrot.lane.b32.xlu0 %v695_v40, %s4849_s22 }
 0xa8a   :  { %4508 = vrcp.f32 %v691_v43  ;;  %v3762_v43 = vld.sshfl [vmem:[%s5467_s0 + $0x20] sm:$0x33 pattern:$0x76325410] }
 0xa94   :  { %v4509_v47 = vpop.eup %4508 }
 0xafb   :  { %v698_v45 = vpop.permute.xlu0 %697 }
 0xafc   :  { %v700_v46 = vadd.f32 %v698_v45, %v694_v44 }
 0xafe   :  { %4510 = vtanh.f32 %v700_v46 }
 0xb08   :  { %v4511_v48 = vpop.eup %4510 }
 0xb09   :  { %v702_v49 = vmul.f32 %v4511_v48, %v4509_v47  ;;  %v941_v48 = vcombine.high %v3762_v43, %v3762_v43 }
 0xb0b   :  { %707 = vrot.lane.b32.xlu1 %v702_v49, %s4849_s22  ;;  %v703_v50 = vadd.f32 %v702_v49, %v591_v27 }
 0xb7d   :  { %v708_v51 = vpop.permute.xlu1 %707 }
 0xb7e   :  { %3753 = vmatmul.mubr.msk.f32.vlgmr.msra.gmra.mrb[6].mxu0 %vm46_vm0, %v708_v51 }
 0xb7f   :  { %4042 = vmatpush1.bf16.msra.mxu0 %v4900_v8  ;;  %1010 = vmatprep.mubr.f32.mxu0 %v4848_v7 }
 0xb80   :  { %4044 = vmatprep.subr.bf16.mxu0 %v4902_v9 }
 0xb83   :  { %4046 = vmatpush1.bf16.msra.mxu0 %v4919_v14 }
 0xb84   :  { %4048 = vmatprep.subr.bf16.mxu0 %v4923_v15 }
 0xb87   :  { %4050 = vmatpush1.bf16.msra.mxu0 %v4939_v20 }
 0xb88   :  { %4052 = vmatprep.subr.bf16.mxu0 %v4943_v21 }
 0xb8b   :  { %4054 = vmatpush1.bf16.msra.mxu0 %v4953_v24 }
 0xb8c   :  { %4072 = vmatprep.subr.bf16.mxu0 %v4887_v3 }
 0xc51   :  { %v788_v53 = vpop.f32.mrb[6].mxu0 }
 0xc52   :  { %v789_v54 = vadd.f32 %v3752_v52, %v788_v53  ;;  %v790_v55 = vpop.f32.mrb[7].mxu0 }
 0xc53   :  { %v791_v58 = vadd.f32 %v790_v55, %v717_v57 }
 0xc54   :  { %v3754_v56 = vmul.f32 -1.442695, %v789_v54 }
 0xc55   :  { %v3755_v0 = vmul.f32 -1.442695, %v791_v58 }
 0xc56   :  { %4512 = vpow2.f32 %v3754_v56 }
 0xc57   :  { %4514 = vtanh.f32 %v791_v58 }
 0xc60   :  { %v4513_v59 = vpop.eup %4512 }
 0xc61   :  { %v796_v60 = vadd.f32 1.0, %v4513_v59  ;;  %v4515_v61 = vpop.eup %4514 }
 0xc63   :  { %4516 = vrcp.f32 %v796_v60 }
 0xc64   :  { %4518 = vpow2.f32 %v3755_v0 }
 0xc6d   :  { %v4517_v62 = vpop.eup %4516 }
 0xc6e   :  { %v807_v63 = vmul.f32 %v4517_v62, %v4515_v61  ;;  %v4519_v1 = vpop.eup %4518  ;;  %v806_v4 = vmul.f32 %v4517_v62, %v700_v46 }
 0xc6f   :  { %v803_v2 = vadd.f32 1.0, %v4519_v1 }
 0xc70   :  { %809 = vrot.lane.b32.xlu0 %v807_v63, %s4849_s22 }
 0xc71   :  { %4520 = vrcp.f32 %v803_v2  ;;  %v3767_v2 = vld.sshfl [vmem:[%s5467_s0 + $0x24] sm:$0x33 pattern:$0x76325410] }
 0xc7b   :  { %v4521_v10 = vpop.eup %4520 }
 0xce2   :  { %v810_v5 = vpop.permute.xlu0 %809 }
 0xce3   :  { %v812_v6 = vadd.f32 %v810_v5, %v806_v4 }
 0xce5   :  { %4522 = vtanh.f32 %v812_v6 }
 0xcef   :  { %v4523_v11 = vpop.eup %4522 }
 0xcf0   :  { %v814_v12 = vmul.f32 %v4523_v11, %v4521_v10  ;;  %v1053_v11 = vcombine.high %v3767_v2, %v3767_v2 }
 0xcf2   :  { %819 = vrot.lane.b32.xlu1 %v814_v12, %s4849_s22  ;;  %v815_v13 = vadd.f32 %v814_v12, %v703_v50 }
 0xd64   :  { %v820_v16 = vpop.permute.xlu1 %819 }
 0xd65   :  { %3758 = vmatmul.mubr.msk.f32.vlgmr.msra.gmra.mrb[6].mxu1 %vm46_vm0, %v820_v16 }
 0xd66   :  { %4058 = vmatpush1.bf16.msra.mxu1 %v4900_v8  ;;  %1122 = vmatprep.mubr.f32.mxu1 %v4848_v7 }
 0xd67   :  { %4060 = vmatprep.subr.bf16.mxu1 %v4902_v9 }
 0xd6a   :  { %4062 = vmatpush1.bf16.msra.mxu1 %v4919_v14 }
 0xd6b   :  { %4064 = vmatprep.subr.bf16.mxu1 %v4923_v15 }
 0xd6e   :  { %4066 = vmatpush1.bf16.msra.mxu1 %v4939_v20 }
 0xd6f   :  { %4068 = vmatprep.subr.bf16.mxu1 %v4943_v21 }
 0xd72   :  { %4070 = vmatpush1.bf16.msra.mxu1 %v4953_v24 }
 0xd73   :  { %4088 = vmatprep.subr.bf16.mxu1 %v4887_v3 }
 0xe38   :  { %v900_v18 = vpop.f32.mrb[6].mxu1 }
 0xe39   :  { %v901_v19 = vadd.f32 %v3757_v17, %v900_v18  ;;  %v902_v22 = vpop.f32.mrb[7].mxu1 }
 0xe3a   :  { %v903_v26 = vadd.f32 %v902_v22, %v829_v25 }
 0xe3b   :  { %v3759_v23 = vmul.f32 -1.442695, %v901_v19 }
 0xe3c   :  { %v3760_v32 = vmul.f32 -1.442695, %v903_v26 }
 0xe3d   :  { %4524 = vpow2.f32 %v3759_v23 }
 0xe3e   :  { %4526 = vtanh.f32 %v903_v26 }
 0xe47   :  { %v4525_v27 = vpop.eup %4524 }
 0xe48   :  { %v908_v28 = vadd.f32 1.0, %v4525_v27  ;;  %v4527_v29 = vpop.eup %4526 }
 0xe4a   :  { %4528 = vrcp.f32 %v908_v28 }
 0xe4b   :  { %4530 = vpow2.f32 %v3760_v32 }
 0xe54   :  { %v4529_v30 = vpop.eup %4528 }
 0xe55   :  { %v919_v31 = vmul.f32 %v4529_v30, %v4527_v29  ;;  %v4531_v33 = vpop.eup %4530  ;;  %v918_v35 = vmul.f32 %v4529_v30, %v812_v6 }
 0xe56   :  { %v915_v34 = vadd.f32 1.0, %v4531_v33 }
 0xe57   :  { %921 = vrot.lane.b32.xlu0 %v919_v31, %s4849_s22 }
 0xe58   :  { %4532 = vrcp.f32 %v915_v34  ;;  %v3772_v34 = vld.sshfl [vmem:[%s5467_s0 + $0x28] sm:$0x33 pattern:$0x76325410] }
 0xe62   :  { %v4533_v38 = vpop.eup %4532 }
 0xec9   :  { %v922_v36 = vpop.permute.xlu0 %921 }
 0xeca   :  { %v924_v37 = vadd.f32 %v922_v36, %v918_v35 }
 0xecc   :  { %4534 = vtanh.f32 %v924_v37 }
 0xed6   :  { %v4535_v39 = vpop.eup %4534 }
 0xed7   :  { %v926_v40 = vmul.f32 %v4535_v39, %v4533_v38  ;;  %v1165_v39 = vcombine.high %v3772_v34, %v3772_v34 }
 0xed9   :  { %931 = vrot.lane.b32.xlu1 %v926_v40, %s4849_s22  ;;  %v927_v41 = vadd.f32 %v926_v40, %v815_v13 }
 0xf4b   :  { %v932_v42 = vpop.permute.xlu1 %931 }
 0xf4c   :  { %3763 = vmatmul.mubr.msk.f32.vlgmr.msra.gmra.mrb[8].mxu0 %vm46_vm0, %v932_v42 }
 0xf4d   :  { %4074 = vmatpush1.bf16.msra.mxu0 %v4900_v8  ;;  %1234 = vmatprep.mubr.f32.mxu0 %v4848_v7 }
 0xf4e   :  { %4076 = vmatprep.subr.bf16.mxu0 %v4902_v9 }
 0xf51   :  { %4078 = vmatpush1.bf16.msra.mxu0 %v4919_v14 }
 0xf52   :  { %4080 = vmatprep.subr.bf16.mxu0 %v4923_v15 }
 0xf55   :  { %4082 = vmatpush1.bf16.msra.mxu0 %v4939_v20 }
 0xf56   :  { %4084 = vmatprep.subr.bf16.mxu0 %v4943_v21 }
 0xf59   :  { %4086 = vmatpush1.bf16.msra.mxu0 %v4953_v24 }
 0xf5a   :  { %4104 = vmatprep.subr.bf16.mxu0 %v4887_v3 }
0x101f   :  { %v1012_v44 = vpop.f32.mrb[8].mxu0 }
0x1020   :  { %v1013_v45 = vadd.f32 %v3762_v43, %v1012_v44  ;;  %v1014_v46 = vpop.f32.mrb[9].mxu0 }
0x1021   :  { %v1015_v49 = vadd.f32 %v1014_v46, %v941_v48 }
0x1022   :  { %v3764_v47 = vmul.f32 -1.442695, %v1013_v45 }
0x1023   :  { %v3765_v55 = vmul.f32 -1.442695, %v1015_v49 }
0x1024   :  { %4536 = vpow2.f32 %v3764_v47 }
0x1025   :  { %4538 = vtanh.f32 %v1015_v49 }
0x102e   :  { %v4537_v50 = vpop.eup %4536 }
0x102f   :  { %v1020_v51 = vadd.f32 1.0, %v4537_v50  ;;  %v4539_v52 = vpop.eup %4538 }
0x1031   :  { %4540 = vrcp.f32 %v1020_v51 }
0x1032   :  { %4542 = vpow2.f32 %v3765_v55 }
0x103b   :  { %v4541_v53 = vpop.eup %4540 }
0x103c   :  { %v1031_v54 = vmul.f32 %v4541_v53, %v4539_v52  ;;  %v4543_v56 = vpop.eup %4542  ;;  %v1030_v58 = vmul.f32 %v4541_v53, %v924_v37 }
0x103d   :  { %v1027_v57 = vadd.f32 1.0, %v4543_v56 }
0x103e   :  { %1033 = vrot.lane.b32.xlu0 %v1031_v54, %s4849_s22 }
0x103f   :  { %4544 = vrcp.f32 %v1027_v57  ;;  %v3777_v57 = vld.sshfl [vmem:[%s5467_s0 + $0x2c] sm:$0x33 pattern:$0x76325410] }
0x1049   :  { %v4545_v61 = vpop.eup %4544 }
0x10b0   :  { %v1034_v59 = vpop.permute.xlu0 %1033 }
0x10b1   :  { %v1036_v60 = vadd.f32 %v1034_v59, %v1030_v58 }
0x10b3   :  { %4546 = vtanh.f32 %v1036_v60 }
0x10bd   :  { %v4547_v62 = vpop.eup %4546 }
0x10be   :  { %v1038_v63 = vmul.f32 %v4547_v62, %v4545_v61  ;;  %v1277_v62 = vcombine.high %v3777_v57, %v3777_v57 }
0x10c0   :  { %1043 = vrot.lane.b32.xlu1 %v1038_v63, %s4849_s22  ;;  %v1039_v0 = vadd.f32 %v1038_v63, %v927_v41 }
0x1132   :  { %v1044_v1 = vpop.permute.xlu1 %1043 }
0x1133   :  { %3768 = vmatmul.mubr.msk.f32.vlgmr.msra.gmra.mrb[8].mxu1 %vm46_vm0, %v1044_v1 }
0x1134   :  { %4090 = vmatpush1.bf16.msra.mxu1 %v4900_v8  ;;  %1346 = vmatprep.mubr.f32.mxu1 %v4848_v7 }
0x1135   :  { %4092 = vmatprep.subr.bf16.mxu1 %v4902_v9 }
0x1138   :  { %4094 = vmatpush1.bf16.msra.mxu1 %v4919_v14 }
0x1139   :  { %4096 = vmatprep.subr.bf16.mxu1 %v4923_v15 }
0x113c   :  { %4098 = vmatpush1.bf16.msra.mxu1 %v4939_v20 }
0x113d   :  { %4100 = vmatprep.subr.bf16.mxu1 %v4943_v21 }
0x1140   :  { %4102 = vmatpush1.bf16.msra.mxu1 %v4953_v24 }
0x1141   :  { %4120 = vmatprep.subr.bf16.mxu1 %v4887_v3 }
0x1206   :  { %v1124_v4 = vpop.f32.mrb[8].mxu1 }
0x1207   :  { %v1125_v5 = vadd.f32 %v3767_v2, %v1124_v4  ;;  %v1126_v6 = vpop.f32.mrb[9].mxu1 }
0x1208   :  { %v1127_v12 = vadd.f32 %v1126_v6, %v1053_v11 }
0x1209   :  { %v3769_v10 = vmul.f32 -1.442695, %v1125_v5 }
0x120a   :  { %v3770_v22 = vmul.f32 -1.442695, %v1127_v12 }
0x120b   :  { %4548 = vpow2.f32 %v3769_v10 }
0x120c   :  { %4550 = vtanh.f32 %v1127_v12 }
0x1215   :  { %v4549_v13 = vpop.eup %4548 }
0x1216   :  { %v1132_v16 = vadd.f32 1.0, %v4549_v13  ;;  %v4551_v17 = vpop.eup %4550 }
0x1218   :  { %4552 = vrcp.f32 %v1132_v16 }
0x1219   :  { %4554 = vpow2.f32 %v3770_v22 }
0x1222   :  { %v4553_v18 = vpop.eup %4552 }
0x1223   :  { %v1143_v19 = vmul.f32 %v4553_v18, %v4551_v17  ;;  %v4555_v23 = vpop.eup %4554  ;;  %v1142_v26 = vmul.f32 %v4553_v18, %v1036_v60 }
0x1224   :  { %v1139_v25 = vadd.f32 1.0, %v4555_v23 }
0x1225   :  { %1145 = vrot.lane.b32.xlu0 %v1143_v19, %s4849_s22 }
0x1226   :  { %4556 = vrcp.f32 %v1139_v25  ;;  %v3782_v25 = vld.sshfl [vmem:[%s5467_s0 + $0x30] sm:$0x33 pattern:$0x76325410] }
0x1230   :  { %v4557_v29 = vpop.eup %4556 }
0x1297   :  { %v1146_v27 = vpop.permute.xlu0 %1145 }
0x1298   :  { %v1148_v28 = vadd.f32 %v1146_v27, %v1142_v26 }
0x129a   :  { %4558 = vtanh.f32 %v1148_v28 }
0x12a4   :  { %v4559_v30 = vpop.eup %4558 }
0x12a5   :  { %v1150_v31 = vmul.f32 %v4559_v30, %v4557_v29  ;;  %v1389_v30 = vcombine.high %v3782_v25, %v3782_v25 }
0x12a7   :  { %1155 = vrot.lane.b32.xlu1 %v1150_v31, %s4849_s22  ;;  %v1151_v32 = vadd.f32 %v1150_v31, %v1039_v0 }
0x1319   :  { %v1156_v33 = vpop.permute.xlu1 %1155 }
0x131a   :  { %3773 = vmatmul.mubr.msk.f32.vlgmr.msra.gmra.mrb[10].mxu0 %vm46_vm0, %v1156_v33 }
0x131b   :  { %4106 = vmatpush1.bf16.msra.mxu0 %v4900_v8  ;;  %1458 = vmatprep.mubr.f32.mxu0 %v4848_v7 }
0x131c   :  { %4108 = vmatprep.subr.bf16.mxu0 %v4902_v9 }
0x131f   :  { %4110 = vmatpush1.bf16.msra.mxu0 %v4919_v14 }
0x1320   :  { %4112 = vmatprep.subr.bf16.mxu0 %v4923_v15 }
0x1323   :  { %4114 = vmatpush1.bf16.msra.mxu0 %v4939_v20 }
0x1324   :  { %4116 = vmatprep.subr.bf16.mxu0 %v4943_v21 }
0x1327   :  { %4118 = vmatpush1.bf16.msra.mxu0 %v4953_v24 }
0x1328   :  { %4136 = vmatprep.subr.bf16.mxu0 %v4887_v3 }
0x13ed   :  { %v1236_v35 = vpop.f32.mrb[10].mxu0 }
0x13ee   :  { %v1237_v36 = vadd.f32 %v3772_v34, %v1236_v35  ;;  %v1238_v37 = vpop.f32.mrb[11].mxu0 }
0x13ef   :  { %v1239_v40 = vadd.f32 %v1238_v37, %v1165_v39 }
0x13f0   :  { %v3774_v38 = vmul.f32 -1.442695, %v1237_v36 }
0x13f1   :  { %v3775_v46 = vmul.f32 -1.442695, %v1239_v40 }
0x13f2   :  { %4560 = vpow2.f32 %v3774_v38 }
0x13f3   :  { %4562 = vtanh.f32 %v1239_v40 }
0x13fc   :  { %v4561_v41 = vpop.eup %4560 }
0x13fd   :  { %v1244_v42 = vadd.f32 1.0, %v4561_v41  ;;  %v4563_v43 = vpop.eup %4562 }
0x13ff   :  { %4564 = vrcp.f32 %v1244_v42 }
0x1400   :  { %4566 = vpow2.f32 %v3775_v46 }
0x1409   :  { %v4565_v44 = vpop.eup %4564 }
0x140a   :  { %v1255_v45 = vmul.f32 %v4565_v44, %v4563_v43  ;;  %v4567_v47 = vpop.eup %4566  ;;  %v1254_v49 = vmul.f32 %v4565_v44, %v1148_v28 }
0x140b   :  { %v1251_v48 = vadd.f32 1.0, %v4567_v47 }
0x140c   :  { %1257 = vrot.lane.b32.xlu0 %v1255_v45, %s4849_s22 }
0x140d   :  { %4568 = vrcp.f32 %v1251_v48  ;;  %v3787_v48 = vld.sshfl [vmem:[%s5467_s0 + $0x34] sm:$0x33 pattern:$0x76325410] }
0x1417   :  { %v4569_v52 = vpop.eup %4568 }
0x147e   :  { %v1258_v50 = vpop.permute.xlu0 %1257 }
0x147f   :  { %v1260_v51 = vadd.f32 %v1258_v50, %v1254_v49 }
0x1481   :  { %4570 = vtanh.f32 %v1260_v51 }
0x148b   :  { %v4571_v53 = vpop.eup %4570 }
0x148c   :  { %v1262_v54 = vmul.f32 %v4571_v53, %v4569_v52  ;;  %v1501_v53 = vcombine.high %v3787_v48, %v3787_v48 }
0x148e   :  { %1267 = vrot.lane.b32.xlu1 %v1262_v54, %s4849_s22  ;;  %v1263_v55 = vadd.f32 %v1262_v54, %v1151_v32 }
0x1500   :  { %v1268_v56 = vpop.permute.xlu1 %1267 }
0x1501   :  { %3778 = vmatmul.mubr.msk.f32.vlgmr.msra.gmra.mrb[10].mxu1 %vm46_vm0, %v1268_v56 }
0x1502   :  { %4122 = vmatpush1.bf16.msra.mxu1 %v4900_v8  ;;  %1570 = vmatprep.mubr.f32.mxu1 %v4848_v7 }
0x1503   :  { %4124 = vmatprep.subr.bf16.mxu1 %v4902_v9 }
0x1506   :  { %4126 = vmatpush1.bf16.msra.mxu1 %v4919_v14 }
0x1507   :  { %4128 = vmatprep.subr.bf16.mxu1 %v4923_v15 }
0x150a   :  { %4130 = vmatpush1.bf16.msra.mxu1 %v4939_v20 }
0x150b   :  { %4132 = vmatprep.subr.bf16.mxu1 %v4943_v21 }
0x150e   :  { %4134 = vmatpush1.bf16.msra.mxu1 %v4953_v24 }
0x150f   :  { %4152 = vmatprep.subr.bf16.mxu1 %v4887_v3 }
0x15d4   :  { %v1348_v58 = vpop.f32.mrb[10].mxu1 }
0x15d5   :  { %v1349_v59 = vadd.f32 %v3777_v57, %v1348_v58  ;;  %v1350_v60 = vpop.f32.mrb[11].mxu1 }
0x15d6   :  { %v1351_v63 = vadd.f32 %v1350_v60, %v1277_v62 }
0x15d7   :  { %v3779_v61 = vmul.f32 -1.442695, %v1349_v59 }
0x15d8   :  { %v3780_v6 = vmul.f32 -1.442695, %v1351_v63 }
0x15d9   :  { %4572 = vpow2.f32 %v3779_v61 }
0x15da   :  { %4574 = vtanh.f32 %v1351_v63 }
0x15e3   :  { %v4573_v0 = vpop.eup %4572 }
0x15e4   :  { %v1356_v1 = vadd.f32 1.0, %v4573_v0  ;;  %v4575_v2 = vpop.eup %4574 }
0x15e6   :  { %4576 = vrcp.f32 %v1356_v1 }
0x15e7   :  { %4578 = vpow2.f32 %v3780_v6 }
0x15f0   :  { %v4577_v4 = vpop.eup %4576 }
0x15f1   :  { %v1367_v5 = vmul.f32 %v4577_v4, %v4575_v2  ;;  %v4579_v10 = vpop.eup %4578  ;;  %v1366_v12 = vmul.f32 %v4577_v4, %v1260_v51 }
0x15f2   :  { %v1363_v11 = vadd.f32 1.0, %v4579_v10 }
0x15f3   :  { %1369 = vrot.lane.b32.xlu0 %v1367_v5, %s4849_s22 }
0x15f4   :  { %4580 = vrcp.f32 %v1363_v11  ;;  %v3792_v11 = vld.sshfl [vmem:[%s5467_s0 + $0x38] sm:$0x33 pattern:$0x76325410] }
0x15fe   :  { %v4581_v17 = vpop.eup %4580 }
0x1665   :  { %v1370_v13 = vpop.permute.xlu0 %1369 }
0x1666   :  { %v1372_v16 = vadd.f32 %v1370_v13, %v1366_v12 }
0x1668   :  { %4582 = vtanh.f32 %v1372_v16 }
0x1672   :  { %v4583_v18 = vpop.eup %4582 }
0x1673   :  { %v1374_v19 = vmul.f32 %v4583_v18, %v4581_v17  ;;  %v1613_v18 = vcombine.high %v3792_v11, %v3792_v11 }
0x1675   :  { %1379 = vrot.lane.b32.xlu1 %v1374_v19, %s4849_s22  ;;  %v1375_v22 = vadd.f32 %v1374_v19, %v1263_v55 }
0x16e7   :  { %v1380_v23 = vpop.permute.xlu1 %1379 }
0x16e8   :  { %3783 = vmatmul.mubr.msk.f32.vlgmr.msra.gmra.mrb[12].mxu0 %vm46_vm0, %v1380_v23 }
0x16e9   :  { %4138 = vmatpush1.bf16.msra.mxu0 %v4900_v8  ;;  %1682 = vmatprep.mubr.f32.mxu0 %v4848_v7 }
0x16ea   :  { %4140 = vmatprep.subr.bf16.mxu0 %v4902_v9 }
0x16ed   :  { %4142 = vmatpush1.bf16.msra.mxu0 %v4919_v14 }
0x16ee   :  { %4144 = vmatprep.subr.bf16.mxu0 %v4923_v15 }
0x16f1   :  { %4146 = vmatpush1.bf16.msra.mxu0 %v4939_v20 }
0x16f2   :  { %4148 = vmatprep.subr.bf16.mxu0 %v4943_v21 }
0x16f5   :  { %4150 = vmatpush1.bf16.msra.mxu0 %v4953_v24 }
0x16f6   :  { %4168 = vmatprep.subr.bf16.mxu0 %v4887_v3 }
0x17bb   :  { %v1460_v26 = vpop.f32.mrb[12].mxu0 }
0x17bc   :  { %v1461_v27 = vadd.f32 %v3782_v25, %v1460_v26  ;;  %v1462_v28 = vpop.f32.mrb[13].mxu0 }
0x17bd   :  { %v1463_v31 = vadd.f32 %v1462_v28, %v1389_v30 }
0x17be   :  { %v3784_v29 = vmul.f32 -1.442695, %v1461_v27 }
0x17bf   :  { %v3785_v37 = vmul.f32 -1.442695, %v1463_v31 }
0x17c0   :  { %4584 = vpow2.f32 %v3784_v29 }
0x17c1   :  { %4586 = vtanh.f32 %v1463_v31 }
0x17ca   :  { %v4585_v32 = vpop.eup %4584 }
0x17cb   :  { %v1468_v33 = vadd.f32 1.0, %v4585_v32  ;;  %v4587_v34 = vpop.eup %4586 }
0x17cd   :  { %4588 = vrcp.f32 %v1468_v33 }
0x17ce   :  { %4590 = vpow2.f32 %v3785_v37 }
0x17d7   :  { %v4589_v35 = vpop.eup %4588 }
0x17d8   :  { %v1479_v36 = vmul.f32 %v4589_v35, %v4587_v34  ;;  %v4591_v38 = vpop.eup %4590  ;;  %v1478_v40 = vmul.f32 %v4589_v35, %v1372_v16 }
0x17d9   :  { %v1475_v39 = vadd.f32 1.0, %v4591_v38 }
0x17da   :  { %1481 = vrot.lane.b32.xlu0 %v1479_v36, %s4849_s22 }
0x17db   :  { %4592 = vrcp.f32 %v1475_v39  ;;  %v3797_v39 = vld.sshfl [vmem:[%s5467_s0 + $0x3c] sm:$0x33 pattern:$0x76325410] }
0x17e5   :  { %v4593_v43 = vpop.eup %4592 }
0x184c   :  { %v1482_v41 = vpop.permute.xlu0 %1481 }
0x184d   :  { %v1484_v42 = vadd.f32 %v1482_v41, %v1478_v40 }
0x184f   :  { %4594 = vtanh.f32 %v1484_v42 }
0x1859   :  { %v4595_v44 = vpop.eup %4594 }
0x185a   :  { %v1486_v45 = vmul.f32 %v4595_v44, %v4593_v43  ;;  %v1725_v44 = vcombine.high %v3797_v39, %v3797_v39 }
0x185c   :  { %1491 = vrot.lane.b32.xlu1 %v1486_v45, %s4849_s22  ;;  %v1487_v46 = vadd.f32 %v1486_v45, %v1375_v22 }
0x18ce   :  { %v1492_v47 = vpop.permute.xlu1 %1491 }
0x18cf   :  { %3788 = vmatmul.mubr.msk.f32.vlgmr.msra.gmra.mrb[12].mxu1 %vm46_vm0, %v1492_v47 }
0x18d0   :  { %4154 = vmatpush1.bf16.msra.mxu1 %v4900_v8  ;;  %1794 = vmatprep.mubr.f32.mxu1 %v4848_v7 }
0x18d1   :  { %4156 = vmatprep.subr.bf16.mxu1 %v4902_v9 }
0x18d4   :  { %4158 = vmatpush1.bf16.msra.mxu1 %v4919_v14 }
0x18d5   :  { %4160 = vmatprep.subr.bf16.mxu1 %v4923_v15 }
0x18d8   :  { %4162 = vmatpush1.bf16.msra.mxu1 %v4939_v20 }
0x18d9   :  { %4164 = vmatprep.subr.bf16.mxu1 %v4943_v21 }
0x18dc   :  { %4166 = vmatpush1.bf16.msra.mxu1 %v4953_v24 }
0x18dd   :  { %4184 = vmatprep.subr.bf16.mxu1 %v4887_v3 }
0x19a2   :  { %v1572_v49 = vpop.f32.mrb[12].mxu1 }
0x19a3   :  { %v1573_v50 = vadd.f32 %v3787_v48, %v1572_v49  ;;  %v1574_v51 = vpop.f32.mrb[13].mxu1 }
0x19a4   :  { %v1575_v54 = vadd.f32 %v1574_v51, %v1501_v53 }
0x19a5   :  { %v3789_v52 = vmul.f32 -1.442695, %v1573_v50 }
0x19a6   :  { %v3790_v60 = vmul.f32 -1.442695, %v1575_v54 }
0x19a7   :  { %4596 = vpow2.f32 %v3789_v52 }
0x19a8   :  { %4598 = vtanh.f32 %v1575_v54 }
0x19b1   :  { %v4597_v55 = vpop.eup %4596 }
0x19b2   :  { %v1580_v56 = vadd.f32 1.0, %v4597_v55  ;;  %v4599_v57 = vpop.eup %4598 }
0x19b4   :  { %4600 = vrcp.f32 %v1580_v56 }
0x19b5   :  { %4602 = vpow2.f32 %v3790_v60 }
0x19be   :  { %v4601_v58 = vpop.eup %4600 }
0x19bf   :  { %v1591_v59 = vmul.f32 %v4601_v58, %v4599_v57  ;;  %v4603_v61 = vpop.eup %4602  ;;  %v1590_v63 = vmul.f32 %v4601_v58, %v1484_v42 }
0x19c0   :  { %v1587_v62 = vadd.f32 1.0, %v4603_v61 }
0x19c1   :  { %1593 = vrot.lane.b32.xlu0 %v1591_v59, %s4849_s22 }
0x19c2   :  { %4604 = vrcp.f32 %v1587_v62  ;;  %v3802_v62 = vld.sshfl [vmem:[%s5467_s0 + $0x40] sm:$0x33 pattern:$0x76325410] }
0x19cc   :  { %v4605_v2 = vpop.eup %4604 }
0x1a33   :  { %v1594_v0 = vpop.permute.xlu0 %1593 }
0x1a34   :  { %v1596_v1 = vadd.f32 %v1594_v0, %v1590_v63 }
0x1a36   :  { %4606 = vtanh.f32 %v1596_v1 }
0x1a40   :  { %v4607_v4 = vpop.eup %4606 }
0x1a41   :  { %v1598_v5 = vmul.f32 %v4607_v4, %v4605_v2  ;;  %v1837_v4 = vcombine.high %v3802_v62, %v3802_v62 }
0x1a43   :  { %1603 = vrot.lane.b32.xlu1 %v1598_v5, %s4849_s22  ;;  %v1599_v6 = vadd.f32 %v1598_v5, %v1487_v46 }
0x1ab5   :  { %v1604_v10 = vpop.permute.xlu1 %1603 }
0x1ab6   :  { %3793 = vmatmul.mubr.msk.f32.vlgmr.msra.gmra.mrb[14].mxu0 %vm46_vm0, %v1604_v10 }
0x1ab7   :  { %4170 = vmatpush1.bf16.msra.mxu0 %v4900_v8  ;;  %1906 = vmatprep.mubr.f32.mxu0 %v4848_v7 }
0x1ab8   :  { %4172 = vmatprep.subr.bf16.mxu0 %v4902_v9 }
0x1abb   :  { %4174 = vmatpush1.bf16.msra.mxu0 %v4919_v14 }
0x1abc   :  { %4176 = vmatprep.subr.bf16.mxu0 %v4923_v15 }
0x1abf   :  { %4178 = vmatpush1.bf16.msra.mxu0 %v4939_v20 }
0x1ac0   :  { %4180 = vmatprep.subr.bf16.mxu0 %v4943_v21 }
0x1ac3   :  { %4182 = vmatpush1.bf16.msra.mxu0 %v4953_v24 }
0x1ac4   :  { %4200 = vmatprep.subr.bf16.mxu0 %v4887_v3 }
0x1b89   :  { %v1684_v12 = vpop.f32.mrb[14].mxu0 }
0x1b8a   :  { %v1685_v13 = vadd.f32 %v3792_v11, %v1684_v12  ;;  %v1686_v16 = vpop.f32.mrb[15].mxu0 }
0x1b8b   :  { %v1687_v19 = vadd.f32 %v1686_v16, %v1613_v18 }
0x1b8c   :  { %v3794_v17 = vmul.f32 -1.442695, %v1685_v13 }
0x1b8d   :  { %v3795_v28 = vmul.f32 -1.442695, %v1687_v19 }
0x1b8e   :  { %4608 = vpow2.f32 %v3794_v17 }
0x1b8f   :  { %4610 = vtanh.f32 %v1687_v19 }
0x1b98   :  { %v4609_v22 = vpop.eup %4608 }
0x1b99   :  { %v1692_v23 = vadd.f32 1.0, %v4609_v22  ;;  %v4611_v25 = vpop.eup %4610 }
0x1b9b   :  { %4612 = vrcp.f32 %v1692_v23 }
0x1b9c   :  { %4614 = vpow2.f32 %v3795_v28 }
0x1ba5   :  { %v4613_v26 = vpop.eup %4612 }
0x1ba6   :  { %v1703_v27 = vmul.f32 %v4613_v26, %v4611_v25  ;;  %v4615_v29 = vpop.eup %4614  ;;  %v1702_v31 = vmul.f32 %v4613_v26, %v1596_v1 }
0x1ba7   :  { %v1699_v30 = vadd.f32 1.0, %v4615_v29 }
0x1ba8   :  { %1705 = vrot.lane.b32.xlu0 %v1703_v27, %s4849_s22 }
0x1ba9   :  { %4616 = vrcp.f32 %v1699_v30  ;;  %v3807_v30 = vld.sshfl [vmem:[%s5467_s0 + $0x44] sm:$0x33 pattern:$0x76325410] }
0x1bb3   :  { %v4617_v34 = vpop.eup %4616 }
0x1c1a   :  { %v1706_v32 = vpop.permute.xlu0 %1705 }
0x1c1b   :  { %v1708_v33 = vadd.f32 %v1706_v32, %v1702_v31 }
0x1c1d   :  { %4618 = vtanh.f32 %v1708_v33 }
0x1c27   :  { %v4619_v35 = vpop.eup %4618 }
0x1c28   :  { %v1710_v36 = vmul.f32 %v4619_v35, %v4617_v34  ;;  %v1949_v35 = vcombine.high %v3807_v30, %v3807_v30 }
0x1c2a   :  { %1715 = vrot.lane.b32.xlu1 %v1710_v36, %s4849_s22  ;;  %v1711_v37 = vadd.f32 %v1710_v36, %v1599_v6 }
0x1c9c   :  { %v1716_v38 = vpop.permute.xlu1 %1715 }
0x1c9d   :  { %3798 = vmatmul.mubr.msk.f32.vlgmr.msra.gmra.mrb[14].mxu1 %vm46_vm0, %v1716_v38 }
0x1c9e   :  { %4186 = vmatpush1.bf16.msra.mxu1 %v4900_v8  ;;  %2018 = vmatprep.mubr.f32.mxu1 %v4848_v7 }
0x1c9f   :  { %4188 = vmatprep.subr.bf16.mxu1 %v4902_v9 }
0x1ca2   :  { %4190 = vmatpush1.bf16.msra.mxu1 %v4919_v14 }
0x1ca3   :  { %4192 = vmatprep.subr.bf16.mxu1 %v4923_v15 }
0x1ca6   :  { %4194 = vmatpush1.bf16.msra.mxu1 %v4939_v20 }
0x1ca7   :  { %4196 = vmatprep.subr.bf16.mxu1 %v4943_v21 }
0x1caa   :  { %4198 = vmatpush1.bf16.msra.mxu1 %v4953_v24 }
0x1cab   :  { %4216 = vmatprep.subr.bf16.mxu1 %v4887_v3 }
0x1d70   :  { %v1796_v40 = vpop.f32.mrb[14].mxu1 }
0x1d71   :  { %v1797_v41 = vadd.f32 %v3797_v39, %v1796_v40  ;;  %v1798_v42 = vpop.f32.mrb[15].mxu1 }
0x1d72   :  { %v1799_v45 = vadd.f32 %v1798_v42, %v1725_v44 }
0x1d73   :  { %v3799_v43 = vmul.f32 -1.442695, %v1797_v41 }
0x1d74   :  { %v3800_v51 = vmul.f32 -1.442695, %v1799_v45 }
0x1d75   :  { %4620 = vpow2.f32 %v3799_v43 }
0x1d76   :  { %4622 = vtanh.f32 %v1799_v45 }
0x1d7f   :  { %v4621_v46 = vpop.eup %4620 }
0x1d80   :  { %v1804_v47 = vadd.f32 1.0, %v4621_v46  ;;  %v4623_v48 = vpop.eup %4622 }
0x1d82   :  { %4624 = vrcp.f32 %v1804_v47 }
0x1d83   :  { %4626 = vpow2.f32 %v3800_v51 }
0x1d8c   :  { %v4625_v49 = vpop.eup %4624 }
0x1d8d   :  { %v1815_v50 = vmul.f32 %v4625_v49, %v4623_v48  ;;  %v4627_v52 = vpop.eup %4626  ;;  %v1814_v54 = vmul.f32 %v4625_v49, %v1708_v33 }
0x1d8e   :  { %v1811_v53 = vadd.f32 1.0, %v4627_v52 }
0x1d8f   :  { %1817 = vrot.lane.b32.xlu0 %v1815_v50, %s4849_s22 }
0x1d90   :  { %4628 = vrcp.f32 %v1811_v53  ;;  %v3812_v53 = vld.sshfl [vmem:[%s5467_s0 + $0x48] sm:$0x33 pattern:$0x76325410] }
0x1d9a   :  { %v4629_v57 = vpop.eup %4628 }
0x1e01   :  { %v1818_v55 = vpop.permute.xlu0 %1817 }
0x1e02   :  { %v1820_v56 = vadd.f32 %v1818_v55, %v1814_v54 }
0x1e04   :  { %4630 = vtanh.f32 %v1820_v56 }
0x1e0e   :  { %v4631_v58 = vpop.eup %4630 }
0x1e0f   :  { %v1822_v59 = vmul.f32 %v4631_v58, %v4629_v57  ;;  %v2061_v58 = vcombine.high %v3812_v53, %v3812_v53 }
0x1e11   :  { %1827 = vrot.lane.b32.xlu1 %v1822_v59, %s4849_s22  ;;  %v1823_v60 = vadd.f32 %v1822_v59, %v1711_v37 }
0x1e83   :  { %v1828_v61 = vpop.permute.xlu1 %1827 }
0x1e84   :  { %3803 = vmatmul.mubr.msk.f32.vlgmr.msra.gmra.mrb[16].mxu0 %vm46_vm0, %v1828_v61 }
0x1e85   :  { %4202 = vmatpush1.bf16.msra.mxu0 %v4900_v8  ;;  %2130 = vmatprep.mubr.f32.mxu0 %v4848_v7 }
0x1e86   :  { %4204 = vmatprep.subr.bf16.mxu0 %v4902_v9 }
0x1e89   :  { %4206 = vmatpush1.bf16.msra.mxu0 %v4919_v14 }
0x1e8a   :  { %4208 = vmatprep.subr.bf16.mxu0 %v4923_v15 }
0x1e8d   :  { %4210 = vmatpush1.bf16.msra.mxu0 %v4939_v20 }
0x1e8e   :  { %4212 = vmatprep.subr.bf16.mxu0 %v4943_v21 }
0x1e91   :  { %4214 = vmatpush1.bf16.msra.mxu0 %v4953_v24 }
0x1e92   :  { %4232 = vmatprep.subr.bf16.mxu0 %v4887_v3 }
0x1f57   :  { %v1908_v63 = vpop.f32.mrb[16].mxu0 }
0x1f58   :  { %v1909_v0 = vadd.f32 %v3802_v62, %v1908_v63  ;;  %v1910_v1 = vpop.f32.mrb[17].mxu0 }
0x1f59   :  { %v1911_v5 = vadd.f32 %v1910_v1, %v1837_v4 }
0x1f5a   :  { %v3804_v2 = vmul.f32 -1.442695, %v1909_v0 }
0x1f5b   :  { %v3805_v16 = vmul.f32 -1.442695, %v1911_v5 }
0x1f5c   :  { %4632 = vpow2.f32 %v3804_v2 }
0x1f5d   :  { %4634 = vtanh.f32 %v1911_v5 }
0x1f66   :  { %v4633_v6 = vpop.eup %4632 }
0x1f67   :  { %v1916_v10 = vadd.f32 1.0, %v4633_v6  ;;  %v4635_v11 = vpop.eup %4634 }
0x1f69   :  { %4636 = vrcp.f32 %v1916_v10 }
0x1f6a   :  { %4638 = vpow2.f32 %v3805_v16 }
0x1f73   :  { %v4637_v12 = vpop.eup %4636 }
0x1f74   :  { %v1927_v13 = vmul.f32 %v4637_v12, %v4635_v11  ;;  %v4639_v17 = vpop.eup %4638  ;;  %v1926_v19 = vmul.f32 %v4637_v12, %v1820_v56 }
0x1f75   :  { %v1923_v18 = vadd.f32 1.0, %v4639_v17 }
0x1f76   :  { %1929 = vrot.lane.b32.xlu0 %v1927_v13, %s4849_s22 }
0x1f77   :  { %4640 = vrcp.f32 %v1923_v18  ;;  %v3817_v18 = vld.sshfl [vmem:[%s5467_s0 + $0x4c] sm:$0x33 pattern:$0x76325410] }
0x1f81   :  { %v4641_v25 = vpop.eup %4640 }
0x1fe8   :  { %v1930_v22 = vpop.permute.xlu0 %1929 }
0x1fe9   :  { %v1932_v23 = vadd.f32 %v1930_v22, %v1926_v19 }
0x1feb   :  { %4642 = vtanh.f32 %v1932_v23 }
0x1ff5   :  { %v4643_v26 = vpop.eup %4642 }
0x1ff6   :  { %v1934_v27 = vmul.f32 %v4643_v26, %v4641_v25  ;;  %v2173_v26 = vcombine.high %v3817_v18, %v3817_v18 }
0x1ff8   :  { %1939 = vrot.lane.b32.xlu1 %v1934_v27, %s4849_s22  ;;  %v1935_v28 = vadd.f32 %v1934_v27, %v1823_v60 }
0x206a   :  { %v1940_v29 = vpop.permute.xlu1 %1939 }
0x206b   :  { %3808 = vmatmul.mubr.msk.f32.vlgmr.msra.gmra.mrb[16].mxu1 %vm46_vm0, %v1940_v29 }
0x206c   :  { %4218 = vmatpush1.bf16.msra.mxu1 %v4900_v8  ;;  %2242 = vmatprep.mubr.f32.mxu1 %v4848_v7 }
0x206d   :  { %4220 = vmatprep.subr.bf16.mxu1 %v4902_v9 }
0x2070   :  { %4222 = vmatpush1.bf16.msra.mxu1 %v4919_v14 }
0x2071   :  { %4224 = vmatprep.subr.bf16.mxu1 %v4923_v15 }
0x2074   :  { %4226 = vmatpush1.bf16.msra.mxu1 %v4939_v20 }
0x2075   :  { %4228 = vmatprep.subr.bf16.mxu1 %v4943_v21 }
0x2078   :  { %4230 = vmatpush1.bf16.msra.mxu1 %v4953_v24 }
0x2079   :  { %4248 = vmatprep.subr.bf16.mxu1 %v4887_v3 }
0x213e   :  { %v2020_v31 = vpop.f32.mrb[16].mxu1 }
0x213f   :  { %v2021_v32 = vadd.f32 %v3807_v30, %v2020_v31  ;;  %v2022_v33 = vpop.f32.mrb[17].mxu1 }
0x2140   :  { %v2023_v36 = vadd.f32 %v2022_v33, %v1949_v35 }
0x2141   :  { %v3809_v34 = vmul.f32 -1.442695, %v2021_v32 }
0x2142   :  { %v3810_v42 = vmul.f32 -1.442695, %v2023_v36 }
0x2143   :  { %4644 = vpow2.f32 %v3809_v34 }
0x2144   :  { %4646 = vtanh.f32 %v2023_v36 }
0x214d   :  { %v4645_v37 = vpop.eup %4644 }
0x214e   :  { %v2028_v38 = vadd.f32 1.0, %v4645_v37  ;;  %v4647_v39 = vpop.eup %4646 }
0x2150   :  { %4648 = vrcp.f32 %v2028_v38 }
0x2151   :  { %4650 = vpow2.f32 %v3810_v42 }
0x215a   :  { %v4649_v40 = vpop.eup %4648 }
0x215b   :  { %v2039_v41 = vmul.f32 %v4649_v40, %v4647_v39  ;;  %v4651_v43 = vpop.eup %4650  ;;  %v2038_v45 = vmul.f32 %v4649_v40, %v1932_v23 }
0x215c   :  { %v2035_v44 = vadd.f32 1.0, %v4651_v43 }
0x215d   :  { %2041 = vrot.lane.b32.xlu0 %v2039_v41, %s4849_s22 }
0x215e   :  { %4652 = vrcp.f32 %v2035_v44  ;;  %v3822_v44 = vld.sshfl [vmem:[%s5467_s0 + $0x50] sm:$0x33 pattern:$0x76325410] }
0x2168   :  { %v4653_v48 = vpop.eup %4652 }
0x21cf   :  { %v2042_v46 = vpop.permute.xlu0 %2041 }
0x21d0   :  { %v2044_v47 = vadd.f32 %v2042_v46, %v2038_v45 }
0x21d2   :  { %4654 = vtanh.f32 %v2044_v47 }
0x21dc   :  { %v4655_v49 = vpop.eup %4654 }
0x21dd   :  { %v2046_v50 = vmul.f32 %v4655_v49, %v4653_v48  ;;  %v2285_v49 = vcombine.high %v3822_v44, %v3822_v44 }
0x21df   :  { %2051 = vrot.lane.b32.xlu1 %v2046_v50, %s4849_s22  ;;  %v2047_v51 = vadd.f32 %v2046_v50, %v1935_v28 }
0x2251   :  { %v2052_v52 = vpop.permute.xlu1 %2051 }
0x2252   :  { %3813 = vmatmul.mubr.msk.f32.vlgmr.msra.gmra.mrb[18].mxu0 %vm46_vm0, %v2052_v52 }
0x2253   :  { %4234 = vmatpush1.bf16.msra.mxu0 %v4900_v8  ;;  %2354 = vmatprep.mubr.f32.mxu0 %v4848_v7 }
0x2254   :  { %4236 = vmatprep.subr.bf16.mxu0 %v4902_v9 }
0x2257   :  { %4238 = vmatpush1.bf16.msra.mxu0 %v4919_v14 }
0x2258   :  { %4240 = vmatprep.subr.bf16.mxu0 %v4923_v15 }
0x225b   :  { %4242 = vmatpush1.bf16.msra.mxu0 %v4939_v20 }
0x225c   :  { %4244 = vmatprep.subr.bf16.mxu0 %v4943_v21 }
0x225f   :  { %4246 = vmatpush1.bf16.msra.mxu0 %v4953_v24 }
0x2260   :  { %4264 = vmatprep.subr.bf16.mxu0 %v4887_v3 }
0x2325   :  { %v2132_v54 = vpop.f32.mrb[18].mxu0 }
0x2326   :  { %v2133_v55 = vadd.f32 %v3812_v53, %v2132_v54  ;;  %v2134_v56 = vpop.f32.mrb[19].mxu0 }
0x2327   :  { %v2135_v59 = vadd.f32 %v2134_v56, %v2061_v58 }
0x2328   :  { %v3814_v57 = vmul.f32 -1.442695, %v2133_v55 }
0x2329   :  { %v3815_v1 = vmul.f32 -1.442695, %v2135_v59 }
0x232a   :  { %4656 = vpow2.f32 %v3814_v57 }
0x232b   :  { %4658 = vtanh.f32 %v2135_v59 }
0x2334   :  { %v4657_v60 = vpop.eup %4656 }
0x2335   :  { %v2140_v61 = vadd.f32 1.0, %v4657_v60  ;;  %v4659_v62 = vpop.eup %4658 }
0x2337   :  { %4660 = vrcp.f32 %v2140_v61 }
0x2338   :  { %4662 = vpow2.f32 %v3815_v1 }
0x2341   :  { %v4661_v63 = vpop.eup %4660 }
0x2342   :  { %v2151_v0 = vmul.f32 %v4661_v63, %v4659_v62  ;;  %v4663_v2 = vpop.eup %4662  ;;  %v2150_v5 = vmul.f32 %v4661_v63, %v2044_v47 }
0x2343   :  { %v2147_v4 = vadd.f32 1.0, %v4663_v2 }
0x2344   :  { %2153 = vrot.lane.b32.xlu0 %v2151_v0, %s4849_s22 }
0x2345   :  { %4664 = vrcp.f32 %v2147_v4  ;;  %v3827_v4 = vld.sshfl [vmem:[%s5467_s0 + $0x54] sm:$0x33 pattern:$0x76325410] }
0x234f   :  { %v4665_v11 = vpop.eup %4664 }
0x23b6   :  { %v2154_v6 = vpop.permute.xlu0 %2153 }
0x23b7   :  { %v2156_v10 = vadd.f32 %v2154_v6, %v2150_v5 }
0x23b9   :  { %4666 = vtanh.f32 %v2156_v10 }
0x23c3   :  { %v4667_v12 = vpop.eup %4666 }
0x23c4   :  { %v2158_v13 = vmul.f32 %v4667_v12, %v4665_v11  ;;  %v2397_v12 = vcombine.high %v3827_v4, %v3827_v4 }
0x23c6   :  { %2163 = vrot.lane.b32.xlu1 %v2158_v13, %s4849_s22  ;;  %v2159_v16 = vadd.f32 %v2158_v13, %v2047_v51 }
0x2438   :  { %v2164_v17 = vpop.permute.xlu1 %2163 }
0x2439   :  { %3818 = vmatmul.mubr.msk.f32.vlgmr.msra.gmra.mrb[18].mxu1 %vm46_vm0, %v2164_v17 }
0x243a   :  { %4250 = vmatpush1.bf16.msra.mxu1 %v4900_v8  ;;  %2466 = vmatprep.mubr.f32.mxu1 %v4848_v7 }
0x243b   :  { %4252 = vmatprep.subr.bf16.mxu1 %v4902_v9 }
0x243e   :  { %4254 = vmatpush1.bf16.msra.mxu1 %v4919_v14 }
0x243f   :  { %4256 = vmatprep.subr.bf16.mxu1 %v4923_v15 }
0x2442   :  { %4258 = vmatpush1.bf16.msra.mxu1 %v4939_v20 }
0x2443   :  { %4260 = vmatprep.subr.bf16.mxu1 %v4943_v21 }
0x2446   :  { %4262 = vmatpush1.bf16.msra.mxu1 %v4953_v24 }
0x2447   :  { %4280 = vmatprep.subr.bf16.mxu1 %v4887_v3 }
0x250c   :  { %v2244_v19 = vpop.f32.mrb[18].mxu1 }
0x250d   :  { %v2245_v22 = vadd.f32 %v3817_v18, %v2244_v19  ;;  %v2246_v23 = vpop.f32.mrb[19].mxu1 }
0x250e   :  { %v2247_v27 = vadd.f32 %v2246_v23, %v2173_v26 }
0x250f   :  { %v3819_v25 = vmul.f32 -1.442695, %v2245_v22 }
0x2510   :  { %v3820_v33 = vmul.f32 -1.442695, %v2247_v27 }
0x2511   :  { %4668 = vpow2.f32 %v3819_v25 }
0x2512   :  { %4670 = vtanh.f32 %v2247_v27 }
0x251b   :  { %v4669_v28 = vpop.eup %4668 }
0x251c   :  { %v2252_v29 = vadd.f32 1.0, %v4669_v28  ;;  %v4671_v30 = vpop.eup %4670 }
0x251e   :  { %4672 = vrcp.f32 %v2252_v29 }
0x251f   :  { %4674 = vpow2.f32 %v3820_v33 }
0x2528   :  { %v4673_v31 = vpop.eup %4672 }
0x2529   :  { %v2263_v32 = vmul.f32 %v4673_v31, %v4671_v30  ;;  %v4675_v34 = vpop.eup %4674  ;;  %v2262_v36 = vmul.f32 %v4673_v31, %v2156_v10 }
0x252a   :  { %v2259_v35 = vadd.f32 1.0, %v4675_v34 }
0x252b   :  { %2265 = vrot.lane.b32.xlu0 %v2263_v32, %s4849_s22 }
0x252c   :  { %4676 = vrcp.f32 %v2259_v35  ;;  %v3832_v35 = vld.sshfl [vmem:[%s5467_s0 + $0x58] sm:$0x33 pattern:$0x76325410] }
0x2536   :  { %v4677_v39 = vpop.eup %4676 }
0x259d   :  { %v2266_v37 = vpop.permute.xlu0 %2265 }
0x259e   :  { %v2268_v38 = vadd.f32 %v2266_v37, %v2262_v36 }
0x25a0   :  { %4678 = vtanh.f32 %v2268_v38 }
0x25aa   :  { %v4679_v40 = vpop.eup %4678 }
0x25ab   :  { %v2270_v41 = vmul.f32 %v4679_v40, %v4677_v39  ;;  %v2509_v40 = vcombine.high %v3832_v35, %v3832_v35 }
0x25ad   :  { %2275 = vrot.lane.b32.xlu1 %v2270_v41, %s4849_s22  ;;  %v2271_v42 = vadd.f32 %v2270_v41, %v2159_v16 }
0x261f   :  { %v2276_v43 = vpop.permute.xlu1 %2275 }
0x2620   :  { %3823 = vmatmul.mubr.msk.f32.vlgmr.msra.gmra.mrb[20].mxu0 %vm46_vm0, %v2276_v43 }
0x2621   :  { %4266 = vmatpush1.bf16.msra.mxu0 %v4900_v8  ;;  %2578 = vmatprep.mubr.f32.mxu0 %v4848_v7 }
0x2622   :  { %4268 = vmatprep.subr.bf16.mxu0 %v4902_v9 }
0x2625   :  { %4270 = vmatpush1.bf16.msra.mxu0 %v4919_v14 }
0x2626   :  { %4272 = vmatprep.subr.bf16.mxu0 %v4923_v15 }
0x2629   :  { %4274 = vmatpush1.bf16.msra.mxu0 %v4939_v20 }
0x262a   :  { %4276 = vmatprep.subr.bf16.mxu0 %v4943_v21 }
0x262d   :  { %4278 = vmatpush1.bf16.msra.mxu0 %v4953_v24 }
0x262e   :  { %4296 = vmatprep.subr.bf16.mxu0 %v4887_v3 }
0x26f3   :  { %v2356_v45 = vpop.f32.mrb[20].mxu0 }
0x26f4   :  { %v2357_v46 = vadd.f32 %v3822_v44, %v2356_v45  ;;  %v2358_v47 = vpop.f32.mrb[21].mxu0 }
0x26f5   :  { %v2359_v50 = vadd.f32 %v2358_v47, %v2285_v49 }
0x26f6   :  { %v3824_v48 = vmul.f32 -1.442695, %v2357_v46 }
0x26f7   :  { %v3825_v56 = vmul.f32 -1.442695, %v2359_v50 }
0x26f8   :  { %4680 = vpow2.f32 %v3824_v48 }
0x26f9   :  { %4682 = vtanh.f32 %v2359_v50 }
0x2702   :  { %v4681_v51 = vpop.eup %4680 }
0x2703   :  { %v2364_v52 = vadd.f32 1.0, %v4681_v51  ;;  %v4683_v53 = vpop.eup %4682 }
0x2705   :  { %4684 = vrcp.f32 %v2364_v52 }
0x2706   :  { %4686 = vpow2.f32 %v3825_v56 }
0x270f   :  { %v4685_v54 = vpop.eup %4684 }
0x2710   :  { %v2375_v55 = vmul.f32 %v4685_v54, %v4683_v53  ;;  %v4687_v57 = vpop.eup %4686  ;;  %v2374_v59 = vmul.f32 %v4685_v54, %v2268_v38 }
0x2711   :  { %v2371_v58 = vadd.f32 1.0, %v4687_v57 }
0x2712   :  { %2377 = vrot.lane.b32.xlu0 %v2375_v55, %s4849_s22 }
0x2713   :  { %4688 = vrcp.f32 %v2371_v58  ;;  %v3837_v58 = vld.sshfl [vmem:[%s5467_s0 + $0x5c] sm:$0x33 pattern:$0x76325410] }
0x271d   :  { %v4689_v62 = vpop.eup %4688 }
0x2784   :  { %v2378_v60 = vpop.permute.xlu0 %2377 }
0x2785   :  { %v2380_v61 = vadd.f32 %v2378_v60, %v2374_v59 }
0x2787   :  { %4690 = vtanh.f32 %v2380_v61 }
0x2791   :  { %v4691_v63 = vpop.eup %4690 }
0x2792   :  { %v2382_v0 = vmul.f32 %v4691_v63, %v4689_v62  ;;  %v2621_v63 = vcombine.high %v3837_v58, %v3837_v58 }
0x2794   :  { %2387 = vrot.lane.b32.xlu1 %v2382_v0, %s4849_s22  ;;  %v2383_v1 = vadd.f32 %v2382_v0, %v2271_v42 }
0x2806   :  { %v2388_v2 = vpop.permute.xlu1 %2387 }
0x2807   :  { %3828 = vmatmul.mubr.msk.f32.vlgmr.msra.gmra.mrb[20].mxu1 %vm46_vm0, %v2388_v2 }
0x2808   :  { %4282 = vmatpush1.bf16.msra.mxu1 %v4900_v8  ;;  %2690 = vmatprep.mubr.f32.mxu1 %v4848_v7 }
0x2809   :  { %4284 = vmatprep.subr.bf16.mxu1 %v4902_v9 }
0x280c   :  { %4286 = vmatpush1.bf16.msra.mxu1 %v4919_v14 }
0x280d   :  { %4288 = vmatprep.subr.bf16.mxu1 %v4923_v15 }
0x2810   :  { %4290 = vmatpush1.bf16.msra.mxu1 %v4939_v20 }
0x2811   :  { %4292 = vmatprep.subr.bf16.mxu1 %v4943_v21 }
0x2814   :  { %4294 = vmatpush1.bf16.msra.mxu1 %v4953_v24 }
0x2815   :  { %4312 = vmatprep.subr.bf16.mxu1 %v4887_v3 }
0x28da   :  { %v2468_v5 = vpop.f32.mrb[20].mxu1 }
0x28db   :  { %v2469_v6 = vadd.f32 %v3827_v4, %v2468_v5  ;;  %v2470_v10 = vpop.f32.mrb[21].mxu1 }
0x28dc   :  { %v2471_v13 = vadd.f32 %v2470_v10, %v2397_v12 }
0x28dd   :  { %v3829_v11 = vmul.f32 -1.442695, %v2469_v6 }
0x28de   :  { %v3830_v23 = vmul.f32 -1.442695, %v2471_v13 }
0x28df   :  { %4692 = vpow2.f32 %v3829_v11 }
0x28e0   :  { %4694 = vtanh.f32 %v2471_v13 }
0x28e9   :  { %v4693_v16 = vpop.eup %4692 }
0x28ea   :  { %v2476_v17 = vadd.f32 1.0, %v4693_v16  ;;  %v4695_v18 = vpop.eup %4694 }
0x28ec   :  { %4696 = vrcp.f32 %v2476_v17 }
0x28ed   :  { %4698 = vpow2.f32 %v3830_v23 }
0x28f6   :  { %v4697_v19 = vpop.eup %4696 }
0x28f7   :  { %v2487_v22 = vmul.f32 %v4697_v19, %v4695_v18  ;;  %v4699_v25 = vpop.eup %4698  ;;  %v2486_v27 = vmul.f32 %v4697_v19, %v2380_v61 }
0x28f8   :  { %v2483_v26 = vadd.f32 1.0, %v4699_v25 }
0x28f9   :  { %2489 = vrot.lane.b32.xlu0 %v2487_v22, %s4849_s22 }
0x28fa   :  { %4700 = vrcp.f32 %v2483_v26  ;;  %v3842_v26 = vld.sshfl [vmem:[%s5467_s0 + $0x60] sm:$0x33 pattern:$0x76325410] }
0x2904   :  { %v4701_v30 = vpop.eup %4700 }
0x296b   :  { %v2490_v28 = vpop.permute.xlu0 %2489 }
0x296c   :  { %v2492_v29 = vadd.f32 %v2490_v28, %v2486_v27 }
0x296e   :  { %4702 = vtanh.f32 %v2492_v29 }
0x2978   :  { %v4703_v31 = vpop.eup %4702 }
0x2979   :  { %v2494_v32 = vmul.f32 %v4703_v31, %v4701_v30  ;;  %v2733_v31 = vcombine.high %v3842_v26, %v3842_v26 }
0x297b   :  { %2499 = vrot.lane.b32.xlu1 %v2494_v32, %s4849_s22  ;;  %v2495_v33 = vadd.f32 %v2494_v32, %v2383_v1 }
0x29ed   :  { %v2500_v34 = vpop.permute.xlu1 %2499 }
0x29ee   :  { %3833 = vmatmul.mubr.msk.f32.vlgmr.msra.gmra.mrb[22].mxu0 %vm46_vm0, %v2500_v34 }
0x29ef   :  { %4298 = vmatpush1.bf16.msra.mxu0 %v4900_v8  ;;  %2802 = vmatprep.mubr.f32.mxu0 %v4848_v7 }
0x29f0   :  { %4300 = vmatprep.subr.bf16.mxu0 %v4902_v9 }
0x29f3   :  { %4302 = vmatpush1.bf16.msra.mxu0 %v4919_v14 }
0x29f4   :  { %4304 = vmatprep.subr.bf16.mxu0 %v4923_v15 }
0x29f7   :  { %4306 = vmatpush1.bf16.msra.mxu0 %v4939_v20 }
0x29f8   :  { %4308 = vmatprep.subr.bf16.mxu0 %v4943_v21 }
0x29fb   :  { %4310 = vmatpush1.bf16.msra.mxu0 %v4953_v24 }
0x29fc   :  { %4328 = vmatprep.subr.bf16.mxu0 %v4887_v3 }
0x2ac1   :  { %v2580_v36 = vpop.f32.mrb[22].mxu0 }
0x2ac2   :  { %v2581_v37 = vadd.f32 %v3832_v35, %v2580_v36  ;;  %v2582_v38 = vpop.f32.mrb[23].mxu0 }
0x2ac3   :  { %v2583_v41 = vadd.f32 %v2582_v38, %v2509_v40 }
0x2ac4   :  { %v3834_v39 = vmul.f32 -1.442695, %v2581_v37 }
0x2ac5   :  { %v3835_v47 = vmul.f32 -1.442695, %v2583_v41 }
0x2ac6   :  { %4704 = vpow2.f32 %v3834_v39 }
0x2ac7   :  { %4706 = vtanh.f32 %v2583_v41 }
0x2ad0   :  { %v4705_v42 = vpop.eup %4704 }
0x2ad1   :  { %v2588_v43 = vadd.f32 1.0, %v4705_v42  ;;  %v4707_v44 = vpop.eup %4706 }
0x2ad3   :  { %4708 = vrcp.f32 %v2588_v43 }
0x2ad4   :  { %4710 = vpow2.f32 %v3835_v47 }
0x2add   :  { %v4709_v45 = vpop.eup %4708 }
0x2ade   :  { %v2599_v46 = vmul.f32 %v4709_v45, %v4707_v44  ;;  %v4711_v48 = vpop.eup %4710  ;;  %v2598_v50 = vmul.f32 %v4709_v45, %v2492_v29 }
0x2adf   :  { %v2595_v49 = vadd.f32 1.0, %v4711_v48 }
0x2ae0   :  { %2601 = vrot.lane.b32.xlu0 %v2599_v46, %s4849_s22 }
0x2ae1   :  { %4712 = vrcp.f32 %v2595_v49  ;;  %v3847_v49 = vld.sshfl [vmem:[%s5467_s0 + $0x64] sm:$0x33 pattern:$0x76325410] }
0x2aeb   :  { %v4713_v53 = vpop.eup %4712 }
0x2b52   :  { %v2602_v51 = vpop.permute.xlu0 %2601 }
0x2b53   :  { %v2604_v52 = vadd.f32 %v2602_v51, %v2598_v50 }
0x2b55   :  { %4714 = vtanh.f32 %v2604_v52 }
0x2b5f   :  { %v4715_v54 = vpop.eup %4714 }
0x2b60   :  { %v2606_v55 = vmul.f32 %v4715_v54, %v4713_v53  ;;  %v2845_v54 = vcombine.high %v3847_v49, %v3847_v49 }
0x2b62   :  { %2611 = vrot.lane.b32.xlu1 %v2606_v55, %s4849_s22  ;;  %v2607_v56 = vadd.f32 %v2606_v55, %v2495_v33 }
0x2bd4   :  { %v2612_v57 = vpop.permute.xlu1 %2611 }
0x2bd5   :  { %3838 = vmatmul.mubr.msk.f32.vlgmr.msra.gmra.mrb[22].mxu1 %vm46_vm0, %v2612_v57 }
0x2bd6   :  { %4314 = vmatpush1.bf16.msra.mxu1 %v4900_v8  ;;  %2914 = vmatprep.mubr.f32.mxu1 %v4848_v7 }
0x2bd7   :  { %4316 = vmatprep.subr.bf16.mxu1 %v4902_v9 }
0x2bda   :  { %4318 = vmatpush1.bf16.msra.mxu1 %v4919_v14 }
0x2bdb   :  { %4320 = vmatprep.subr.bf16.mxu1 %v4923_v15 }
0x2bde   :  { %4322 = vmatpush1.bf16.msra.mxu1 %v4939_v20 }
0x2bdf   :  { %4324 = vmatprep.subr.bf16.mxu1 %v4943_v21 }
0x2be2   :  { %4326 = vmatpush1.bf16.msra.mxu1 %v4953_v24 }
0x2be3   :  { %4344 = vmatprep.subr.bf16.mxu1 %v4887_v3 }
0x2ca8   :  { %v2692_v59 = vpop.f32.mrb[22].mxu1 }
0x2ca9   :  { %v2693_v60 = vadd.f32 %v3837_v58, %v2692_v59  ;;  %v2694_v61 = vpop.f32.mrb[23].mxu1 }
0x2caa   :  { %v2695_v0 = vadd.f32 %v2694_v61, %v2621_v63 }
0x2cab   :  { %v3839_v62 = vmul.f32 -1.442695, %v2693_v60 }
0x2cac   :  { %v3840_v10 = vmul.f32 -1.442695, %v2695_v0 }
0x2cad   :  { %4716 = vpow2.f32 %v3839_v62 }
0x2cae   :  { %4718 = vtanh.f32 %v2695_v0 }
0x2cb7   :  { %v4717_v1 = vpop.eup %4716 }
0x2cb8   :  { %v2700_v2 = vadd.f32 1.0, %v4717_v1  ;;  %v4719_v4 = vpop.eup %4718 }
0x2cba   :  { %4720 = vrcp.f32 %v2700_v2 }
0x2cbb   :  { %4722 = vpow2.f32 %v3840_v10 }
0x2cc4   :  { %v4721_v5 = vpop.eup %4720 }
0x2cc5   :  { %v2711_v6 = vmul.f32 %v4721_v5, %v4719_v4  ;;  %v4723_v11 = vpop.eup %4722  ;;  %v2710_v13 = vmul.f32 %v4721_v5, %v2604_v52 }
0x2cc6   :  { %v2707_v12 = vadd.f32 1.0, %v4723_v11 }
0x2cc7   :  { %2713 = vrot.lane.b32.xlu0 %v2711_v6, %s4849_s22 }
0x2cc8   :  { %4724 = vrcp.f32 %v2707_v12  ;;  %v3852_v12 = vld.sshfl [vmem:[%s5467_s0 + $0x68] sm:$0x33 pattern:$0x76325410] }
0x2cd2   :  { %v4725_v18 = vpop.eup %4724 }
0x2d39   :  { %v2714_v16 = vpop.permute.xlu0 %2713 }
0x2d3a   :  { %v2716_v17 = vadd.f32 %v2714_v16, %v2710_v13 }
0x2d3c   :  { %4726 = vtanh.f32 %v2716_v17 }
0x2d46   :  { %v4727_v19 = vpop.eup %4726 }
0x2d47   :  { %v2718_v22 = vmul.f32 %v4727_v19, %v4725_v18  ;;  %v2957_v19 = vcombine.high %v3852_v12, %v3852_v12 }
0x2d49   :  { %2723 = vrot.lane.b32.xlu1 %v2718_v22, %s4849_s22  ;;  %v2719_v23 = vadd.f32 %v2718_v22, %v2607_v56 }
0x2dbb   :  { %v2724_v25 = vpop.permute.xlu1 %2723 }
0x2dbc   :  { %3843 = vmatmul.mubr.msk.f32.vlgmr.msra.gmra.mrb[24].mxu0 %vm46_vm0, %v2724_v25 }
0x2dbd   :  { %4330 = vmatpush1.bf16.msra.mxu0 %v4900_v8  ;;  %3026 = vmatprep.mubr.f32.mxu0 %v4848_v7 }
0x2dbe   :  { %4332 = vmatprep.subr.bf16.mxu0 %v4902_v9 }
0x2dc1   :  { %4334 = vmatpush1.bf16.msra.mxu0 %v4919_v14 }
0x2dc2   :  { %4336 = vmatprep.subr.bf16.mxu0 %v4923_v15 }
0x2dc5   :  { %4338 = vmatpush1.bf16.msra.mxu0 %v4939_v20 }
0x2dc6   :  { %4340 = vmatprep.subr.bf16.mxu0 %v4943_v21 }
0x2dc9   :  { %4342 = vmatpush1.bf16.msra.mxu0 %v4953_v24 }
0x2dca   :  { %4360 = vmatprep.subr.bf16.mxu0 %v4887_v3 }
0x2e8f   :  { %v2804_v27 = vpop.f32.mrb[24].mxu0 }
0x2e90   :  { %v2805_v28 = vadd.f32 %v3842_v26, %v2804_v27  ;;  %v2806_v29 = vpop.f32.mrb[25].mxu0 }
0x2e91   :  { %v2807_v32 = vadd.f32 %v2806_v29, %v2733_v31 }
0x2e92   :  { %v3844_v30 = vmul.f32 -1.442695, %v2805_v28 }
0x2e93   :  { %v3845_v38 = vmul.f32 -1.442695, %v2807_v32 }
0x2e94   :  { %4728 = vpow2.f32 %v3844_v30 }
0x2e95   :  { %4730 = vtanh.f32 %v2807_v32 }
0x2e9e   :  { %v4729_v33 = vpop.eup %4728 }
0x2e9f   :  { %v2812_v34 = vadd.f32 1.0, %v4729_v33  ;;  %v4731_v35 = vpop.eup %4730 }
0x2ea1   :  { %4732 = vrcp.f32 %v2812_v34 }
0x2ea2   :  { %4734 = vpow2.f32 %v3845_v38 }
0x2eab   :  { %v4733_v36 = vpop.eup %4732 }
0x2eac   :  { %v2823_v37 = vmul.f32 %v4733_v36, %v4731_v35  ;;  %v4735_v39 = vpop.eup %4734  ;;  %v2822_v41 = vmul.f32 %v4733_v36, %v2716_v17 }
0x2ead   :  { %v2819_v40 = vadd.f32 1.0, %v4735_v39 }
0x2eae   :  { %2825 = vrot.lane.b32.xlu0 %v2823_v37, %s4849_s22 }
0x2eaf   :  { %4736 = vrcp.f32 %v2819_v40  ;;  %v3857_v40 = vld.sshfl [vmem:[%s5467_s0 + $0x6c] sm:$0x33 pattern:$0x76325410] }
0x2eb9   :  { %v4737_v44 = vpop.eup %4736 }
0x2f20   :  { %v2826_v42 = vpop.permute.xlu0 %2825 }
0x2f21   :  { %v2828_v43 = vadd.f32 %v2826_v42, %v2822_v41 }
0x2f23   :  { %4738 = vtanh.f32 %v2828_v43 }
0x2f2d   :  { %v4739_v45 = vpop.eup %4738 }
0x2f2e   :  { %v2830_v46 = vmul.f32 %v4739_v45, %v4737_v44  ;;  %v3069_v45 = vcombine.high %v3857_v40, %v3857_v40 }
0x2f30   :  { %2835 = vrot.lane.b32.xlu1 %v2830_v46, %s4849_s22  ;;  %v2831_v47 = vadd.f32 %v2830_v46, %v2719_v23 }
0x2fa2   :  { %v2836_v48 = vpop.permute.xlu1 %2835 }
0x2fa3   :  { %3848 = vmatmul.mubr.msk.f32.vlgmr.msra.gmra.mrb[24].mxu1 %vm46_vm0, %v2836_v48 }
0x2fa4   :  { %4346 = vmatpush1.bf16.msra.mxu1 %v4900_v8  ;;  %3138 = vmatprep.mubr.f32.mxu1 %v4848_v7 }
0x2fa5   :  { %4348 = vmatprep.subr.bf16.mxu1 %v4902_v9 }
0x2fa8   :  { %4350 = vmatpush1.bf16.msra.mxu1 %v4919_v14 }
0x2fa9   :  { %4352 = vmatprep.subr.bf16.mxu1 %v4923_v15 }
0x2fac   :  { %4354 = vmatpush1.bf16.msra.mxu1 %v4939_v20 }
0x2fad   :  { %4356 = vmatprep.subr.bf16.mxu1 %v4943_v21 }
0x2fb0   :  { %4358 = vmatpush1.bf16.msra.mxu1 %v4953_v24 }
0x2fb1   :  { %4376 = vmatprep.subr.bf16.mxu1 %v4887_v3 }
0x3076   :  { %v2916_v50 = vpop.f32.mrb[24].mxu1 }
0x3077   :  { %v2917_v51 = vadd.f32 %v3847_v49, %v2916_v50  ;;  %v2918_v52 = vpop.f32.mrb[25].mxu1 }
0x3078   :  { %v2919_v55 = vadd.f32 %v2918_v52, %v2845_v54 }
0x3079   :  { %v3849_v53 = vmul.f32 -1.442695, %v2917_v51 }
0x307a   :  { %v3850_v61 = vmul.f32 -1.442695, %v2919_v55 }
0x307b   :  { %4740 = vpow2.f32 %v3849_v53 }
0x307c   :  { %4742 = vtanh.f32 %v2919_v55 }
0x3085   :  { %v4741_v56 = vpop.eup %4740 }
0x3086   :  { %v2924_v57 = vadd.f32 1.0, %v4741_v56  ;;  %v4743_v58 = vpop.eup %4742 }
0x3088   :  { %4744 = vrcp.f32 %v2924_v57 }
0x3089   :  { %4746 = vpow2.f32 %v3850_v61 }
0x3092   :  { %v4745_v59 = vpop.eup %4744 }
0x3093   :  { %v2935_v60 = vmul.f32 %v4745_v59, %v4743_v58  ;;  %v4747_v62 = vpop.eup %4746  ;;  %v2934_v0 = vmul.f32 %v4745_v59, %v2828_v43 }
0x3094   :  { %v2931_v63 = vadd.f32 1.0, %v4747_v62  ;;  %v3862_v62 = vld.sshfl [vmem:[%s5467_s0 + $0x70] sm:$0x33 pattern:$0x76325410] }
0x3095   :  { %2937 = vrot.lane.b32.xlu0 %v2935_v60, %s4849_s22 }
0x3096   :  { %4748 = vrcp.f32 %v2931_v63 }
0x30a0   :  { %v4749_v4 = vpop.eup %4748 }
0x3107   :  { %v2938_v1 = vpop.permute.xlu0 %2937 }
0x3108   :  { %v2940_v2 = vadd.f32 %v2938_v1, %v2934_v0 }
0x310a   :  { %4750 = vtanh.f32 %v2940_v2 }
0x3114   :  { %v4751_v5 = vpop.eup %4750 }
0x3115   :  { %v2942_v6 = vmul.f32 %v4751_v5, %v4749_v4  ;;  %v3181_v4 = vcombine.high %v3862_v62, %v3862_v62 }
0x3117   :  { %2947 = vrot.lane.b32.xlu1 %v2942_v6, %s4849_s22  ;;  %v2943_v10 = vadd.f32 %v2942_v6, %v2831_v47 }
0x3189   :  { %v2948_v11 = vpop.permute.xlu1 %2947 }
0x318a   :  { %3853 = vmatmul.mubr.msk.f32.vlgmr.msra.gmra.mrb[26].mxu0 %vm46_vm0, %v2948_v11 }
0x318b   :  { %4362 = vmatpush1.bf16.msra.mxu0 %v4900_v8  ;;  %3250 = vmatprep.mubr.f32.mxu0 %v4848_v7 }
0x318c   :  { %4364 = vmatprep.subr.bf16.mxu0 %v4902_v9 }
0x318f   :  { %4366 = vmatpush1.bf16.msra.mxu0 %v4919_v14 }
0x3190   :  { %4368 = vmatprep.subr.bf16.mxu0 %v4923_v15 }
0x3193   :  { %4370 = vmatpush1.bf16.msra.mxu0 %v4939_v20 }
0x3194   :  { %4372 = vmatprep.subr.bf16.mxu0 %v4943_v21 }
0x3197   :  { %4374 = vmatpush1.bf16.msra.mxu0 %v4953_v24 }
0x3198   :  { %4392 = vmatprep.subr.bf16.mxu0 %v4887_v3 }
0x325d   :  { %v3028_v13 = vpop.f32.mrb[26].mxu0 }
0x325e   :  { %v3029_v16 = vadd.f32 %v3852_v12, %v3028_v13  ;;  %v3030_v17 = vpop.f32.mrb[27].mxu0 }
0x325f   :  { %v3031_v22 = vadd.f32 %v3030_v17, %v2957_v19 }
0x3260   :  { %v3854_v18 = vmul.f32 -1.442695, %v3029_v16 }
0x3261   :  { %v3855_v29 = vmul.f32 -1.442695, %v3031_v22 }
0x3262   :  { %4752 = vpow2.f32 %v3854_v18 }
0x3263   :  { %4754 = vtanh.f32 %v3031_v22 }
0x326c   :  { %v4753_v23 = vpop.eup %4752 }
0x326d   :  { %v3036_v25 = vadd.f32 1.0, %v4753_v23  ;;  %v4755_v26 = vpop.eup %4754 }
0x326f   :  { %4756 = vrcp.f32 %v3036_v25 }
0x3270   :  { %4758 = vpow2.f32 %v3855_v29 }
0x3279   :  { %v4757_v27 = vpop.eup %4756 }
0x327a   :  { %v3047_v28 = vmul.f32 %v4757_v27, %v4755_v26  ;;  %v4759_v30 = vpop.eup %4758  ;;  %v3046_v32 = vmul.f32 %v4757_v27, %v2940_v2 }
0x327b   :  { %v3043_v31 = vadd.f32 1.0, %v4759_v30  ;;  %v3867_v30 = vld.sshfl [vmem:[%s5467_s0 + $0x74] sm:$0x33 pattern:$0x76325410] }
0x327c   :  { %3049 = vrot.lane.b32.xlu0 %v3047_v28, %s4849_s22 }
0x327d   :  { %4760 = vrcp.f32 %v3043_v31 }
0x3287   :  { %v4761_v35 = vpop.eup %4760 }
0x32ee   :  { %v3050_v33 = vpop.permute.xlu0 %3049 }
0x32ef   :  { %v3052_v34 = vadd.f32 %v3050_v33, %v3046_v32 }
0x32f1   :  { %4762 = vtanh.f32 %v3052_v34 }
0x32fb   :  { %v4763_v36 = vpop.eup %4762 }
0x32fc   :  { %v3054_v37 = vmul.f32 %v4763_v36, %v4761_v35 }
0x32fe   :  { %3059 = vrot.lane.b32.xlu1 %v3054_v37, %s4849_s22  ;;  %v3055_v38 = vadd.f32 %v3054_v37, %v2943_v10 }
0x3370   :  { %v3060_v39 = vpop.permute.xlu1 %3059 }
0x3371   :  { %3858 = vmatmul.mubr.msk.f32.vlgmr.msra.gmra.mrb[26].mxu1 %vm46_vm0, %v3060_v39 }
0x3372   :  { %4378 = vmatpush1.bf16.msra.mxu1 %v4900_v8  ;;  %3362 = vmatprep.mubr.f32.mxu1 %v4848_v7 }
0x3373   :  { %4380 = vmatprep.subr.bf16.mxu1 %v4902_v9 }
0x3376   :  { %4382 = vmatpush1.bf16.msra.mxu1 %v4919_v14 }
0x3377   :  { %4384 = vmatprep.subr.bf16.mxu1 %v4923_v15 }
0x337a   :  { %4386 = vmatpush1.bf16.msra.mxu1 %v4939_v20 }
0x337b   :  { %4388 = vmatprep.subr.bf16.mxu1 %v4943_v21 }
0x337e   :  { %4390 = vmatpush1.bf16.msra.mxu1 %v4953_v24 }
0x337f   :  { %4408 = vmatprep.subr.bf16.mxu1 %v4887_v3 }
0x3444   :  { %v3140_v41 = vpop.f32.mrb[26].mxu1 }
0x3445   :  { %v3141_v42 = vadd.f32 %v3857_v40, %v3140_v41  ;;  %v3142_v43 = vpop.f32.mrb[27].mxu1 }
0x3446   :  { %v3143_v46 = vadd.f32 %v3142_v43, %v3069_v45 }
0x3447   :  { %v3859_v44 = vmul.f32 -1.442695, %v3141_v42 }
0x3448   :  { %v3860_v3 = vmul.f32 -1.442695, %v3143_v46 }
0x3449   :  { %4764 = vpow2.f32 %v3859_v44 }
0x344a   :  { %4766 = vtanh.f32 %v3143_v46  ;;  %v3872_v46 = vld.sshfl [vmem:[%s5467_s0 + $0x78] sm:$0x33 pattern:$0x76325410] }
0x3453   :  { %v4765_v47 = vpop.eup %4764 }
0x3454   :  { %v3148_v48 = vadd.f32 1.0, %v4765_v47  ;;  %v4767_v49 = vpop.eup %4766 }
0x3456   :  { %4768 = vrcp.f32 %v3148_v48 }
0x3457   :  { %4770 = vpow2.f32 %v3860_v3 }
0x3460   :  { %v4769_v50 = vpop.eup %4768 }
0x3461   :  { %v3159_v51 = vmul.f32 %v4769_v50, %v4767_v49  ;;  %v4771_v52 = vpop.eup %4770  ;;  %v3158_v54 = vmul.f32 %v4769_v50, %v3052_v34 }
0x3462   :  { %v3155_v53 = vadd.f32 1.0, %v4771_v52 }
0x3463   :  { %3161 = vrot.lane.b32.xlu0 %v3159_v51, %s4849_s22  ;;  %v3405_v51 = vcombine.high %v3872_v46, %v3872_v46 }
0x3464   :  { %4772 = vrcp.f32 %v3155_v53 }
0x346e   :  { %v4773_v57 = vpop.eup %4772 }
0x34d5   :  { %v3162_v55 = vpop.permute.xlu0 %3161 }
0x34d6   :  { %v3164_v56 = vadd.f32 %v3162_v55, %v3158_v54 }
0x34d8   :  { %4774 = vtanh.f32 %v3164_v56 }
0x34e2   :  { %v4775_v58 = vpop.eup %4774 }
0x34e3   :  { %v3166_v59 = vmul.f32 %v4775_v58, %v4773_v57 }
0x34e5   :  { %3171 = vrot.lane.b32.xlu1 %v3166_v59, %s4849_s22  ;;  %v3167_v60 = vadd.f32 %v3166_v59, %v3055_v38 }
0x3557   :  { %v3172_v61 = vpop.permute.xlu1 %3171 }
0x3558   :  { %3863 = vmatmul.mubr.msk.f32.vlgmr.msra.gmra.mrb[28].mxu0 %vm46_vm0, %v3172_v61 }
0x3559   :  { %4394 = vmatpush1.bf16.msra.mxu0 %v4900_v8  ;;  %3474 = vmatprep.mubr.f32.mxu0 %v4848_v7 }
0x355a   :  { %4396 = vmatprep.subr.bf16.mxu0 %v4902_v9 }
0x355d   :  { %4398 = vmatpush1.bf16.msra.mxu0 %v4919_v14 }
0x355e   :  { %4400 = vmatprep.subr.bf16.mxu0 %v4923_v15 }
0x3561   :  { %4402 = vmatpush1.bf16.msra.mxu0 %v4939_v20 }
0x3562   :  { %4404 = vmatprep.subr.bf16.mxu0 %v4943_v21 }
0x3565   :  { %4406 = vmatpush1.bf16.msra.mxu0 %v4953_v24 }
0x362b   :  { %v3252_v63 = vpop.f32.mrb[28].mxu0 }
0x362c   :  { %v3253_v0 = vadd.f32 %v3862_v62, %v3252_v63  ;;  %v3254_v1 = vpop.f32.mrb[29].mxu0 }
0x362d   :  { %v3255_v5 = vadd.f32 %v3254_v1, %v3181_v4 }
0x362e   :  { %v3864_v2 = vmul.f32 -1.442695, %v3253_v0 }
0x362f   :  { %v3865_v16 = vmul.f32 -1.442695, %v3255_v5 }
0x3630   :  { %4776 = vpow2.f32 %v3864_v2 }
0x3631   :  { %4778 = vtanh.f32 %v3255_v5  ;;  %v3877_v5 = vld.sshfl [vmem:[%s5467_s0 + $0x7c] sm:$0x33 pattern:$0x76325410] }
0x363a   :  { %v4777_v6 = vpop.eup %4776 }
0x363b   :  { %v3260_v10 = vadd.f32 1.0, %v4777_v6  ;;  %v4779_v11 = vpop.eup %4778 }
0x363d   :  { %4780 = vrcp.f32 %v3260_v10 }
0x363e   :  { %4782 = vpow2.f32 %v3865_v16 }
0x3647   :  { %v4781_v12 = vpop.eup %4780 }
0x3648   :  { %v3271_v13 = vmul.f32 %v4781_v12, %v4779_v11  ;;  %v4783_v17 = vpop.eup %4782  ;;  %v3270_v19 = vmul.f32 %v4781_v12, %v3164_v56 }
0x3649   :  { %v3267_v18 = vadd.f32 1.0, %v4783_v17 }
0x364a   :  { %3273 = vrot.lane.b32.xlu0 %v3271_v13, %s4849_s22  ;;  %v3517_v13 = vcombine.high %v3877_v5, %v3877_v5 }
0x364b   :  { %4784 = vrcp.f32 %v3267_v18 }
0x3655   :  { %v4785_v25 = vpop.eup %4784 }
0x36bc   :  { %v3274_v22 = vpop.permute.xlu0 %3273 }
0x36bd   :  { %v3276_v23 = vadd.f32 %v3274_v22, %v3270_v19 }
0x36bf   :  { %4786 = vtanh.f32 %v3276_v23 }
0x36c9   :  { %v4787_v26 = vpop.eup %4786 }
0x36ca   :  { %v3278_v27 = vmul.f32 %v4787_v26, %v4785_v25  ;;  %v3617_v25 = vld [vmem:[%s5469_s2] sm:$0xff]  ;;  %v3618_v26 = vld [vmem:[%s5469_s2 + $0x8] sm:$0xff] }
0x36cc   :  { %3283 = vrot.lane.b32.xlu1 %v3278_v27, %s4849_s22  ;;  %v3279_v28 = vadd.f32 %v3278_v27, %v3167_v60  ;;  %v3619_v27 = vld [vmem:[%s5469_s2 + $0x10] sm:$0xff] }
0x373e   :  { %v3284_v29 = vpop.permute.xlu1 %3283 }
0x373f   :  { %3868 = vmatmul.mubr.msk.f32.vlgmr.msra.gmra.mrb[28].mxu1 %vm46_vm0, %v3284_v29  ;;  %v4424_v29 = vpack.c.bf16 %v3618_v26, %v3617_v25 }
0x3740   :  { %4410 = vmatpush1.bf16.msra.mxu1 %v4900_v8  ;;  %3586 = vmatprep.mubr.f32.mxu1 %v4848_v7 }
0x3741   :  { %4412 = vmatprep.subr.bf16.mxu1 %v4902_v9  ;;  %v3293_v9 = vcombine.high %v3867_v30, %v3867_v30 }
0x3744   :  { %4414 = vmatpush1.bf16.msra.mxu1 %v4919_v14 }
0x3745   :  { %4416 = vmatprep.subr.bf16.mxu1 %v4923_v15 }
0x3748   :  { %4418 = vmatpush1.bf16.msra.mxu1 %v4939_v20 }
0x3749   :  { %4420 = vmatprep.subr.bf16.mxu1 %v4943_v21 }
0x374c   :  { %4422 = vmatpush1.bf16.msra.mxu1 %v4953_v24 }
0x3812   :  { %v3364_v31 = vpop.f32.mrb[28].mxu1 }
0x3813   :  { %v3365_v8 = vadd.f32 %v3867_v30, %v3364_v31  ;;  %v3366_v32 = vpop.f32.mrb[29].mxu1  ;;  %v3620_v30 = vld [vmem:[%s5469_s2 + $0x18] sm:$0xff] }
0x3814   :  { %v3367_v34 = vadd.f32 %v3366_v32, %v3293_v9  ;;  %v4427_v31 = vpack.c.bf16 %v3620_v30, %v3619_v27  ;;  %v3622_v32 = vld [vmem:[%s5469_s2 + $0x28] sm:$0xff]  ;;  %v3623_v9 = vld [vmem:[%s5469_s2 + $0x30] sm:$0xff] }
0x3815   :  { %v3869_v33 = vmul.f32 -1.442695, %v3365_v8  ;;  %v3621_v8 = vld [vmem:[%s5469_s2 + $0x20] sm:$0xff] }
0x3816   :  { %v3870_v24 = vmul.f32 -1.442695, %v3367_v34 }
0x3817   :  { %4788 = vpow2.f32 %v3869_v33  ;;  %v4430_v33 = vpack.c.bf16 %v3622_v32, %v3621_v8 }
0x3818   :  { %4790 = vtanh.f32 %v3367_v34 }
0x3821   :  { %v4789_v14 = vpop.eup %4788 }
0x3822   :  { %v3372_v35 = vadd.f32 1.0, %v4789_v14  ;;  %v4791_v15 = vpop.eup %4790 }
0x3824   :  { %4792 = vrcp.f32 %v3372_v35 }
0x3825   :  { %4794 = vpow2.f32 %v3870_v24 }
0x382e   :  { %v4793_v20 = vpop.eup %4792 }
0x382f   :  { %v3383_v21 = vmul.f32 %v4793_v20, %v4791_v15  ;;  %v4795_v36 = vpop.eup %4794  ;;  %v3382_v38 = vmul.f32 %v4793_v20, %v3276_v23 }
0x3830   :  { %v3379_v37 = vadd.f32 1.0, %v4795_v36 }
0x3831   :  { %3385 = vrot.lane.b32.xlu0 %v3383_v21, %s4849_s22 }
0x3832   :  { %4796 = vrcp.f32 %v3379_v37 }
0x383c   :  { %v4797_v41 = vpop.eup %4796 }
0x38a3   :  { %v3386_v39 = vpop.permute.xlu0 %3385 }
0x38a4   :  { %v3388_v40 = vadd.f32 %v3386_v39, %v3382_v38 }
0x38a6   :  { %4798 = vtanh.f32 %v3388_v40 }
0x38b0   :  { %v4799_v42 = vpop.eup %4798 }
0x38b1   :  { %v3390_v43 = vmul.f32 %v4799_v42, %v4797_v41  ;;  %v3881_v42 = vld [vmem:[%s5470_s3] ss:$0 sm:$0xff] }
0x38b3   :  { %3395 = vrot.lane.b32.xlu1 %v3390_v43, %s4849_s22  ;;  %v3391_v44 = vadd.f32 %v3390_v43, %v3279_v28  ;;  %v4850_v28 = vmov 0.0|0.0  }
0x38b4   :  { %4423 = vmatprep.subr.bf16.mxu0 %v4850_v28 }
0x3925   :  { %v3396_v45 = vpop.permute.xlu1 %3395 }
0x3926   :  { %3873 = vmatmul.mubr.msk.f32.vlgmr.msra.gmra.mrb[30].mxu0 %vm46_vm0, %v3396_v45 }
0x3927   :  { %3908 = vmatprep.mubr.msk.f32.mxu0 %vm4851_vm1, %v4848_v7  ;;  %4425 = vmatpush3.bf16.msra.mxu0 %v4424_v29  ;;  %v3624_v7 = vld [vmem:[%s5469_s2 + $0x38] sm:$0xff] }
0x3928   :  { %4426 = vmatprep.subr.bf16.mxu0 %v4850_v28  ;;  %v4433_v34 = vpack.c.bf16 %v3624_v7, %v3623_v9 }
0x392b   :  { %4428 = vmatpush3.bf16.msra.mxu0 %v4427_v31 }
0x392c   :  { %4429 = vmatprep.subr.bf16.mxu0 %v4850_v28 }
0x392f   :  { %4431 = vmatpush3.bf16.msra.mxu0 %v4430_v33 }
0x3930   :  { %4432 = vmatprep.subr.bf16.mxu0 %v4850_v28 }
0x3933   :  { %4434 = vmatpush3.bf16.msra.mxu0 %v4433_v34 }
0x39f9   :  { %v3476_v47 = vpop.f32.mrb[30].mxu0 }
0x39fa   :  { %v3477_v48 = vadd.f32 %v3872_v46, %v3476_v47  ;;  %v3478_v49 = vpop.f32.mrb[31].mxu0 }
0x39fb   :  { %v3479_v3 = vadd.f32 %v3478_v49, %v3405_v51 }
0x39fc   :  { %v3874_v50 = vmul.f32 -1.442695, %v3477_v48 }
0x39fd   :  { %v3875_v57 = vmul.f32 -1.442695, %v3479_v3 }
0x39fe   :  { %4800 = vpow2.f32 %v3874_v50 }
0x39ff   :  { %4802 = vtanh.f32 %v3479_v3 }
0x3a08   :  { %v4801_v52 = vpop.eup %4800 }
0x3a09   :  { %v3484_v53 = vadd.f32 1.0, %v4801_v52  ;;  %v4803_v54 = vpop.eup %4802 }
0x3a0b   :  { %4804 = vrcp.f32 %v3484_v53 }
0x3a0c   :  { %4806 = vpow2.f32 %v3875_v57 }
0x3a15   :  { %v4805_v55 = vpop.eup %4804 }
0x3a16   :  { %v3495_v56 = vmul.f32 %v4805_v55, %v4803_v54  ;;  %v4807_v58 = vpop.eup %4806  ;;  %v3494_v60 = vmul.f32 %v4805_v55, %v3388_v40 }
0x3a17   :  { %v3491_v59 = vadd.f32 1.0, %v4807_v58 }
0x3a18   :  { %3497 = vrot.lane.b32.xlu0 %v3495_v56, %s4849_s22 }
0x3a19   :  { %4808 = vrcp.f32 %v3491_v59 }
0x3a23   :  { %v4809_v63 = vpop.eup %4808 }
0x3a8a   :  { %v3498_v61 = vpop.permute.xlu0 %3497 }
0x3a8b   :  { %v3500_v62 = vadd.f32 %v3498_v61, %v3494_v60 }
0x3a8d   :  { %4810 = vtanh.f32 %v3500_v62 }
0x3a97   :  { %v4811_v0 = vpop.eup %4810 }
0x3a98   :  { %v3502_v1 = vmul.f32 %v4811_v0, %v4809_v63 }
0x3a9a   :  { %3507 = vrot.lane.b32.xlu1 %v3502_v1, %s4849_s22  ;;  %v3503_v2 = vadd.f32 %v3502_v1, %v3391_v44 }
0x3b0c   :  { %v3508_v4 = vpop.permute.xlu1 %3507 }
0x3b0d   :  { %3878 = vmatmul.mubr.msk.f32.vlgmr.msra.gmra.mrb[30].mxu1 %vm46_vm0, %v3508_v4 }
0x3be0   :  { %v3588_v6 = vpop.f32.mrb[30].mxu1 }
0x3be1   :  { %v3589_v10 = vadd.f32 %v3877_v5, %v3588_v6  ;;  %v3590_v11 = vpop.f32.mrb[31].mxu1 }
0x3be2   :  { %v3591_v16 = vadd.f32 %v3590_v11, %v3517_v13 }
0x3be3   :  { %v3879_v12 = vmul.f32 -1.442695, %v3589_v10 }
0x3be4   :  { %v3880_v14 = vmul.f32 -1.442695, %v3591_v16 }
0x3be5   :  { %4812 = vpow2.f32 %v3879_v12 }
0x3be6   :  { %4814 = vtanh.f32 %v3591_v16 }
0x3bef   :  { %v4813_v17 = vpop.eup %4812 }
0x3bf0   :  { %v3596_v18 = vadd.f32 1.0, %v4813_v17  ;;  %v4815_v19 = vpop.eup %4814 }
0x3bf2   :  { %4816 = vrcp.f32 %v3596_v18 }
0x3bf3   :  { %4818 = vpow2.f32 %v3880_v14 }
0x3bfc   :  { %v4817_v22 = vpop.eup %4816 }
0x3bfd   :  { %v3607_v23 = vmul.f32 %v4817_v22, %v4815_v19  ;;  %v4819_v35 = vpop.eup %4818  ;;  %v3606_v20 = vmul.f32 %v4817_v22, %v3500_v62 }
0x3bfe   :  { %v3603_v15 = vadd.f32 1.0, %v4819_v35 }
0x3bff   :  { %3609 = vrot.lane.b32.xlu0 %v3607_v23, %s4849_s22 }
0x3c00   :  { %4820 = vrcp.f32 %v3603_v15 }
0x3c0a   :  { %v4821_v36 = vpop.eup %4820 }
0x3c71   :  { %v3610_v21 = vpop.permute.xlu0 %3609 }
0x3c72   :  { %v3612_v24 = vadd.f32 %v3610_v21, %v3606_v20 }
0x3c74   :  { %4822 = vtanh.f32 %v3612_v24 }
0x3c7e   :  { %v4823_v37 = vpop.eup %4822 }
0x3c7f   :  { %v3614_v38 = vmul.f32 %v4823_v37, %v4821_v36 }
0x3c81   :  { %v3615_v39 = vadd.f32 %v3614_v38, %v3503_v2 }
0x3c83   :  { %v3616_v40 = vmul.f32 0.03125, %v3615_v39 }
0x3c85   :  { %3633 = vrot.lane.b32.xlu1 %v3616_v40, %s4849_s22 }
0x3cf7   :  { %v3634_v41 = vpop.permute.xlu1 %3633 }
0x3cf8   :  { %3909 = vmatmul.mubr.msk.f32.vlgmr.msra.gmra.mrb[32].mxu0 %vm46_vm0, %v3634_v41 }
0x3dcb   :  { %v3703_v43 = vpop.f32.mrb[32].mxu0 }
0x3dcc   :  { %v3704_v44 = vadd.f32 %v3881_v42, %v3703_v43  ;;  %v3910_v45 = vpop.f32.mrb[33].mxu0 }
0x3dce   :  { %3708 = vst.msk [vmem:[#allocation2] sm:$0x3] %vm3707_vm2, %v3704_v44 }
0x3dcf   :  { %4835 = shalt.err (!%p4832_p4)
}
0x3dd0   :  { %s4836_s27 = scalar_lea.hbm %s5471_s4, 32 }
0x3dd1   :  { %p4837_p5 = scmp.ne.s32.totalorder %s5471_s4, %s4836_s27  ;;  %p4840_p6 = scmp.lt.u32.totalorder %s4836_s27, %s5471_s4 }
0x3dd3   :  { %p4842_p7 = pnand %p4840_p6, %p4837_p5 }
0x3dd5   :  { %4845 = shalt.err (!%p4842_p7)
}
0x3dd6   :  { %3718 = dma.vmem_to_hbm [thread:$0]  %s3716_s24, 32, %s5471_s4, [#allocation3]  }
0x3dd7   :  { %4846 = dma.done.wait [#allocation3], 32  }
0x3dd8   :  { %4847 = vsyncadd [#allocation3], 4294967264 }
0x3dd9   :  { %3722 = vsyncpa [#allocation3], 1 }

</bundles_post_ra>
